<compile_context>
chip_gen: v7x
topology: tpu7x:2x2x1
jax: 0.10.0
libtpu: 0.0.40
codegen_flags: <defaults>
</compile_context>

<pallas_src>
import functools
import numpy as np
import jax
import jax.numpy as jnp
from jax import lax
from jax.experimental import pallas as pl
from jax.experimental.pallas import tpu as pltpu


def _relative_position_index(window_size):
    """Numpy port of the buffer computed in WindowAttention3D.__init__."""
    Wd, Wh, Ww = window_size
    coords = np.stack(
        np.meshgrid(np.arange(Wd), np.arange(Wh), np.arange(Ww), indexing="ij")
    )                                                       # (3, Wd, Wh, Ww)
    coords_flatten = coords.reshape(3, -1)                  # (3, N)
    rel = coords_flatten[:, :, None] - coords_flatten[:, None, :]  # (3, N, N)
    rel = rel.transpose(1, 2, 0).copy()                     # (N, N, 3)
    rel[:, :, 0] += Wd - 1
    rel[:, :, 1] += Wh - 1
    rel[:, :, 2] += Ww - 1
    rel[:, :, 0] *= (2 * Wh - 1) * (2 * Ww - 1)
    rel[:, :, 1] *= (2 * Ww - 1)
    return rel.sum(-1)                                      # (N, N) int


def _window_attn_kernel(x_ref, wqkv_ref, bqkv_ref, bias_ref, mask_ref,
                        wproj_ref, bproj_ref, o_ref, qkv_scr, y_scr, *,
                        Bw, N, C, num_heads, nW):
    """One grid step = Bw windows. Everything lives in VMEM."""
    hd = C // num_heads
    R = Bw * N

    # Fused QKV projection for all Bw windows: (Bw*N, C) @ (C, 3C) on the MXU.
    # The qk scale is already folded into the Q columns of wqkv / bqkv.
    x = x_ref[...].reshape(R, C)                            # leading-dim collapse (free)
    qkv = jnp.dot(x, wqkv_ref[...], preferred_element_type=jnp.float32)
    qkv_scr[...] = (qkv + bqkv_ref[0]).astype(qkv_scr.dtype)

    # Per-window additive mask for this block. Window b_ uses mask[b_ % nW]; the block
    # start is a multiple of nW, so the nW resident masks simply repeat along the block.
    mask_blk = jnp.broadcast_to(mask_ref[...][None],
                                (Bw // nW, nW, N, N)).reshape(Bw, N, N)  # f32

    for h in range(num_heads):                              # static unroll over heads
        qh = qkv_scr[:, h * hd:(h + 1) * hd].reshape(Bw, N, hd)
        kh = qkv_scr[:, C + h * hd:C + (h + 1) * hd].reshape(Bw, N, hd)
        vh = qkv_scr[:, 2 * C + h * hd:2 * C + (h + 1) * hd].reshape(Bw, N, hd)

        # Batched-over-windows q @ k^T, f32 accumulation.
        logits = lax.dot_general(qh, kh, (((2,), (2,)), ((0,), (0,))),
                                 preferred_element_type=jnp.float32)     # (Bw, N, N)
        logits = logits + bias_ref[h][None] + mask_blk

        # Numerically-stable softmax; normalisation deferred past the PV matmul.
        m = jnp.max(logits, axis=-1, keepdims=True)
        p = jnp.exp(logits - m)                                          # (Bw, N, N)
        s = jnp.sum(p, axis=-1, keepdims=True)                           # (Bw, N, 1)
        out_h = lax.dot_general(p.astype(vh.dtype), vh,
                                (((2,), (1,)), ((0,), (0,))),
                                preferred_element_type=jnp.float32)      # (Bw, N, hd)
        out_h = out_h * pl.reciprocal(s, approx=True)                    # EUP, not VPU divide
        y_scr[:, h * hd:(h + 1) * hd] = out_h.reshape(R, hd).astype(y_scr.dtype)

    # Single output projection for all heads & windows: (Bw*N, C) @ (C, C).
    y = jnp.dot(y_scr[...], wproj_ref[...], preferred_element_type=jnp.float32)
    y = y + bproj_ref[0]
    o_ref[...] = y.reshape(Bw, N, C).astype(o_ref.dtype)


def window_attention_3d(x, params, rel_index, mask, num_heads, qk_scale=None,
                        compute_dtype=jnp.bfloat16, windows_per_step=8):
    """Pallas forward of WindowAttention3D (attn_drop/proj_drop = 0, eval mode)."""
    B_, N, C = x.shape
    assert C % num_heads == 0
    hd = C // num_heads
    scale = qk_scale if qk_scale is not None else hd ** (-0.5)

    if mask is None:
        mask = jnp.zeros((1, N, N), jnp.float32)
    nW = mask.shape[0]
    # PyTorch layout: b_ = batch_idx * nW + window_idx, so window index == b_ % nW.
    assert B_ % nW == 0, "B_ must be a multiple of num_windows (nW)"

    # Windows per grid step: a multiple of nW that divides B_. Amortises per-step
    # pipeline overhead and feeds the MXU Bw*N rows per matmul.
    Bw = nW
    cap = max(nW, min(windows_per_step, B_))
    while Bw * 2 <= cap and B_ % (Bw * 2) == 0:
        Bw *= 2
    grid = (B_ // Bw,)

    # Gather of the relative-position-bias table (pure indexing glue, done in JAX).
    table = params["rel_bias_table"].astype(jnp.float32)                 # (L, H)
    bias = table[rel_index.reshape(-1)].reshape(N, N, num_heads)
    bias = jnp.transpose(bias, (2, 0, 1)).astype(compute_dtype)          # (H, N, N)

    # Fold the qk scale into the Q columns of the QKV projection (f32 math, then bf16).
    wqkv = params["w_qkv"].astype(jnp.float32)                           # (C, 3C)
    bqkv = params["b_qkv"].astype(jnp.float32)                           # (3C,)
    wqkv = jnp.concatenate([wqkv[:, :C] * scale, wqkv[:, C:]], axis=1)
    bqkv = jnp.concatenate([bqkv[:C] * scale, bqkv[C:]])
    wqkv = wqkv.astype(compute_dtype)
    bqkv = bqkv.reshape(1, 3 * C).astype(jnp.float32)                    # biases stay f32
    wproj = params["w_proj"].astype(compute_dtype)                       # (C, C)
    bproj = params["b_proj"].reshape(1, C).astype(jnp.float32)
    mask = mask.astype(jnp.float32)                                      # keep -1e9 logits in f32
    x = x.astype(compute_dtype)                                          # bf16 HBM traffic

    kernel = functools.partial(_window_attn_kernel, Bw=Bw, N=N, C=C,
                               num_heads=num_heads, nW=nW)

    grid_spec = pltpu.PrefetchScalarGridSpec(
        num_scalar_prefetch=0,
        grid=grid,
        in_specs=[
            pl.BlockSpec((Bw, N, C), lambda g: (g, 0, 0)),               # Bw windows of x
            pl.BlockSpec((C, 3 * C), lambda g: (0, 0)),                  # qkv weight (resident)
            pl.BlockSpec((1, 3 * C), lambda g: (0, 0)),                  # qkv bias (resident)
            pl.BlockSpec((num_heads, N, N), lambda g: (0, 0, 0)),        # rel-pos bias (resident)
            pl.BlockSpec((nW, N, N), lambda g: (0, 0, 0)),               # all nW masks (resident)
            pl.BlockSpec((C, C), lambda g: (0, 0)),                      # proj weight (resident)
            pl.BlockSpec((1, C), lambda g: (0, 0)),                      # proj bias (resident)
        ],
        out_specs=pl.BlockSpec((Bw, N, C), lambda g: (g, 0, 0)),
        scratch_shapes=[
            pltpu.VMEM((Bw * N, 3 * C), compute_dtype),                  # staged qkv
            pltpu.VMEM((Bw * N, C), compute_dtype),                      # per-head outputs
        ],
    )

    itemsize = jnp.dtype(compute_dtype).itemsize
    cost = pl.CostEstimate(
        flops=2 * B_ * N * C * (3 * C + 2 * N + C),
        transcendentals=B_ * num_heads * N * N,
        bytes_accessed=(2 * B_ * N * C * itemsize
                        + (C * 3 * C + C * C + num_heads * N * N) * itemsize
                        + 4 * C * 4 + nW * N * N * 4),
    )

    return pl.pallas_call(
        kernel,
        out_shape=jax.ShapeDtypeStruct((B_, N, C), compute_dtype),
        grid_spec=grid_spec,
        compiler_params=pltpu.CompilerParams(
            dimension_semantics=("parallel",)),   # independent windows; 2 TCs on v7x
        cost_estimate=cost,
    )(x, wqkv, bqkv, bias, mask, wproj, bproj)


def reference_forward(x, params, rel_index, mask, num_heads, qk_scale=None):
    """Pure-JAX mirror of the PyTorch forward (for correctness checking)."""
    B_, N, C = x.shape
    nW = mask.shape[0]
    hd = C // num_heads
    scale = qk_scale if qk_scale is not None else hd ** (-0.5)
    qkv = x @ params["w_qkv"] + params["b_qkv"]
    qkv = qkv.reshape(B_, N, 3, num_heads, hd).transpose(2, 0, 3, 1, 4)
    q, k, v = qkv[0], qkv[1], qkv[2]
    q = q * scale
    attn = jnp.einsum("bhnd,bhmd->bhnm", q, k)
    bias = params["rel_bias_table"][rel_index.reshape(-1)].reshape(N, N, num_heads)
    bias = jnp.transpose(bias, (2, 0, 1))
    attn = attn + bias[None]
    attn = attn.reshape(B_ // nW, nW, num_heads, N, N) + mask[None, :, None]
    attn = attn.reshape(B_, num_heads, N, N)
    attn = jax.nn.softmax(attn, axis=-1)
    out = jnp.einsum("bhnm,bhmd->bhnd", attn, v)
    out = out.transpose(0, 2, 1, 3).reshape(B_, N, C)
    return out @ params["w_proj"] + params["b_proj"]


if __name__ == "__main__":
    # Config consistent with the module:
    #   dim = 32, window_size = (2, 4, 4) -> N = 32, num_heads = 4, qkv_bias = True
    dim = 32
    window_size = (2, 4, 4)
    num_heads = 4
    N = window_size[0] * window_size[1] * window_size[2]     # 32
    batch, nW = 8, 2
    B_ = batch * nW                                           # 16 = num_windows * B

    key = jax.random.PRNGKey(0)
    k_tab, k_wq, k_bq, k_wp, k_bp, k_x = jax.random.split(key, 6)

    table_len = (2 * window_size[0] - 1) * (2 * window_size[1] - 1) * (2 * window_size[2] - 1)
    params = {
        # trunc_normal_(std=0.02) approximated with a plain normal (deterministic init).
        "rel_bias_table": 0.02 * jax.random.normal(k_tab, (table_len, num_heads), jnp.float32),
        "w_qkv": 0.02 * jax.random.normal(k_wq, (dim, 3 * dim), jnp.float32),
        "b_qkv": 0.02 * jax.random.normal(k_bq, (3 * dim,), jnp.float32),
        "w_proj": 0.02 * jax.random.normal(k_wp, (dim, dim), jnp.float32),
        "b_proj": 0.02 * jax.random.normal(k_bp, (dim,), jnp.float32),
    }

    rel_index = jnp.asarray(_relative_position_index(window_size), dtype=jnp.int32)

    x = jax.random.normal(k_x, (B_, N, dim), jnp.float32)

    # (nW, N, N) additive mask (0 / very-negative), like the shifted-window mask.
    seg = (jnp.arange(N)[None, :] + 5 * jnp.arange(nW)[:, None]) % 3
    mask = jnp.where(seg[:, :, None] == seg[:, None, :], 0.0, -1e9).astype(jnp.float32)

    # Feed bf16 activations: the kernel keeps HBM traffic bf16 and accumulates in f32.
    x_bf16 = x.astype(jnp.bfloat16)
    out = window_attention_3d(x_bf16, params, rel_index, mask, num_heads)
    out = jax.block_until_ready(out)

    # f32 reference on the same bf16-rounded inputs (isolates in-kernel rounding only).
    params_ref = {k: v.astype(jnp.bfloat16).astype(jnp.float32) for k, v in params.items()}
    ref = reference_forward(x_bf16.astype(jnp.float32), params_ref, rel_index, mask, num_heads)

    np.testing.assert_allclose(np.asarray(out.astype(jnp.float32)), np.asarray(ref),
                               rtol=2e-2, atol=5e-3)

    print("KERNEL_OK")
</pallas_src>

<mosaic_0001>
module attributes {stable_mosaic.version = 11 : i64} {
  func.func @_window_attn_kernel(%arg0: i32, %arg1: memref<8x32x32xbf16, #tpu.memory_space<vmem>>, %arg2: memref<32x96xbf16, #tpu.memory_space<vmem>>, %arg3: memref<1x96xf32, #tpu.memory_space<vmem>>, %arg4: memref<4x32x32xbf16, #tpu.memory_space<vmem>>, %arg5: memref<2x32x32xf32, #tpu.memory_space<vmem>>, %arg6: memref<32x32xbf16, #tpu.memory_space<vmem>>, %arg7: memref<1x32xf32, #tpu.memory_space<vmem>>, %arg8: memref<8x32x32xbf16, #tpu.memory_space<vmem>>, %arg9: memref<256x96xbf16, #tpu.memory_space<vmem>>, %arg10: memref<256x32xbf16, #tpu.memory_space<vmem>>) attributes {dimension_semantics = [#tpu.dimension_semantics<parallel>], iteration_bounds = array<i64: 2>, scalar_prefetch = 0 : i64, scratch_operands = 2 : i64, tpu.core_type = #tpu.core_type<tc>, window_params = [{transform_indices = @transform_0, window_bounds = array<i64: 8, 32, 32>}, {pipeline_mode = #tpu.pipeline_mode<synchronous>, transform_indices = @transform_1, window_bounds = array<i64: 32, 96>}, {pipeline_mode = #tpu.pipeline_mode<synchronous>, transform_indices = @transform_2, window_bounds = array<i64: 1, 96>}, {pipeline_mode = #tpu.pipeline_mode<synchronous>, transform_indices = @transform_3, window_bounds = array<i64: 4, 32, 32>}, {pipeline_mode = #tpu.pipeline_mode<synchronous>, transform_indices = @transform_4, window_bounds = array<i64: 2, 32, 32>}, {pipeline_mode = #tpu.pipeline_mode<synchronous>, transform_indices = @transform_5, window_bounds = array<i64: 32, 32>}, {pipeline_mode = #tpu.pipeline_mode<synchronous>, transform_indices = @transform_6, window_bounds = array<i64: 1, 32>}, {transform_indices = @transform_7, window_bounds = array<i64: 8, 32, 32>}]} {
    %c0 = arith.constant 0 : index
    %c0_0 = arith.constant 0 : index
    %c0_1 = arith.constant 0 : index
    %0 = vector.load %arg1[%c0, %c0_0, %c0_1] : memref<8x32x32xbf16, #tpu.memory_space<vmem>>, vector<8x32x32xbf16>
    %1 = vector.shape_cast %0 : vector<8x32x32xbf16> to vector<256x32xbf16>
    %c0_2 = arith.constant 0 : index
    %c0_3 = arith.constant 0 : index
    %2 = vector.load %arg2[%c0_2, %c0_3] : memref<32x96xbf16, #tpu.memory_space<vmem>>, vector<32x96xbf16>
    %cst = arith.constant dense<0.000000e+00> : vector<256x96xf32>
    %3 = tpu.matmul %1, %2, %cst {dimension_numbers = #tpu.dot_dimension_numbers<[1], [0], [0], [1], [0, 0, 1, 1], [], []>} : vector<256x32xbf16>, vector<32x96xbf16>, vector<256x96xf32> -> vector<256x96xf32>
    %c0_4 = arith.constant 0 : index
    %c0_5 = arith.constant 0 : index
    %4 = vector.load %arg3[%c0_4, %c0_5] : memref<1x96xf32, #tpu.memory_space<vmem>>, vector<1x96xf32>
    %5 = vector.shape_cast %4 : vector<1x96xf32> to vector<96xf32>
    %6 = vector.shape_cast %5 : vector<96xf32> to vector<1x96xf32>
    %7 = vector.broadcast %6 : vector<1x96xf32> to vector<256x96xf32>
    %8 = arith.addf %3, %7 : vector<256x96xf32>
    %9 = arith.truncf %8 : vector<256x96xf32> to vector<256x96xbf16>
    %c0_6 = arith.constant 0 : index
    %c0_7 = arith.constant 0 : index
    %10 = vector.load %arg9[%c0_6, %c0_7] : memref<256x96xbf16, #tpu.memory_space<vmem>>, vector<256x96xbf16>
    tpu.vector_store %arg9[%c0_6, %c0_7], %9 {strides = array<i32>} : memref<256x96xbf16, #tpu.memory_space<vmem>>, vector<256x96xbf16>,
    %c0_8 = arith.constant 0 : index
    %c0_9 = arith.constant 0 : index
    %c0_10 = arith.constant 0 : index
    %11 = vector.load %arg5[%c0_8, %c0_9, %c0_10] : memref<2x32x32xf32, #tpu.memory_space<vmem>>, vector<2x32x32xf32>
    %12 = vector.shape_cast %11 : vector<2x32x32xf32> to vector<1x2x32x32xf32>
    %13 = vector.shape_cast %12 : vector<1x2x32x32xf32> to vector<1x2x32x32xf32>
    %14 = vector.broadcast %13 : vector<1x2x32x32xf32> to vector<4x2x32x32xf32>
    %15 = vector.shape_cast %14 : vector<4x2x32x32xf32> to vector<8x32x32xf32>
    %c0_11 = arith.constant 0 : index
    %c0_12 = arith.constant 0 : index
    %16 = vector.load %arg9[%c0_11, %c0_12] : memref<256x96xbf16, #tpu.memory_space<vmem>>, vector<256x8xbf16>
    %17 = vector.shape_cast %16 : vector<256x8xbf16> to vector<8x32x8xbf16>
    %c0_13 = arith.constant 0 : index
    %c32 = arith.constant 32 : index
    %18 = vector.load %arg9[%c0_13, %c32] : memref<256x96xbf16, #tpu.memory_space<vmem>>, vector<256x8xbf16>
    %19 = vector.shape_cast %18 : vector<256x8xbf16> to vector<8x32x8xbf16>
    %c0_14 = arith.constant 0 : index
    %c64 = arith.constant 64 : index
    %20 = vector.load %arg9[%c0_14, %c64] : memref<256x96xbf16, #tpu.memory_space<vmem>>, vector<256x8xbf16>
    %21 = vector.shape_cast %20 : vector<256x8xbf16> to vector<8x32x8xbf16>
    %cst_15 = arith.constant dense<0.000000e+00> : vector<8x32x32xf32>
    %22 = tpu.matmul %17, %19, %cst_15 {dimension_numbers = #tpu.dot_dimension_numbers<[2], [2], [1], [1], [0, 0, 0, 1, 1, 1], [0], [0]>} : vector<8x32x8xbf16>, vector<8x32x8xbf16>, vector<8x32x32xf32> -> vector<8x32x32xf32>
    %c0_16 = arith.constant 0 : index
    %c0_17 = arith.constant 0 : index
    %c0_18 = arith.constant 0 : index
    %23 = vector.load %arg4[%c0_16, %c0_17, %c0_18] : memref<4x32x32xbf16, #tpu.memory_space<vmem>>, vector<1x32x32xbf16>
    %24 = vector.shape_cast %23 : vector<1x32x32xbf16> to vector<32x32xbf16>
    %25 = vector.shape_cast %24 : vector<32x32xbf16> to vector<1x32x32xbf16>
    %26 = arith.extf %25 : vector<1x32x32xbf16> to vector<1x32x32xf32>
    %27 = vector.broadcast %26 : vector<1x32x32xf32> to vector<8x32x32xf32>
    %28 = arith.addf %22, %27 : vector<8x32x32xf32>
    %29 = arith.addf %28, %15 : vector<8x32x32xf32>
    %cst_19 = arith.constant dense<0xFF800000> : vector<8x32xf32>
    %30 = vector.multi_reduction <maximumf>, %29, %cst_19 [2] : vector<8x32x32xf32> to vector<8x32xf32>
    %31 = vector.shape_cast %30 : vector<8x32xf32> to vector<8x32x1xf32>
    %32 = vector.broadcast %31 : vector<8x32x1xf32> to vector<8x32x32xf32>
    %33 = arith.subf %29, %32 : vector<8x32x32xf32>
    %34 = math.exp %33 : vector<8x32x32xf32>
    %cst_20 = arith.constant dense<0.000000e+00> : vector<8x32xf32>
    %35 = vector.multi_reduction <add>, %34, %cst_20 [2] : vector<8x32x32xf32> to vector<8x32xf32>
    %36 = vector.shape_cast %35 : vector<8x32xf32> to vector<8x32x1xf32>
    %37 = arith.truncf %34 : vector<8x32x32xf32> to vector<8x32x32xbf16>
    %cst_21 = arith.constant dense<0.000000e+00> : vector<8x32x8xf32>
    %38 = tpu.matmul %37, %21, %cst_21 {dimension_numbers = #tpu.dot_dimension_numbers<[2], [1], [1], [2], [0, 0, 0, 1, 1, 2], [0], [0]>} : vector<8x32x32xbf16>, vector<8x32x8xbf16>, vector<8x32x8xf32> -> vector<8x32x8xf32>
    %39 = tpu.reciprocal %36 {approx = true} : vector<8x32x1xf32> -> vector<8x32x1xf32>
    %40 = vector.broadcast %39 : vector<8x32x1xf32> to vector<8x32x8xf32>
    %41 = arith.mulf %38, %40 : vector<8x32x8xf32>
    %42 = vector.shape_cast %41 : vector<8x32x8xf32> to vector<256x8xf32>
    %43 = arith.truncf %42 : vector<256x8xf32> to vector<256x8xbf16>
    %c0_22 = arith.constant 0 : index
    %c0_23 = arith.constant 0 : index
    %44 = vector.load %arg10[%c0_22, %c0_23] : memref<256x32xbf16, #tpu.memory_space<vmem>>, vector<256x8xbf16>
    tpu.vector_store %arg10[%c0_22, %c0_23], %43 {strides = array<i32>} : memref<256x32xbf16, #tpu.memory_space<vmem>>, vector<256x8xbf16>,
    %c0_24 = arith.constant 0 : index
    %c8 = arith.constant 8 : index
    %45 = vector.load %arg9[%c0_24, %c8] : memref<256x96xbf16, #tpu.memory_space<vmem>>, vector<256x8xbf16>
    %46 = vector.shape_cast %45 : vector<256x8xbf16> to vector<8x32x8xbf16>
    %c0_25 = arith.constant 0 : index
    %c40 = arith.constant 40 : index
    %47 = vector.load %arg9[%c0_25, %c40] : memref<256x96xbf16, #tpu.memory_space<vmem>>, vector<256x8xbf16>
    %48 = vector.shape_cast %47 : vector<256x8xbf16> to vector<8x32x8xbf16>
    %c0_26 = arith.constant 0 : index
    %c72 = arith.constant 72 : index
    %49 = vector.load %arg9[%c0_26, %c72] : memref<256x96xbf16, #tpu.memory_space<vmem>>, vector<256x8xbf16>
    %50 = vector.shape_cast %49 : vector<256x8xbf16> to vector<8x32x8xbf16>
    %cst_27 = arith.constant dense<0.000000e+00> : vector<8x32x32xf32>
    %51 = tpu.matmul %46, %48, %cst_27 {dimension_numbers = #tpu.dot_dimension_numbers<[2], [2], [1], [1], [0, 0, 0, 1, 1, 1], [0], [0]>} : vector<8x32x8xbf16>, vector<8x32x8xbf16>, vector<8x32x32xf32> -> vector<8x32x32xf32>
    %c1 = arith.constant 1 : index
    %c0_28 = arith.constant 0 : index
    %c0_29 = arith.constant 0 : index
    %52 = vector.load %arg4[%c1, %c0_28, %c0_29] : memref<4x32x32xbf16, #tpu.memory_space<vmem>>, vector<1x32x32xbf16>
    %53 = vector.shape_cast %52 : vector<1x32x32xbf16> to vector<32x32xbf16>
    %54 = vector.shape_cast %53 : vector<32x32xbf16> to vector<1x32x32xbf16>
    %55 = arith.extf %54 : vector<1x32x32xbf16> to vector<1x32x32xf32>
    %56 = vector.broadcast %55 : vector<1x32x32xf32> to vector<8x32x32xf32>
    %57 = arith.addf %51, %56 : vector<8x32x32xf32>
    %58 = arith.addf %57, %15 : vector<8x32x32xf32>
    %cst_30 = arith.constant dense<0xFF800000> : vector<8x32xf32>
    %59 = vector.multi_reduction <maximumf>, %58, %cst_30 [2] : vector<8x32x32xf32> to vector<8x32xf32>
    %60 = vector.shape_cast %59 : vector<8x32xf32> to vector<8x32x1xf32>
    %61 = vector.broadcast %60 : vector<8x32x1xf32> to vector<8x32x32xf32>
    %62 = arith.subf %58, %61 : vector<8x32x32xf32>
    %63 = math.exp %62 : vector<8x32x32xf32>
    %cst_31 = arith.constant dense<0.000000e+00> : vector<8x32xf32>
    %64 = vector.multi_reduction <add>, %63, %cst_31 [2] : vector<8x32x32xf32> to vector<8x32xf32>
    %65 = vector.shape_cast %64 : vector<8x32xf32> to vector<8x32x1xf32>
    %66 = arith.truncf %63 : vector<8x32x32xf32> to vector<8x32x32xbf16>
    %cst_32 = arith.constant dense<0.000000e+00> : vector<8x32x8xf32>
    %67 = tpu.matmul %66, %50, %cst_32 {dimension_numbers = #tpu.dot_dimension_numbers<[2], [1], [1], [2], [0, 0, 0, 1, 1, 2], [0], [0]>} : vector<8x32x32xbf16>, vector<8x32x8xbf16>, vector<8x32x8xf32> -> vector<8x32x8xf32>
    %68 = tpu.reciprocal %65 {approx = true} : vector<8x32x1xf32> -> vector<8x32x1xf32>
    %69 = vector.broadcast %68 : vector<8x32x1xf32> to vector<8x32x8xf32>
    %70 = arith.mulf %67, %69 : vector<8x32x8xf32>
    %71 = vector.shape_cast %70 : vector<8x32x8xf32> to vector<256x8xf32>
    %72 = arith.truncf %71 : vector<256x8xf32> to vector<256x8xbf16>
    %c0_33 = arith.constant 0 : index
    %c8_34 = arith.constant 8 : index
    %73 = vector.load %arg10[%c0_33, %c8_34] : memref<256x32xbf16, #tpu.memory_space<vmem>>, vector<256x8xbf16>
    tpu.vector_store %arg10[%c0_33, %c8_34], %72 {strides = array<i32>} : memref<256x32xbf16, #tpu.memory_space<vmem>>, vector<256x8xbf16>,
    %c0_35 = arith.constant 0 : index
    %c16 = arith.constant 16 : index
    %74 = vector.load %arg9[%c0_35, %c16] : memref<256x96xbf16, #tpu.memory_space<vmem>>, vector<256x8xbf16>
    %75 = vector.shape_cast %74 : vector<256x8xbf16> to vector<8x32x8xbf16>
    %c0_36 = arith.constant 0 : index
    %c48 = arith.constant 48 : index
    %76 = vector.load %arg9[%c0_36, %c48] : memref<256x96xbf16, #tpu.memory_space<vmem>>, vector<256x8xbf16>
    %77 = vector.shape_cast %76 : vector<256x8xbf16> to vector<8x32x8xbf16>
    %c0_37 = arith.constant 0 : index
    %c80 = arith.constant 80 : index
    %78 = vector.load %arg9[%c0_37, %c80] : memref<256x96xbf16, #tpu.memory_space<vmem>>, vector<256x8xbf16>
    %79 = vector.shape_cast %78 : vector<256x8xbf16> to vector<8x32x8xbf16>
    %cst_38 = arith.constant dense<0.000000e+00> : vector<8x32x32xf32>
    %80 = tpu.matmul %75, %77, %cst_38 {dimension_numbers = #tpu.dot_dimension_numbers<[2], [2], [1], [1], [0, 0, 0, 1, 1, 1], [0], [0]>} : vector<8x32x8xbf16>, vector<8x32x8xbf16>, vector<8x32x32xf32> -> vector<8x32x32xf32>
    %c2 = arith.constant 2 : index
    %c0_39 = arith.constant 0 : index
    %c0_40 = arith.constant 0 : index
    %81 = vector.load %arg4[%c2, %c0_39, %c0_40] : memref<4x32x32xbf16, #tpu.memory_space<vmem>>, vector<1x32x32xbf16>
    %82 = vector.shape_cast %81 : vector<1x32x32xbf16> to vector<32x32xbf16>
    %83 = vector.shape_cast %82 : vector<32x32xbf16> to vector<1x32x32xbf16>
    %84 = arith.extf %83 : vector<1x32x32xbf16> to vector<1x32x32xf32>
    %85 = vector.broadcast %84 : vector<1x32x32xf32> to vector<8x32x32xf32>
    %86 = arith.addf %80, %85 : vector<8x32x32xf32>
    %87 = arith.addf %86, %15 : vector<8x32x32xf32>
    %cst_41 = arith.constant dense<0xFF800000> : vector<8x32xf32>
    %88 = vector.multi_reduction <maximumf>, %87, %cst_41 [2] : vector<8x32x32xf32> to vector<8x32xf32>
    %89 = vector.shape_cast %88 : vector<8x32xf32> to vector<8x32x1xf32>
    %90 = vector.broadcast %89 : vector<8x32x1xf32> to vector<8x32x32xf32>
    %91 = arith.subf %87, %90 : vector<8x32x32xf32>
    %92 = math.exp %91 : vector<8x32x32xf32>
    %cst_42 = arith.constant dense<0.000000e+00> : vector<8x32xf32>
    %93 = vector.multi_reduction <add>, %92, %cst_42 [2] : vector<8x32x32xf32> to vector<8x32xf32>
    %94 = vector.shape_cast %93 : vector<8x32xf32> to vector<8x32x1xf32>
    %95 = arith.truncf %92 : vector<8x32x32xf32> to vector<8x32x32xbf16>
    %cst_43 = arith.constant dense<0.000000e+00> : vector<8x32x8xf32>
    %96 = tpu.matmul %95, %79, %cst_43 {dimension_numbers = #tpu.dot_dimension_numbers<[2], [1], [1], [2], [0, 0, 0, 1, 1, 2], [0], [0]>} : vector<8x32x32xbf16>, vector<8x32x8xbf16>, vector<8x32x8xf32> -> vector<8x32x8xf32>
    %97 = tpu.reciprocal %94 {approx = true} : vector<8x32x1xf32> -> vector<8x32x1xf32>
    %98 = vector.broadcast %97 : vector<8x32x1xf32> to vector<8x32x8xf32>
    %99 = arith.mulf %96, %98 : vector<8x32x8xf32>
    %100 = vector.shape_cast %99 : vector<8x32x8xf32> to vector<256x8xf32>
    %101 = arith.truncf %100 : vector<256x8xf32> to vector<256x8xbf16>
    %c0_44 = arith.constant 0 : index
    %c16_45 = arith.constant 16 : index
    %102 = vector.load %arg10[%c0_44, %c16_45] : memref<256x32xbf16, #tpu.memory_space<vmem>>, vector<256x8xbf16>
    tpu.vector_store %arg10[%c0_44, %c16_45], %101 {strides = array<i32>} : memref<256x32xbf16, #tpu.memory_space<vmem>>, vector<256x8xbf16>,
    %c0_46 = arith.constant 0 : index
    %c24 = arith.constant 24 : index
    %103 = vector.load %arg9[%c0_46, %c24] : memref<256x96xbf16, #tpu.memory_space<vmem>>, vector<256x8xbf16>
    %104 = vector.shape_cast %103 : vector<256x8xbf16> to vector<8x32x8xbf16>
    %c0_47 = arith.constant 0 : index
    %c56 = arith.constant 56 : index
    %105 = vector.load %arg9[%c0_47, %c56] : memref<256x96xbf16, #tpu.memory_space<vmem>>, vector<256x8xbf16>
    %106 = vector.shape_cast %105 : vector<256x8xbf16> to vector<8x32x8xbf16>
    %c0_48 = arith.constant 0 : index
    %c88 = arith.constant 88 : index
    %107 = vector.load %arg9[%c0_48, %c88] : memref<256x96xbf16, #tpu.memory_space<vmem>>, vector<256x8xbf16>
    %108 = vector.shape_cast %107 : vector<256x8xbf16> to vector<8x32x8xbf16>
    %cst_49 = arith.constant dense<0.000000e+00> : vector<8x32x32xf32>
    %109 = tpu.matmul %104, %106, %cst_49 {dimension_numbers = #tpu.dot_dimension_numbers<[2], [2], [1], [1], [0, 0, 0, 1, 1, 1], [0], [0]>} : vector<8x32x8xbf16>, vector<8x32x8xbf16>, vector<8x32x32xf32> -> vector<8x32x32xf32>
    %c3 = arith.constant 3 : index
    %c0_50 = arith.constant 0 : index
    %c0_51 = arith.constant 0 : index
    %110 = vector.load %arg4[%c3, %c0_50, %c0_51] : memref<4x32x32xbf16, #tpu.memory_space<vmem>>, vector<1x32x32xbf16>
    %111 = vector.shape_cast %110 : vector<1x32x32xbf16> to vector<32x32xbf16>
    %112 = vector.shape_cast %111 : vector<32x32xbf16> to vector<1x32x32xbf16>
    %113 = arith.extf %112 : vector<1x32x32xbf16> to vector<1x32x32xf32>
    %114 = vector.broadcast %113 : vector<1x32x32xf32> to vector<8x32x32xf32>
    %115 = arith.addf %109, %114 : vector<8x32x32xf32>
    %116 = arith.addf %115, %15 : vector<8x32x32xf32>
    %cst_52 = arith.constant dense<0xFF800000> : vector<8x32xf32>
    %117 = vector.multi_reduction <maximumf>, %116, %cst_52 [2] : vector<8x32x32xf32> to vector<8x32xf32>
    %118 = vector.shape_cast %117 : vector<8x32xf32> to vector<8x32x1xf32>
    %119 = vector.broadcast %118 : vector<8x32x1xf32> to vector<8x32x32xf32>
    %120 = arith.subf %116, %119 : vector<8x32x32xf32>
    %121 = math.exp %120 : vector<8x32x32xf32>
    %cst_53 = arith.constant dense<0.000000e+00> : vector<8x32xf32>
    %122 = vector.multi_reduction <add>, %121, %cst_53 [2] : vector<8x32x32xf32> to vector<8x32xf32>
    %123 = vector.shape_cast %122 : vector<8x32xf32> to vector<8x32x1xf32>
    %124 = arith.truncf %121 : vector<8x32x32xf32> to vector<8x32x32xbf16>
    %cst_54 = arith.constant dense<0.000000e+00> : vector<8x32x8xf32>
    %125 = tpu.matmul %124, %108, %cst_54 {dimension_numbers = #tpu.dot_dimension_numbers<[2], [1], [1], [2], [0, 0, 0, 1, 1, 2], [0], [0]>} : vector<8x32x32xbf16>, vector<8x32x8xbf16>, vector<8x32x8xf32> -> vector<8x32x8xf32>
    %126 = tpu.reciprocal %123 {approx = true} : vector<8x32x1xf32> -> vector<8x32x1xf32>
    %127 = vector.broadcast %126 : vector<8x32x1xf32> to vector<8x32x8xf32>
    %128 = arith.mulf %125, %127 : vector<8x32x8xf32>
    %129 = vector.shape_cast %128 : vector<8x32x8xf32> to vector<256x8xf32>
    %130 = arith.truncf %129 : vector<256x8xf32> to vector<256x8xbf16>
    %c0_55 = arith.constant 0 : index
    %c24_56 = arith.constant 24 : index
    %131 = vector.load %arg10[%c0_55, %c24_56] : memref<256x32xbf16, #tpu.memory_space<vmem>>, vector<256x8xbf16>
    tpu.vector_store %arg10[%c0_55, %c24_56], %130 {strides = array<i32>} : memref<256x32xbf16, #tpu.memory_space<vmem>>, vector<256x8xbf16>,
    %c0_57 = arith.constant 0 : index
    %c0_58 = arith.constant 0 : index
    %132 = vector.load %arg10[%c0_57, %c0_58] : memref<256x32xbf16, #tpu.memory_space<vmem>>, vector<256x32xbf16>
    %c0_59 = arith.constant 0 : index
    %c0_60 = arith.constant 0 : index
    %133 = vector.load %arg6[%c0_59, %c0_60] : memref<32x32xbf16, #tpu.memory_space<vmem>>, vector<32x32xbf16>
    %cst_61 = arith.constant dense<0.000000e+00> : vector<256x32xf32>
    %134 = tpu.matmul %132, %133, %cst_61 {dimension_numbers = #tpu.dot_dimension_numbers<[1], [0], [0], [1], [0, 0, 1, 1], [], []>} : vector<256x32xbf16>, vector<32x32xbf16>, vector<256x32xf32> -> vector<256x32xf32>
    %c0_62 = arith.constant 0 : index
    %c0_63 = arith.constant 0 : index
    %135 = vector.load %arg7[%c0_62, %c0_63] : memref<1x32xf32, #tpu.memory_space<vmem>>, vector<1x32xf32>
    %136 = vector.shape_cast %135 : vector<1x32xf32> to vector<32xf32>
    %137 = vector.shape_cast %136 : vector<32xf32> to vector<1x32xf32>
    %138 = vector.broadcast %137 : vector<1x32xf32> to vector<256x32xf32>
    %139 = arith.addf %134, %138 : vector<256x32xf32>
    %140 = vector.shape_cast %139 : vector<256x32xf32> to vector<8x32x32xf32>
    %141 = arith.truncf %140 : vector<8x32x32xf32> to vector<8x32x32xbf16>
    %c0_64 = arith.constant 0 : index
    %c0_65 = arith.constant 0 : index
    %c0_66 = arith.constant 0 : index
    %142 = vector.load %arg8[%c0_64, %c0_65, %c0_66] : memref<8x32x32xbf16, #tpu.memory_space<vmem>>, vector<8x32x32xbf16>
    tpu.vector_store %arg8[%c0_64, %c0_65, %c0_66], %141 {strides = array<i32>} : memref<8x32x32xbf16, #tpu.memory_space<vmem>>, vector<8x32x32xbf16>,
    return
  }
  func.func @transform_0(%arg0: i32) -> (i32, i32, i32) {
    %c0_i32 = arith.constant 0 : i32
    %c0_i32_0 = arith.constant 0 : i32
    %c0_i32_1 = arith.constant 0 : i32
    return %arg0, %c0_i32, %c0_i32_0 : i32, i32, i32
  }
  func.func @transform_1(%arg0: i32) -> (i32, i32) {
    %c0_i32 = arith.constant 0 : i32
    %c0_i32_0 = arith.constant 0 : i32
    %c0_i32_1 = arith.constant 0 : i32
    return %c0_i32, %c0_i32_0 : i32, i32
  }
  func.func @transform_2(%arg0: i32) -> (i32, i32) {
    %c0_i32 = arith.constant 0 : i32
    %c0_i32_0 = arith.constant 0 : i32
    %c0_i32_1 = arith.constant 0 : i32
    return %c0_i32, %c0_i32_0 : i32, i32
  }
  func.func @transform_3(%arg0: i32) -> (i32, i32, i32) {
    %c0_i32 = arith.constant 0 : i32
    %c0_i32_0 = arith.constant 0 : i32
    %c0_i32_1 = arith.constant 0 : i32
    %c0_i32_2 = arith.constant 0 : i32
    return %c0_i32, %c0_i32_0, %c0_i32_1 : i32, i32, i32
  }
  func.func @transform_4(%arg0: i32) -> (i32, i32, i32) {
    %c0_i32 = arith.constant 0 : i32
    %c0_i32_0 = arith.constant 0 : i32
    %c0_i32_1 = arith.constant 0 : i32
    %c0_i32_2 = arith.constant 0 : i32
    return %c0_i32, %c0_i32_0, %c0_i32_1 : i32, i32, i32
  }
  func.func @transform_5(%arg0: i32) -> (i32, i32) {
    %c0_i32 = arith.constant 0 : i32
    %c0_i32_0 = arith.constant 0 : i32
    %c0_i32_1 = arith.constant 0 : i32
    return %c0_i32, %c0_i32_0 : i32, i32
  }
  func.func @transform_6(%arg0: i32) -> (i32, i32) {
    %c0_i32 = arith.constant 0 : i32
    %c0_i32_0 = arith.constant 0 : i32
    %c0_i32_1 = arith.constant 0 : i32
    return %c0_i32, %c0_i32_0 : i32, i32
  }
  func.func @transform_7(%arg0: i32) -> (i32, i32, i32) {
    %c0_i32 = arith.constant 0 : i32
    %c0_i32_0 = arith.constant 0 : i32
    %c0_i32_1 = arith.constant 0 : i32
    return %arg0, %c0_i32, %c0_i32_0 : i32, i32, i32
  }
}

</mosaic_0001>

<bundles_post_ra>
// kernel: tpu_custom_call.1
= control target key start
LH: loop header
LB: loop body
LE: loop exit
PB: predicated region body
PF: predicated region fallthrough
CT: control target
= control target key end

     0   :  { %12 = vsyncpa [#allocation5], 0  ;;  %s13537_s0 = inlined_call_operand.hbm [shape: bf16[16,32,32], index: 0, kind: input, shape index: {}]   ;;  %s13538_s1 = inlined_call_operand.hbm [shape: bf16[32,96], index: 1, kind: input, shape index: {}]   ;;  %s13539_s2 = inlined_call_operand.vmem [shape: f32[1,96], index: 2, kind: input, shape index: {}]   ;;  %s13540_s3 = inlined_call_operand.hbm [shape: bf16[4,32,32], index: 3, kind: input, shape index: {}]   ;;  %s13541_s4 = inlined_call_operand.hbm [shape: f32[2,32,32], index: 4, kind: input, shape index: {}]   ;;  %s13542_s5 = inlined_call_operand.vmem [shape: bf16[32,32], index: 5, kind: input, shape index: {}]   ;;  %s13543_s6 = inlined_call_operand.vmem [shape: f32[1,32], index: 6, kind: input, shape index: {}]   ;;  %s13544_s7 = inlined_call_operand.hbm [shape: bf16[16,32,32], index: 7, kind: output, shape index: {}]  }
   0x1   :  { %14 = vsyncpa [#allocation5 + $0x1], 0 }
   0x2   :  { %15 = vsyncpa [#allocation8], 0 }
   0x3   :  { %16 = vsyncpa [#allocation11], 0 }
   0x4   :  { %17 = vsyncpa [#allocation6], 0 }
   0x5   :  { %19 = vsyncpa [#allocation6 + $0x1], 0  ;;  %s9651_s24 = smov 0   ;;  %s9653_s25 = smov 0  }
   0x6   :  { %s9655_s26 = smov 0   ;;  %s9657_s27 = smov 0  }
   0x7 LB: > { %s9672_s28 = sadd.s32 4294967295, %s9585_s27   ;;  %s7472_s29 = sadd.s32 4294967294, %s9585_s27   ;;  %s9585_s27 = sphi %s9657_s27, %s14158_s27   ;;  %s9581_s26 = sphi %s9655_s26, %s14157_s26   ;;  %s9577_s25 = sphi %s9653_s25, %s14156_s25   ;;  %s9573_s24 = sphi %s9651_s24, %s14155_s24  }
   0x8   : > { %p45_p0 = scmp.ne.s32.totalorder %s9577_s25, %s9573_s24  ;;  %p13545_p1 = scmp.eq.s32.totalorder %s9672_s28, 0 }
   0x9   : > { %p201_p3 = scmp.eq.s32.totalorder %s7472_s29, 1  ;;  %p7473_p5 = scmp.ge.s32.totalorder %s9585_s27, 1 }
   0xa   : > { %p9681_p4 = por %p13545_p1, %p45_p0  ;;  %p208_p7 = scmp.lt.s32.totalorder %s9585_s27, 3 }
   0xb   : > { %p9686_p6 = por %p201_p3, %p45_p0  ;;  %s9587_s10 = smov [#allocation7]  }
   0xc   : > { %s13687_s30 = scalar_select %p9681_p4, 1, 0 }
   0xd   : > { %s13688_s8 = scalar_select %p9686_p6, 1, 0 }
   0xe   : > { %p9691_p8 = pnand %p7473_p5, %p208_p7  ;;  %s220_s11 = sshll.u32 %s9587_s10, 4  ;;  %s9695_s11 = int_to_ptr.vmem [resolvable:$true] %s220_s11 }
   0xf   : > { %13689 = sst [smem:[#allocation17_spill]] %s13688_s8  ;;  %s9588_s13 = smov [#allocation9]  }
  0x10   : > { %s13690_s9 = scalar_select %p9691_p8, 1, 0 }
  0x11   : > { %p8740_p9 = pneg %p9691_p8  ;;  %s236_s14 = sshll.u32 %s9588_s13, 4  ;;  %s9706_s14 = int_to_ptr.vmem [resolvable:$true] %s236_s14 }
  0x12   : > { %s9589_s15 = smov [#allocation10]   ;;  %s9397_s19 = scalar_lea.hbm %s13538_s1, 256 }
  0x13   : > { %p9702_p11 = pnand %p8740_p9, %p13545_p1  ;;  %s9708_s16 = sshll.u32 %s9589_s15, 4  ;;  %s250_s16 = int_to_ptr.vmem [resolvable:$true] %s9708_s16 }
  0x14   : > { %p9398_p12 = scmp.ne.s32.totalorder %s13538_s1, %s9397_s19  ;;  %p9404_p5 = scmp.lt.u32.totalorder %s9397_s19, %s13538_s1 }
  0x15   : > { %p9718_p13 = pneg %p9702_p11 }
  0x17   : > { %p9400_p0 = pnand %p9718_p13, %p9398_p12 }
  0x19   : > { %p9401_p3 = pneg %p9400_p0 }
  0x1b   : > { %p9406_p7 = pnand %p9404_p5, %p9401_p3 }
  0x1d   : > { %9409 = shalt.err (!%p9406_p7)
}
  0x1e   : > { %s9410_s10 = scalar_lea.vmem %s9695_s11, 256  ;;  %p9418_p2 = scmp.lt.s32.totalorder %s9695_s11, %s9695_s11 }
  0x1f   : > { %p9411_p9 = scmp.ne.s32.totalorder %s9695_s11, %s9410_s10  ;;  %p9419_p6 = scmp.lt.s32.totalorder %s9410_s10, %s9410_s10 }
  0x21   : > { %p9413_p10 = pnand %p9411_p9, %p9718_p13  ;;  %p9420_p12 = por %p9419_p6, %p9418_p2 }
  0x23   : > { %p9414_p1 = pneg %p9413_p10 }
  0x25   : > { %p9421_p0 = pnand %p9420_p12, %p9414_p1 }
  0x27   : > { %9424 = shalt.err (!%p9421_p0)
}
  0x28   : > { %s9590_s13 = smov 64   ;;  %s9591_s15 = smov 4  }
  0x29   : > { %8743 = dma.hbm_to_vmem [thread:$0]  (!%p9702_p11), %s13538_s1, 256, %s9695_s11, [#allocation8], %s9590_s13, %s9590_s13, %s9591_s15  }
  0x2a   : > { %s9425_s21 = scalar_lea.hbm %s13540_s3, 1024 }
  0x2b   : > { %p9426_p1 = scmp.ne.s32.totalorder %s13540_s3, %s9425_s21  ;;  %p9432_p10 = scmp.lt.u32.totalorder %s9425_s21, %s13540_s3 }
  0x2d   : > { %p9428_p2 = pnand %p9426_p1, %p9718_p13 }
  0x2f   : > { %p9429_p6 = pneg %p9428_p2 }
  0x31   : > { %p9434_p3 = pnand %p9432_p10, %p9429_p6 }
  0x33   : > { %9437 = shalt.err (!%p9434_p3)
}
  0x34   : > { %s9438_s11 = scalar_lea.vmem %s9706_s14, 1024  ;;  %p9446_p12 = scmp.lt.s32.totalorder %s9706_s14, %s9706_s14 }
  0x35   : > { %p9439_p5 = scmp.ne.s32.totalorder %s9706_s14, %s9438_s11  ;;  %p9447_p0 = scmp.lt.s32.totalorder %s9438_s11, %s9438_s11 }
  0x37   : > { %p9441_p7 = pnand %p9439_p5, %p9718_p13  ;;  %p9448_p1 = por %p9447_p0, %p9446_p12 }
  0x39   : > { %p9442_p9 = pneg %p9441_p7 }
  0x3b   : > { %p9449_p2 = pnand %p9448_p1, %p9442_p9 }
  0x3d   : > { %9452 = shalt.err (!%p9449_p2)
}
  0x3e   : > { %8746 = dma.hbm_to_vmem [thread:$0]  (!%p9702_p11), %s13540_s3, 1024, %s9706_s14, [#allocation8], %s9590_s13, %s9590_s13, %s9591_s15  }
  0x3f   : > { %s9453_s20 = scalar_lea.hbm %s13541_s4, 1024 }
  0x40   : > { %p9454_p6 = scmp.ne.s32.totalorder %s13541_s4, %s9453_s20  ;;  %p9460_p5 = scmp.lt.u32.totalorder %s9453_s20, %s13541_s4 }
  0x42   : > { %p9456_p10 = pnand %p9454_p6, %p9718_p13 }
  0x44   : > { %p9457_p3 = pneg %p9456_p10 }
  0x46   : > { %p9462_p7 = pnand %p9460_p5, %p9457_p3 }
  0x48   : > { %9465 = shalt.err (!%p9462_p7)
}
  0x49   : > { %s9466_s11 = scalar_lea.vmem %s250_s16, 1024  ;;  %p9474_p1 = scmp.lt.s32.totalorder %s250_s16, %s250_s16 }
  0x4a   : > { %p9467_p9 = scmp.ne.s32.totalorder %s250_s16, %s9466_s11  ;;  %p9475_p2 = scmp.lt.s32.totalorder %s9466_s11, %s9466_s11 }
  0x4c   : > { %p9469_p12 = pnand %p9467_p9, %p9718_p13  ;;  %p9476_p4 = por %p9475_p2, %p9474_p1 }
  0x4e   : > { %p9470_p0 = pneg %p9469_p12 }
  0x50   : > { %p9477_p8 = pnand %p9476_p4, %p9470_p0 }
  0x52   : > { %9480 = shalt.err (!%p9477_p8)
}
  0x53   : > { %s9592_s14 = smov 128   ;;  %s9593_s22 = smov 8  }
  0x54   : > { %8749 = dma.hbm_to_vmem [thread:$0]  (!%p9702_p11), %s13541_s4, 1024, %s250_s16, [#allocation11], %s9592_s14, %s9592_s14, %s9593_s22  }
  0x55   : > { %s9788_s18 = sadd.s32 1, %s9585_s27   ;;  %s32_s20 = sadd.s32 1, %s9581_s26 }
  0x56   : > { %s29_s19 = ssub.s32 %s9585_s27, %s9788_s18  ;;  %p39_p8 = scmp.ne.s32.totalorder %s9581_s26, %s9577_s25 }
  0x57   : > { %p30_p4 = scmp.eq.s32.totalorder %s29_s19, 0  ;;  %p40_p13 = scmp.eq.s32.totalorder %s9585_s27, 0 }
  0x58   : > { %p8761_p6 = scmp.lt.s32.totalorder %s9585_s27, 2  ;;  %p13693_p3 = scmp.eq.s32.totalorder %s9672_s28, 1 }
  0x59   : > { %s9798_s21 = scalar_select %p30_p4, %s9581_s26, %s32_s20  }
  0x5a   : > { %p41_p10 = por %p40_p13, %p39_p8  ;;  %p9802_p5 = por %p13693_p3, %p39_p8 }
  0x5b   : > { %s269_s12 = sand.u32 1, %s9581_s26   ;;  %s7709_s29 = sshll.u32 %s9585_s27, 11 }
  0x5c   : > { %s7478_s16 = sshll.u32 %s269_s12, 7  ;;  %s9811_s14 = scalar_lea.hbm %s13537_s0, %s7709_s29 }
  0x5d   : > { %s273_s22 = scalar_lea.vmem [#allocation4], %s7478_s16  ;;  %p9813_p11 = pnand %p8761_p6, %p41_p10 }
  0x5e   : > { %s281_s8 = sshll.u32 %s273_s22, 4  ;;  %s9819_s19 = scalar_lea.sflag [#allocation5], %s269_s12  ;;  %s9817_s8 = int_to_ptr.vmem [resolvable:$true] %s281_s8 }
  0x5f   : > { %s9481_s20 = scalar_lea.hbm %s9811_s14, 2048  ;;  %p9483_p9 = pneg %p9813_p11 }
  0x60   : > { %p9482_p7 = scmp.ne.s32.totalorder %s9811_s14, %s9481_s20  ;;  %s9486_s10 = scalar_lea.hbm %s13537_s0, 4096 }
  0x61   : > { %p9487_p1 = scmp.lt.u32.totalorder %s9811_s14, %s13537_s0  ;;  %p9488_p2 = scmp.lt.u32.totalorder %s9486_s10, %s9481_s20 }
  0x62   : > { %p9484_p12 = pnand %p9483_p9, %p9482_p7  ;;  %p9490_p8 = scmp.lt.u32.totalorder %s9481_s20, %s9811_s14 }
  0x63   : > { %p9489_p4 = por %p9488_p2, %p9487_p1 }
  0x64   : > { %p9485_p0 = pneg %p9484_p12 }
  0x65   : > { %p9491_p13 = por %p9490_p8, %p9489_p4 }
  0x67   : > { %p9492_p6 = pnand %p9491_p13, %p9485_p0 }
  0x69   : > { %9495 = shalt.err (!%p9492_p6)
}
  0x6a   : > { %s9496_s12 = scalar_lea.vmem %s9817_s8, 2048  ;;  %s9594_s29 = smov [#allocation4]  }
  0x6b   : > { %p9497_p10 = scmp.ne.s32.totalorder %s9817_s8, %s9496_s12  ;;  %s9501_s16 = sshll.u32 %s9594_s29, 4  ;;  %s9502_s16 = int_to_ptr.vmem [resolvable:$false] %s9501_s16 }
  0x6c   : > { %s9503_s11 = scalar_lea.vmem %s9502_s16, 4096  ;;  %p9504_p12 = scmp.lt.s32.totalorder %s9817_s8, %s9502_s16 }
  0x6d   : > { %p9499_p3 = pnand %p9497_p10, %p9483_p9  ;;  %p9505_p1 = scmp.lt.s32.totalorder %s9503_s11, %s9496_s12 }
  0x6f   : > { %p9500_p7 = pneg %p9499_p3  ;;  %p9506_p2 = por %p9505_p1, %p9504_p12 }
  0x71   : > { %p9507_p4 = pnand %p9506_p2, %p9500_p7 }
  0x73   : > { %9510 = shalt.err (!%p9507_p4)
}
  0x74   : > { %8753 = dma.hbm_to_vmem [thread:$0]  (!%p9813_p11), %s9811_s14, 2048, %s9817_s8, %s9819_s19, %s9590_s13, %s9590_s13, %s9591_s15  }
  0x75   : > { %p13696_p9 = scmp.ne.s32.totalorder %s13690_s9, 0 }
  0x77   : > { %293 = sbr.rel (%p13696_p9) target bundleno = 3174 (0xc66), region = 48 }
  0x7e   : > { %s9853_s20 = sand.u32 1, %s9577_s25   ;;  %p13697_p0 = scmp.ne.s32.totalorder %s13687_s30, 0 }
  0x7f   : > { %s7483_s10 = sshll.u32 %s9853_s20, 7  ;;  %s296_s22 = scalar_lea.sflag [#allocation5], %s9853_s20 }
  0x80   : > { %s9859_s17 = scalar_lea.vmem [#allocation4], %s7483_s10 }
  0x81   : > { %9556 = dma.done.wait (%p13697_p0), %s296_s22, 2048  }
  0x82   : > { %9558 = vsyncadd (%p13697_p0), %s296_s22, 4294965248  ;;  %p13698_p11 = scmp.eq.s32.totalorder %s9672_s28, 0 }
  0x84   : > { %9560 = dma.done.wait (%p13698_p11), [#allocation8], 1280   ;;  %p13699_p8 = pmov %p13698_p11 }
  0x86   : > { %9562 = vsyncadd (%p13699_p8), [#allocation8], 4294966016  ;;  %p13700_p13 = pmov %p13699_p8 }
  0x87   : > { %p13701_p6 = pmov %p13699_p8 }
  0x88   : > { %9564 = dma.done.wait (%p13700_p13), [#allocation11], 1024  }
  0x89   : > { %9566 = vsyncadd (%p13701_p6), [#allocation11], 4294966272  ;;  %v8820_v0 = vld [vmem:[#allocation7] sm:$0xff]   ;;  %v8821_v1 = vld [vmem:[#allocation7 + $0x8] sm:$0xff]   ;;  %vm480_vm0 = vcmask 261120   ;;  %vm706_vm1 = vcmask 785408  }
  0x8a   : > { %8072 = vmatprep.subr.bf16.mxu0 %v8820_v0  ;;  %v8822_v2 = vld [vmem:[%s9859_s17] sm:$0xff]   ;;  %v8823_v3 = vld [vmem:[%s9859_s17 + $0x8] sm:$0xff]   ;;  %v8824_v4 = vld [vmem:[%s9859_s17 + $0x10] sm:$0xff]   ;;  %vm761_vm2 = vcmask 64512   ;;  %s9595_s13 = smov 96   ;;  %s9596_s15 = smov 64  }
  0x8b   : > { %8073 = vmatpush3.bf16.msra.mxu0 %v8820_v0  ;;  %8076 = vmatprep.mubr.msk.bf16.mxu0 %vm480_vm0, %v8822_v2  ;;  %v8825_v5 = vld [vmem:[%s9859_s17 + $0x18] sm:$0xff]   ;;  %v8826_v6 = vld [vmem:[%s9859_s17 + $0x20] sm:$0xff]   ;;  %v8827_v7 = vld [vmem:[%s9859_s17 + $0x28] sm:$0xff]   ;;  %s9597_s14 = smov 88   ;;  %s9598_s8 = smov 120   ;;  %vm3773_vm3 = vcmask 130112  }
  0x8c   : > { %8074 = vmatprep.subr.bf16.mxu0 %v8821_v1  ;;  %v8828_v8 = vld [vmem:[%s9859_s17 + $0x30] sm:$0xff]   ;;  %v8829_v9 = vld [vmem:[%s9859_s17 + $0x38] sm:$0xff]   ;;  %v8830_v10 = vld [vmem:[%s9859_s17 + $0x40] sm:$0xff]   ;;  %s9599_s19 = smov 56   ;;  %s9600_s12 = smov 80   ;;  %vm5351_vm4 = vcmask 195712  }
  0x8d   : > { %v8831_v11 = vld [vmem:[%s9859_s17 + $0x48] sm:$0xff]   ;;  %v8832_v12 = vld [vmem:[%s9859_s17 + $0x50] sm:$0xff]   ;;  %v8833_v13 = vld [vmem:[%s9859_s17 + $0x58] sm:$0xff]   ;;  %s9601_s29 = smov 112   ;;  %s9602_s16 = smov 48   ;;  %vm6929_vm5 = vcmask 261312  }
  0x8e   : > { %v8834_v14 = vld [vmem:[%s9859_s17 + $0x60] sm:$0xff]   ;;  %v8835_v15 = vld [vmem:[%s9859_s17 + $0x68] sm:$0xff]   ;;  %v8836_v16 = vld [vmem:[%s9859_s17 + $0x70] sm:$0xff]   ;;  %s9603_s11 = smov 72   ;;  %s9604_s22 = smov 104   ;;  %vm7322_vm6 = vcmask 257024  }
  0x8f   : > { %8075 = vmatpush3.bf16.msra.mxu0 %v8821_v1  ;;  %v8837_v17 = vld [vmem:[%s9859_s17 + $0x78] sm:$0xff]   ;;  %v9908_v19 = vld [vmem:[%s13539_s2] ss:$0 sm:$0xff]  ;;  %s9605_s17 = smov 40   ;;  %s9606_s30 = smov 8  }
  0x90   : > { %s9607_s9 = smov 16  }
  0x92   : > { %8077 = vmatmul.mubr.msk.bf16.vlgmr.msra.gmra.mrb[0].mxu0 %vm480_vm0, %v8823_v3 }
  0x93   : > { %8080 = vmatprep.mubr.msk.bf16.mxu0 %vm480_vm0, %v8824_v4 }
  0x9a   : > { %8081 = vmatmul.mubr.msk.bf16.gmra.mrb[4].mxu0 %vm480_vm0, %v8825_v5 }
  0x9b   : > { %8084 = vmatprep.mubr.msk.bf16.mxu0 %vm480_vm0, %v8826_v6 }
  0xa2   : > { %8085 = vmatmul.mubr.msk.bf16.gmra.mrb[8].mxu0 %vm480_vm0, %v8827_v7 }
  0xa3   : > { %8088 = vmatprep.mubr.msk.bf16.mxu0 %vm480_vm0, %v8828_v8 }
  0xaa   : > { %8089 = vmatmul.mubr.msk.bf16.gmra.mrb[12].mxu0 %vm480_vm0, %v8829_v9 }
  0xab   : > { %8092 = vmatprep.mubr.msk.bf16.mxu0 %vm480_vm0, %v8830_v10 }
  0xb2   : > { %8093 = vmatmul.mubr.msk.bf16.gmra.mrb[16].mxu0 %vm480_vm0, %v8831_v11 }
  0xb3   : > { %8096 = vmatprep.mubr.msk.bf16.mxu0 %vm480_vm0, %v8832_v12 }
  0xba   : > { %8097 = vmatmul.mubr.msk.bf16.gmra.mrb[20].mxu0 %vm480_vm0, %v8833_v13 }
  0xbb   : > { %8100 = vmatprep.mubr.msk.bf16.mxu0 %vm480_vm0, %v8834_v14 }
  0xc2   : > { %8101 = vmatmul.mubr.msk.bf16.gmra.mrb[24].mxu0 %vm480_vm0, %v8835_v15 }
  0xc3   : > { %8104 = vmatprep.mubr.msk.bf16.mxu0 %vm480_vm0, %v8836_v16 }
  0xca   : > { %8105 = vmatmul.mubr.msk.bf16.gmra.mrb[28].mxu0 %vm480_vm0, %v8837_v17 }
 0x165   : > { %v8078_v18 = vpop.f32.mrb[0].mxu0 }
 0x166   : > { %v563_v20 = vpop.f32.mrb[1].mxu0  ;;  %v572_v22 = vadd.f32 %v8078_v18, %v9908_v19 }
 0x167   : > { %v8079_v21 = vpop.f32.mrb[2].mxu0  ;;  %v564_v25 = vadd.f32 %v9908_v19, %v563_v20 }
 0x168   : > { %v575_v23 = vadd.f32 %v8079_v21, %v9908_v19  ;;  %v566_v24 = vpop.f32.mrb[3].mxu0 }
 0x169   : > { %v567_v26 = vadd.f32 %v9908_v19, %v566_v24 }
 0x16a   : > { %v691_v27 = vpack.c.bf16 %v575_v23, %v572_v22 }
 0x16b   : > { %v690_v28 = vpack.c.bf16 %v567_v26, %v564_v25 }
 0x16c   : > { %708 = vst.msk [vmem:[#allocation2 + $0x8] sm:$0xff] %vm706_vm1, %v691_v27 }
 0x16d   : > { %707 = vst.msk [vmem:[#allocation2] sm:$0xff] %vm706_vm1, %v690_v28  ;;  %v8082_v29 = vpop.f32.mrb[4].mxu0 }
 0x16e   : > { %v588_v30 = vadd.f32 %v8082_v29, %v9908_v19  ;;  %v579_v31 = vpop.f32.mrb[5].mxu0 }
 0x16f   : > { %v580_v32 = vadd.f32 %v9908_v19, %v579_v31  ;;  %v8083_v33 = vpop.f32.mrb[6].mxu0 }
 0x170   : > { %v591_v34 = vadd.f32 %v8083_v33, %v9908_v19  ;;  %v582_v35 = vpop.f32.mrb[7].mxu0 }
 0x171   : > { %v583_v36 = vadd.f32 %v9908_v19, %v582_v35 }
 0x172   : > { %v693_v37 = vpack.c.bf16 %v591_v34, %v588_v30 }
 0x173   : > { %v692_v38 = vpack.c.bf16 %v583_v36, %v580_v32  ;;  %v9931_v47 = vld [vmem:[#allocation2 + $0x8] sm:$0xff] }
 0x174   : > { %710 = vst.msk [vmem:[#allocation2 + $0x18] sm:$0xff] %vm706_vm1, %v693_v37  ;;  %v9921_v39 = vld [vmem:[#allocation2] sm:$0xff] }
 0x175   : > { %709 = vst.msk [vmem:[#allocation2 + $0x10] sm:$0xff] %vm706_vm1, %v692_v38  ;;  %v8086_v40 = vpop.f32.mrb[8].mxu0  ;;  %757 = vrot.lane.b32.xlu0 %v9921_v39, %s9595_s13  ;;  %8112 = vmatprep.mubr.msk.bf16.mxu1 %vm761_vm2, %v9921_v39 }
 0x176   : > { %v604_v41 = vadd.f32 %v8086_v40, %v9908_v19  ;;  %v595_v42 = vpop.f32.mrb[9].mxu0 }
 0x177   : > { %v596_v43 = vadd.f32 %v9908_v19, %v595_v42  ;;  %v8087_v44 = vpop.f32.mrb[10].mxu0 }
 0x178   : > { %v607_v45 = vadd.f32 %v8087_v44, %v9908_v19  ;;  %v598_v46 = vpop.f32.mrb[11].mxu0 }
 0x179   : > { %v599_v48 = vadd.f32 %v9908_v19, %v598_v46  ;;  %759 = vrot.lane.b32.xlu0 %v9931_v47, %s9595_s13 }
 0x17a   : > { %v695_v49 = vpack.c.bf16 %v607_v45, %v604_v41 }
 0x17b   : > { %v694_v50 = vpack.c.bf16 %v599_v48, %v596_v43  ;;  %v9945_v59 = vld [vmem:[#allocation2 + $0x18] sm:$0xff] }
 0x17c   : > { %712 = vst.msk [vmem:[#allocation2 + $0x28] sm:$0xff] %vm706_vm1, %v695_v49  ;;  %v9937_v51 = vld [vmem:[#allocation2 + $0x10] sm:$0xff] }
 0x17d   : > { %711 = vst.msk [vmem:[#allocation2 + $0x20] sm:$0xff] %vm706_vm1, %v694_v50  ;;  %v8090_v52 = vpop.f32.mrb[12].mxu0  ;;  %825 = vrot.lane.b32.xlu1 %v9937_v51, %s9595_s13 }
 0x17e   : > { %v620_v53 = vadd.f32 %v8090_v52, %v9908_v19  ;;  %v611_v54 = vpop.f32.mrb[13].mxu0 }
 0x17f   : > { %v612_v55 = vadd.f32 %v9908_v19, %v611_v54  ;;  %v8091_v56 = vpop.f32.mrb[14].mxu0 }
 0x180   : > { %v623_v57 = vadd.f32 %v8091_v56, %v9908_v19  ;;  %v614_v58 = vpop.f32.mrb[15].mxu0 }
 0x181   : > { %v615_v60 = vadd.f32 %v9908_v19, %v614_v58  ;;  %827 = vrot.lane.b32.xlu1 %v9945_v59, %s9595_s13 }
 0x182   : > { %v697_v61 = vpack.c.bf16 %v623_v57, %v620_v53 }
 0x183   : > { %v696_v62 = vpack.c.bf16 %v615_v60, %v612_v55  ;;  %v9950_v63 = vld [vmem:[#allocation2 + $0x28] sm:$0xff] }
 0x184   : > { %714 = vst.msk [vmem:[#allocation2 + $0x38] sm:$0xff] %vm706_vm1, %v697_v61  ;;  %v9953_v0 = vld [vmem:[#allocation2 + $0x20] sm:$0xff] }
 0x185   : > { %713 = vst.msk [vmem:[#allocation2 + $0x30] sm:$0xff] %vm706_vm1, %v696_v62  ;;  %v8094_v1 = vpop.f32.mrb[16].mxu0  ;;  %894 = vrot.lane.b32.xlu1 %v9950_v63, %s9595_s13  ;;  %892 = vrot.lane.b32.xlu0 %v9953_v0, %s9595_s13 }
 0x186   : > { %v636_v2 = vadd.f32 %v8094_v1, %v9908_v19  ;;  %v627_v3 = vpop.f32.mrb[17].mxu0 }
 0x187   : > { %v628_v4 = vadd.f32 %v9908_v19, %v627_v3  ;;  %v8095_v5 = vpop.f32.mrb[18].mxu0 }
 0x188   : > { %v639_v6 = vadd.f32 %v8095_v5, %v9908_v19  ;;  %v630_v7 = vpop.f32.mrb[19].mxu0 }
 0x189   : > { %v631_v8 = vadd.f32 %v9908_v19, %v630_v7 }
 0x18a   : > { %v699_v9 = vpack.c.bf16 %v639_v6, %v636_v2 }
 0x18b   : > { %v698_v10 = vpack.c.bf16 %v631_v8, %v628_v4  ;;  %v9964_v11 = vld [vmem:[#allocation2 + $0x38] sm:$0xff] }
 0x18c   : > { %716 = vst.msk [vmem:[#allocation2 + $0x48] sm:$0xff] %vm706_vm1, %v699_v9  ;;  %961 = vrot.lane.b32.xlu1 %v9964_v11, %s9595_s13  ;;  %v9969_v12 = vld [vmem:[#allocation2 + $0x30] sm:$0xff] }
 0x18d   : > { %715 = vst.msk [vmem:[#allocation2 + $0x40] sm:$0xff] %vm706_vm1, %v698_v10  ;;  %959 = vrot.lane.b32.xlu0 %v9969_v12, %s9595_s13  ;;  %v8098_v13 = vpop.f32.mrb[20].mxu0 }
 0x18e   : > { %v652_v14 = vadd.f32 %v8098_v13, %v9908_v19  ;;  %v643_v15 = vpop.f32.mrb[21].mxu0 }
 0x18f   : > { %v644_v16 = vadd.f32 %v9908_v19, %v643_v15  ;;  %v8099_v17 = vpop.f32.mrb[22].mxu0 }
 0x190   : > { %v655_v18 = vadd.f32 %v8099_v17, %v9908_v19  ;;  %v646_v20 = vpop.f32.mrb[23].mxu0 }
 0x191   : > { %v647_v21 = vadd.f32 %v9908_v19, %v646_v20 }
 0x192   : > { %v701_v22 = vpack.c.bf16 %v655_v18, %v652_v14 }
 0x193   : > { %v700_v23 = vpack.c.bf16 %v647_v21, %v644_v16  ;;  %v9978_v24 = vld [vmem:[#allocation2 + $0x48] sm:$0xff] }
 0x194   : > { %718 = vst.msk [vmem:[#allocation2 + $0x58] sm:$0xff] %vm706_vm1, %v701_v22  ;;  %1028 = vrot.lane.b32.xlu1 %v9978_v24, %s9595_s13  ;;  %v9983_v25 = vld [vmem:[#allocation2 + $0x40] sm:$0xff] }
 0x195   : > { %717 = vst.msk [vmem:[#allocation2 + $0x50] sm:$0xff] %vm706_vm1, %v700_v23  ;;  %v8102_v26 = vpop.f32.mrb[24].mxu0  ;;  %8144 = vmatprep.mubr.msk.bf16.mxu0 %vm761_vm2, %v9983_v25  ;;  %1026 = vrot.lane.b32.xlu0 %v9983_v25, %s9595_s13 }
 0x196   : > { %v668_v27 = vadd.f32 %v8102_v26, %v9908_v19  ;;  %v659_v28 = vpop.f32.mrb[25].mxu0 }
 0x197   : > { %v660_v29 = vadd.f32 %v9908_v19, %v659_v28  ;;  %v8103_v30 = vpop.f32.mrb[26].mxu0 }
 0x198   : > { %v671_v31 = vadd.f32 %v8103_v30, %v9908_v19  ;;  %v662_v32 = vpop.f32.mrb[27].mxu0 }
 0x199   : > { %v663_v33 = vadd.f32 %v9908_v19, %v662_v32 }
 0x19a   : > { %v703_v34 = vpack.c.bf16 %v671_v31, %v668_v27 }
 0x19b   : > { %v702_v35 = vpack.c.bf16 %v663_v33, %v660_v29  ;;  %v9994_v36 = vld [vmem:[#allocation2 + $0x58] sm:$0xff] }
 0x19c   : > { %720 = vst.msk [vmem:[#allocation2 + $0x68] sm:$0xff] %vm706_vm1, %v703_v34  ;;  %v9997_v37 = vld [vmem:[#allocation2 + $0x50] sm:$0xff]  ;;  %1095 = vrot.lane.b32.xlu1 %v9994_v36, %s9595_s13 }
 0x19d   : > { %719 = vst.msk [vmem:[#allocation2 + $0x60] sm:$0xff] %vm706_vm1, %v702_v35  ;;  %v8106_v38 = vpop.f32.mrb[28].mxu0  ;;  %1093 = vrot.lane.b32.xlu0 %v9997_v37, %s9595_s13 }
 0x19e   : > { %v684_v40 = vadd.f32 %v8106_v38, %v9908_v19  ;;  %v675_v41 = vpop.f32.mrb[29].mxu0  ;;  %v7776_v38 = vld [vmem:[#allocation9 + $0x8] sm:$0xff]  }
 0x19f   : > { %v676_v42 = vadd.f32 %v9908_v19, %v675_v41  ;;  %v8107_v43 = vpop.f32.mrb[30].mxu0  ;;  %v10122_v41 = vunpack.c.l.bf16 %v7776_v38 }
 0x1a0   : > { %v687_v44 = vadd.f32 %v8107_v43, %v9908_v19  ;;  %v678_v45 = vpop.f32.mrb[31].mxu0 }
 0x1a1   : > { %v679_v46 = vadd.f32 %v9908_v19, %v678_v45  ;;  %v10128_v45 = vld [vmem:[#allocation10 + $0x10] sm:$0xff] }
 0x1a2   : > { %v705_v48 = vpack.c.bf16 %v687_v44, %v684_v40  ;;  %v7745_v40 = vld [vmem:[#allocation9] sm:$0xff]  }
 0x1a3   : > { %v704_v49 = vpack.c.bf16 %v679_v46, %v676_v42  ;;  %v10008_v50 = vld [vmem:[#allocation2 + $0x68] sm:$0xff]  ;;  %v10124_v42 = vunpack.c.l.bf16 %v7745_v40  ;;  %v10126_v44 = vunpack.c.h.bf16 %v7745_v40 }
 0x1a4   : > { %722 = vst.msk [vmem:[#allocation2 + $0x78] sm:$0xff] %vm706_vm1, %v705_v48  ;;  %v10011_v52 = vld [vmem:[#allocation2 + $0x60] sm:$0xff]  ;;  %1162 = vrot.lane.b32.xlu1 %v10008_v50, %s9595_s13 }
 0x1a5   : > { %721 = vst.msk [vmem:[#allocation2 + $0x70] sm:$0xff] %vm706_vm1, %v704_v49  ;;  %1160 = vrot.lane.b32.xlu0 %v10011_v52, %s9595_s13  ;;  %v10131_v49 = vunpack.c.h.bf16 %v7776_v38 }
 0x1ab   : > { %v10018_v53 = vld [vmem:[#allocation2 + $0x78] sm:$0xff] }
 0x1ac   : > { %1229 = vrot.lane.b32.xlu1 %v10018_v53, %s9595_s13  ;;  %v10022_v19 = vld [vmem:[#allocation2 + $0x70] sm:$0xff] }
 0x1ad   : > { %1227 = vrot.lane.b32.xlu0 %v10022_v19, %s9595_s13  ;;  %s9608_s13 = smov 24  }
 0x1b0   : > { %1628 = vrot.lane.b32.xlu1 %v9921_v39, %s9596_s15 }
 0x1b1   : > { %1689 = vrot.lane.b32.xlu0 %v9937_v51, %s9596_s15 }
 0x1b4   : > { %1630 = vrot.lane.b32.xlu1 %v9931_v47, %s9596_s15 }
 0x1b5   : > { %1750 = vrot.lane.b32.xlu0 %v9953_v0, %s9596_s15 }
 0x1b8   : > { %1752 = vrot.lane.b32.xlu1 %v9950_v63, %s9596_s15 }
 0x1b9   : > { %1691 = vrot.lane.b32.xlu0 %v9945_v59, %s9596_s15 }
 0x1bc   : > { %1872 = vrot.lane.b32.xlu1 %v9983_v25, %s9596_s15 }
 0x1bd   : > { %1811 = vrot.lane.b32.xlu0 %v9969_v12, %s9596_s15 }
 0x1c0   : > { %1933 = vrot.lane.b32.xlu1 %v9997_v37, %s9596_s15 }
 0x1c1   : > { %1813 = vrot.lane.b32.xlu0 %v9964_v11, %s9596_s15 }
 0x1c4   : > { %1935 = vrot.lane.b32.xlu1 %v9994_v36, %s9596_s15 }
 0x1c5   : > { %1874 = vrot.lane.b32.xlu0 %v9978_v24, %s9596_s15 }
 0x1c8   : > { %2055 = vrot.lane.b32.xlu1 %v10022_v19, %s9596_s15 }
 0x1c9   : > { %1994 = vrot.lane.b32.xlu0 %v10011_v52, %s9596_s15 }
 0x1cd   : > { %1996 = vrot.lane.b32.xlu0 %v10008_v50, %s9596_s15 }
 0x1e7   : > { %v758_v54 = vpop.permute.xlu0 %757 }
 0x1e8   : > { %8660 = vmatprep.subr.msk.bf16.mxu1 %vm761_vm2, %v758_v54  ;;  %v769_v55 = vsel %vm761_vm2, %v758_v54, 0 }
 0x1e9   : > { %8109 = vmatpush3.bf16.xpose.msra.mxu1 %v769_v55 }
 0x1eb   : > { %v760_v56 = vpop.permute.xlu0 %759 }
 0x1ec   : > { %8661 = vmatprep.subr.msk.bf16.mxu1 %vm761_vm2, %v760_v56  ;;  %v772_v57 = vsel %vm761_vm2, %v760_v56, 0  ;;  %v10134_v56 = vld [vmem:[#allocation10] sm:$0xff] }
 0x1ef   : > { %v826_v58 = vpop.permute.xlu1 %825 }
 0x1f0   : > { %v836_v60 = vsel %vm761_vm2, %v826_v58, 0 }
 0x1f1   : > { %8111 = vmatpush3.bf16.xpose.msra.mxu1 %v772_v57 }
 0x1f2   : > { %8662 = vmatprep.subr.msk.bf16.mxu1 %vm761_vm2, %v826_v58 }
 0x1f3   : > { %v828_v61 = vpop.permute.xlu1 %827 }
 0x1f4   : > { %v839_v1 = vsel %vm761_vm2, %v828_v61, 0 }
 0x1f7   : > { %v893_v62 = vpop.permute.xlu0 %892  ;;  %v895_v2 = vpop.permute.xlu1 %894 }
 0x1f8   : > { %8113 = vmatmul.mubr.msk.bf16.vlgmr.msra.gmra.mrb[0].mxu1 %vm761_vm2, %v9931_v47  ;;  %v903_v6 = vsel %vm761_vm2, %v893_v62, 0  ;;  %v906_v9 = vsel %vm761_vm2, %v895_v2, 0 }
 0x1f9   : > { %8117 = vmatpush3.bf16.xpose.msra.mxu1 %v836_v60  ;;  %8120 = vmatprep.mubr.msk.bf16.mxu1 %vm761_vm2, %v9937_v51  ;;  %v10139_v60 = vld [vmem:[#allocation10 + $0x8] sm:$0xff] }
 0x1fa   : > { %8663 = vmatprep.subr.msk.bf16.mxu1 %vm761_vm2, %v828_v61 }
 0x1fe   : > { %v962_v4 = vpop.permute.xlu1 %961 }
 0x1ff   : > { %v960_v3 = vpop.permute.xlu0 %959  ;;  %v973_v21 = vsel %vm761_vm2, %v962_v4, 0 }
 0x200   : > { %v970_v16 = vsel %vm761_vm2, %v960_v3, 0 }
 0x201   : > { %8119 = vmatpush3.bf16.xpose.msra.mxu1 %v839_v1 }
 0x202   : > { %8664 = vmatprep.subr.msk.bf16.mxu1 %vm761_vm2, %v893_v62 }
 0x206   : > { %v1029_v8 = vpop.permute.xlu1 %1028 }
 0x207   : > { %v1027_v5 = vpop.permute.xlu0 %1026  ;;  %v1040_v10 = vsel %vm761_vm2, %v1029_v8, 0 }
 0x208   : > { %8121 = vmatmul.mubr.msk.bf16.vlgmr.msra.gmra.mrb[4].mxu1 %vm761_vm2, %v9945_v59  ;;  %8668 = vmatprep.subr.msk.bf16.mxu0 %vm761_vm2, %v1027_v5  ;;  %v1037_v7 = vsel %vm761_vm2, %v1027_v5, 0 }
 0x209   : > { %8125 = vmatpush3.bf16.xpose.msra.mxu1 %v903_v6  ;;  %8128 = vmatprep.mubr.msk.bf16.mxu1 %vm761_vm2, %v9953_v0 }
 0x20a   : > { %8141 = vmatpush3.bf16.xpose.msra.mxu0 %v1037_v7  ;;  %8665 = vmatprep.subr.msk.bf16.mxu1 %vm761_vm2, %v895_v2 }
 0x20b   : > { %8669 = vmatprep.subr.msk.bf16.mxu0 %vm761_vm2, %v1029_v8 }
 0x20e   : > { %v1096_v14 = vpop.permute.xlu1 %1095 }
 0x20f   : > { %v1094_v13 = vpop.permute.xlu0 %1093  ;;  %v1107_v30 = vsel %vm761_vm2, %v1096_v14, 0 }
 0x210   : > { %v1104_v27 = vsel %vm761_vm2, %v1094_v13, 0 }
 0x211   : > { %8127 = vmatpush3.bf16.xpose.msra.mxu1 %v906_v9 }
 0x212   : > { %8143 = vmatpush3.bf16.xpose.msra.mxu0 %v1040_v10  ;;  %8666 = vmatprep.subr.msk.bf16.mxu1 %vm761_vm2, %v960_v3  ;;  %v10162_v10 = vld [vmem:[#allocation10 + $0x30] sm:$0xff] }
 0x216   : > { %v1163_v18 = vpop.permute.xlu1 %1162 }
 0x217   : > { %v1161_v15 = vpop.permute.xlu0 %1160  ;;  %v1174_v22 = vsel %vm761_vm2, %v1163_v18, 0 }
 0x218   : > { %8129 = vmatmul.mubr.msk.bf16.vlgmr.msra.gmra.mrb[8].mxu1 %vm761_vm2, %v9950_v63  ;;  %8672 = vmatprep.subr.msk.bf16.mxu0 %vm761_vm2, %v1161_v15  ;;  %v1171_v17 = vsel %vm761_vm2, %v1161_v15, 0 }
 0x219   : > { %8145 = vmatmul.mubr.msk.bf16.vlgmr.msra.gmra.mrb[32].mxu0 %vm761_vm2, %v9978_v24  ;;  %8133 = vmatpush3.bf16.xpose.msra.mxu1 %v970_v16 }
 0x21a   : > { %8136 = vmatprep.mubr.msk.bf16.mxu1 %vm761_vm2, %v9969_v12  ;;  %8157 = vmatpush3.bf16.xpose.msra.mxu0 %v1171_v17  ;;  %v10166_v17 = vld [vmem:[#allocation10 + $0x38] sm:$0xff] }
 0x21b   : > { %8160 = vmatprep.mubr.msk.bf16.mxu0 %vm761_vm2, %v10011_v52  ;;  %8667 = vmatprep.subr.msk.bf16.mxu1 %vm761_vm2, %v962_v4  ;;  %v10151_v4 = vld [vmem:[#allocation10 + $0x18] sm:$0xff] }
 0x21c   : > { %8673 = vmatprep.subr.msk.bf16.mxu0 %vm761_vm2, %v1163_v18  ;;  %v10168_v18 = vld [vmem:[#allocation10 + $0x20] sm:$0xff] }
 0x21e   : > { %v1230_v20 = vpop.permute.xlu1 %1229 }
 0x21f   : > { %v1228_v26 = vpop.permute.xlu0 %1227  ;;  %v1241_v32 = vsel %vm761_vm2, %v1230_v20, 0 }
 0x220   : > { %v1238_v31 = vsel %vm761_vm2, %v1228_v26, 0 }
 0x221   : > { %8135 = vmatpush3.bf16.xpose.msra.mxu1 %v973_v21 }
 0x222   : > { %8159 = vmatpush3.bf16.xpose.msra.mxu0 %v1174_v22  ;;  %v1629_v23 = vpop.permute.xlu1 %1628  ;;  %8670 = vmatprep.subr.msk.bf16.mxu1 %vm761_vm2, %v1094_v13 }
 0x223   : > { %8172 = vmatprep.subr.bf16.mxu0 %v1629_v23  ;;  %v10105_v29 = vpop.permute.xlu0 %1689 }
 0x226   : > { %v1631_v28 = vpop.permute.xlu1 %1630 }
 0x227   : > { %v1751_v33 = vpop.permute.xlu0 %1750 }
 0x228   : > { %8137 = vmatmul.mubr.msk.bf16.vlgmr.msra.gmra.mrb[12].mxu1 %vm761_vm2, %v9964_v11 }
 0x229   : > { %8161 = vmatmul.mubr.msk.bf16.vlgmr.msra.gmra.mrb[36].mxu0 %vm761_vm2, %v10008_v50  ;;  %8149 = vmatpush3.bf16.xpose.msra.mxu1 %v1104_v27 }
 0x22a   : > { %8152 = vmatprep.mubr.msk.bf16.mxu1 %vm761_vm2, %v9997_v37  ;;  %8173 = vmatpush3.bf16.msra.mxu0 %v1629_v23  ;;  %v1753_v34 = vpop.permute.xlu1 %1752 }
 0x22b   : > { %8174 = vmatprep.subr.bf16.mxu0 %v1631_v28  ;;  %8671 = vmatprep.subr.msk.bf16.mxu1 %vm761_vm2, %v1096_v14 }
 0x22e   : > { %8175 = vmatpush3.bf16.msra.mxu0 %v1631_v28  ;;  %v10119_v35 = vpop.permute.xlu1 %1872 }
 0x22f   : > { %8180 = vmatprep.subr.bf16.mxu0 %v10105_v29 }
 0x231   : > { %8151 = vmatpush3.bf16.xpose.msra.mxu1 %v1107_v30 }
 0x232   : > { %8674 = vmatprep.subr.msk.bf16.mxu1 %vm761_vm2, %v1228_v26  ;;  %v10175_v26 = vld [vmem:[#allocation10 + $0x28] sm:$0xff] }
 0x238   : > { %8153 = vmatmul.mubr.msk.bf16.vlgmr.msra.gmra.mrb[16].mxu1 %vm761_vm2, %v9994_v36 }
 0x239   : > { %8165 = vmatpush3.bf16.xpose.msra.mxu1 %v1238_v31  ;;  %8168 = vmatprep.mubr.msk.bf16.mxu1 %vm761_vm2, %v10022_v19 }
 0x23a   : > { %8675 = vmatprep.subr.msk.bf16.mxu1 %vm761_vm2, %v1230_v20 }
 0x241   : > { %8167 = vmatpush3.bf16.xpose.msra.mxu1 %v1241_v32 }
 0x242   : > { %8188 = vmatprep.subr.bf16.mxu1 %v1751_v33 }
 0x248   : > { %8169 = vmatmul.mubr.msk.bf16.vlgmr.msra.gmra.mrb[20].mxu1 %vm761_vm2, %v10018_v53 }
 0x249   : > { %8189 = vmatpush3.bf16.msra.mxu1 %v1751_v33 }
 0x24a   : > { %8190 = vmatprep.subr.bf16.mxu1 %v1753_v34 }
 0x24d   : > { %8191 = vmatpush3.bf16.msra.mxu1 %v1753_v34 }
 0x24e   : > { %8204 = vmatprep.subr.bf16.mxu1 %v10119_v35 }
 0x2cb   : > { %v8114_v43 = vpop.f32.mrb[0].mxu1 }
 0x2cc   : > { %v817_v46 = vadd.f32 %v8114_v43, %v10122_v41  ;;  %v808_v48 = vpop.f32.mrb[1].mxu1 }
 0x2cd   : > { %v809_v54 = vadd.f32 %v10124_v42, %v808_v48  ;;  %v8115_v55 = vpop.f32.mrb[2].mxu1 }
 0x2ce   : > { %v811_v57 = vpop.f32.mrb[3].mxu1  ;;  %v10137_v58 = vadd.f32 %v817_v46, %v10128_v45  ;;  %v820_v62 = vadd.f32 %v8115_v55, %v10131_v49 }
 0x2cf   : > { %v812_v61 = vadd.f32 %v10126_v44, %v811_v57  ;;  %v10146_v2 = vadd.f32 %v809_v54, %v10134_v56 }
 0x2d0   : > { %v1330_v1 = vsel %vm480_vm0, %v10137_v58, -inf  ;;  %v10158_v7 = vadd.f32 %v820_v62, %v10151_v4 }
 0x2d1   : > { %1331 = vmax.xlane.f32.xlu0 %v1330_v1  ;;  %v10149_v3 = vadd.f32 %v812_v61, %v10139_v60  ;;  %v1324_v6 = vsel %vm480_vm0, %v10146_v2, -inf }
 0x2d2   : > { %v1333_v8 = vsel %vm480_vm0, %v10158_v7, -inf }
 0x2d3   : > { %v1327_v5 = vsel %vm480_vm0, %v10149_v3, -inf }
 0x2d4   : > { %1328 = vmax.xlane.f32.xlu1 %v1327_v5 }
 0x2d5   : > { %1325 = vmax.xlane.f32.xlu0 %v1324_v6 }
 0x2d9   : > { %1334 = vmax.xlane.f32.xlu0 %v1333_v8 }
 0x2db   : > { %v8122_v9 = vpop.f32.mrb[4].mxu1 }
 0x2dc   : > { %v884_v13 = vadd.f32 %v8122_v9, %v10122_v41  ;;  %v875_v14 = vpop.f32.mrb[5].mxu1 }
 0x2dd   : > { %v876_v15 = vadd.f32 %v10124_v42, %v875_v14  ;;  %v8123_v16 = vpop.f32.mrb[6].mxu1 }
 0x2de   : > { %v887_v20 = vadd.f32 %v8123_v16, %v10131_v49  ;;  %v878_v21 = vpop.f32.mrb[7].mxu1  ;;  %v10172_v22 = vadd.f32 %v884_v13, %v10162_v10 }
 0x2df   : > { %v879_v23 = vadd.f32 %v10126_v44, %v878_v21  ;;  %v10183_v30 = vadd.f32 %v876_v15, %v10168_v18 }
 0x2e0   : > { %v1342_v27 = vsel %vm480_vm0, %v10172_v22, -inf  ;;  %v10180_v28 = vadd.f32 %v887_v20, %v10166_v17 }
 0x2e1   : > { %1343 = vmax.xlane.f32.xlu1 %v1342_v27  ;;  %v10188_v32 = vadd.f32 %v879_v23, %v10175_v26  ;;  %v1336_v33 = vsel %vm480_vm0, %v10183_v30, -inf }
 0x2e2   : > { %v1345_v31 = vsel %vm480_vm0, %v10180_v28, -inf }
 0x2e3   : > { %1346 = vmax.xlane.f32.xlu0 %v1345_v31  ;;  %v1339_v34 = vsel %vm480_vm0, %v10188_v32, -inf }
 0x2e5   : > { %1337 = vmax.xlane.f32.xlu1 %v1336_v33 }
 0x2e7   : > { %1340 = vmax.xlane.f32.xlu0 %v1339_v34 }
 0x2eb   : > { %v8130_v38 = vpop.f32.mrb[8].mxu1 }
 0x2ec   : > { %v951_v40 = vadd.f32 %v8130_v38, %v10122_v41  ;;  %v8146_v43 = vpop.f32.mrb[32].mxu0  ;;  %v942_v46 = vpop.f32.mrb[9].mxu1 }
 0x2ed   : > { %v1085_v48 = vadd.f32 %v8146_v43, %v10122_v41  ;;  %v1076_v54 = vpop.f32.mrb[33].mxu0  ;;  %v8131_v55 = vpop.f32.mrb[10].mxu1  ;;  %v943_v8 = vadd.f32 %v10124_v42, %v942_v46 }
 0x2ee   : > { %v954_v57 = vadd.f32 %v8131_v55, %v10131_v49  ;;  %v8147_v61 = vpop.f32.mrb[34].mxu0  ;;  %v945_v62 = vpop.f32.mrb[11].mxu1  ;;  %v10198_v1 = vadd.f32 %v951_v40, %v10128_v45  ;;  %v1077_v21 = vadd.f32 %v10124_v42, %v1076_v54 }
 0x2ef   : > { %v1088_v5 = vadd.f32 %v8147_v61, %v10131_v49  ;;  %v1079_v6 = vpop.f32.mrb[35].mxu0  ;;  %v10208_v14 = vadd.f32 %v1085_v48, %v10128_v45  ;;  %v946_v15 = vadd.f32 %v10126_v44, %v945_v62  ;;  %v10220_v27 = vadd.f32 %v943_v8, %v10134_v56 }
 0x2f0   : > { %v1354_v9 = vsel %vm480_vm0, %v10198_v1, -inf  ;;  %v10205_v13 = vadd.f32 %v954_v57, %v10151_v4  ;;  %v1080_v31 = vadd.f32 %v10126_v44, %v1079_v6  ;;  %v10231_v40 = vadd.f32 %v1077_v21, %v10134_v56 }
 0x2f1   : > { %1355 = vmax.xlane.f32.xlu1 %v1354_v9  ;;  %v10214_v20 = vadd.f32 %v1088_v5, %v10151_v4  ;;  %v1378_v23 = vsel %vm480_vm0, %v10208_v14, -inf  ;;  %v10226_v34 = vadd.f32 %v946_v15, %v10139_v60  ;;  %v1348_v38 = vsel %vm480_vm0, %v10220_v27, -inf }
 0x2f2   : > { %v1357_v16 = vsel %vm480_vm0, %v10205_v13, -inf  ;;  %v10236_v46 = vadd.f32 %v1080_v31, %v10139_v60  ;;  %v1372_v61 = vsel %vm480_vm0, %v10231_v40, -inf }
 0x2f3   : > { %1358 = vmax.xlane.f32.xlu0 %v1357_v16  ;;  %v1381_v33 = vsel %vm480_vm0, %v10214_v20, -inf  ;;  %v1351_v43 = vsel %vm480_vm0, %v10226_v34, -inf }
 0x2f4   : > { %v1375_v21 = vsel %vm480_vm0, %v10236_v46, -inf }
 0x2f5   : > { %1379 = vmax.xlane.f32.xlu1 %v1378_v23 }
 0x2f7   : > { %1382 = vmax.xlane.f32.xlu0 %v1381_v33 }
 0x2f9   : > { %1349 = vmax.xlane.f32.xlu1 %v1348_v38 }
 0x2fb   : > { %v8138_v48 = vpop.f32.mrb[12].mxu1  ;;  %1352 = vmax.xlane.f32.xlu0 %v1351_v43 }
 0x2fc   : > { %v1018_v54 = vadd.f32 %v8138_v48, %v10122_v41  ;;  %v8162_v55 = vpop.f32.mrb[36].mxu0  ;;  %v1009_v57 = vpop.f32.mrb[13].mxu1 }
 0x2fd   : > { %v1219_v62 = vadd.f32 %v8162_v55, %v10122_v41  ;;  %v1010_v5 = vadd.f32 %v10124_v42, %v1009_v57  ;;  %v1210_v6 = vpop.f32.mrb[37].mxu0  ;;  %v8139_v8 = vpop.f32.mrb[14].mxu1  ;;  %1373 = vmax.xlane.f32.xlu1 %v1372_v61 }
 0x2fe   : > { %v1211_v9 = vadd.f32 %v10124_v42, %v1210_v6  ;;  %v8163_v15 = vpop.f32.mrb[38].mxu0  ;;  %v1012_v16 = vpop.f32.mrb[15].mxu1  ;;  %v10247_v23 = vadd.f32 %v1018_v54, %v10162_v10  ;;  %v1021_v55 = vadd.f32 %v8139_v8, %v10131_v49 }
 0x2ff   : > { %v1213_v31 = vpop.f32.mrb[39].mxu0  ;;  %1376 = vmax.xlane.f32.xlu0 %v1375_v21  ;;  %v10250_v33 = vadd.f32 %v1219_v62, %v10128_v45  ;;  %v10256_v48 = vadd.f32 %v1010_v5, %v10168_v18  ;;  %v1222_v62 = vadd.f32 %v8163_v15, %v10131_v49  ;;  %v1013_v8 = vadd.f32 %v10126_v44, %v1012_v16 }
 0x300   : > { %v1214_v38 = vadd.f32 %v10126_v44, %v1213_v31  ;;  %v1366_v43 = vsel %vm480_vm0, %v10247_v23, -inf  ;;  %v10262_v57 = vadd.f32 %v1211_v9, %v10134_v56  ;;  %v10273_v6 = vadd.f32 %v1021_v55, %v10166_v17 }
 0x301   : > { %1367 = vmax.xlane.f32.xlu1 %v1366_v43  ;;  %v1402_v54 = vsel %vm480_vm0, %v10250_v33, -inf  ;;  %v1360_v45 = vsel %vm480_vm0, %v10256_v48, -inf  ;;  %v10281_v9 = vadd.f32 %v1222_v62, %v10151_v4 }
 0x302   : > { %v10267_v61 = vadd.f32 %v1214_v38, %v10139_v60  ;;  %v1396_v5 = vsel %vm480_vm0, %v10262_v57, -inf  ;;  %v1369_v60 = vsel %vm480_vm0, %v10273_v6, -inf }
 0x303   : > { %1403 = vmax.xlane.f32.xlu0 %v1402_v54  ;;  %v1405_v55 = vsel %vm480_vm0, %v10281_v9, -inf  ;;  %v10287_v54 = vadd.f32 %v1013_v8, %v10175_v26 }
 0x304   : > { %v1399_v56 = vsel %vm480_vm0, %v10267_v61, -inf }
 0x305   : > { %1361 = vmax.xlane.f32.xlu1 %v1360_v45  ;;  %v1363_v4 = vsel %vm480_vm0, %v10287_v54, -inf }
 0x307   : > { %1397 = vmax.xlane.f32.xlu0 %v1396_v5 }
 0x309   : > { %1400 = vmax.xlane.f32.xlu1 %v1399_v56 }
 0x30b   : > { %v8154_v15 = vpop.f32.mrb[16].mxu1  ;;  %1370 = vmax.xlane.f32.xlu0 %v1369_v60 }
 0x30c   : > { %v1143_v21 = vpop.f32.mrb[17].mxu1  ;;  %v1152_v38 = vadd.f32 %v8154_v15, %v10122_v41 }
 0x30d   : > { %v8155_v31 = vpop.f32.mrb[18].mxu1  ;;  %v1144_v16 = vadd.f32 %v10124_v42, %v1143_v21 }
 0x30e   : > { %v1146_v43 = vpop.f32.mrb[19].mxu1  ;;  %v10293_v45 = vadd.f32 %v1152_v38, %v10162_v10  ;;  %v1155_v62 = vadd.f32 %v8155_v31, %v10131_v49 }
 0x30f   : > { %1406 = vmax.xlane.f32.xlu0 %v1405_v55  ;;  %v10299_v56 = vadd.f32 %v1144_v16, %v10168_v18  ;;  %v1147_v8 = vadd.f32 %v10126_v44, %v1146_v43 }
 0x310   : > { %13702 = vst [vmem:[#allocation18_spill] sm:$0xff] %v10293_v45  ;;  %v1390_v5 = vsel %vm480_vm0, %v10293_v45, -inf  ;;  %v10307_v15 = vadd.f32 %v1155_v62, %v10166_v17 }
 0x311   : > { %v1384_v60 = vsel %vm480_vm0, %v10299_v56, -inf  ;;  %v10314_v16 = vadd.f32 %v1147_v8, %v10175_v26 }
 0x312   : > { %v1393_v43 = vsel %vm480_vm0, %v10307_v15, -inf }
 0x313   : > { %1364 = vmax.xlane.f32.xlu0 %v1363_v4  ;;  %13703 = vst [vmem:[#allocation19_spill] sm:$0xff] %v10314_v16  ;;  %v1387_v4 = vsel %vm480_vm0, %v10314_v16, -inf }
 0x317   : > { %1391 = vmax.xlane.f32.xlu0 %v1390_v5  ;;  %v10321_v5 = vpop.permute.xlu0 %1691 }
 0x31a   : > { %2243 = vrot.lane.b32.xlu1 %v9921_v39, %s9597_s14 }
 0x31b   : > { %v8170_v21 = vpop.f32.mrb[20].mxu1  ;;  %1385 = vmax.xlane.f32.xlu0 %v1384_v60  ;;  %v10328_v8 = vpop.permute.xlu0 %1811 }
 0x31c   : > { %v1277_v31 = vpop.f32.mrb[21].mxu1 }
 0x31d   : > { %v8171_v38 = vpop.f32.mrb[22].mxu1 }
 0x31e   : > { %v1280_v55 = vpop.f32.mrb[23].mxu1  ;;  %2314 = vrot.lane.b32.xlu1 %v9937_v51, %s9597_s14 }
 0x31f   : > { %1394 = vmax.xlane.f32.xlu0 %v1393_v43  ;;  %v1281_v62 = vadd.f32 %v10126_v44, %v1280_v55  ;;  %v10330_v43 = vpop.permute.xlu0 %1813  ;;  %v1286_v44 = vadd.f32 %v8170_v21, %v10122_v41  ;;  %v10335_v55 = vpop.permute.xlu1 %1933 }
 0x321   : > { %v10324_v60 = vadd.f32 %v1281_v62, %v10175_v26  ;;  %v10341_v26 = vadd.f32 %v1286_v44, %v10162_v10 }
 0x323   : > { %1388 = vmax.xlane.f32.xlu0 %v1387_v4  ;;  %13704 = vst [vmem:[#allocation20_spill] sm:$0xff] %v10324_v60  ;;  %v1411_v45 = vsel %vm480_vm0, %v10324_v60, -inf  ;;  %v10332_v16 = vpop.permute.xlu0 %1874  ;;  %v1278_v4 = vadd.f32 %v10124_v42, %v1277_v31  ;;  %13705 = vst [vmem:[#allocation21_spill] sm:$0xff] %v10341_v26  ;;  %v1414_v41 = vsel %vm480_vm0, %v10341_v26, -inf  ;;  %v10353_v42 = vpop.permute.xlu1 %1935 }
 0x325   : > { %v10351_v21 = vadd.f32 %v1278_v4, %v10168_v18 }
 0x327   : > { %v10343_v62 = vpop.permute.xlu0 %1994  ;;  %13706 = vst [vmem:[#allocation22_spill] sm:$0xff] %v10351_v21 }
 0x32b   : > { %v10355_v31 = vpop.permute.xlu0 %1996 }
 0x339   : > { %2057 = vrot.lane.b32.xlu0 %v10018_v53, %s9596_s15 }
 0x342   : > { %1412 = vmax.xlane.f32.xlu1 %v1411_v45  ;;  %v1289_v45 = vadd.f32 %v8171_v38, %v10131_v49  ;;  %v1408_v49 = vsel %vm480_vm0, %v10351_v21, -inf  ;;  %v10364_v38 = vpop.permute.xlu1 %2055 }
 0x344   : > { %v10362_v10 = vadd.f32 %v1289_v45, %v10166_v17 }
 0x346   : > { %13707 = vst [vmem:[#allocation23_spill] sm:$0xff] %v10362_v10  ;;  %v1417_v18 = vsel %vm480_vm0, %v10362_v10, -inf }
 0x353   : > { %2316 = vrot.lane.b32.xlu1 %v9945_v59, %s9597_s14 }
 0x357   : > { %2241 = vrot.lane.b32.xlu1 %v9931_v47, %s9598_s8 }
 0x358   : > { %1415 = vmax.xlane.f32.xlu0 %v1414_v41 }
 0x35b   : > { %2387 = vrot.lane.b32.xlu1 %v9950_v63, %s9597_s14 }
 0x35c   : > { %1409 = vmax.xlane.f32.xlu0 %v1408_v49 }
 0x35e   : > { %v1332_v44 = vpop.xlane.xlu0 %1331 }
 0x35f   : > { %2312 = vrot.lane.b32.xlu1 %v9945_v59, %s9598_s8  ;;  %v1422_v41 = vsub.f32 %v10137_v58, %v1332_v44 }
 0x360   : > { %1418 = vmax.xlane.f32.xlu0 %v1417_v18 }
 0x361   : > { %v1329_v4 = vpop.xlane.xlu1 %1328  ;;  %v1456_v60 = vmul.f32 1.442695, %v1422_v41 }
 0x362   : > { %v1421_v26 = vsub.f32 %v10149_v3, %v1329_v4  ;;  %v1326_v21 = vpop.xlane.xlu0 %1325 }
 0x363   : > { %v1420_v17 = vsub.f32 %v10146_v2, %v1326_v21  ;;  %2458 = vrot.lane.b32.xlu1 %v9964_v11, %s9597_s14 }
 0x364   : > { %v1454_v45 = vmul.f32 1.442695, %v1421_v26 }
 0x365   : > { %v1452_v49 = vmul.f32 1.442695, %v1420_v17 }
 0x366   : > { %8840 = vpow2.f32 %v1454_v45  ;;  %v1335_v59 = vpop.xlane.xlu0 %1334 }
 0x367   : > { %8842 = vpow2.f32 %v1452_v49  ;;  %v1423_v10 = vsub.f32 %v10158_v7, %v1335_v59  ;;  %2383 = vrot.lane.b32.xlu1 %v9950_v63, %s9598_s8 }
 0x368   : > { %8844 = vpow2.f32 %v1456_v60 }
 0x369   : > { %v1458_v58 = vmul.f32 1.442695, %v1423_v10 }
 0x36b   : > { %8846 = vpow2.f32 %v1458_v58  ;;  %2529 = vrot.lane.b32.xlu1 %v9978_v24, %s9597_s14 }
 0x36e   : > { %v1344_v2 = vpop.xlane.xlu1 %1343 }
 0x36f   : > { %2454 = vrot.lane.b32.xlu1 %v9964_v11, %s9598_s8  ;;  %v1426_v44 = vsub.f32 %v10172_v22, %v1344_v2 }
 0x370   : > { %v10382_v3 = vpop.eup %8840  ;;  %v1347_v26 = vpop.xlane.xlu0 %1346 }
 0x371   : > { %13708 = vst [vmem:[#allocation24_spill] sm:$0xff] %v10382_v3  ;;  %v10384_v21 = vpop.eup %8842  ;;  %v1427_v7 = vsub.f32 %v10180_v28, %v1347_v26  ;;  %v1464_v45 = vmul.f32 1.442695, %v1426_v44 }
 0x372   : > { %13709 = vst [vmem:[#allocation25_spill] sm:$0xff] %v10384_v21  ;;  %v1338_v63 = vpop.xlane.xlu1 %1337  ;;  %v1612_v60 = vpack.c.bf16 %v10382_v3, %v10384_v21  ;;  %v10393_v4 = vpop.eup %8844 }
 0x373   : > { %v1466_v10 = vmul.f32 1.442695, %v1427_v7  ;;  %v1424_v18 = vsub.f32 %v10183_v30, %v1338_v63  ;;  %2600 = vrot.lane.b32.xlu1 %v9994_v36, %s9597_s14  ;;  %13710 = vst [vmem:[#allocation26_spill] sm:$0xff] %v10393_v4 }
 0x374   : > { %8176 = vmatprep.mubr.msk.bf16.mxu0 %vm480_vm0, %v1612_v60  ;;  %v1341_v41 = vpop.xlane.xlu0 %1340 }
 0x375   : > { %v10396_v17 = vpop.eup %8846  ;;  %v1460_v28 = vmul.f32 1.442695, %v1424_v18  ;;  %v1425_v22 = vsub.f32 %v10188_v32, %v1341_v41  ;;  %8848 = vpow2.f32 %v1466_v10 }
 0x376   : > { %13711 = vst [vmem:[#allocation27_spill] sm:$0xff] %v10396_v17  ;;  %2245 = vrot.lane.b32.xlu0 %v9931_v47, %s9597_s14  ;;  %v1613_v30 = vpack.c.bf16 %v10396_v17, %v10393_v4 }
 0x377   : > { %v1462_v49 = vmul.f32 1.442695, %v1425_v22  ;;  %2525 = vrot.lane.b32.xlu1 %v9978_v24, %s9598_s8  ;;  %8850 = vpow2.f32 %v1460_v28 }
 0x378   : > { %8177 = vmatmul.mubr.msk.bf16.vlgmr.msra.gmra.mrb[40].mxu0 %vm480_vm0, %v1613_v30 }
 0x379   : > { %8852 = vpow2.f32 %v1462_v49  ;;  %8181 = vmatpush3.bf16.msra.mxu0 %v10105_v29 }
 0x37a   : > { %8854 = vpow2.f32 %v1464_v45  ;;  %8182 = vmatprep.subr.bf16.mxu0 %v10321_v5  ;;  %2239 = vrot.lane.b32.xlu0 %v9921_v39, %s9598_s8 }
 0x37b   : > { %2671 = vrot.lane.b32.xlu1 %v10008_v50, %s9597_s14 }
 0x37d   : > { %8183 = vmatpush3.bf16.msra.mxu0 %v10321_v5 }
 0x37e   : > { %8196 = vmatprep.subr.bf16.mxu0 %v10328_v8  ;;  %v1356_v24 = vpop.xlane.xlu1 %1355  ;;  %2385 = vrot.lane.b32.xlu0 %v9953_v0, %s9597_s14 }
 0x37f   : > { %2596 = vrot.lane.b32.xlu1 %v9994_v36, %s9598_s8  ;;  %v10418_v32 = vpop.eup %8848  ;;  %v1430_v63 = vsub.f32 %v10198_v1, %v1356_v24 }
 0x380   : > { %v1359_v29 = vpop.xlane.xlu0 %1358  ;;  %13712 = vst [vmem:[#allocation28_spill] sm:$0xff] %v10418_v32 }
 0x381   : > { %v10420_v59 = vpop.eup %8850  ;;  %v1431_v5 = vsub.f32 %v10205_v13, %v1359_v29  ;;  %v1472_v18 = vmul.f32 1.442695, %v1430_v63 }
 0x382   : > { %13713 = vst [vmem:[#allocation29_spill] sm:$0xff] %v10420_v59  ;;  %v1380_v39 = vpop.xlane.xlu1 %1379  ;;  %2310 = vrot.lane.b32.xlu0 %v9937_v51, %s9598_s8 }
 0x383   : > { %v10424_v58 = vpop.eup %8852  ;;  %2667 = vrot.lane.b32.xlu1 %v10008_v50, %s9598_s8  ;;  %v1474_v51 = vmul.f32 1.442695, %v1431_v5  ;;  %v1438_v30 = vsub.f32 %v10208_v14, %v1380_v39 }
 0x384   : > { %13714 = vst [vmem:[#allocation30_spill] sm:$0xff] %v10424_v58  ;;  %v10429_v2 = vpop.eup %8854  ;;  %v1383_v26 = vpop.xlane.xlu0 %1382  ;;  %v1614_v7 = vpack.c.bf16 %v10424_v58, %v10420_v59 }
 0x385   : > { %13715 = vst [vmem:[#allocation31_spill] sm:$0xff] %v10429_v2  ;;  %v1615_v44 = vpack.c.bf16 %v10418_v32, %v10429_v2  ;;  %8856 = vpow2.f32 %v1474_v51  ;;  %v1488_v49 = vmul.f32 1.442695, %v1438_v30 }
 0x386   : > { %v1350_v60 = vpop.xlane.xlu1 %1349  ;;  %2456 = vrot.lane.b32.xlu0 %v9969_v12, %s9597_s14  ;;  %8184 = vmatprep.mubr.msk.bf16.mxu0 %vm480_vm0, %v1614_v7 }
 0x387   : > { %v1428_v50 = vsub.f32 %v10220_v27, %v1350_v60  ;;  %2736 = vrot.lane.b32.xlu1 %v10022_v19, %s9598_s8  ;;  %8185 = vmatmul.mubr.msk.bf16.vlgmr.msra.gmra.mrb[44].mxu0 %vm480_vm0, %v1615_v44 }
 0x388   : > { %8197 = vmatpush3.bf16.msra.mxu0 %v10328_v8  ;;  %v1353_v13 = vpop.xlane.xlu0 %1352  ;;  %v1439_v8 = vsub.f32 %v10214_v20, %v1383_v26 }
 0x389   : > { %v1468_v10 = vmul.f32 1.442695, %v1428_v50  ;;  %8198 = vmatprep.subr.bf16.mxu0 %v10330_v43  ;;  %v1429_v1 = vsub.f32 %v10226_v34, %v1353_v13 }
 0x38a   : > { %v1374_v41 = vpop.xlane.xlu1 %1373  ;;  %2381 = vrot.lane.b32.xlu0 %v9953_v0, %s9598_s8  ;;  %v1490_v20 = vmul.f32 1.442695, %v1439_v8 }
 0x38b   : > { %v1470_v27 = vmul.f32 1.442695, %v1429_v1  ;;  %v1436_v28 = vsub.f32 %v10231_v40, %v1374_v41  ;;  %3143 = vrot.lane.b32.xlu1 %v9931_v47, %s9599_s19  ;;  %8858 = vpow2.f32 %v1468_v10 }
 0x38c   : > { %8199 = vmatpush3.bf16.msra.mxu0 %v10330_v43  ;;  %v1377_v22 = vpop.xlane.xlu0 %1376 }
 0x38d   : > { %8860 = vpow2.f32 %v1470_v27  ;;  %v1484_v34 = vmul.f32 1.442695, %v1436_v28  ;;  %8212 = vmatprep.subr.bf16.mxu0 %v10335_v55  ;;  %v1437_v45 = vsub.f32 %v10236_v46, %v1377_v22 }
 0x38e   : > { %8862 = vpow2.f32 %v1472_v18  ;;  %v1368_v40 = vpop.xlane.xlu1 %1367  ;;  %2527 = vrot.lane.b32.xlu0 %v9983_v25, %s9597_s14 }
 0x38f   : > { %v1486_v47 = vmul.f32 1.442695, %v1437_v45  ;;  %3263 = vrot.lane.b32.xlu1 %v9953_v0, %s9599_s19  ;;  %8864 = vpow2.f32 %v1484_v34  ;;  %v10464_v46 = vpop.eup %8856  ;;  %v1434_v18 = vsub.f32 %v10247_v23, %v1368_v40 }
 0x390   : > { %v1404_v43 = vpop.xlane.xlu0 %1403  ;;  %13716 = vst [vmem:[#allocation32_spill] sm:$0xff] %v10464_v46 }
 0x391   : > { %8866 = vpow2.f32 %v1486_v47  ;;  %v1446_v44 = vsub.f32 %v10250_v33, %v1404_v43  ;;  %v1480_v8 = vmul.f32 1.442695, %v1434_v18 }
 0x392   : > { %v1362_v24 = vpop.xlane.xlu1 %1361  ;;  %2452 = vrot.lane.b32.xlu0 %v9969_v12, %s9598_s8  ;;  %8868 = vpow2.f32 %v1490_v20 }
 0x393   : > { %3385 = vrot.lane.b32.xlu1 %v9983_v25, %s9599_s19  ;;  %8870 = vpow2.f32 %v1488_v49  ;;  %v1432_v33 = vsub.f32 %v10256_v48, %v1362_v24  ;;  %v13730_v49 = vld [vmem:[#allocation18_spill] sm:$0xff] }
 0x394   : > { %v1398_v14 = vpop.xlane.xlu0 %1397 }
 0x395   : > { %v1444_v29 = vsub.f32 %v10262_v57, %v1398_v14  ;;  %v10467_v39 = vpop.eup %8858 }
 0x396   : > { %13717 = vst [vmem:[#allocation33_spill] sm:$0xff] %v10467_v39  ;;  %v1401_v0 = vpop.xlane.xlu1 %1400  ;;  %2598 = vrot.lane.b32.xlu0 %v9997_v37, %s9597_s14 }
 0x397   : > { %v10471_v5 = vpop.eup %8860  ;;  %v1500_v26 = vmul.f32 1.442695, %v1444_v29  ;;  %v1445_v12 = vsub.f32 %v10267_v61, %v1401_v0  ;;  %3326 = vrot.lane.b32.xlu1 %v9964_v11, %s9599_s19  ;;  %v1504_v61 = vmul.f32 1.442695, %v1446_v44 }
 0x398   : > { %13718 = vst [vmem:[#allocation34_spill] sm:$0xff] %v10471_v5  ;;  %v10476_v7 = vpop.eup %8862  ;;  %v1371_v57 = vpop.xlane.xlu0 %1370  ;;  %v1616_v63 = vpack.c.bf16 %v10471_v5, %v10467_v39 }
 0x399   : > { %13719 = vst [vmem:[#allocation35_spill] sm:$0xff] %v10476_v7  ;;  %v1502_v60 = vmul.f32 1.442695, %v1445_v12  ;;  %v1617_v51 = vpack.c.bf16 %v10464_v46, %v10476_v7  ;;  %v10483_v50 = vpop.eup %8864  ;;  %8872 = vpow2.f32 %v1500_v26  ;;  %v1435_v13 = vsub.f32 %v10273_v6, %v1371_v57  ;;  %v13733_v12 = vld [vmem:[#allocation19_spill] sm:$0xff] }
 0x39a   : > { %13720 = vst [vmem:[#allocation36_spill] sm:$0xff] %v10483_v50  ;;  %2523 = vrot.lane.b32.xlu0 %v9983_v25, %s9598_s8  ;;  %8192 = vmatprep.mubr.msk.bf16.mxu1 %vm480_vm0, %v1616_v63  ;;  %v1476_v6 = vmul.f32 1.442695, %v1432_v33  ;;  %v2244_v34 = vpop.permute.xlu1 %2243 }
 0x39b   : > { %v10488_v11 = vpop.eup %8866  ;;  %8874 = vpow2.f32 %v1502_v60  ;;  %3446 = vrot.lane.b32.xlu1 %v9997_v37, %s9599_s19  ;;  %8193 = vmatmul.mubr.msk.bf16.vlgmr.msra.gmra.mrb[24].mxu1 %vm480_vm0, %v1617_v51  ;;  %v1482_v27 = vmul.f32 1.442695, %v1435_v13  ;;  %v2254_v0 = vsel %vm761_vm2, %v2244_v34, 0  ;;  %v9352_v51 = vld [vmem:[#allocation2] sm:$0xff]  ;;  %v9354_v13 = vld [vmem:[#allocation2 + $0x18] sm:$0xff] }
 0x39c   : > { %13721 = vst [vmem:[#allocation37_spill] sm:$0xff] %v10488_v11  ;;  %8205 = vmatpush3.bf16.msra.mxu1 %v10119_v35  ;;  %v1407_v10 = vpop.xlane.xlu0 %1406  ;;  %v1620_v25 = vpack.c.bf16 %v10488_v11, %v10483_v50  ;;  %v10500_v48 = vpop.eup %8868  ;;  %8876 = vpow2.f32 %v1504_v61 }
 0x39d   : > { %8206 = vmatprep.subr.bf16.mxu1 %v10332_v16  ;;  %v1447_v1 = vsub.f32 %v10281_v9, %v1407_v10  ;;  %13722 = vst [vmem:[#allocation38_spill] sm:$0xff] %v10500_v48  ;;  %v10508_v35 = vpop.eup %8870 }
 0x39e   : > { %2669 = vrot.lane.b32.xlu0 %v10011_v52, %s9597_s14  ;;  %8208 = vmatprep.mubr.msk.bf16.mxu1 %vm480_vm0, %v1620_v25  ;;  %13723 = vst [vmem:[#allocation39_spill] sm:$0xff] %v10508_v35  ;;  %v1621_v28 = vpack.c.bf16 %v10500_v48, %v10508_v35 }
 0x39f   : > { %v1506_v41 = vmul.f32 1.442695, %v1447_v1  ;;  %3448 = vrot.lane.b32.xlu1 %v9994_v36, %s9599_s19  ;;  %v9355_v1 = vld [vmem:[#allocation2 + $0x28] sm:$0xff] }
 0x3a0   : > { %8207 = vmatpush3.bf16.msra.mxu1 %v10332_v16  ;;  %v1365_v9 = vpop.xlane.xlu0 %1364 }
 0x3a1   : > { %8878 = vpow2.f32 %v1506_v41  ;;  %8220 = vmatprep.subr.bf16.mxu1 %v10343_v62  ;;  %v1433_v23 = vsub.f32 %v10287_v54, %v1365_v9  ;;  %v2315_v41 = vpop.permute.xlu1 %2314  ;;  %v9358_v9 = vld [vmem:[#allocation2 + $0x60] sm:$0xff] }
 0x3a2   : > { %2594 = vrot.lane.b32.xlu0 %v9997_v37, %s9598_s8  ;;  %8880 = vpow2.f32 %v1476_v6  ;;  %v9356_v6 = vld [vmem:[#allocation2 + $0x30] sm:$0xff] }
 0x3a3   : > { %v1478_v36 = vmul.f32 1.442695, %v1433_v23  ;;  %3568 = vrot.lane.b32.xlu1 %v10022_v19, %s9599_s19  ;;  %8209 = vmatmul.mubr.msk.bf16.vlgmr.msra.gmra.mrb[28].mxu1 %vm480_vm0, %v1621_v28  ;;  %v10520_v16 = vpop.eup %8872  ;;  %8882 = vpow2.f32 %v1482_v27  ;;  %v9357_v27 = vld [vmem:[#allocation2 + $0x48] sm:$0xff] }
 0x3a4   : > { %13724 = vst [vmem:[#allocation40_spill] sm:$0xff] %v10520_v16  ;;  %8221 = vmatpush3.bf16.msra.mxu1 %v10343_v62  ;;  %v1392_v54 = vpop.xlane.xlu0 %1391  ;;  %v9359_v23 = vld [vmem:[#allocation2 + $0x68] sm:$0xff] }
 0x3a5   : > { %v10523_v22 = vpop.eup %8874  ;;  %8884 = vpow2.f32 %v1478_v36  ;;  %8222 = vmatprep.subr.bf16.mxu1 %v10355_v31  ;;  %v1442_v24 = vsub.f32 %v13730_v49, %v1392_v54  ;;  %v13738_v36 = vld [vmem:[#allocation20_spill] sm:$0xff] }
 0x3a6   : > { %13725 = vst [vmem:[#allocation41_spill] sm:$0xff] %v10523_v22  ;;  %8886 = vpow2.f32 %v1480_v8  ;;  %2740 = vrot.lane.b32.xlu0 %v10022_v19, %s9597_s14  ;;  %v1624_v37 = vpack.c.bf16 %v10523_v22, %v10520_v16  ;;  %v10533_v62 = vpop.eup %8876 }
 0x3a7   : > { %13726 = vst [vmem:[#allocation42_spill] sm:$0xff] %v10533_v62  ;;  %v1496_v63 = vmul.f32 1.442695, %v1442_v24 }
 0x3a8   : > { %8223 = vmatpush3.bf16.msra.mxu1 %v10355_v31  ;;  %8224 = vmatprep.mubr.msk.bf16.mxu1 %vm480_vm0, %v1624_v37  ;;  %v1386_v45 = vpop.xlane.xlu0 %1385 }
 0x3a9   : > { %8676 = vmatprep.subr.msk.bf16.mxu1 %vm761_vm2, %v2244_v34  ;;  %v1440_v19 = vsub.f32 %v10299_v56, %v1386_v45 }
 0x3aa   : > { %2665 = vrot.lane.b32.xlu0 %v10011_v52, %s9598_s8 }
 0x3ab   : > { %v10537_v30 = vpop.eup %8878  ;;  %v1492_v56 = vmul.f32 1.442695, %v1440_v19  ;;  %v13739_v19 = vld [vmem:[#allocation21_spill] sm:$0xff] }
 0x3ac   : > { %13727 = vst [vmem:[#allocation43_spill] sm:$0xff] %v10537_v30  ;;  %v1395_v40 = vpop.xlane.xlu0 %1394  ;;  %v1625_v47 = vpack.c.bf16 %v10537_v30, %v10533_v62  ;;  %v10542_v20 = vpop.eup %8880 }
 0x3ad   : > { %13728 = vst [vmem:[#allocation44_spill] sm:$0xff] %v10542_v20  ;;  %v1443_v31 = vsub.f32 %v10307_v15, %v1395_v40  ;;  %v10545_v43 = vpop.eup %8882  ;;  %8888 = vpow2.f32 %v1492_v56 }
 0x3ae   : > { %13729 = vst [vmem:[#allocation45_spill] sm:$0xff] %v10545_v43  ;;  %2742 = vrot.lane.b32.xlu0 %v10018_v53, %s9597_s14  ;;  %8225 = vmatmul.mubr.msk.bf16.vlgmr.msra.gmra.mrb[32].mxu1 %vm480_vm0, %v1625_v47  ;;  %s9609_s14 = smov [#allocation12]  }
 0x3af   : > { %v10551_v52 = vpop.eup %8884  ;;  %v1498_v29 = vmul.f32 1.442695, %v1443_v31  ;;  %v13740_v31 = vld [vmem:[#allocation22_spill] sm:$0xff] }
 0x3b0   : > { %13731 = vst [vmem:[#allocation18_spill] sm:$0xff] %v10551_v52  ;;  %v10553_v14 = vpop.eup %8886  ;;  %v1389_v26 = vpop.xlane.xlu0 %1388  ;;  %v1618_v15 = vpack.c.bf16 %v10551_v52, %v10542_v20  ;;  %v11448_v20 = vld [vmem:[#allocation10 + $0x30] sm:$0xff] }
 0x3b1   : > { %13732 = vst [vmem:[#allocation46_spill] sm:$0xff] %v10553_v14  ;;  %8237 = vmatpush3.bf16.xpose.msra.mxu1 %v2254_v0  ;;  %v1441_v44 = vsub.f32 %v13733_v12, %v1389_v26  ;;  %v1619_v57 = vpack.c.bf16 %v10545_v43, %v10553_v14  ;;  %8890 = vpow2.f32 %v1498_v29  ;;  %v13741_v0 = vld [vmem:[#allocation23_spill] sm:$0xff] }
 0x3b2   : > { %2738 = vrot.lane.b32.xlu0 %v10018_v53, %s9598_s8  ;;  %8200 = vmatprep.mubr.msk.bf16.mxu0 %vm480_vm0, %v1618_v15  ;;  %v9353_v53 = vld [vmem:[#allocation2 + $0x10] sm:$0xff]  ;;  %s9515_s8 = sshll.u32 %s9609_s14, 4  ;;  %s9516_s8 = int_to_ptr.vmem [resolvable:$false] %s9515_s8 }
 0x3b3   : > { %v1494_v60 = vmul.f32 1.442695, %v1441_v44  ;;  %8201 = vmatmul.mubr.msk.bf16.vlgmr.msra.gmra.mrb[48].mxu0 %vm480_vm0, %v1619_v57 }
 0x3b4   : > { %8213 = vmatpush3.bf16.msra.mxu0 %v10335_v55  ;;  %v2058_v18 = vpop.permute.xlu0 %2057 }
 0x3b5   : > { %8892 = vpow2.f32 %v1494_v60  ;;  %8214 = vmatprep.subr.bf16.mxu0 %v10353_v42 }
 0x3b6   : > { %8894 = vpow2.f32 %v1496_v63  ;;  %3141 = vrot.lane.b32.xlu0 %v9352_v51, %s9599_s19 }
 0x3b7   : > { %v10571_v33 = vpop.eup %8888 }
 0x3b8   : > { %8215 = vmatpush3.bf16.msra.mxu0 %v10353_v42  ;;  %13734 = vst [vmem:[#allocation19_spill] sm:$0xff] %v10571_v33 }
 0x3b9   : > { %8228 = vmatprep.subr.bf16.mxu0 %v10364_v38 }
 0x3ba   : > { %3202 = vrot.lane.b32.xlu0 %v9353_v53, %s9599_s19 }
 0x3bb   : > { %v10573_v61 = vpop.eup %8890 }
 0x3bc   : > { %13735 = vst [vmem:[#allocation47_spill] sm:$0xff] %v10573_v61 }
 0x3be   : > { %3204 = vrot.lane.b32.xlu0 %v9354_v13, %s9599_s19 }
 0x3bf   : > { %v10576_v55 = vpop.eup %8892 }
 0x3c0   : > { %13736 = vst [vmem:[#allocation48_spill] sm:$0xff] %v10576_v55  ;;  %v10578_v10 = vpop.eup %8894  ;;  %v1622_v25 = vpack.c.bf16 %v10576_v55, %v10571_v33 }
 0x3c1   : > { %13737 = vst [vmem:[#allocation49_spill] sm:$0xff] %v10578_v10  ;;  %v1623_v42 = vpack.c.bf16 %v10573_v61, %v10578_v10  ;;  %v9368_v61 = vld [vmem:[#allocation2 + $0x78] sm:$0xff] }
 0x3c2   : > { %3265 = vrot.lane.b32.xlu0 %v9355_v1, %s9599_s19  ;;  %8216 = vmatprep.mubr.msk.bf16.mxu0 %vm480_vm0, %v1622_v25 }
 0x3c3   : > { %8217 = vmatmul.mubr.msk.bf16.vlgmr.msra.gmra.mrb[52].mxu0 %vm480_vm0, %v1623_v42 }
 0x3c4   : > { %8229 = vmatpush3.bf16.msra.mxu0 %v10364_v38 }
 0x3c5   : > { %8230 = vmatprep.subr.bf16.mxu0 %v2058_v18 }
 0x3c6   : > { %3324 = vrot.lane.b32.xlu0 %v9356_v6, %s9599_s19 }
 0x3c8   : > { %8231 = vmatpush3.bf16.msra.mxu0 %v2058_v18 }
 0x3c9   : > { %8678 = vmatprep.subr.msk.bf16.mxu0 %vm761_vm2, %v2315_v41 }
 0x3ca   : > { %3387 = vrot.lane.b32.xlu0 %v9357_v27, %s9599_s19 }
 0x3ce   : > { %3507 = vrot.lane.b32.xlu0 %v9358_v9, %s9599_s19 }
 0x3cf   : > { %v1413_v28 = vpop.xlane.xlu1 %1412 }
 0x3d0   : > { %v1449_v54 = vsub.f32 %v13738_v36, %v1413_v28 }
 0x3d2   : > { %3509 = vrot.lane.b32.xlu0 %v9359_v23, %s9599_s19  ;;  %v1510_v34 = vmul.f32 1.442695, %v1449_v54  ;;  %v2325_v23 = vsel %vm761_vm2, %v2315_v41, 0 }
 0x3d3   : > { %v2317_v8 = vpop.permute.xlu1 %2316 }
 0x3d4   : > { %8896 = vpow2.f32 %v1510_v34  ;;  %v2328_v34 = vsel %vm761_vm2, %v2317_v8, 0 }
 0x3d7   : > { %v2242_v38 = vpop.permute.xlu1 %2241 }
 0x3db   : > { %v2388_v45 = vpop.permute.xlu1 %2387 }
 0x3dc   : > { %v2399_v36 = vsel %vm761_vm2, %v2388_v45, 0 }
 0x3de   : > { %v10600_v51 = vpop.eup %8896 }
 0x3df   : > { %v2313_v15 = vpop.permute.xlu1 %2312  ;;  %13742 = vst [vmem:[#allocation20_spill] sm:$0xff] %v10600_v51 }
 0x3e3   : > { %v2459_v63 = vpop.permute.xlu1 %2458 }
 0x3e5   : > { %v1416_v37 = vpop.xlane.xlu0 %1415 }
 0x3e6   : > { %v1450_v40 = vsub.f32 %v13739_v19, %v1416_v37 }
 0x3e7   : > { %v2384_v18 = vpop.permute.xlu1 %2383 }
 0x3e8   : > { %v1512_v56 = vmul.f32 1.442695, %v1450_v40 }
 0x3e9   : > { %v1410_v47 = vpop.xlane.xlu0 %1409 }
 0x3ea   : > { %v1448_v49 = vsub.f32 %v13740_v31, %v1410_v47 }
 0x3eb   : > { %v2530_v28 = vpop.permute.xlu1 %2529 }
 0x3ec   : > { %v1508_v24 = vmul.f32 1.442695, %v1448_v49  ;;  %v2541_v31 = vsel %vm761_vm2, %v2530_v28, 0 }
 0x3ed   : > { %v1419_v29 = vpop.xlane.xlu0 %1418 }
 0x3ee   : > { %8898 = vpow2.f32 %v1508_v24  ;;  %v1451_v26 = vsub.f32 %v13741_v0, %v1419_v29 }
 0x3ef   : > { %8900 = vpow2.f32 %v1512_v56  ;;  %v2455_v37 = vpop.permute.xlu1 %2454  ;;  %v2470_v56 = vsel %vm761_vm2, %v2459_v63, 0 }
 0x3f0   : > { %v1514_v12 = vmul.f32 1.442695, %v1451_v26 }
 0x3f1   : > { %v2246_v44 = vpop.permute.xlu0 %2245 }
 0x3f2   : > { %8902 = vpow2.f32 %v1514_v12  ;;  %8677 = vmatprep.subr.msk.bf16.mxu1 %vm761_vm2, %v2246_v44  ;;  %v2257_v57 = vsel %vm761_vm2, %v2246_v44, 0 }
 0x3f3   : > { %8239 = vmatpush3.bf16.xpose.msra.mxu1 %v2257_v57 }
 0x3f5   : > { %v2240_v60 = vpop.permute.xlu0 %2239 }
 0x3f6   : > { %8240 = vmatprep.mubr.msk.bf16.mxu1 %vm761_vm2, %v2240_v60 }
 0x3f8   : > { %v10602_v53 = vpop.eup %8898 }
 0x3f9   : > { %13743 = vst [vmem:[#allocation21_spill] sm:$0xff] %v10602_v53  ;;  %v2386_v13 = vpop.permute.xlu0 %2385  ;;  %v1626_v25 = vpack.c.bf16 %v10600_v51, %v10602_v53  ;;  %v10609_v1 = vpop.eup %8900  ;;  %v10730_v53 = vld [vmem:[#allocation10 + $0x10] sm:$0xff] }
 0x3fa   : > { %8241 = vmatmul.mubr.msk.bf16.vlgmr.msra.gmra.mrb[36].mxu1 %vm761_vm2, %v2242_v38  ;;  %8680 = vmatprep.subr.msk.bf16.mxu1 %vm761_vm2, %v2386_v13  ;;  %v2396_v42 = vsel %vm761_vm2, %v2386_v13, 0  ;;  %13744 = vst [vmem:[#allocation22_spill] sm:$0xff] %v10609_v1 }
 0x3fb   : > { %8232 = vmatprep.mubr.msk.bf16.mxu0 %vm480_vm0, %v1626_v25  ;;  %8253 = vmatpush3.bf16.xpose.msra.mxu1 %v2396_v42 }
 0x3fc   : > { %v10612_v6 = vpop.eup %8902  ;;  %8681 = vmatprep.subr.msk.bf16.mxu1 %vm761_vm2, %v2388_v45  ;;  %v2601_v45 = vpop.permute.xlu1 %2600 }
 0x3fd   : > { %13745 = vst [vmem:[#allocation23_spill] sm:$0xff] %v10612_v6  ;;  %v2311_v27 = vpop.permute.xlu0 %2310  ;;  %v1627_v9 = vpack.c.bf16 %v10612_v6, %v10609_v1  ;;  %v2612_v25 = vsel %vm761_vm2, %v2601_v45, 0 }
 0x3ff   : > { %8233 = vmatmul.mubr.msk.bf16.vlgmr.msra.gmra.mrb[56].mxu0 %vm480_vm0, %v1627_v9 }
 0x400   : > { %8245 = vmatpush3.bf16.xpose.msra.mxu0 %v2325_v23  ;;  %8248 = vmatprep.mubr.msk.bf16.mxu0 %vm761_vm2, %v2311_v27  ;;  %v2526_v49 = vpop.permute.xlu1 %2525 }
 0x401   : > { %8679 = vmatprep.subr.msk.bf16.mxu0 %vm761_vm2, %v2317_v8  ;;  %v2457_v38 = vpop.permute.xlu0 %2456 }
 0x402   : > { %v2467_v47 = vsel %vm761_vm2, %v2457_v38, 0 }
 0x403   : > { %8255 = vmatpush3.bf16.xpose.msra.mxu1 %v2399_v36 }
 0x404   : > { %v2672_v29 = vpop.permute.xlu1 %2671 }
 0x405   : > { %v2382_v54 = vpop.permute.xlu0 %2381 }
 0x406   : > { %8256 = vmatprep.mubr.msk.bf16.mxu1 %vm761_vm2, %v2382_v54 }
 0x408   : > { %8247 = vmatpush3.bf16.xpose.msra.mxu0 %v2328_v34  ;;  %v2597_v12 = vpop.permute.xlu1 %2596 }
 0x409   : > { %8682 = vmatprep.subr.msk.bf16.mxu0 %vm761_vm2, %v2457_v38  ;;  %v2528_v41 = vpop.permute.xlu0 %2527 }
 0x40a   : > { %8257 = vmatmul.mubr.msk.bf16.vlgmr.msra.gmra.mrb[40].mxu1 %vm761_vm2, %v2384_v18  ;;  %8684 = vmatprep.subr.msk.bf16.mxu1 %vm761_vm2, %v2528_v41  ;;  %v2538_v19 = vsel %vm761_vm2, %v2528_v41, 0 }
 0x40b   : > { %8269 = vmatpush3.bf16.xpose.msra.mxu1 %v2538_v19 }
 0x40c   : > { %8685 = vmatprep.subr.msk.bf16.mxu1 %vm761_vm2, %v2530_v28  ;;  %v2668_v60 = vpop.permute.xlu1 %2667 }
 0x40d   : > { %v2453_v40 = vpop.permute.xlu0 %2452 }
 0x40f   : > { %8249 = vmatmul.mubr.msk.bf16.vlgmr.msra.gmra.mrb[60].mxu0 %vm761_vm2, %v2313_v15 }
 0x410   : > { %8261 = vmatpush3.bf16.xpose.msra.mxu0 %v2467_v47  ;;  %8264 = vmatprep.mubr.msk.bf16.mxu0 %vm761_vm2, %v2453_v40  ;;  %v2737_v18 = vpop.permute.xlu1 %2736 }
 0x411   : > { %8683 = vmatprep.subr.msk.bf16.mxu0 %vm761_vm2, %v2459_v63  ;;  %v2599_v8 = vpop.permute.xlu0 %2598  ;;  %v2683_v63 = vsel %vm761_vm2, %v2672_v29, 0 }
 0x412   : > { %v2609_v44 = vsel %vm761_vm2, %v2599_v8, 0 }
 0x413   : > { %8271 = vmatpush3.bf16.xpose.msra.mxu1 %v2541_v31 }
 0x414   : > { %v3144_v23 = vpop.permute.xlu1 %3143 }
 0x415   : > { %v2524_v24 = vpop.permute.xlu0 %2523 }
 0x416   : > { %8272 = vmatprep.mubr.msk.bf16.mxu1 %vm761_vm2, %v2524_v24 }
 0x418   : > { %8263 = vmatpush3.bf16.xpose.msra.mxu0 %v2470_v56  ;;  %v10654_v36 = vpop.permute.xlu1 %3263 }
 0x419   : > { %8686 = vmatprep.subr.msk.bf16.mxu0 %vm761_vm2, %v2599_v8  ;;  %v2670_v0 = vpop.permute.xlu0 %2669 }
 0x41a   : > { %8273 = vmatmul.mubr.msk.bf16.vlgmr.msra.gmra.mrb[44].mxu1 %vm761_vm2, %v2526_v49  ;;  %8688 = vmatprep.subr.msk.bf16.mxu1 %vm761_vm2, %v2670_v0  ;;  %v2680_v26 = vsel %vm761_vm2, %v2670_v0, 0 }
 0x41b   : > { %8285 = vmatpush3.bf16.xpose.msra.mxu1 %v2680_v26 }
 0x41c   : > { %8689 = vmatprep.subr.msk.bf16.mxu1 %vm761_vm2, %v2672_v29 }
 0x41d   : > { %v2595_v15 = vpop.permute.xlu0 %2594 }
 0x41f   : > { %8265 = vmatmul.mubr.msk.bf16.vlgmr.msra.gmra.mrb[64].mxu0 %vm761_vm2, %v2455_v37 }
 0x420   : > { %8277 = vmatpush3.bf16.xpose.msra.mxu0 %v2609_v44  ;;  %8280 = vmatprep.mubr.msk.bf16.mxu0 %vm761_vm2, %v2595_v15 }
 0x421   : > { %8687 = vmatprep.subr.msk.bf16.mxu0 %vm761_vm2, %v2601_v45  ;;  %v2741_v57 = vpop.permute.xlu0 %2740 }
 0x422   : > { %v2751_v9 = vsel %vm761_vm2, %v2741_v57, 0 }
 0x423   : > { %8287 = vmatpush3.bf16.xpose.msra.mxu1 %v2683_v63 }
 0x425   : > { %v2666_v13 = vpop.permute.xlu0 %2665 }
 0x426   : > { %8288 = vmatprep.mubr.msk.bf16.mxu1 %vm761_vm2, %v2666_v13 }
 0x428   : > { %8279 = vmatpush3.bf16.xpose.msra.mxu0 %v2612_v25 }
 0x429   : > { %8690 = vmatprep.subr.msk.bf16.mxu0 %vm761_vm2, %v2741_v57  ;;  %v2743_v42 = vpop.permute.xlu0 %2742 }
 0x42a   : > { %8289 = vmatmul.mubr.msk.bf16.vlgmr.msra.gmra.mrb[48].mxu1 %vm761_vm2, %v2668_v60  ;;  %v2754_v54 = vsel %vm761_vm2, %v2743_v42, 0 }
 0x42d   : > { %v2739_v27 = vpop.permute.xlu0 %2738 }
 0x42f   : > { %8281 = vmatmul.mubr.msk.bf16.vlgmr.msra.gmra.mrb[68].mxu0 %vm761_vm2, %v2597_v12 }
 0x430   : > { %8293 = vmatpush3.bf16.xpose.msra.mxu0 %v2751_v9  ;;  %8296 = vmatprep.mubr.msk.bf16.mxu0 %vm761_vm2, %v2737_v18 }
 0x431   : > { %8691 = vmatprep.subr.msk.bf16.mxu0 %vm761_vm2, %v2743_v42  ;;  %v3142_v28 = vpop.permute.xlu0 %3141 }
 0x432   : > { %8300 = vmatprep.subr.bf16.mxu1 %v3142_v28 }
 0x433   : > { %8301 = vmatpush3.bf16.msra.mxu1 %v3142_v28 }
 0x434   : > { %8302 = vmatprep.subr.bf16.mxu1 %v3144_v23 }
 0x435   : > { %v3203_v38 = vpop.permute.xlu0 %3202 }
 0x437   : > { %8303 = vmatpush3.bf16.msra.mxu1 %v3144_v23 }
 0x438   : > { %8295 = vmatpush3.bf16.xpose.msra.mxu0 %v2754_v54  ;;  %8316 = vmatprep.subr.bf16.mxu1 %v10654_v36 }
 0x439   : > { %8308 = vmatprep.subr.bf16.mxu0 %v3203_v38  ;;  %v3205_v37 = vpop.permute.xlu0 %3204 }
 0x43d   : > { %v10658_v34 = vpop.permute.xlu0 %3265 }
 0x43f   : > { %8297 = vmatmul.mubr.msk.bf16.vlgmr.msra.gmra.mrb[72].mxu0 %vm761_vm2, %v2739_v27 }
 0x440   : > { %8309 = vmatpush3.bf16.msra.mxu0 %v3203_v38 }
 0x441   : > { %8310 = vmatprep.subr.bf16.mxu0 %v3205_v37  ;;  %v10661_v41 = vpop.permute.xlu0 %3324 }
 0x444   : > { %8311 = vmatpush3.bf16.msra.mxu0 %v3205_v37  ;;  %v7777_v37 = vld [vmem:[#allocation9 + $0x18] sm:$0xff]  }
 0x445   : > { %8324 = vmatprep.subr.bf16.mxu0 %v10661_v41 }
 0x44b   : > { %v10664_v19 = vpop.f32.mrb[40].mxu0 }
 0x44c   : > { %13746 = vst [vmem:[#allocation50_spill] sm:$0xff] %v10664_v19  ;;  %v10666_v45 = vpop.f32.mrb[41].mxu0 }
 0x44d   : > { %13747 = vst [vmem:[#allocation51_spill] sm:$0xff] %v10666_v45  ;;  %v10668_v40 = vpop.f32.mrb[42].mxu0 }
 0x44e   : > { %13748 = vst [vmem:[#allocation52_spill] sm:$0xff] %v10668_v40  ;;  %v10670_v47 = vpop.f32.mrb[43].mxu0 }
 0x44f   : > { %13749 = vst [vmem:[#allocation53_spill] sm:$0xff] %v10670_v47  ;;  %v10806_v47 = vld [vmem:[#allocation10 + $0x20] sm:$0xff] }
 0x45a   : > { %v10672_v8 = vpop.f32.mrb[44].mxu0 }
 0x45b   : > { %13750 = vst [vmem:[#allocation54_spill] sm:$0xff] %v10672_v8  ;;  %v10674_v31 = vpop.f32.mrb[45].mxu0  ;;  %v10736_v8 = vld [vmem:[#allocation10] sm:$0xff] }
 0x45c   : > { %13751 = vst [vmem:[#allocation55_spill] sm:$0xff] %v10674_v31  ;;  %v10676_v49 = vpop.f32.mrb[46].mxu0 }
 0x45d   : > { %13752 = vst [vmem:[#allocation56_spill] sm:$0xff] %v10676_v49  ;;  %v10678_v24 = vpop.f32.mrb[47].mxu0  ;;  %v10746_v49 = vld [vmem:[#allocation10 + $0x18] sm:$0xff] }
 0x45e   : > { %13753 = vst [vmem:[#allocation57_spill] sm:$0xff] %v10678_v24 }
 0x46e   : > { %v10680_v56 = vpop.f32.mrb[24].mxu1 }
 0x46f   : > { %13754 = vst [vmem:[#allocation58_spill] sm:$0xff] %v10680_v56  ;;  %v10682_v29 = vpop.f32.mrb[25].mxu1  ;;  %v7753_v56 = vld [vmem:[#allocation9 + $0x10] sm:$0xff]  }
 0x470   : > { %13755 = vst [vmem:[#allocation59_spill] sm:$0xff] %v10682_v29  ;;  %v10684_v0 = vpop.f32.mrb[26].mxu1  ;;  %v10724_v29 = vunpack.c.h.bf16 %v7777_v37  ;;  %v10726_v7 = vunpack.c.h.bf16 %v7753_v56 }
 0x471   : > { %13756 = vst [vmem:[#allocation60_spill] sm:$0xff] %v10684_v0  ;;  %v10686_v26 = vpop.f32.mrb[27].mxu1  ;;  %v10720_v0 = vunpack.c.l.bf16 %v7777_v37 }
 0x472   : > { %13757 = vst [vmem:[#allocation61_spill] sm:$0xff] %v10686_v26  ;;  %v10722_v26 = vunpack.c.l.bf16 %v7753_v56 }
 0x476   : > { %v10688_v15 = vpop.f32.mrb[28].mxu1 }
 0x477   : > { %13758 = vst [vmem:[#allocation62_spill] sm:$0xff] %v10688_v15  ;;  %v10690_v12 = vpop.f32.mrb[29].mxu1 }
 0x478   : > { %13759 = vst [vmem:[#allocation63_spill] sm:$0xff] %v10690_v12  ;;  %v10692_v44 = vpop.f32.mrb[30].mxu1 }
 0x479   : > { %13760 = vst [vmem:[#allocation64_spill] sm:$0xff] %v10692_v44  ;;  %v10694_v57 = vpop.f32.mrb[31].mxu1 }
 0x47a   : > { %13761 = vst [vmem:[#allocation65_spill] sm:$0xff] %v10694_v57 }
 0x481   : > { %v10696_v63 = vpop.f32.mrb[32].mxu1 }
 0x482   : > { %13762 = vst [vmem:[#allocation66_spill] sm:$0xff] %v10696_v63  ;;  %v10698_v60 = vpop.f32.mrb[33].mxu1 }
 0x483   : > { %13763 = vst [vmem:[#allocation67_spill] sm:$0xff] %v10698_v60  ;;  %v10700_v13 = vpop.f32.mrb[34].mxu1  ;;  %v10751_v60 = vld [vmem:[#allocation10 + $0x8] sm:$0xff] }
 0x484   : > { %13764 = vst [vmem:[#allocation68_spill] sm:$0xff] %v10700_v13  ;;  %v10702_v25 = vpop.f32.mrb[35].mxu1 }
 0x485   : > { %13765 = vst [vmem:[#allocation69_spill] sm:$0xff] %v10702_v25 }
 0x486   : > { %v10704_v42 = vpop.f32.mrb[48].mxu0 }
 0x487   : > { %13766 = vst [vmem:[#allocation70_spill] sm:$0xff] %v10704_v42  ;;  %v10706_v18 = vpop.f32.mrb[49].mxu0 }
 0x488   : > { %13767 = vst [vmem:[#allocation71_spill] sm:$0xff] %v10706_v18  ;;  %v10708_v27 = vpop.f32.mrb[50].mxu0 }
 0x489   : > { %13768 = vst [vmem:[#allocation72_spill] sm:$0xff] %v10708_v27  ;;  %v10710_v9 = vpop.f32.mrb[51].mxu0 }
 0x48a   : > { %13769 = vst [vmem:[#allocation73_spill] sm:$0xff] %v10710_v9 }
 0x496   : > { %v10712_v23 = vpop.f32.mrb[52].mxu0 }
 0x497   : > { %13770 = vst [vmem:[#allocation74_spill] sm:$0xff] %v10712_v23  ;;  %v10714_v28 = vpop.f32.mrb[53].mxu0 }
 0x498   : > { %13771 = vst [vmem:[#allocation75_spill] sm:$0xff] %v10714_v28  ;;  %v10716_v38 = vpop.f32.mrb[54].mxu0 }
 0x499   : > { %13772 = vst [vmem:[#allocation76_spill] sm:$0xff] %v10716_v38  ;;  %v10718_v54 = vpop.f32.mrb[55].mxu0 }
 0x49a   : > { %13773 = vst [vmem:[#allocation77_spill] sm:$0xff] %v10718_v54 }
 0x4cd   : > { %v8242_v1 = vpop.f32.mrb[36].mxu1 }
 0x4ce   : > { %v2302_v6 = vadd.f32 %v8242_v1, %v10720_v0  ;;  %v2293_v46 = vpop.f32.mrb[37].mxu1 }
 0x4cf   : > { %v2294_v5 = vadd.f32 %v10722_v26, %v2293_v46  ;;  %v8243_v51 = vpop.f32.mrb[38].mxu1 }
 0x4d0   : > { %v10733_v39 = vadd.f32 %v10730_v53, %v2302_v6  ;;  %v2305_v63 = vadd.f32 %v8243_v51, %v10724_v29  ;;  %v2296_v13 = vpop.f32.mrb[39].mxu1 }
 0x4d1   : > { %v10739_v37 = vadd.f32 %v10736_v8, %v2294_v5  ;;  %v2297_v56 = vadd.f32 %v10726_v7, %v2296_v13 }
 0x4d2   : > { %v10742_v1 = vpop.f32.mrb[56].mxu0  ;;  %v2843_v46 = vsel %vm480_vm0, %v10733_v39, -inf  ;;  %v10749_v6 = vadd.f32 %v10746_v49, %v2305_v63 }
 0x4d3   : > { %13774 = vst [vmem:[#allocation78_spill] sm:$0xff] %v10742_v1  ;;  %v10754_v51 = vadd.f32 %v10751_v60, %v2297_v56  ;;  %v10756_v25 = vpop.f32.mrb[57].mxu0  ;;  %2844 = vmax.xlane.f32.xlu0 %v2843_v46  ;;  %v2837_v5 = vsel %vm480_vm0, %v10739_v37, -inf }
 0x4d4   : > { %13775 = vst [vmem:[#allocation79_spill] sm:$0xff] %v10756_v25  ;;  %v10760_v13 = vpop.f32.mrb[58].mxu0  ;;  %2838 = vmax.xlane.f32.xlu1 %v2837_v5  ;;  %v2846_v31 = vsel %vm480_vm0, %v10749_v6, -inf }
 0x4d5   : > { %13776 = vst [vmem:[#allocation80_spill] sm:$0xff] %v10760_v13  ;;  %v10762_v1 = vpop.f32.mrb[59].mxu0  ;;  %v2840_v63 = vsel %vm480_vm0, %v10754_v51, -inf }
 0x4d6   : > { %13777 = vst [vmem:[#allocation81_spill] sm:$0xff] %v10762_v1 }
 0x4d7   : > { %2841 = vmax.xlane.f32.xlu0 %v2840_v63 }
 0x4d8   : > { %2847 = vmax.xlane.f32.xlu1 %v2846_v31 }
 0x4dd   : > { %v8258_v56 = vpop.f32.mrb[40].mxu1 }
 0x4de   : > { %v2444_v25 = vadd.f32 %v8258_v56, %v10720_v0  ;;  %v2435_v46 = vpop.f32.mrb[41].mxu1 }
 0x4df   : > { %v2436_v24 = vadd.f32 %v10722_v26, %v2435_v46  ;;  %v8259_v23 = vpop.f32.mrb[42].mxu1 }
 0x4e0   : > { %v10771_v13 = vadd.f32 %v10730_v53, %v2444_v25  ;;  %v2447_v5 = vadd.f32 %v8259_v23, %v10724_v29  ;;  %v2438_v1 = vpop.f32.mrb[43].mxu1 }
 0x4e1   : > { %v2439_v38 = vadd.f32 %v10726_v7, %v2438_v1  ;;  %v10776_v63 = vadd.f32 %v10736_v8, %v2436_v24 }
 0x4e2   : > { %v10779_v31 = vadd.f32 %v10746_v49, %v2447_v5  ;;  %v8250_v19 = vpop.f32.mrb[60].mxu0  ;;  %v2867_v56 = vsel %vm480_vm0, %v10771_v13, -inf  ;;  %v10790_v5 = vld [vmem:[#allocation10 + $0x30] sm:$0xff] }
 0x4e3   : > { %v2373_v46 = vadd.f32 %v8250_v19, %v10720_v0  ;;  %v2364_v40 = vpop.f32.mrb[61].mxu0  ;;  %2868 = vmax.xlane.f32.xlu0 %v2867_v56  ;;  %v10785_v25 = vadd.f32 %v10751_v60, %v2439_v38  ;;  %v2861_v56 = vsel %vm480_vm0, %v10776_v63, -inf  ;;  %v10798_v38 = vld [vmem:[#allocation10 + $0x38] sm:$0xff] }
 0x4e4   : > { %v8251_v23 = vpop.f32.mrb[62].mxu0  ;;  %v2870_v1 = vsel %vm480_vm0, %v10779_v31, -inf  ;;  %v2365_v19 = vadd.f32 %v10722_v26, %v2364_v40 }
 0x4e5   : > { %v2376_v24 = vadd.f32 %v8251_v23, %v10724_v29  ;;  %v2367_v28 = vpop.f32.mrb[63].mxu0  ;;  %2871 = vmax.xlane.f32.xlu1 %v2870_v1  ;;  %v10793_v54 = vadd.f32 %v10790_v5, %v2373_v46  ;;  %v2864_v1 = vsel %vm480_vm0, %v10785_v25, -inf }
 0x4e6   : > { %v2368_v23 = vadd.f32 %v10726_v7, %v2367_v28  ;;  %v10809_v46 = vadd.f32 %v10806_v47, %v2365_v19 }
 0x4e7   : > { %2862 = vmax.xlane.f32.xlu0 %v2861_v56  ;;  %v10801_v45 = vadd.f32 %v10798_v38, %v2376_v24  ;;  %v2855_v40 = vsel %vm480_vm0, %v10793_v54, -inf  ;;  %v10813_v56 = vld [vmem:[#allocation10 + $0x28] sm:$0xff] }
 0x4e8   : > { %v10816_v24 = vadd.f32 %v10813_v56, %v2368_v23  ;;  %v2849_v19 = vsel %vm480_vm0, %v10809_v46, -inf }
 0x4e9   : > { %2865 = vmax.xlane.f32.xlu1 %v2864_v1  ;;  %v2858_v28 = vsel %vm480_vm0, %v10801_v45, -inf }
 0x4eb   : > { %2856 = vmax.xlane.f32.xlu0 %v2855_v40 }
 0x4ed   : > { %2859 = vmax.xlane.f32.xlu1 %v2858_v28  ;;  %v8274_v15 = vpop.f32.mrb[44].mxu1  ;;  %v2852_v28 = vsel %vm480_vm0, %v10816_v24, -inf }
 0x4ee   : > { %v2586_v1 = vadd.f32 %v8274_v15, %v10720_v0  ;;  %v2577_v44 = vpop.f32.mrb[45].mxu1 }
 0x4ef   : > { %v2578_v12 = vadd.f32 %v10722_v26, %v2577_v44  ;;  %2850 = vmax.xlane.f32.xlu0 %v2849_v19  ;;  %v8275_v40 = vpop.f32.mrb[46].mxu1 }
 0x4f0   : > { %v10825_v57 = vadd.f32 %v10730_v53, %v2586_v1  ;;  %v2589_v23 = vadd.f32 %v8275_v40, %v10724_v29  ;;  %v2580_v42 = vpop.f32.mrb[47].mxu1 }
 0x4f1   : > { %v2581_v27 = vadd.f32 %v10726_v7, %v2580_v42  ;;  %2853 = vmax.xlane.f32.xlu1 %v2852_v28  ;;  %v10832_v15 = vadd.f32 %v10736_v8, %v2578_v12 }
 0x4f2   : > { %v10835_v18 = vadd.f32 %v10746_v49, %v2589_v23  ;;  %v8266_v44 = vpop.f32.mrb[64].mxu0  ;;  %v2891_v1 = vsel %vm480_vm0, %v10825_v57, -inf }
 0x4f3   : > { %v2515_v19 = vadd.f32 %v8266_v44, %v10720_v0  ;;  %v2506_v40 = vpop.f32.mrb[65].mxu0  ;;  %2892 = vmax.xlane.f32.xlu0 %v2891_v1  ;;  %v10841_v9 = vadd.f32 %v10751_v60, %v2581_v27  ;;  %v2885_v30 = vsel %vm480_vm0, %v10832_v15, -inf }
 0x4f4   : > { %v8267_v62 = vpop.f32.mrb[66].mxu0  ;;  %v2894_v42 = vsel %vm480_vm0, %v10835_v18, -inf  ;;  %v2507_v28 = vadd.f32 %v10722_v26, %v2506_v40 }
 0x4f5   : > { %v2509_v12 = vpop.f32.mrb[67].mxu0  ;;  %2895 = vmax.xlane.f32.xlu1 %v2894_v42  ;;  %v10846_v23 = vadd.f32 %v10790_v5, %v2515_v19  ;;  %v2888_v44 = vsel %vm480_vm0, %v10841_v9, -inf }
 0x4f6   : > { %v10854_v27 = vadd.f32 %v10806_v47, %v2507_v28  ;;  %v2510_v17 = vadd.f32 %v10726_v7, %v2509_v12 }
 0x4f7   : > { %2886 = vmax.xlane.f32.xlu0 %v2885_v30  ;;  %v2879_v1 = vsel %vm480_vm0, %v10846_v23, -inf }
 0x4f8   : > { %v2873_v40 = vsel %vm480_vm0, %v10854_v27, -inf  ;;  %v10872_v55 = vadd.f32 %v10813_v56, %v2510_v17 }
 0x4f9   : > { %2889 = vmax.xlane.f32.xlu1 %v2888_v44  ;;  %v10860_v44 = vld [vmem:[#allocation2] sm:$0xff] }
 0x4fa   : > { %v2876_v17 = vsel %vm480_vm0, %v10872_v55, -inf }
 0x4fb   : > { %2880 = vmax.xlane.f32.xlu0 %v2879_v1 }
 0x4fd   : > { %v8290_v42 = vpop.f32.mrb[48].mxu1 }
 0x4fe   : > { %v2719_v19 = vpop.f32.mrb[49].mxu1  ;;  %v2728_v33 = vadd.f32 %v8290_v42, %v10720_v0 }
 0x4ff   : > { %2874 = vmax.xlane.f32.xlu0 %v2873_v40  ;;  %v8291_v2 = vpop.f32.mrb[50].mxu1  ;;  %v2518_v40 = vadd.f32 %v8267_v62, %v10724_v29  ;;  %v2720_v62 = vadd.f32 %v10722_v26, %v2719_v19 }
 0x500   : > { %v2722_v32 = vpop.f32.mrb[51].mxu1  ;;  %v2731_v42 = vadd.f32 %v8291_v2, %v10724_v29 }
 0x501   : > { %v10867_v4 = vadd.f32 %v10798_v38, %v2518_v40  ;;  %v2723_v21 = vadd.f32 %v10726_v7, %v2722_v32  ;;  %v10888_v32 = vadd.f32 %v10736_v8, %v2720_v62 }
 0x502   : > { %v8282_v30 = vpop.f32.mrb[68].mxu0 }
 0x503   : > { %v2648_v16 = vpop.f32.mrb[69].mxu0  ;;  %v2882_v3 = vsel %vm480_vm0, %v10867_v4, -inf  ;;  %v10882_v40 = vadd.f32 %v10751_v60, %v2723_v21  ;;  %v2657_v12 = vadd.f32 %v8282_v30, %v10720_v0  ;;  %v10900_v60 = vadd.f32 %v10746_v49, %v2731_v42 }
 0x504   : > { %v8283_v22 = vpop.f32.mrb[70].mxu0  ;;  %v2649_v21 = vadd.f32 %v10722_v26, %v2648_v16  ;;  %v2909_v2 = vsel %vm480_vm0, %v10888_v32, -inf }
 0x505   : > { %v2651_v59 = vpop.f32.mrb[71].mxu0  ;;  %v2660_v30 = vadd.f32 %v8283_v22, %v10724_v29 }
 0x506   : > { %v10906_v19 = vadd.f32 %v10806_v47, %v2649_v21 }
 0x508   : > { %v2897_v22 = vsel %vm480_vm0, %v10906_v19, -inf }
 0x50a   : > { %3821 = vrot.lane.b32.xlu1 %v10860_v44, %s9600_s12 }
 0x512   : > { %v8298_v28 = vpop.f32.mrb[72].mxu0 }
 0x513   : > { %v2790_v1 = vpop.f32.mrb[73].mxu0  ;;  %v2799_v8 = vadd.f32 %v8298_v28, %v10720_v0  ;;  %v2918_v0 = vsel %vm480_vm0, %v10900_v60, -inf  ;;  %v10918_v28 = vadd.f32 %v10798_v38, %v2660_v30 }
 0x514   : > { %v8299_v58 = vpop.f32.mrb[74].mxu0  ;;  %v2791_v42 = vadd.f32 %v10722_v26, %v2790_v1 }
 0x515   : > { %v2793_v10 = vpop.f32.mrb[75].mxu0  ;;  %3570 = vrot.lane.b32.xlu0 %v9368_v61, %s9599_s19  ;;  %v10878_v61 = vadd.f32 %v10730_v53, %v2728_v33  ;;  %v10894_v33 = vadd.f32 %v10790_v5, %v2657_v12  ;;  %v2912_v53 = vsel %vm480_vm0, %v10882_v40, -inf  ;;  %v10912_v62 = vadd.f32 %v10790_v5, %v2799_v8  ;;  %s9517_s19 = scalar_lea.vmem %s9516_s8, 4096 }
 0x516   : > { %v2794_v49 = vadd.f32 %v10726_v7, %v2793_v10  ;;  %v2652_v12 = vadd.f32 %v10726_v7, %v2651_v59  ;;  %v10936_v7 = vpop.permute.xlu1 %3385  ;;  %v10939_v21 = vadd.f32 %v10806_v47, %v2791_v42  ;;  %v10953_v47 = vpop.permute.xlu0 %3387  ;;  %v10976_v42 = vld [vmem:[#allocation2 + $0x20] sm:$0xff] }
 0x517   : > { %v2903_v16 = vsel %vm480_vm0, %v10894_v33, -inf  ;;  %v2927_v5 = vsel %vm480_vm0, %v10912_v62, -inf }
 0x518   : > { %v10929_v10 = vadd.f32 %v10813_v56, %v2652_v12  ;;  %v2921_v1 = vsel %vm480_vm0, %v10939_v21, -inf }
 0x51a   : > { %v10949_v8 = vpop.permute.xlu1 %3326 }
 0x52e   : > { %2883 = vmax.xlane.f32.xlu1 %v2882_v3  ;;  %v2915_v3 = vsel %vm480_vm0, %v10878_v61, -inf }
 0x532   : > { %2877 = vmax.xlane.f32.xlu1 %v2876_v17  ;;  %v10924_v17 = vadd.f32 %v10813_v56, %v2794_v49  ;;  %v2900_v56 = vsel %vm480_vm0, %v10929_v10, -inf }
 0x534   : > { %2916 = vmax.xlane.f32.xlu0 %v2915_v3  ;;  %v2906_v3 = vsel %vm480_vm0, %v10918_v28, -inf  ;;  %v2924_v59 = vsel %vm480_vm0, %v10924_v17, -inf }
 0x536   : > { %2913 = vmax.xlane.f32.xlu1 %v2912_v53  ;;  %v2802_v53 = vadd.f32 %v8299_v58, %v10724_v29  ;;  %v10955_v58 = vpop.permute.xlu1 %3446  ;;  %v10957_v29 = vpop.permute.xlu0 %3507 }
 0x538   : > { %2910 = vmax.xlane.f32.xlu0 %v2909_v2  ;;  %v10945_v26 = vadd.f32 %v10798_v38, %v2802_v53  ;;  %v10961_v38 = vld [vmem:[#allocation2 + $0x8] sm:$0xff] }
 0x53a   : > { %2904 = vmax.xlane.f32.xlu1 %v2903_v16  ;;  %v2930_v2 = vsel %vm480_vm0, %v10945_v26, -inf  ;;  %v10959_v30 = vpop.permute.xlu1 %3448  ;;  %v10965_v16 = vpop.permute.xlu0 %3509 }
 0x53c   : > { %2919 = vmax.xlane.f32.xlu0 %v2918_v0  ;;  %v10971_v0 = vld [vmem:[#allocation2 + $0x10] sm:$0xff] }
 0x53e   : > { %2898 = vmax.xlane.f32.xlu1 %v2897_v22  ;;  %v10967_v49 = vpop.permute.xlu1 %3568 }
 0x540   : > { %2928 = vmax.xlane.f32.xlu0 %v2927_v5 }
 0x542   : > { %2907 = vmax.xlane.f32.xlu1 %v2906_v3 }
 0x544   : > { %2925 = vmax.xlane.f32.xlu0 %v2924_v59  ;;  %v10981_v59 = vld [vmem:[#allocation2 + $0x18] sm:$0xff] }
 0x546   : > { %2901 = vmax.xlane.f32.xlu1 %v2900_v56 }
 0x54a   : > { %2922 = vmax.xlane.f32.xlu1 %v2921_v1 }
 0x54e   : > { %2931 = vmax.xlane.f32.xlu1 %v2930_v2 }
 0x55a   : > { %3823 = vrot.lane.b32.xlu0 %v10961_v38, %s9600_s12 }
 0x55e   : > { %3817 = vrot.lane.b32.xlu0 %v10860_v44, %s9601_s29 }
 0x55f   : > { %3892 = vrot.lane.b32.xlu1 %v10971_v0, %s9600_s12 }
 0x560   : > { %v2845_v12 = vpop.xlane.xlu0 %2844 }
 0x561   : > { %v2935_v22 = vsub.f32 %v10733_v39, %v2845_v12  ;;  %v2839_v5 = vpop.xlane.xlu1 %2838 }
 0x562   : > { %v2933_v3 = vsub.f32 %v10739_v37, %v2839_v5  ;;  %3963 = vrot.lane.b32.xlu0 %v10976_v42, %s9600_s12  ;;  %v11005_v5 = vld [vmem:[#allocation2 + $0x40] sm:$0xff] }
 0x563   : > { %v2969_v53 = vmul.f32 1.442695, %v2935_v22  ;;  %3894 = vrot.lane.b32.xlu1 %v10981_v59, %s9600_s12  ;;  %v10991_v22 = vld [vmem:[#allocation2 + $0x30] sm:$0xff] }
 0x564   : > { %v2965_v56 = vmul.f32 1.442695, %v2933_v3  ;;  %v2842_v1 = vpop.xlane.xlu0 %2841 }
 0x565   : > { %v2934_v2 = vsub.f32 %v10754_v51, %v2842_v1  ;;  %v2848_v35 = vpop.xlane.xlu1 %2847  ;;  %8904 = vpow2.f32 %v2969_v53  ;;  %v10995_v51 = vld [vmem:[#allocation2 + $0x28] sm:$0xff] }
 0x566   : > { %v2936_v39 = vsub.f32 %v10749_v6, %v2848_v35  ;;  %3888 = vrot.lane.b32.xlu0 %v10971_v0, %s9601_s29  ;;  %8906 = vpow2.f32 %v2965_v56  ;;  %v11011_v56 = vld [vmem:[#allocation2 + $0x38] sm:$0xff] }
 0x567   : > { %v2967_v37 = vmul.f32 1.442695, %v2934_v2  ;;  %3819 = vrot.lane.b32.xlu1 %v10961_v38, %s9601_s29 }
 0x568   : > { %v2971_v12 = vmul.f32 1.442695, %v2936_v39 }
 0x569   : > { %8908 = vpow2.f32 %v2967_v37 }
 0x56a   : > { %8910 = vpow2.f32 %v2971_v12  ;;  %4034 = vrot.lane.b32.xlu0 %v10991_v22, %s9600_s12 }
 0x56b   : > { %3965 = vrot.lane.b32.xlu1 %v10995_v51, %s9600_s12 }
 0x56e   : > { %3959 = vrot.lane.b32.xlu0 %v10976_v42, %s9601_s29 }
 0x56f   : > { %3890 = vrot.lane.b32.xlu1 %v10981_v59, %s9601_s29  ;;  %v11003_v6 = vpop.eup %8904 }
 0x570   : > { %v2869_v35 = vpop.xlane.xlu0 %2868  ;;  %13778 = vst [vmem:[#allocation82_spill] sm:$0xff] %v11003_v6  ;;  %v11007_v3 = vpop.eup %8906 }
 0x571   : > { %13779 = vst [vmem:[#allocation83_spill] sm:$0xff] %v11007_v3  ;;  %v2943_v37 = vsub.f32 %v10771_v13, %v2869_v35 }
 0x572   : > { %v2872_v53 = vpop.xlane.xlu1 %2871  ;;  %4105 = vrot.lane.b32.xlu0 %v11005_v5, %s9600_s12 }
 0x573   : > { %v11013_v1 = vpop.eup %8908  ;;  %v2944_v2 = vsub.f32 %v10779_v31, %v2872_v53  ;;  %4036 = vrot.lane.b32.xlu1 %v11011_v56, %s9600_s12  ;;  %v2985_v13 = vmul.f32 1.442695, %v2943_v37 }
 0x574   : > { %13780 = vst [vmem:[#allocation84_spill] sm:$0xff] %v11013_v1  ;;  %v11018_v39 = vpop.eup %8910  ;;  %v2863_v12 = vpop.xlane.xlu0 %2862  ;;  %v3125_v48 = vpack.c.bf16 %v11013_v1, %v11007_v3 }
 0x575   : > { %13781 = vst [vmem:[#allocation85_spill] sm:$0xff] %v11018_v39  ;;  %v2987_v50 = vmul.f32 1.442695, %v2944_v2  ;;  %v2941_v11 = vsub.f32 %v10776_v63, %v2863_v12  ;;  %v3126_v14 = vpack.c.bf16 %v11018_v39, %v11003_v6  ;;  %v11035_v2 = vld [vmem:[#allocation2 + $0x50] sm:$0xff] }
 0x576   : > { %v2866_v43 = vpop.xlane.xlu1 %2865  ;;  %4030 = vrot.lane.b32.xlu0 %v10991_v22, %s9601_s29  ;;  %8304 = vmatprep.mubr.msk.bf16.mxu1 %vm480_vm0, %v3125_v48 }
 0x577   : > { %v2981_v31 = vmul.f32 1.442695, %v2941_v11  ;;  %v2942_v53 = vsub.f32 %v10785_v25, %v2866_v43  ;;  %3961 = vrot.lane.b32.xlu1 %v10995_v51, %s9601_s29  ;;  %8305 = vmatmul.mubr.msk.bf16.vlgmr.msra.gmra.mrb[52].mxu1 %vm480_vm0, %v3126_v14  ;;  %8912 = vpow2.f32 %v2987_v50  ;;  %v11039_v11 = vld [vmem:[#allocation2 + $0x48] sm:$0xff] }
 0x578   : > { %8317 = vmatpush3.bf16.msra.mxu1 %v10654_v36  ;;  %v2857_v63 = vpop.xlane.xlu0 %2856 }
 0x579   : > { %v2983_v35 = vmul.f32 1.442695, %v2942_v53  ;;  %8318 = vmatprep.subr.bf16.mxu1 %v10658_v34  ;;  %8914 = vpow2.f32 %v2981_v31  ;;  %v2939_v50 = vsub.f32 %v10793_v54, %v2857_v63  ;;  %v11053_v53 = vld [vmem:[#allocation2 + $0x60] sm:$0xff] }
 0x57a   : > { %v2860_v48 = vpop.xlane.xlu1 %2859  ;;  %4176 = vrot.lane.b32.xlu0 %v11035_v2, %s9600_s12 }
 0x57b   : > { %8916 = vpow2.f32 %v2983_v35  ;;  %v2940_v43 = vsub.f32 %v10801_v45, %v2860_v48  ;;  %4107 = vrot.lane.b32.xlu1 %v11039_v11, %s9600_s12  ;;  %v2977_v31 = vmul.f32 1.442695, %v2939_v50 }
 0x57c   : > { %8918 = vpow2.f32 %v2985_v13  ;;  %8319 = vmatpush3.bf16.msra.mxu1 %v10658_v34  ;;  %v2851_v14 = vpop.xlane.xlu0 %2850 }
 0x57d   : > { %v2979_v36 = vmul.f32 1.442695, %v2940_v43  ;;  %8332 = vmatprep.subr.bf16.mxu1 %v10936_v7  ;;  %v2937_v25 = vsub.f32 %v10809_v46, %v2851_v14  ;;  %v11057_v46 = vld [vmem:[#allocation2 + $0x58] sm:$0xff] }
 0x57e   : > { %v2854_v37 = vpop.xlane.xlu1 %2853  ;;  %4101 = vrot.lane.b32.xlu0 %v11005_v5, %s9601_s29 }
 0x57f   : > { %v2973_v12 = vmul.f32 1.442695, %v2937_v25  ;;  %v2938_v45 = vsub.f32 %v10816_v24, %v2854_v37  ;;  %4032 = vrot.lane.b32.xlu1 %v11011_v56, %s9601_s29  ;;  %8920 = vpow2.f32 %v2979_v36 }
 0x580   : > { %v2893_v54 = vpop.xlane.xlu0 %2892 }
 0x581   : > { %v2975_v34 = vmul.f32 1.442695, %v2938_v45  ;;  %8922 = vpow2.f32 %v2973_v12  ;;  %v11059_v63 = vpop.eup %8912  ;;  %v2951_v48 = vsub.f32 %v10825_v57, %v2893_v54  ;;  %v3804_v54 = vld [vmem:[#allocation2 + $0x70] sm:$0xff] }
 0x582   : > { %v2896_v13 = vpop.xlane.xlu1 %2895  ;;  %4247 = vrot.lane.b32.xlu0 %v11053_v53, %s9600_s12  ;;  %13782 = vst [vmem:[#allocation86_spill] sm:$0xff] %v11059_v63 }
 0x583   : > { %8924 = vpow2.f32 %v2975_v34  ;;  %v2952_v24 = vsub.f32 %v10835_v18, %v2896_v13  ;;  %4178 = vrot.lane.b32.xlu1 %v11057_v46, %s9600_s12  ;;  %v11064_v35 = vpop.eup %8914 }
 0x584   : > { %13783 = vst [vmem:[#allocation87_spill] sm:$0xff] %v11064_v35  ;;  %8926 = vpow2.f32 %v2977_v31  ;;  %v2887_v43 = vpop.xlane.xlu0 %2886  ;;  %v3001_v31 = vmul.f32 1.442695, %v2951_v48 }
 0x585   : > { %v11067_v50 = vpop.eup %8916  ;;  %v3003_v14 = vmul.f32 1.442695, %v2952_v24  ;;  %v2949_v36 = vsub.f32 %v10832_v15, %v2887_v43 }
 0x586   : > { %13784 = vst [vmem:[#allocation88_spill] sm:$0xff] %v11067_v50  ;;  %v11070_v25 = vpop.eup %8918  ;;  %v2890_v37 = vpop.xlane.xlu1 %2889  ;;  %4172 = vrot.lane.b32.xlu0 %v11035_v2, %s9601_s29  ;;  %v3129_v18 = vpack.c.bf16 %v11067_v50, %v11064_v35 }
 0x587   : > { %13785 = vst [vmem:[#allocation89_spill] sm:$0xff] %v11070_v25  ;;  %v2997_v12 = vmul.f32 1.442695, %v2949_v36  ;;  %v2950_v45 = vsub.f32 %v10841_v9, %v2890_v37  ;;  %4103 = vrot.lane.b32.xlu1 %v11039_v11, %s9601_s29  ;;  %v3130_v57 = vpack.c.bf16 %v11059_v63, %v11070_v25  ;;  %8928 = vpow2.f32 %v3003_v14  ;;  %v3803_v9 = vld [vmem:[#allocation2 + $0x68] sm:$0xff]  ;;  %v3805_v14 = vld [vmem:[#allocation2 + $0x78] sm:$0xff] }
 0x588   : > { %8320 = vmatprep.mubr.msk.bf16.mxu1 %vm480_vm0, %v3129_v18 }
 0x589   : > { %v2999_v15 = vmul.f32 1.442695, %v2950_v45  ;;  %8321 = vmatmul.mubr.msk.bf16.vlgmr.msra.gmra.mrb[56].mxu1 %vm480_vm0, %v3130_v57  ;;  %8930 = vpow2.f32 %v2997_v12  ;;  %v11085_v34 = vpop.eup %8920 }
 0x58a   : > { %8333 = vmatpush3.bf16.msra.mxu1 %v10936_v7  ;;  %4318 = vrot.lane.b32.xlu0 %v3804_v54, %s9600_s12  ;;  %13786 = vst [vmem:[#allocation90_spill] sm:$0xff] %v11085_v34 }
 0x58b   : > { %8932 = vpow2.f32 %v2999_v15  ;;  %8334 = vmatprep.subr.bf16.mxu1 %v10953_v47  ;;  %4249 = vrot.lane.b32.xlu1 %v3803_v9, %s9600_s12  ;;  %v11089_v13 = vpop.eup %8922 }
 0x58c   : > { %13787 = vst [vmem:[#allocation91_spill] sm:$0xff] %v11089_v13  ;;  %8934 = vpow2.f32 %v3001_v31 }
 0x58d   : > { %v11091_v24 = vpop.eup %8924 }
 0x58e   : > { %13788 = vst [vmem:[#allocation92_spill] sm:$0xff] %v11091_v24  ;;  %v11093_v48 = vpop.eup %8926  ;;  %8335 = vmatpush3.bf16.msra.mxu1 %v10953_v47  ;;  %4243 = vrot.lane.b32.xlu0 %v11053_v53, %s9601_s29  ;;  %v3127_v7 = vpack.c.bf16 %v11091_v24, %v11089_v13 }
 0x58f   : > { %13789 = vst [vmem:[#allocation93_spill] sm:$0xff] %v11093_v48  ;;  %8348 = vmatprep.subr.bf16.mxu1 %v10957_v29  ;;  %4174 = vrot.lane.b32.xlu1 %v11057_v46, %s9601_s29  ;;  %v3128_v43 = vpack.c.bf16 %v11085_v34, %v11093_v48 }
 0x590   : > { %8312 = vmatprep.mubr.msk.bf16.mxu0 %vm480_vm0, %v3127_v7 }
 0x591   : > { %8313 = vmatmul.mubr.msk.bf16.vlgmr.msra.gmra.mrb[76].mxu0 %vm480_vm0, %v3128_v43  ;;  %v11109_v47 = vpop.eup %8928 }
 0x592   : > { %8325 = vmatpush3.bf16.msra.mxu0 %v10661_v41  ;;  %4320 = vrot.lane.b32.xlu0 %v3805_v14, %s9600_s12  ;;  %13790 = vst [vmem:[#allocation94_spill] sm:$0xff] %v11109_v47 }
 0x593   : > { %8326 = vmatprep.subr.bf16.mxu0 %v10949_v8  ;;  %4245 = vrot.lane.b32.xlu1 %v3803_v9, %s9601_s29  ;;  %v11113_v36 = vpop.eup %8930 }
 0x594   : > { %13791 = vst [vmem:[#allocation95_spill] sm:$0xff] %v11113_v36 }
 0x595   : > { %v11115_v37 = vpop.eup %8932 }
 0x596   : > { %13792 = vst [vmem:[#allocation96_spill] sm:$0xff] %v11115_v37  ;;  %v11117_v18 = vpop.eup %8934  ;;  %8327 = vmatpush3.bf16.msra.mxu0 %v10949_v8  ;;  %4316 = vrot.lane.b32.xlu0 %v3805_v14, %s9601_s29  ;;  %v3133_v41 = vpack.c.bf16 %v11115_v37, %v11113_v36  ;;  %v11133_v8 = vpop.permute.xlu1 %3821 }
 0x597   : > { %13793 = vst [vmem:[#allocation97_spill] sm:$0xff] %v11117_v18  ;;  %8340 = vmatprep.subr.bf16.mxu0 %v10955_v58  ;;  %4314 = vrot.lane.b32.xlu1 %v3804_v54, %s9601_s29  ;;  %v3134_v12 = vpack.c.bf16 %v11109_v47, %v11117_v18 }
 0x598   : > { %8336 = vmatprep.mubr.msk.bf16.mxu1 %vm480_vm0, %v3133_v41 }
 0x599   : > { %8337 = vmatmul.mubr.msk.bf16.vlgmr.msra.gmra.mrb[60].mxu1 %vm480_vm0, %v3134_v12 }
 0x59a   : > { %8349 = vmatpush3.bf16.msra.mxu1 %v10957_v29  ;;  %4719 = vrot.lane.b32.xlu0 %v10860_v44, %s9602_s16  ;;  %v2881_v29 = vpop.xlane.xlu0 %2880 }
 0x59b   : > { %8350 = vmatprep.subr.bf16.mxu1 %v10965_v16  ;;  %4721 = vrot.lane.b32.xlu1 %v10961_v38, %s9602_s16 }
 0x59e   : > { %8351 = vmatpush3.bf16.msra.mxu1 %v10965_v16  ;;  %4780 = vrot.lane.b32.xlu0 %v10971_v0, %s9602_s16  ;;  %v2875_v16 = vpop.xlane.xlu0 %2874 }
 0x59f   : > { %8692 = vmatprep.subr.msk.bf16.mxu1 %vm761_vm2, %v11133_v8  ;;  %4841 = vrot.lane.b32.xlu1 %v10976_v42, %s9602_s16  ;;  %v2945_v45 = vsub.f32 %v10854_v27, %v2875_v16 }
 0x5a2   : > { %4782 = vrot.lane.b32.xlu0 %v10981_v59, %s9602_s16  ;;  %v11156_v15 = vpop.permute.xlu0 %3570 }
 0x5a3   : > { %4963 = vrot.lane.b32.xlu1 %v11005_v5, %s9602_s16 }
 0x5a6   : > { %4843 = vrot.lane.b32.xlu0 %v10995_v51, %s9602_s16 }
 0x5a7   : > { %4904 = vrot.lane.b32.xlu1 %v11011_v56, %s9602_s16 }
 0x5aa   : > { %4902 = vrot.lane.b32.xlu0 %v10991_v22, %s9602_s16 }
 0x5ab   : > { %5024 = vrot.lane.b32.xlu1 %v11035_v2, %s9602_s16 }
 0x5ae   : > { %4965 = vrot.lane.b32.xlu0 %v11039_v11, %s9602_s16 }
 0x5af   : > { %5026 = vrot.lane.b32.xlu1 %v11057_v46, %s9602_s16  ;;  %v2947_v46 = vsub.f32 %v10846_v23, %v2881_v29 }
 0x5b1   : > { %v2993_v7 = vmul.f32 1.442695, %v2947_v46 }
 0x5b2   : > { %5085 = vrot.lane.b32.xlu0 %v11053_v53, %s9602_s16  ;;  %v2989_v53 = vmul.f32 1.442695, %v2945_v45 }
 0x5b3   : > { %5146 = vrot.lane.b32.xlu1 %v3804_v54, %s9602_s16 }
 0x5b4   : > { %8936 = vpow2.f32 %v2989_v53 }
 0x5b6   : > { %5087 = vrot.lane.b32.xlu0 %v3803_v9, %s9602_s16 }
 0x5b7   : > { %5399 = vrot.lane.b32.xlu1 %v10860_v44, %s9603_s11 }
 0x5ba   : > { %5148 = vrot.lane.b32.xlu0 %v3805_v14, %s9602_s16 }
 0x5bb   : > { %v2884_v57 = vpop.xlane.xlu1 %2883  ;;  %5470 = vrot.lane.b32.xlu1 %v10971_v0, %s9603_s11 }
 0x5bc   : > { %v2948_v31 = vsub.f32 %v10867_v4, %v2884_v57 }
 0x5be   : > { %5401 = vrot.lane.b32.xlu0 %v10961_v38, %s9603_s11  ;;  %v2995_v54 = vmul.f32 1.442695, %v2948_v31 }
 0x5bf   : > { %v2878_v9 = vpop.xlane.xlu1 %2877  ;;  %5472 = vrot.lane.b32.xlu1 %v10981_v59, %s9603_s11 }
 0x5c0   : > { %v2946_v27 = vsub.f32 %v10872_v55, %v2878_v9  ;;  %8938 = vpow2.f32 %v2995_v54 }
 0x5c1   : > { %v2917_v43 = vpop.xlane.xlu0 %2916 }
 0x5c2   : > { %v2991_v14 = vmul.f32 1.442695, %v2946_v27  ;;  %5395 = vrot.lane.b32.xlu0 %v10860_v44, %s9604_s22  ;;  %v2959_v41 = vsub.f32 %v10878_v61, %v2917_v43 }
 0x5c3   : > { %v2914_v4 = vpop.xlane.xlu1 %2913  ;;  %5397 = vrot.lane.b32.xlu1 %v10961_v38, %s9604_s22 }
 0x5c4   : > { %8940 = vpow2.f32 %v2991_v14  ;;  %v2958_v23 = vsub.f32 %v10882_v40, %v2914_v4  ;;  %v3017_v45 = vmul.f32 1.442695, %v2959_v41 }
 0x5c5   : > { %8942 = vpow2.f32 %v2993_v7  ;;  %v2911_v55 = vpop.xlane.xlu0 %2910 }
 0x5c6   : > { %v3015_v12 = vmul.f32 1.442695, %v2958_v23  ;;  %v2957_v29 = vsub.f32 %v10888_v32, %v2911_v55  ;;  %5541 = vrot.lane.b32.xlu0 %v10976_v42, %s9603_s11  ;;  %v11179_v32 = vpop.eup %8936 }
 0x5c7   : > { %v2905_v16 = vpop.xlane.xlu1 %2904  ;;  %5543 = vrot.lane.b32.xlu1 %v10995_v51, %s9603_s11 }
 0x5c8   : > { %v3013_v44 = vmul.f32 1.442695, %v2957_v29  ;;  %8944 = vpow2.f32 %v3015_v12  ;;  %v2955_v7 = vsub.f32 %v10894_v33, %v2905_v16 }
 0x5c9   : > { %v2920_v38 = vpop.xlane.xlu0 %2919 }
 0x5ca   : > { %8946 = vpow2.f32 %v3013_v44  ;;  %v2960_v40 = vsub.f32 %v10900_v60, %v2920_v38  ;;  %5466 = vrot.lane.b32.xlu0 %v10971_v0, %s9604_s22  ;;  %v11181_v31 = vpop.eup %8938 }
 0x5cb   : > { %v2899_v61 = vpop.xlane.xlu1 %2898  ;;  %5468 = vrot.lane.b32.xlu1 %v10981_v59, %s9604_s22  ;;  %8948 = vpow2.f32 %v3017_v45 }
 0x5cc   : > { %v3019_v57 = vmul.f32 1.442695, %v2960_v40  ;;  %v2953_v54 = vsub.f32 %v10906_v19, %v2899_v61 }
 0x5cd   : > { %v2929_v46 = vpop.xlane.xlu0 %2928 }
 0x5ce   : > { %v11183_v53 = vpop.eup %8940  ;;  %8950 = vpow2.f32 %v3019_v57  ;;  %5612 = vrot.lane.b32.xlu0 %v10991_v22, %s9603_s11  ;;  %v3005_v43 = vmul.f32 1.442695, %v2953_v54 }
 0x5cf   : > { %v11188_v60 = vpop.eup %8942  ;;  %v2908_v0 = vpop.xlane.xlu1 %2907  ;;  %5614 = vrot.lane.b32.xlu1 %v11011_v56, %s9603_s11  ;;  %v3131_v59 = vpack.c.bf16 %v11183_v53, %v11179_v32 }
 0x5d0   : > { %v2956_v9 = vsub.f32 %v10918_v28, %v2908_v0  ;;  %v3132_v27 = vpack.c.bf16 %v11181_v31, %v11188_v60  ;;  %8952 = vpow2.f32 %v3005_v43 }
 0x5d1   : > { %8328 = vmatprep.mubr.msk.bf16.mxu0 %vm480_vm0, %v3131_v59  ;;  %v2926_v19 = vpop.xlane.xlu0 %2925 }
 0x5d2   : > { %5537 = vrot.lane.b32.xlu0 %v10976_v42, %s9604_s22  ;;  %8329 = vmatmul.mubr.msk.bf16.vlgmr.msra.gmra.mrb[80].mxu0 %vm480_vm0, %v3132_v27  ;;  %v11202_v14 = vpop.eup %8944  ;;  %v3011_v4 = vmul.f32 1.442695, %v2956_v9  ;;  %v2962_v23 = vsub.f32 %v10924_v17, %v2926_v19  ;;  %v3009_v42 = vmul.f32 1.442695, %v2955_v7 }
 0x5d3   : > { %13794 = vst [vmem:[#allocation98_spill] sm:$0xff] %v11202_v14  ;;  %8341 = vmatpush3.bf16.msra.mxu0 %v10955_v58  ;;  %v2902_v28 = vpop.xlane.xlu1 %2901  ;;  %5539 = vrot.lane.b32.xlu1 %v10995_v51, %s9604_s22  ;;  %v2963_v58 = vsub.f32 %v10912_v62, %v2929_v46 }
 0x5d4   : > { %v11208_v33 = vpop.eup %8946  ;;  %v2954_v41 = vsub.f32 %v10929_v10, %v2902_v28  ;;  %8342 = vmatprep.subr.bf16.mxu0 %v10959_v30  ;;  %8954 = vpow2.f32 %v3011_v4  ;;  %v3023_v51 = vmul.f32 1.442695, %v2962_v23 }
 0x5d5   : > { %13795 = vst [vmem:[#allocation99_spill] sm:$0xff] %v11208_v33  ;;  %v3824_v55 = vpop.permute.xlu0 %3823  ;;  %v3137_v12 = vpack.c.bf16 %v11202_v14, %v11208_v33  ;;  %v11216_v17 = vpop.eup %8948 }
 0x5d6   : > { %v3007_v29 = vmul.f32 1.442695, %v2954_v41  ;;  %5683 = vrot.lane.b32.xlu0 %v11005_v5, %s9603_s11  ;;  %13796 = vst [vmem:[#allocation100_spill] sm:$0xff] %v11216_v17  ;;  %v3835_v59 = vsel %vm761_vm2, %v3824_v55, 0 }
 0x5d7   : > { %8343 = vmatpush3.bf16.msra.mxu0 %v10959_v30  ;;  %5610 = vrot.lane.b32.xlu1 %v11011_v56, %s9604_s22  ;;  %v2923_v10 = vpop.xlane.xlu1 %2922  ;;  %v3025_v30 = vmul.f32 1.442695, %v2963_v58 }
 0x5d8   : > { %v11222_v16 = vpop.eup %8950  ;;  %8956 = vpow2.f32 %v3007_v29  ;;  %v2961_v44 = vsub.f32 %v10939_v21, %v2923_v10  ;;  %8352 = vmatprep.mubr.msk.bf16.mxu1 %vm480_vm0, %v3137_v12  ;;  %8356 = vmatprep.subr.bf16.mxu0 %v10967_v49  ;;  %v3832_v21 = vsel %vm761_vm2, %v11133_v8, 0 }
 0x5d9   : > { %13797 = vst [vmem:[#allocation101_spill] sm:$0xff] %v11222_v16  ;;  %8958 = vpow2.f32 %v3009_v42  ;;  %v3818_v5 = vpop.permute.xlu0 %3817  ;;  %v3138_v62 = vpack.c.bf16 %v11222_v16, %v11216_v17 }
 0x5da   : > { %v3021_v45 = vmul.f32 1.442695, %v2961_v44  ;;  %5608 = vrot.lane.b32.xlu0 %v10991_v22, %s9604_s22  ;;  %8960 = vpow2.f32 %v3023_v51  ;;  %v11237_v57 = vpop.eup %8952 }
 0x5db   : > { %v2932_v56 = vpop.xlane.xlu1 %2931  ;;  %8353 = vmatmul.mubr.msk.bf16.vlgmr.msra.gmra.mrb[64].mxu1 %vm480_vm0, %v3138_v62  ;;  %13798 = vst [vmem:[#allocation102_spill] sm:$0xff] %v11237_v57 }
 0x5dc   : > { %8962 = vpow2.f32 %v3021_v45  ;;  %v2964_v38 = vsub.f32 %v10945_v26, %v2932_v56  ;;  %8365 = vmatpush3.bf16.xpose.msra.mxu1 %v3832_v21  ;;  %8368 = vmatprep.mubr.msk.bf16.mxu1 %vm761_vm2, %v3818_v5 }
 0x5dd   : > { %8693 = vmatprep.subr.msk.bf16.mxu1 %vm761_vm2, %v3824_v55  ;;  %v3964_v40 = vpop.permute.xlu0 %3963  ;;  %8964 = vpow2.f32 %v3025_v30 }
 0x5de   : > { %v3027_v61 = vmul.f32 1.442695, %v2964_v38  ;;  %v11239_v46 = vpop.eup %8954 }
 0x5df   : > { %v3893_v22 = vpop.permute.xlu1 %3892  ;;  %13799 = vst [vmem:[#allocation103_spill] sm:$0xff] %v11239_v46 }
 0x5e0   : > { %8966 = vpow2.f32 %v3027_v61  ;;  %v3903_v10 = vsel %vm761_vm2, %v3893_v22, 0 }
 0x5e1   : > { %v3889_v54 = vpop.permute.xlu0 %3888 }
 0x5e2   : > { %v11241_v0 = vpop.eup %8956 }
 0x5e3   : > { %13800 = vst [vmem:[#allocation104_spill] sm:$0xff] %v11241_v0  ;;  %v11243_v8 = vpop.eup %8958  ;;  %v3895_v26 = vpop.permute.xlu1 %3894  ;;  %v3135_v9 = vpack.c.bf16 %v11241_v0, %v11237_v57 }
 0x5e4   : > { %13801 = vst [vmem:[#allocation105_spill] sm:$0xff] %v11243_v8  ;;  %8367 = vmatpush3.bf16.xpose.msra.mxu1 %v3835_v59  ;;  %v3136_v27 = vpack.c.bf16 %v11239_v46, %v11243_v8  ;;  %v11250_v7 = vpop.eup %8960  ;;  %v3906_v56 = vsel %vm761_vm2, %v3895_v26, 0 }
 0x5e5   : > { %13802 = vst [vmem:[#allocation106_spill] sm:$0xff] %v11250_v7  ;;  %8696 = vmatprep.subr.msk.bf16.mxu1 %vm761_vm2, %v3964_v40  ;;  %8344 = vmatprep.mubr.msk.bf16.mxu0 %vm480_vm0, %v3135_v9  ;;  %v4035_v19 = vpop.permute.xlu0 %4034 }
 0x5e6   : > { %v11254_v43 = vpop.eup %8962  ;;  %8345 = vmatmul.mubr.msk.bf16.vlgmr.msra.gmra.mrb[84].mxu0 %vm480_vm0, %v3136_v27 }
 0x5e7   : > { %13803 = vst [vmem:[#allocation107_spill] sm:$0xff] %v11254_v43  ;;  %8357 = vmatpush3.bf16.msra.mxu0 %v10967_v49  ;;  %v3820_v4 = vpop.permute.xlu1 %3819  ;;  %v3139_v23 = vpack.c.bf16 %v11250_v7, %v11254_v43  ;;  %v11261_v28 = vpop.eup %8964  ;;  %v3974_v49 = vsel %vm761_vm2, %v3964_v40, 0 }
 0x5e8   : > { %8358 = vmatprep.subr.bf16.mxu0 %v11156_v15  ;;  %13804 = vst [vmem:[#allocation108_spill] sm:$0xff] %v11261_v28 }
 0x5e9   : > { %8360 = vmatprep.mubr.msk.bf16.mxu0 %vm480_vm0, %v3139_v23  ;;  %v3960_v41 = vpop.permute.xlu0 %3959 }
 0x5ea   : > { %v11264_v42 = vpop.eup %8966 }
 0x5eb   : > { %13805 = vst [vmem:[#allocation109_spill] sm:$0xff] %v11264_v42  ;;  %8359 = vmatpush3.bf16.msra.mxu0 %v11156_v15  ;;  %8369 = vmatmul.mubr.msk.bf16.vlgmr.msra.gmra.mrb[68].mxu1 %vm761_vm2, %v3820_v4  ;;  %v3966_v55 = vpop.permute.xlu1 %3965  ;;  %v3140_v12 = vpack.c.bf16 %v11264_v42, %v11261_v28  ;;  %v11457_v28 = vld [vmem:[#allocation10 + $0x20] sm:$0xff] }
 0x5ec   : > { %8694 = vmatprep.subr.msk.bf16.mxu0 %vm761_vm2, %v3893_v22  ;;  %8381 = vmatpush3.bf16.xpose.msra.mxu1 %v3974_v49  ;;  %v3977_v44 = vsel %vm761_vm2, %v3966_v55, 0 }
 0x5ed   : > { %8384 = vmatprep.mubr.msk.bf16.mxu1 %vm761_vm2, %v3960_v41  ;;  %8697 = vmatprep.subr.msk.bf16.mxu1 %vm761_vm2, %v3966_v55  ;;  %v4106_v29 = vpop.permute.xlu0 %4105 }
 0x5ee   : > { %8361 = vmatmul.mubr.msk.bf16.vlgmr.msra.gmra.mrb[88].mxu0 %vm480_vm0, %v3140_v12  ;;  %v4116_v21 = vsel %vm761_vm2, %v4106_v29, 0 }
 0x5ef   : > { %v3891_v58 = vpop.permute.xlu1 %3890  ;;  %8376 = vmatprep.mubr.msk.bf16.mxu0 %vm761_vm2, %v3889_v54  ;;  %v4045_v54 = vsel %vm761_vm2, %v4035_v19, 0 }
 0x5f1   : > { %v4031_v15 = vpop.permute.xlu0 %4030 }
 0x5f3   : > { %v4037_v51 = vpop.permute.xlu1 %4036 }
 0x5f4   : > { %8373 = vmatpush3.bf16.xpose.msra.mxu0 %v3903_v10  ;;  %8383 = vmatpush3.bf16.xpose.msra.mxu1 %v3977_v44  ;;  %v4048_v23 = vsel %vm761_vm2, %v4037_v51, 0 }
 0x5f5   : > { %8695 = vmatprep.subr.msk.bf16.mxu0 %vm761_vm2, %v3895_v26  ;;  %8700 = vmatprep.subr.msk.bf16.mxu1 %vm761_vm2, %v4106_v29  ;;  %v4177_v5 = vpop.permute.xlu0 %4176 }
 0x5f6   : > { %v4187_v29 = vsel %vm761_vm2, %v4177_v5, 0 }
 0x5f7   : > { %v3962_v62 = vpop.permute.xlu1 %3961 }
 0x5f9   : > { %v4102_v45 = vpop.permute.xlu0 %4101 }
 0x5fb   : > { %8385 = vmatmul.mubr.msk.bf16.vlgmr.msra.gmra.mrb[72].mxu1 %vm761_vm2, %v3962_v62  ;;  %v4108_v30 = vpop.permute.xlu1 %4107 }
 0x5fc   : > { %8375 = vmatpush3.bf16.xpose.msra.mxu0 %v3906_v56  ;;  %8397 = vmatpush3.bf16.xpose.msra.mxu1 %v4116_v21  ;;  %v4119_v26 = vsel %vm761_vm2, %v4108_v30, 0 }
 0x5fd   : > { %8400 = vmatprep.mubr.msk.bf16.mxu1 %vm761_vm2, %v4102_v45  ;;  %8698 = vmatprep.subr.msk.bf16.mxu0 %vm761_vm2, %v4035_v19  ;;  %v4248_v38 = vpop.permute.xlu0 %4247 }
 0x5fe   : > { %8701 = vmatprep.subr.msk.bf16.mxu1 %vm761_vm2, %v4108_v30  ;;  %v4258_v19 = vsel %vm761_vm2, %v4248_v38, 0 }
 0x5ff   : > { %v4033_v40 = vpop.permute.xlu1 %4032 }
 0x601   : > { %v4173_v61 = vpop.permute.xlu0 %4172 }
 0x603   : > { %8377 = vmatmul.mubr.msk.bf16.vlgmr.msra.gmra.mrb[92].mxu0 %vm761_vm2, %v3891_v58  ;;  %v4179_v22 = vpop.permute.xlu1 %4178 }
 0x604   : > { %8389 = vmatpush3.bf16.xpose.msra.mxu0 %v4045_v54  ;;  %8392 = vmatprep.mubr.msk.bf16.mxu0 %vm761_vm2, %v4031_v15  ;;  %v4190_v44 = vsel %vm761_vm2, %v4179_v22, 0 }
 0x605   : > { %8399 = vmatpush3.bf16.xpose.msra.mxu1 %v4119_v26  ;;  %8699 = vmatprep.subr.msk.bf16.mxu0 %vm761_vm2, %v4037_v51  ;;  %v4319_v59 = vpop.permute.xlu0 %4318 }
 0x606   : > { %8704 = vmatprep.subr.msk.bf16.mxu1 %vm761_vm2, %v4248_v38  ;;  %v4329_v62 = vsel %vm761_vm2, %v4319_v59, 0 }
 0x607   : > { %v4104_v9 = vpop.permute.xlu1 %4103 }
 0x609   : > { %v4244_v27 = vpop.permute.xlu0 %4243 }
 0x60b   : > { %v4250_v4 = vpop.permute.xlu1 %4249 }
 0x60c   : > { %8401 = vmatmul.mubr.msk.bf16.vlgmr.msra.gmra.mrb[76].mxu1 %vm761_vm2, %v4104_v9  ;;  %8391 = vmatpush3.bf16.xpose.msra.mxu0 %v4048_v23  ;;  %v4261_v58 = vsel %vm761_vm2, %v4250_v4, 0 }
 0x60d   : > { %8413 = vmatpush3.bf16.xpose.msra.mxu1 %v4258_v19  ;;  %8416 = vmatprep.mubr.msk.bf16.mxu1 %vm761_vm2, %v4244_v27  ;;  %v4321_v41 = vpop.permute.xlu0 %4320 }
 0x60e   : > { %8702 = vmatprep.subr.msk.bf16.mxu0 %vm761_vm2, %v4177_v5  ;;  %8705 = vmatprep.subr.msk.bf16.mxu1 %vm761_vm2, %v4250_v4  ;;  %v4332_v30 = vsel %vm761_vm2, %v4321_v41, 0 }
 0x60f   : > { %v4175_v55 = vpop.permute.xlu1 %4174 }
 0x611   : > { %v4317_v49 = vpop.permute.xlu0 %4316 }
 0x613   : > { %8393 = vmatmul.mubr.msk.bf16.vlgmr.msra.gmra.mrb[96].mxu0 %vm761_vm2, %v4033_v40  ;;  %v4246_v12 = vpop.permute.xlu1 %4245 }
 0x614   : > { %8405 = vmatpush3.bf16.xpose.msra.mxu0 %v4187_v29  ;;  %8408 = vmatprep.mubr.msk.bf16.mxu0 %vm761_vm2, %v4173_v61 }
 0x615   : > { %8415 = vmatpush3.bf16.xpose.msra.mxu1 %v4261_v58  ;;  %8703 = vmatprep.subr.msk.bf16.mxu0 %vm761_vm2, %v4179_v22  ;;  %v4720_v15 = vpop.permute.xlu0 %4719 }
 0x616   : > { %8428 = vmatprep.subr.bf16.mxu1 %v4720_v15 }
 0x617   : > { %v4315_v51 = vpop.permute.xlu1 %4314 }
 0x619   : > { %v4781_v45 = vpop.permute.xlu0 %4780 }
 0x61b   : > { %v4722_v10 = vpop.permute.xlu1 %4721 }
 0x61c   : > { %8417 = vmatmul.mubr.msk.bf16.vlgmr.msra.gmra.mrb[80].mxu1 %vm761_vm2, %v4246_v12  ;;  %8407 = vmatpush3.bf16.xpose.msra.mxu0 %v4190_v44 }
 0x61d   : > { %8429 = vmatpush3.bf16.msra.mxu1 %v4720_v15  ;;  %8706 = vmatprep.subr.msk.bf16.mxu0 %vm761_vm2, %v4319_v59  ;;  %v4783_v56 = vpop.permute.xlu0 %4782 }
 0x61e   : > { %8430 = vmatprep.subr.bf16.mxu1 %v4722_v10 }
 0x61f   : > { %v11306_v5 = vpop.permute.xlu1 %4841 }
 0x621   : > { %8431 = vmatpush3.bf16.msra.mxu1 %v4722_v10  ;;  %v11314_v21 = vpop.permute.xlu0 %4843 }
 0x622   : > { %8444 = vmatprep.subr.bf16.mxu1 %v11306_v5 }
 0x623   : > { %8409 = vmatmul.mubr.msk.bf16.vlgmr.msra.gmra.mrb[100].mxu0 %vm761_vm2, %v4175_v55 }
 0x624   : > { %8421 = vmatpush3.bf16.xpose.msra.mxu0 %v4329_v62  ;;  %8424 = vmatprep.mubr.msk.bf16.mxu0 %vm761_vm2, %v4315_v51 }
 0x625   : > { %8707 = vmatprep.subr.msk.bf16.mxu0 %vm761_vm2, %v4321_v41  ;;  %v11317_v38 = vpop.permute.xlu0 %4902 }
 0x629   : > { %v11526_v39 = vpop.permute.xlu0 %4965 }
 0x62c   : > { %8423 = vmatpush3.bf16.xpose.msra.mxu0 %v4332_v30 }
 0x62d   : > { %8436 = vmatprep.subr.bf16.mxu0 %v4781_v45  ;;  %v11530_v0 = vpop.permute.xlu0 %5085 }
 0x633   : > { %8425 = vmatmul.mubr.msk.bf16.vlgmr.msra.gmra.mrb[104].mxu0 %vm761_vm2, %v4317_v49 }
 0x634   : > { %8437 = vmatpush3.bf16.msra.mxu0 %v4781_v45 }
 0x635   : > { %8438 = vmatprep.subr.bf16.mxu0 %v4783_v56 }
 0x638   : > { %8439 = vmatpush3.bf16.msra.mxu0 %v4783_v56  ;;  %v7778_v56 = vld [vmem:[#allocation9 + $0x28] sm:$0xff]  }
 0x639   : > { %8452 = vmatprep.subr.bf16.mxu0 %v11317_v38 }
 0x64a   : > { %v11320_v40 = vpop.f32.mrb[52].mxu1 }
 0x64b   : > { %13806 = vst [vmem:[#allocation110_spill] sm:$0xff] %v11320_v40  ;;  %v11322_v61 = vpop.f32.mrb[53].mxu1  ;;  %v11386_v40 = vld [vmem:[#allocation10 + $0x10] sm:$0xff] }
 0x64c   : > { %13807 = vst [vmem:[#allocation111_spill] sm:$0xff] %v11322_v61  ;;  %v11324_v22 = vpop.f32.mrb[54].mxu1 }
 0x64d   : > { %13808 = vst [vmem:[#allocation112_spill] sm:$0xff] %v11324_v22  ;;  %v11326_v54 = vpop.f32.mrb[55].mxu1 }
 0x64e   : > { %13809 = vst [vmem:[#allocation113_spill] sm:$0xff] %v11326_v54 }
 0x65c   : > { %v11328_v26 = vpop.f32.mrb[56].mxu1 }
 0x65d   : > { %13810 = vst [vmem:[#allocation114_spill] sm:$0xff] %v11328_v26  ;;  %v11330_v59 = vpop.f32.mrb[57].mxu1  ;;  %v7761_v26 = vld [vmem:[#allocation9 + $0x20] sm:$0xff]  }
 0x65e   : > { %13811 = vst [vmem:[#allocation115_spill] sm:$0xff] %v11330_v59  ;;  %v11332_v9 = vpop.f32.mrb[58].mxu1 }
 0x65f   : > { %13812 = vst [vmem:[#allocation116_spill] sm:$0xff] %v11332_v9  ;;  %v11334_v27 = vpop.f32.mrb[59].mxu1 }
 0x660   : > { %13813 = vst [vmem:[#allocation117_spill] sm:$0xff] %v11334_v27 }
 0x664   : > { %v11336_v4 = vpop.f32.mrb[76].mxu0 }
 0x665   : > { %13814 = vst [vmem:[#allocation118_spill] sm:$0xff] %v11336_v4  ;;  %v11338_v23 = vpop.f32.mrb[77].mxu0 }
 0x666   : > { %13815 = vst [vmem:[#allocation119_spill] sm:$0xff] %v11338_v23  ;;  %v11340_v19 = vpop.f32.mrb[78].mxu0 }
 0x667   : > { %13816 = vst [vmem:[#allocation120_spill] sm:$0xff] %v11340_v19  ;;  %v11342_v41 = vpop.f32.mrb[79].mxu0  ;;  %v11374_v19 = vunpack.c.l.bf16 %v7778_v56 }
 0x668   : > { %13817 = vst [vmem:[#allocation121_spill] sm:$0xff] %v11342_v41  ;;  %v11378_v41 = vunpack.c.l.bf16 %v7761_v26 }
 0x66c   : > { %v11344_v55 = vpop.f32.mrb[60].mxu1 }
 0x66d   : > { %13818 = vst [vmem:[#allocation122_spill] sm:$0xff] %v11344_v55  ;;  %v11346_v49 = vpop.f32.mrb[61].mxu1 }
 0x66e   : > { %13819 = vst [vmem:[#allocation123_spill] sm:$0xff] %v11346_v49  ;;  %v11348_v12 = vpop.f32.mrb[62].mxu1 }
 0x66f   : > { %13820 = vst [vmem:[#allocation124_spill] sm:$0xff] %v11348_v12  ;;  %v11350_v29 = vpop.f32.mrb[63].mxu1  ;;  %v11406_v12 = vld [vmem:[#allocation10 + $0x18] sm:$0xff] }
 0x670   : > { %13821 = vst [vmem:[#allocation125_spill] sm:$0xff] %v11350_v29 }
 0x6a5   : > { %v11352_v58 = vpop.f32.mrb[80].mxu0 }
 0x6a6   : > { %13822 = vst [vmem:[#allocation126_spill] sm:$0xff] %v11352_v58  ;;  %v11354_v15 = vpop.f32.mrb[81].mxu0 }
 0x6a7   : > { %13823 = vst [vmem:[#allocation127_spill] sm:$0xff] %v11354_v15  ;;  %v11356_v51 = vpop.f32.mrb[82].mxu0 }
 0x6a8   : > { %13824 = vst [vmem:[#allocation128_spill] sm:$0xff] %v11356_v51  ;;  %v11358_v10 = vpop.f32.mrb[83].mxu0 }
 0x6a9   : > { %13825 = vst [vmem:[#allocation129_spill] sm:$0xff] %v11358_v10 }
 0x6ae   : > { %v11360_v44 = vpop.f32.mrb[64].mxu1 }
 0x6af   : > { %13826 = vst [vmem:[#allocation130_spill] sm:$0xff] %v11360_v44  ;;  %v11362_v62 = vpop.f32.mrb[65].mxu1  ;;  %v11380_v44 = vunpack.c.h.bf16 %v7778_v56  ;;  %v11394_v56 = vld [vmem:[#allocation10] sm:$0xff] }
 0x6b0   : > { %13827 = vst [vmem:[#allocation131_spill] sm:$0xff] %v11362_v62  ;;  %v11364_v45 = vpop.f32.mrb[66].mxu1 }
 0x6b1   : > { %13828 = vst [vmem:[#allocation132_spill] sm:$0xff] %v11364_v45  ;;  %v11366_v30 = vpop.f32.mrb[67].mxu1  ;;  %v11382_v45 = vunpack.c.h.bf16 %v7761_v26 }
 0x6b2   : > { %13829 = vst [vmem:[#allocation133_spill] sm:$0xff] %v11366_v30 }
 0x6b9   : > { %v11368_v9 = vpop.f32.mrb[84].mxu0 }
 0x6ba   : > { %13830 = vst [vmem:[#allocation134_spill] sm:$0xff] %v11368_v9  ;;  %v11370_v27 = vpop.f32.mrb[85].mxu0 }
 0x6bb   : > { %13831 = vst [vmem:[#allocation135_spill] sm:$0xff] %v11370_v27  ;;  %v11372_v59 = vpop.f32.mrb[86].mxu0 }
 0x6bc   : > { %13832 = vst [vmem:[#allocation136_spill] sm:$0xff] %v11372_v59  ;;  %v11376_v4 = vpop.f32.mrb[87].mxu0 }
 0x6bd   : > { %13833 = vst [vmem:[#allocation137_spill] sm:$0xff] %v11376_v4 }
 0x6be   : > { %v8370_v62 = vpop.f32.mrb[68].mxu1 }
 0x6bf   : > { %v3880_v30 = vadd.f32 %v8370_v62, %v11374_v19  ;;  %v3871_v23 = vpop.f32.mrb[69].mxu1 }
 0x6c0   : > { %v3872_v9 = vadd.f32 %v11378_v41, %v3871_v23  ;;  %v8371_v22 = vpop.f32.mrb[70].mxu1 }
 0x6c1   : > { %v11389_v59 = vadd.f32 %v11386_v40, %v3880_v30  ;;  %v3883_v4 = vadd.f32 %v8371_v22, %v11380_v44  ;;  %v3874_v27 = vpop.f32.mrb[71].mxu1  ;;  %v11392_v54 = vpop.f32.mrb[88].mxu0 }
 0x6c2   : > { %13834 = vst [vmem:[#allocation138_spill] sm:$0xff] %v11392_v54  ;;  %v11397_v26 = vadd.f32 %v11394_v56, %v3872_v9  ;;  %v3875_v62 = vadd.f32 %v11382_v45, %v3874_v27  ;;  %v11400_v61 = vpop.f32.mrb[89].mxu0  ;;  %v11411_v54 = vld [vmem:[#allocation10 + $0x8] sm:$0xff] }
 0x6c3   : > { %13835 = vst [vmem:[#allocation139_spill] sm:$0xff] %v11400_v61  ;;  %v11402_v23 = vpop.f32.mrb[90].mxu0  ;;  %v4421_v30 = vsel %vm480_vm0, %v11389_v59, -inf  ;;  %v11409_v22 = vadd.f32 %v11406_v12, %v3883_v4 }
 0x6c4   : > { %13836 = vst [vmem:[#allocation140_spill] sm:$0xff] %v11402_v23  ;;  %v11414_v55 = vadd.f32 %v11411_v54, %v3875_v62  ;;  %4422 = vmax.xlane.f32.xlu0 %v4421_v30  ;;  %v11416_v9 = vpop.f32.mrb[91].mxu0  ;;  %v4415_v27 = vsel %vm480_vm0, %v11397_v26, -inf }
 0x6c5   : > { %13837 = vst [vmem:[#allocation141_spill] sm:$0xff] %v11416_v9  ;;  %4416 = vmax.xlane.f32.xlu1 %v4415_v27  ;;  %v4424_v4 = vsel %vm480_vm0, %v11409_v22, -inf }
 0x6c6   : > { %v4418_v23 = vsel %vm480_vm0, %v11414_v55, -inf }
 0x6c8   : > { %4419 = vmax.xlane.f32.xlu0 %v4418_v23 }
 0x6c9   : > { %4425 = vmax.xlane.f32.xlu1 %v4424_v4 }
 0x6ce   : > { %v8386_v61 = vpop.f32.mrb[72].mxu1 }
 0x6cf   : > { %v4022_v29 = vadd.f32 %v8386_v61, %v11374_v19  ;;  %v4013_v62 = vpop.f32.mrb[73].mxu1 }
 0x6d0   : > { %v4014_v30 = vadd.f32 %v11378_v41, %v4013_v62  ;;  %v8387_v49 = vpop.f32.mrb[74].mxu1 }
 0x6d1   : > { %v11427_v9 = vadd.f32 %v11386_v40, %v4022_v29  ;;  %v4025_v27 = vadd.f32 %v8387_v49, %v11380_v44  ;;  %v4016_v51 = vpop.f32.mrb[75].mxu1 }
 0x6d2   : > { %v4017_v58 = vadd.f32 %v11382_v45, %v4016_v51  ;;  %v11432_v23 = vadd.f32 %v11394_v56, %v4014_v30 }
 0x6d3   : > { %v11435_v4 = vadd.f32 %v11406_v12, %v4025_v27  ;;  %v4445_v61 = vsel %vm480_vm0, %v11427_v9, -inf }
 0x6d4   : > { %4446 = vmax.xlane.f32.xlu0 %v4445_v61  ;;  %v11440_v62 = vadd.f32 %v11411_v54, %v4017_v58  ;;  %v4439_v30 = vsel %vm480_vm0, %v11432_v23, -inf }
 0x6d5   : > { %v4448_v29 = vsel %vm480_vm0, %v11435_v4, -inf }
 0x6d6   : > { %v8378_v49 = vpop.f32.mrb[92].mxu0  ;;  %4449 = vmax.xlane.f32.xlu1 %v4448_v29  ;;  %v4442_v29 = vsel %vm480_vm0, %v11440_v62, -inf }
 0x6d7   : > { %v3951_v51 = vadd.f32 %v8378_v49, %v11374_v19  ;;  %v3942_v10 = vpop.f32.mrb[93].mxu0 }
 0x6d8   : > { %v3943_v27 = vadd.f32 %v11378_v41, %v3942_v10  ;;  %v8379_v15 = vpop.f32.mrb[94].mxu0  ;;  %4440 = vmax.xlane.f32.xlu0 %v4439_v30  ;;  %v11462_v30 = vld [vmem:[#allocation10 + $0x38] sm:$0xff] }
 0x6d9   : > { %v11451_v58 = vadd.f32 %v11448_v20, %v3951_v51  ;;  %v3954_v61 = vadd.f32 %v8379_v15, %v11380_v44  ;;  %v3945_v52 = vpop.f32.mrb[95].mxu0  ;;  %v11469_v51 = vld [vmem:[#allocation10 + $0x28] sm:$0xff] }
 0x6da   : > { %v3946_v49 = vadd.f32 %v11382_v45, %v3945_v52  ;;  %4443 = vmax.xlane.f32.xlu1 %v4442_v29  ;;  %v11460_v10 = vadd.f32 %v11457_v28, %v3943_v27 }
 0x6db   : > { %v11465_v42 = vadd.f32 %v11462_v30, %v3954_v61  ;;  %v4433_v15 = vsel %vm480_vm0, %v11451_v58, -inf }
 0x6dc   : > { %4434 = vmax.xlane.f32.xlu0 %v4433_v15  ;;  %v11472_v25 = vadd.f32 %v11469_v51, %v3946_v49  ;;  %v4427_v29 = vsel %vm480_vm0, %v11460_v10, -inf }
 0x6dd   : > { %v4436_v52 = vsel %vm480_vm0, %v11465_v42, -inf }
 0x6de   : > { %4437 = vmax.xlane.f32.xlu1 %v4436_v52  ;;  %v4430_v7 = vsel %vm480_vm0, %v11472_v25, -inf }
 0x6df   : > { %v8402_v27 = vpop.f32.mrb[76].mxu1 }
 0x6e0   : > { %v4164_v61 = vadd.f32 %v8402_v27, %v11374_v19  ;;  %v4155_v63 = vpop.f32.mrb[77].mxu1  ;;  %4428 = vmax.xlane.f32.xlu0 %v4427_v29 }
 0x6e1   : > { %v4156_v43 = vadd.f32 %v11378_v41, %v4155_v63  ;;  %v8403_v15 = vpop.f32.mrb[78].mxu1 }
 0x6e2   : > { %v11483_v49 = vadd.f32 %v11386_v40, %v4164_v61  ;;  %v4167_v35 = vadd.f32 %v8403_v15, %v11380_v44  ;;  %v4158_v52 = vpop.f32.mrb[79].mxu1  ;;  %4431 = vmax.xlane.f32.xlu1 %v4430_v7 }
 0x6e3   : > { %v4159_v50 = vadd.f32 %v11382_v45, %v4158_v52  ;;  %v11488_v17 = vadd.f32 %v11394_v56, %v4156_v43 }
 0x6e4   : > { %v11491_v27 = vadd.f32 %v11406_v12, %v4167_v35  ;;  %v4469_v63 = vsel %vm480_vm0, %v11483_v49, -inf }
 0x6e5   : > { %4470 = vmax.xlane.f32.xlu0 %v4469_v63  ;;  %v11496_v29 = vadd.f32 %v11411_v54, %v4159_v50  ;;  %v4463_v35 = vsel %vm480_vm0, %v11488_v17, -inf }
 0x6e6   : > { %v8394_v61 = vpop.f32.mrb[96].mxu0  ;;  %v4472_v15 = vsel %vm480_vm0, %v11491_v27, -inf }
 0x6e7   : > { %v4093_v7 = vadd.f32 %v8394_v61, %v11374_v19  ;;  %4473 = vmax.xlane.f32.xlu1 %v4472_v15  ;;  %v4084_v52 = vpop.f32.mrb[97].mxu0  ;;  %v4466_v63 = vsel %vm480_vm0, %v11496_v29, -inf }
 0x6e8   : > { %v4085_v43 = vadd.f32 %v11378_v41, %v4084_v52  ;;  %v8395_v16 = vpop.f32.mrb[98].mxu0 }
 0x6e9   : > { %v11505_v48 = vadd.f32 %v11448_v20, %v4093_v7  ;;  %4464 = vmax.xlane.f32.xlu0 %v4463_v35  ;;  %v4087_v50 = vpop.f32.mrb[99].mxu0  ;;  %v4096_v1 = vadd.f32 %v8395_v16, %v11380_v44 }
 0x6ea   : > { %v11512_v15 = vadd.f32 %v11457_v28, %v4085_v43  ;;  %v4088_v47 = vadd.f32 %v11382_v45, %v4087_v50 }
 0x6eb   : > { %13838 = vst [vmem:[#allocation142_spill] sm:$0xff] %v11505_v48  ;;  %4467 = vmax.xlane.f32.xlu1 %v4466_v63  ;;  %v4457_v61 = vsel %vm480_vm0, %v11505_v48, -inf  ;;  %v11518_v63 = vpop.permute.xlu1 %4963 }
 0x6ec   : > { %13839 = vst [vmem:[#allocation143_spill] sm:$0xff] %v11512_v15  ;;  %v4451_v33 = vsel %vm480_vm0, %v11512_v15, -inf  ;;  %v11549_v15 = vadd.f32 %v11469_v51, %v4088_v47 }
 0x6ed   : > { %4458 = vmax.xlane.f32.xlu0 %v4457_v61 }
 0x6ee   : > { %v4454_v47 = vsel %vm480_vm0, %v11549_v15, -inf }
 0x6ef   : > { %v8418_v52 = vpop.f32.mrb[80].mxu1  ;;  %v11520_v43 = vpop.permute.xlu1 %4904 }
 0x6f0   : > { %v4297_v34 = vpop.f32.mrb[81].mxu1  ;;  %v4306_v36 = vadd.f32 %v8418_v52, %v11374_v19 }
 0x6f1   : > { %4452 = vmax.xlane.f32.xlu0 %v4451_v33  ;;  %v8419_v7 = vpop.f32.mrb[82].mxu1  ;;  %v4298_v50 = vadd.f32 %v11378_v41, %v4297_v34 }
 0x6f2   : > { %v4300_v35 = vpop.f32.mrb[83].mxu1 }
 0x6f3   : > { %v11528_v57 = vpop.permute.xlu1 %5024 }
 0x6f6   : > { %v8410_v14 = vpop.f32.mrb[100].mxu0 }
 0x6f7   : > { %v4226_v13 = vpop.f32.mrb[101].mxu0  ;;  %v11532_v3 = vpop.permute.xlu1 %5026 }
 0x6f8   : > { %v8411_v24 = vpop.f32.mrb[102].mxu0  ;;  %13840 = vst [vmem:[#allocation144_spill] sm:$0xff] %v11532_v3  ;;  %v4301_v3 = vadd.f32 %v11382_v45, %v4300_v35 }
 0x6f9   : > { %v4229_v8 = vpop.f32.mrb[103].mxu0 }
 0x6fa   : > { %v11561_v52 = vadd.f32 %v11411_v54, %v4301_v3 }
 0x6fb   : > { %v11537_v18 = vpop.permute.xlu1 %5146 }
 0x6fc   : > { %5754 = vrot.lane.b32.xlu1 %v11035_v2, %s9603_s11  ;;  %v11534_v2 = vpop.permute.xlu0 %5087  ;;  %13841 = vst [vmem:[#allocation145_spill] sm:$0xff] %v11537_v18 }
 0x6ff   : > { %v11546_v37 = vpop.permute.xlu1 %5399 }
 0x700   : > { %v11543_v48 = vpop.permute.xlu0 %5148 }
 0x701   : > { %13842 = vst [vmem:[#allocation146_spill] sm:$0xff] %v11543_v48  ;;  %v4235_v48 = vadd.f32 %v8410_v14, %v11374_v19  ;;  %v4227_v14 = vadd.f32 %v11378_v41, %v4226_v13  ;;  %v4238_v13 = vadd.f32 %v8411_v24, %v11380_v44  ;;  %v4230_v24 = vadd.f32 %v11382_v45, %v4229_v8 }
 0x703   : > { %v11566_v35 = vpop.permute.xlu1 %5470  ;;  %v11575_v3 = vadd.f32 %v11448_v20, %v4235_v48  ;;  %v11591_v48 = vadd.f32 %v11457_v28, %v4227_v14  ;;  %v11605_v14 = vadd.f32 %v11462_v30, %v4238_v13 }
 0x704   : > { %v11558_v18 = vpop.permute.xlu0 %5401  ;;  %13843 = vst [vmem:[#allocation147_spill] sm:$0xff] %v11566_v35 }
 0x705   : > { %v4484_v8 = vsel %vm480_vm0, %v11605_v14, -inf }
 0x706   : > { %v8426_v61 = vpop.f32.mrb[104].mxu0 }
 0x707   : > { %5685 = vrot.lane.b32.xlu0 %v11039_v11, %s9603_s11  ;;  %v4368_v46 = vpop.f32.mrb[105].mxu0  ;;  %v11540_v11 = vadd.f32 %v11462_v30, %v4096_v1  ;;  %v11555_v1 = vadd.f32 %v11386_v40, %v4306_v36  ;;  %v4309_v36 = vadd.f32 %v8419_v7, %v11380_v44  ;;  %v4490_v40 = vsel %vm480_vm0, %v11561_v52, -inf }
 0x708   : > { %v11524_v6 = vpop.f32.mrb[106].mxu0  ;;  %v11580_v54 = vpop.permute.xlu0 %5395  ;;  %v4377_v7 = vadd.f32 %v8426_v61, %v11374_v19  ;;  %v4369_v13 = vadd.f32 %v11378_v41, %v4368_v46 }
 0x709   : > { %v4371_v33 = vpop.f32.mrb[107].mxu0  ;;  %v4460_v16 = vsel %vm480_vm0, %v11540_v11, -inf  ;;  %v4493_v34 = vsel %vm480_vm0, %v11555_v1, -inf }
 0x70a   : > { %v4372_v19 = vadd.f32 %v11382_v45, %v4371_v33 }
 0x720   : > { %4461 = vmax.xlane.f32.xlu1 %v4460_v16  ;;  %v11569_v16 = vadd.f32 %v11394_v56, %v4298_v50  ;;  %v11583_v56 = vadd.f32 %v11406_v12, %v4309_v36  ;;  %v11597_v12 = vadd.f32 %v11448_v20, %v4377_v7  ;;  %v11602_v36 = vpop.permute.xlu0 %5541  ;;  %v11613_v20 = vadd.f32 %v11469_v51, %v4372_v19 }
 0x721   : > { %13845 = vst [vmem:[#allocation149_spill] sm:$0xff] %v11602_v36  ;;  %v11618_v7 = vadd.f32 %v11469_v51, %v4230_v24  ;;  %v4380_v51 = vadd.f32 %v11524_v6, %v11380_v44 }
 0x722   : > { %v4487_v50 = vsel %vm480_vm0, %v11569_v16, -inf  ;;  %v4496_v61 = vsel %vm480_vm0, %v11583_v56, -inf  ;;  %v4505_v33 = vsel %vm480_vm0, %v11597_v12, -inf }
 0x723   : > { %v4478_v46 = vsel %vm480_vm0, %v11618_v7, -inf  ;;  %v11639_v24 = vadd.f32 %v11462_v30, %v4380_v51  ;;  %v11655_v30 = vld [vmem:[#allocation2 + $0x40] sm:$0xff] }
 0x724   : > { %4455 = vmax.xlane.f32.xlu1 %v4454_v47  ;;  %v11588_v47 = vpop.permute.xlu1 %5472  ;;  %v11623_v45 = vpop.permute.xlu0 %5466 }
 0x725   : > { %13844 = vst [vmem:[#allocation148_spill] sm:$0xff] %v11588_v47  ;;  %13847 = vst [vmem:[#allocation151_spill] sm:$0xff] %v11623_v45 }
 0x726   : > { %4494 = vmax.xlane.f32.xlu0 %v4493_v34  ;;  %v4481_v34 = vsel %vm480_vm0, %v11575_v3, -inf }
 0x728   : > { %4491 = vmax.xlane.f32.xlu1 %v4490_v40  ;;  %v4475_v40 = vsel %vm480_vm0, %v11591_v48, -inf  ;;  %v11636_v41 = vpop.permute.xlu0 %5612 }
 0x729   : > { %13849 = vst [vmem:[#allocation153_spill] sm:$0xff] %v11636_v41 }
 0x72a   : > { %4488 = vmax.xlane.f32.xlu0 %v4487_v50  ;;  %v11610_v50 = vpop.permute.xlu1 %5397 }
 0x72b   : > { %13846 = vst [vmem:[#allocation150_spill] sm:$0xff] %v11610_v50 }
 0x72c   : > { %4482 = vmax.xlane.f32.xlu1 %v4481_v34  ;;  %v4502_v34 = vsel %vm480_vm0, %v11613_v20, -inf  ;;  %v11647_v6 = vpop.permute.xlu0 %5537 }
 0x72d   : > { %13851 = vst [vmem:[#allocation155_spill] sm:$0xff] %v11647_v6 }
 0x72e   : > { %4497 = vmax.xlane.f32.xlu0 %v4496_v61  ;;  %v11627_v19 = vpop.permute.xlu1 %5543  ;;  %v11630_v61 = vadd.f32 %v11457_v28, %v4369_v13  ;;  %v4508_v28 = vsel %vm480_vm0, %v11639_v24, -inf }
 0x72f   : > { %13848 = vst [vmem:[#allocation152_spill] sm:$0xff] %v11627_v19 }
 0x730   : > { %4476 = vmax.xlane.f32.xlu1 %v4475_v40  ;;  %v4499_v40 = vsel %vm480_vm0, %v11630_v61, -inf  ;;  %v11651_v13 = vpop.permute.xlu0 %5683 }
 0x731   : > { %13853 = vst [vmem:[#allocation157_spill] sm:$0xff] %v11651_v13 }
 0x732   : > { %4506 = vmax.xlane.f32.xlu0 %v4505_v33  ;;  %v11643_v33 = vpop.permute.xlu1 %5468 }
 0x733   : > { %13850 = vst [vmem:[#allocation154_spill] sm:$0xff] %v11643_v33 }
 0x734   : > { %4485 = vmax.xlane.f32.xlu1 %v4484_v8 }
 0x736   : > { %4503 = vmax.xlane.f32.xlu0 %v4502_v34  ;;  %v11649_v44 = vpop.permute.xlu1 %5614  ;;  %v11659_v34 = vpop.permute.xlu0 %5608 }
 0x737   : > { %13852 = vst [vmem:[#allocation156_spill] sm:$0xff] %v11649_v44  ;;  %13855 = vst [vmem:[#allocation159_spill] sm:$0xff] %v11659_v34  ;;  %v11673_v34 = vld [vmem:[#allocation2 + $0x50] sm:$0xff] }
 0x738   : > { %4479 = vmax.xlane.f32.xlu1 %v4478_v46  ;;  %v11663_v46 = vld [vmem:[#allocation2 + $0x58] sm:$0xff] }
 0x73a   : > { %v11653_v8 = vpop.permute.xlu1 %5539 }
 0x73b   : > { %13854 = vst [vmem:[#allocation158_spill] sm:$0xff] %v11653_v8 }
 0x73c   : > { %4500 = vmax.xlane.f32.xlu1 %v4499_v40  ;;  %v11667_v40 = vld [vmem:[#allocation2 + $0x48] sm:$0xff] }
 0x73e   : > { %v11661_v51 = vpop.permute.xlu1 %5610 }
 0x73f   : > { %13856 = vst [vmem:[#allocation160_spill] sm:$0xff] %v11661_v51  ;;  %v11677_v51 = vld [vmem:[#allocation2 + $0x60] sm:$0xff] }
 0x740   : > { %4509 = vmax.xlane.f32.xlu1 %v4508_v28 }
 0x74c   : > { %5679 = vrot.lane.b32.xlu0 %v11655_v30, %s9604_s22 }
 0x750   : > { %5756 = vrot.lane.b32.xlu0 %v11663_v46, %s9603_s11 }
 0x751   : > { %5681 = vrot.lane.b32.xlu1 %v11667_v40, %s9604_s22  ;;  %v4423_v28 = vpop.xlane.xlu0 %4422 }
 0x752   : > { %v4513_v44 = vsub.f32 %v11389_v59, %v4423_v28  ;;  %v4417_v33 = vpop.xlane.xlu1 %4416  ;;  %v11683_v28 = vld [vmem:[#allocation2 + $0x68] sm:$0xff] }
 0x753   : > { %v4511_v41 = vsub.f32 %v11397_v26, %v4417_v33 }
 0x754   : > { %v4547_v8 = vmul.f32 1.442695, %v4513_v44  ;;  %5750 = vrot.lane.b32.xlu0 %v11673_v34, %s9604_s22 }
 0x755   : > { %v4543_v47 = vmul.f32 1.442695, %v4511_v41  ;;  %5825 = vrot.lane.b32.xlu1 %v11677_v51, %s9603_s11  ;;  %v4420_v13 = vpop.xlane.xlu0 %4419 }
 0x756   : > { %v4512_v45 = vsub.f32 %v11414_v55, %v4420_v13  ;;  %v4426_v19 = vpop.xlane.xlu1 %4425  ;;  %8968 = vpow2.f32 %v4547_v8  ;;  %v11691_v55 = vld [vmem:[#allocation2 + $0x70] sm:$0xff] }
 0x757   : > { %v4514_v59 = vsub.f32 %v11409_v22, %v4426_v19  ;;  %8970 = vpow2.f32 %v4543_v47  ;;  %v11695_v22 = vld [vmem:[#allocation2 + $0x78] sm:$0xff] }
 0x758   : > { %v4545_v26 = vmul.f32 1.442695, %v4512_v45  ;;  %5827 = vrot.lane.b32.xlu0 %v11683_v28, %s9603_s11 }
 0x759   : > { %v4549_v33 = vmul.f32 1.442695, %v4514_v59  ;;  %5752 = vrot.lane.b32.xlu1 %v11663_v46, %s9604_s22 }
 0x75a   : > { %8972 = vpow2.f32 %v4545_v26 }
 0x75b   : > { %8974 = vpow2.f32 %v4549_v33 }
 0x75c   : > { %5821 = vrot.lane.b32.xlu0 %v11677_v51, %s9604_s22 }
 0x75d   : > { %5896 = vrot.lane.b32.xlu1 %v11691_v55, %s9603_s11 }
 0x760   : > { %5898 = vrot.lane.b32.xlu0 %v11695_v22, %s9603_s11  ;;  %v11701_v45 = vpop.eup %8968  ;;  %s13390_s11 = scalar_lea.vmem [#allocation12], %s7483_s10  ;;  %s7743_s10 = sshll.u32 %s9672_s28, 11 }
 0x761   : > { %5823 = vrot.lane.b32.xlu1 %v11683_v28, %s9604_s22  ;;  %v4447_v47 = vpop.xlane.xlu0 %4446  ;;  %v11703_v19 = vpop.eup %8970  ;;  %s7356_s28 = scalar_lea.sflag [#allocation6], %s9853_s20 }
 0x762   : > { %13857 = vst [vmem:[#allocation161_spill] sm:$0xff] %v11703_v19  ;;  %v4521_v59 = vsub.f32 %v11427_v9, %v4447_v47  ;;  %v9381_v9 = vld [vmem:[#allocation2] sm:$0xff] }
 0x763   : > { %v4450_v41 = vpop.xlane.xlu1 %4449 }
 0x764   : > { %v11705_v44 = vpop.eup %8972  ;;  %v4522_v13 = vsub.f32 %v11435_v4, %v4450_v41  ;;  %5894 = vrot.lane.b32.xlu0 %v11695_v22, %s9604_s22  ;;  %v4563_v47 = vmul.f32 1.442695, %v4521_v59 }
 0x765   : > { %v11710_v8 = vpop.eup %8974  ;;  %5892 = vrot.lane.b32.xlu1 %v11691_v55, %s9604_s22  ;;  %v4441_v26 = vpop.xlane.xlu0 %4440  ;;  %v4703_v33 = vpack.c.bf16 %v11705_v44, %v11703_v19  ;;  %v9382_v19 = vld [vmem:[#allocation2 + $0x10] sm:$0xff]  ;;  %s7370_s22 = sshll.u32 %s13390_s11, 4  ;;  %s13487_s22 = int_to_ptr.vmem [resolvable:$true] %s7370_s22 }
 0x766   : > { %v4565_v6 = vmul.f32 1.442695, %v4522_v13  ;;  %v4519_v35 = vsub.f32 %v11432_v23, %v4441_v26  ;;  %v4704_v4 = vpack.c.bf16 %v11710_v8, %v11701_v45  ;;  %v9383_v26 = vld [vmem:[#allocation2 + $0x8] sm:$0xff]  ;;  %p9518_p12 = scmp.lt.s32.totalorder %s13487_s22, %s9516_s8 }
 0x767   : > { %v4444_v41 = vpop.xlane.xlu1 %4443  ;;  %8432 = vmatprep.mubr.msk.bf16.mxu1 %vm480_vm0, %v4703_v33  ;;  %v9384_v33 = vld [vmem:[#allocation2 + $0x18] sm:$0xff] }
 0x768   : > { %v4559_v50 = vmul.f32 1.442695, %v4519_v35  ;;  %v4520_v36 = vsub.f32 %v11440_v62, %v4444_v41  ;;  %6297 = vrot.lane.b32.xlu0 %v9381_v9, %s9605_s17  ;;  %8433 = vmatmul.mubr.msk.bf16.vlgmr.msra.gmra.mrb[84].mxu1 %vm480_vm0, %v4704_v4  ;;  %8976 = vpow2.f32 %v4565_v6  ;;  %v9385_v4 = vld [vmem:[#allocation2 + $0x20] sm:$0xff] }
 0x769   : > { %6358 = vrot.lane.b32.xlu1 %v9382_v19, %s9605_s17  ;;  %8445 = vmatpush3.bf16.msra.mxu1 %v11306_v5  ;;  %v4435_v23 = vpop.xlane.xlu0 %4434 }
 0x76a   : > { %v4561_v13 = vmul.f32 1.442695, %v4520_v36  ;;  %8446 = vmatprep.subr.bf16.mxu1 %v11314_v21  ;;  %8978 = vpow2.f32 %v4559_v50  ;;  %v4517_v59 = vsub.f32 %v11451_v58, %v4435_v23  ;;  %v9386_v58 = vld [vmem:[#allocation2 + $0x30] sm:$0xff] }
 0x76b   : > { %v4438_v35 = vpop.xlane.xlu1 %4437 }
 0x76c   : > { %8980 = vpow2.f32 %v4561_v13  ;;  %v4518_v62 = vsub.f32 %v11465_v42, %v4438_v35  ;;  %6299 = vrot.lane.b32.xlu0 %v9383_v26, %s9605_s17  ;;  %v4555_v41 = vmul.f32 1.442695, %v4517_v59  ;;  %v9388_v35 = vld [vmem:[#allocation2 + $0x38] sm:$0xff] }
 0x76d   : > { %8982 = vpow2.f32 %v4563_v47  ;;  %6360 = vrot.lane.b32.xlu1 %v9384_v33, %s9605_s17  ;;  %8447 = vmatpush3.bf16.msra.mxu1 %v11314_v21  ;;  %v4429_v5 = vpop.xlane.xlu0 %4428 }
 0x76e   : > { %v4557_v36 = vmul.f32 1.442695, %v4518_v62  ;;  %8460 = vmatprep.subr.bf16.mxu1 %v11518_v63  ;;  %v4515_v50 = vsub.f32 %v11460_v10, %v4429_v5  ;;  %v9387_v10 = vld [vmem:[#allocation2 + $0x28] sm:$0xff] }
 0x76f   : > { %v4432_v6 = vpop.xlane.xlu1 %4431 }
 0x770   : > { %v4551_v19 = vmul.f32 1.442695, %v4515_v50  ;;  %v4516_v42 = vsub.f32 %v11472_v25, %v4432_v6  ;;  %6419 = vrot.lane.b32.xlu0 %v9385_v4, %s9605_s17  ;;  %8984 = vpow2.f32 %v4557_v36 }
 0x771   : > { %6480 = vrot.lane.b32.xlu1 %v9386_v58, %s9605_s17  ;;  %v3074_v58 = vsel %vm480_vm0, %v11181_v31, 0.0 }
 0x772   : > { %v4553_v9 = vmul.f32 1.442695, %v4516_v42  ;;  %v4471_v21 = vpop.xlane.xlu0 %4470  ;;  %8986 = vpow2.f32 %v4551_v19  ;;  %v11737_v47 = vpop.eup %8976 }
 0x773   : > { %v4529_v26 = vsub.f32 %v11483_v49, %v4471_v21  ;;  %v13858_v21 = vld [vmem:[#allocation143_spill] sm:$0xff] }
 0x774   : > { %8988 = vpow2.f32 %v4553_v9  ;;  %v4474_v23 = vpop.xlane.xlu1 %4473  ;;  %6421 = vrot.lane.b32.xlu0 %v9387_v10, %s9605_s17  ;;  %v11740_v13 = vpop.eup %8978  ;;  %v13859_v10 = vld [vmem:[#allocation96_spill] sm:$0xff] }
 0x775   : > { %8990 = vpow2.f32 %v4555_v41  ;;  %v4530_v25 = vsub.f32 %v11491_v27, %v4474_v23  ;;  %6482 = vrot.lane.b32.xlu1 %v9388_v35, %s9605_s17  ;;  %v4579_v49 = vmul.f32 1.442695, %v4529_v26  ;;  %v3068_v41 = vsel %vm480_vm0, %v11183_v53, 0.0  ;;  %v13860_v35 = vld [vmem:[#allocation95_spill] sm:$0xff]  ;;  %v13861_v26 = vld [vmem:[#allocation142_spill] sm:$0xff] }
 0x776   : > { %v11744_v62 = vpop.eup %8980  ;;  %v4465_v59 = vpop.xlane.xlu0 %4464  ;;  %v3077_v31 = vsel %vm480_vm0, %v13860_v35, 0.0 }
 0x777   : > { %v11747_v33 = vpop.eup %8982  ;;  %v4581_v5 = vmul.f32 1.442695, %v4530_v25  ;;  %v4527_v36 = vsub.f32 %v11488_v17, %v4465_v59  ;;  %v4707_v50 = vpack.c.bf16 %v11744_v62, %v11740_v13 }
 0x778   : > { %v4468_v6 = vpop.xlane.xlu1 %4467  ;;  %6541 = vrot.lane.b32.xlu0 %v11655_v30, %s9605_s17  ;;  %v4708_v27 = vpack.c.bf16 %v11737_v47, %v11747_v33 }
 0x779   : > { %v4575_v19 = vmul.f32 1.442695, %v4527_v36  ;;  %v4528_v42 = vsub.f32 %v11496_v29, %v4468_v6  ;;  %6543 = vrot.lane.b32.xlu1 %v11667_v40, %s9605_s17  ;;  %8448 = vmatprep.mubr.msk.bf16.mxu1 %vm480_vm0, %v4707_v50  ;;  %8992 = vpow2.f32 %v4581_v5 }
 0x77a   : > { %8449 = vmatmul.mubr.msk.bf16.vlgmr.msra.gmra.mrb[88].mxu1 %vm480_vm0, %v4708_v27  ;;  %v11762_v4 = vpop.eup %8984 }
 0x77b   : > { %v4577_v17 = vmul.f32 1.442695, %v4528_v42  ;;  %8461 = vmatpush3.bf16.msra.mxu1 %v11518_v63  ;;  %8994 = vpow2.f32 %v4575_v19  ;;  %v13863_v42 = vld [vmem:[#allocation97_spill] sm:$0xff] }
 0x77c   : > { %6602 = vrot.lane.b32.xlu0 %v11673_v34, %s9605_s17  ;;  %8462 = vmatprep.subr.bf16.mxu1 %v11526_v39  ;;  %v11767_v29 = vpop.eup %8986 }
 0x77d   : > { %8996 = vpow2.f32 %v4577_v17  ;;  %6663 = vrot.lane.b32.xlu1 %v11677_v51, %s9605_s17 }
 0x77e   : > { %v11771_v30 = vpop.eup %8988  ;;  %8998 = vpow2.f32 %v4579_v49 }
 0x77f   : > { %v11773_v40 = vpop.eup %8990  ;;  %8463 = vmatpush3.bf16.msra.mxu1 %v11526_v39  ;;  %v4705_v63 = vpack.c.bf16 %v11771_v30, %v11767_v29 }
 0x780   : > { %6604 = vrot.lane.b32.xlu0 %v11663_v46, %s9605_s17  ;;  %8476 = vmatprep.subr.bf16.mxu1 %v11530_v0  ;;  %v4706_v34 = vpack.c.bf16 %v11762_v4, %v11773_v40 }
 0x781   : > { %6724 = vrot.lane.b32.xlu1 %v11691_v55, %s9605_s17  ;;  %8440 = vmatprep.mubr.msk.bf16.mxu0 %vm480_vm0, %v4705_v63 }
 0x782   : > { %8441 = vmatmul.mubr.msk.bf16.vlgmr.msra.gmra.mrb[108].mxu0 %vm480_vm0, %v4706_v34  ;;  %v13864_v34 = vld [vmem:[#allocation84_spill] sm:$0xff] }
 0x783   : > { %8453 = vmatpush3.bf16.msra.mxu0 %v11317_v38  ;;  %v11791_v39 = vpop.eup %8992 }
 0x784   : > { %6665 = vrot.lane.b32.xlu0 %v11683_v28, %s9605_s17  ;;  %8454 = vmatprep.subr.bf16.mxu0 %v11520_v43 }
 0x785   : > { %v11793_v51 = vpop.eup %8994 }
 0x787   : > { %v11795_v46 = vpop.eup %8996  ;;  %8455 = vmatpush3.bf16.msra.mxu0 %v11520_v43  ;;  %v4459_v43 = vpop.xlane.xlu0 %4458 }
 0x788   : > { %v11798_v55 = vpop.eup %8998  ;;  %6726 = vrot.lane.b32.xlu0 %v11695_v22, %s9605_s17  ;;  %8468 = vmatprep.subr.bf16.mxu0 %v11528_v57  ;;  %v4711_v38 = vpack.c.bf16 %v11795_v46, %v11793_v51  ;;  %v3065_v22 = vsel %vm480_vm0, %v11179_v32, 0.0  ;;  %v3080_v32 = vsel %vm480_vm0, %v13859_v10, 0.0  ;;  %v4525_v59 = vsub.f32 %v13861_v26, %v4459_v43 }
 0x789   : > { %v4712_v28 = vpack.c.bf16 %v11791_v39, %v11798_v55 }
 0x78a   : > { %8464 = vmatprep.mubr.msk.bf16.mxu1 %vm480_vm0, %v4711_v38  ;;  %v4571_v49 = vmul.f32 1.442695, %v4525_v59  ;;  %v3032_v38 = vsel %vm480_vm0, %v13864_v34, 0.0 }
 0x78b   : > { %8465 = vmatmul.mubr.msk.bf16.vlgmr.msra.gmra.mrb[92].mxu1 %vm480_vm0, %v4712_v28  ;;  %v4453_v9 = vpop.xlane.xlu0 %4452 }
 0x78c   : > { %8477 = vmatpush3.bf16.msra.mxu1 %v11530_v0  ;;  %v11820_v0 = vpop.permute.xlu1 %5754  ;;  %v4523_v23 = vsub.f32 %v13858_v21, %v4453_v9  ;;  %v13866_v21 = vld [vmem:[#allocation104_spill] sm:$0xff] }
 0x78d   : > { %8478 = vmatprep.subr.bf16.mxu1 %v11534_v2 }
 0x78e   : > { %v4567_v36 = vmul.f32 1.442695, %v4523_v23  ;;  %v3092_v23 = vsel %vm480_vm0, %v13866_v21, 0.0 }
 0x78f   : > { %v11831_v5 = vpop.permute.xlu0 %5685 }
 0x790   : > { %8479 = vmatpush3.bf16.msra.mxu1 %v11534_v2  ;;  %v3071_v2 = vsel %vm480_vm0, %v11188_v60, 0.0  ;;  %v13862_v60 = vld [vmem:[#allocation94_spill] sm:$0xff]  ;;  %9000 = vpow2.f32 %v4567_v36 }
 0x791   : > { %8708 = vmatprep.subr.msk.bf16.mxu1 %vm761_vm2, %v11546_v37  ;;  %v3086_v50 = vsel %vm480_vm0, %v13862_v60, 0.0  ;;  %v13869_v60 = vld [vmem:[#allocation82_spill] sm:$0xff] }
 0x79a   : > { %v11852_v59 = vpop.eup %9000 }
 0x7a5   : > { %3066 = vadd.xlane.f32.xlu1 %v3065_v22  ;;  %v13865_v22 = vld [vmem:[#allocation83_spill] sm:$0xff] }
 0x7a7   : > { %3069 = vadd.xlane.f32.xlu0 %v3068_v41 }
 0x7a9   : > { %3075 = vadd.xlane.f32.xlu1 %v3074_v58 }
 0x7ab   : > { %3072 = vadd.xlane.f32.xlu0 %v3071_v2 }
 0x7ad   : > { %v4462_v25 = vpop.xlane.xlu1 %4461  ;;  %3081 = vadd.xlane.f32.xlu1 %v3080_v32 }
 0x7ae   : > { %v4526_v53 = vsub.f32 %v11540_v11, %v4462_v25  ;;  %v3083_v11 = vsel %vm480_vm0, %v13863_v42, 0.0  ;;  %v13867_v25 = vld [vmem:[#allocation102_spill] sm:$0xff]  ;;  %v13870_v42 = vld [vmem:[#allocation103_spill] sm:$0xff] }
 0x7af   : > { %3078 = vadd.xlane.f32.xlu0 %v3077_v31  ;;  %v13868_v31 = vld [vmem:[#allocation85_spill] sm:$0xff] }
 0x7b0   : > { %v4573_v6 = vmul.f32 1.442695, %v4526_v53  ;;  %v3038_v26 = vsel %vm480_vm0, %v13868_v31, 0.0 }
 0x7b1   : > { %v4456_v27 = vpop.xlane.xlu1 %4455  ;;  %3087 = vadd.xlane.f32.xlu1 %v3086_v50  ;;  %v3035_v50 = vsel %vm480_vm0, %v13869_v60, 0.0  ;;  %v13876_v60 = vld [vmem:[#allocation145_spill] sm:$0xff] }
 0x7b2   : > { %v4524_v19 = vsub.f32 %v11549_v15, %v4456_v27  ;;  %9002 = vpow2.f32 %v4573_v6  ;;  %v3029_v15 = vsel %vm480_vm0, %v13865_v22, 0.0 }
 0x7b3   : > { %3084 = vadd.xlane.f32.xlu0 %v3083_v11  ;;  %v4495_v17 = vpop.xlane.xlu0 %4494  ;;  %v3098_v11 = vsel %vm480_vm0, %v13870_v42, 0.0  ;;  %v13878_v42 = vld [vmem:[#allocation90_spill] sm:$0xff] }
 0x7b4   : > { %v4569_v63 = vmul.f32 1.442695, %v4524_v19  ;;  %v4537_v41 = vsub.f32 %v11555_v1, %v4495_v17 }
 0x7b5   : > { %v4492_v28 = vpop.xlane.xlu1 %4491  ;;  %3033 = vadd.xlane.f32.xlu1 %v3032_v38  ;;  %v13871_v38 = vld [vmem:[#allocation105_spill] sm:$0xff] }
 0x7b6   : > { %9004 = vpow2.f32 %v4569_v63  ;;  %v4536_v43 = vsub.f32 %v11561_v52, %v4492_v28  ;;  %v3089_v52 = vsel %vm480_vm0, %v13867_v25, 0.0  ;;  %v4595_v53 = vmul.f32 1.442695, %v4537_v41  ;;  %v13872_v41 = vld [vmem:[#allocation92_spill] sm:$0xff] }
 0x7b7   : > { %9006 = vpow2.f32 %v4571_v49  ;;  %3030 = vadd.xlane.f32.xlu0 %v3029_v15  ;;  %v4489_v58 = vpop.xlane.xlu0 %4488  ;;  %v3095_v28 = vsel %vm480_vm0, %v13871_v38, 0.0  ;;  %v13879_v38 = vld [vmem:[#allocation93_spill] sm:$0xff] }
 0x7b8   : > { %v4593_v9 = vmul.f32 1.442695, %v4536_v43  ;;  %v4535_v2 = vsub.f32 %v11569_v16, %v4489_v58  ;;  %v3044_v58 = vsel %vm480_vm0, %v13872_v41, 0.0 }
 0x7b9   : > { %v4483_v10 = vpop.xlane.xlu1 %4482  ;;  %3093 = vadd.xlane.f32.xlu1 %v3092_v23 }
 0x7ba   : > { %v4591_v32 = vmul.f32 1.442695, %v4535_v2  ;;  %9008 = vpow2.f32 %v4593_v9  ;;  %v4533_v22 = vsub.f32 %v11575_v3, %v4483_v10  ;;  %v13873_v3 = vld [vmem:[#allocation144_spill] sm:$0xff]  ;;  %v13874_v10 = vld [vmem:[#allocation91_spill] sm:$0xff] }
 0x7bb   : > { %3090 = vadd.xlane.f32.xlu0 %v3089_v52  ;;  %v4498_v35 = vpop.xlane.xlu0 %4497  ;;  %v3041_v25 = vsel %vm480_vm0, %v13874_v10, 0.0  ;;  %v13883_v10 = vld [vmem:[#allocation87_spill] sm:$0xff] }
 0x7bc   : > { %9010 = vpow2.f32 %v4591_v32  ;;  %v4538_v1 = vsub.f32 %v11583_v56, %v4498_v35  ;;  %v11856_v6 = vpop.eup %9002  ;;  %v13875_v35 = vld [vmem:[#allocation98_spill] sm:$0xff] }
 0x7bd   : > { %v4477_v16 = vpop.xlane.xlu1 %4476  ;;  %3039 = vadd.xlane.f32.xlu1 %v3038_v26  ;;  %9012 = vpow2.f32 %v4595_v53  ;;  %v4587_v53 = vmul.f32 1.442695, %v4533_v22 }
 0x7be   : > { %v4597_v36 = vmul.f32 1.442695, %v4538_v1  ;;  %v4531_v56 = vsub.f32 %v11591_v48, %v4477_v16 }
 0x7bf   : > { %3036 = vadd.xlane.f32.xlu0 %v3035_v50  ;;  %v4507_v27 = vpop.xlane.xlu0 %4506  ;;  %v13877_v50 = vld [vmem:[#allocation99_spill] sm:$0xff] }
 0x7c0   : > { %v11858_v19 = vpop.eup %9004  ;;  %9014 = vpow2.f32 %v4597_v36  ;;  %v4583_v15 = vmul.f32 1.442695, %v4531_v56  ;;  %v4541_v31 = vsub.f32 %v11597_v12, %v4507_v27  ;;  %v3101_v56 = vsel %vm480_vm0, %v13877_v50, 0.0  ;;  %v13887_v50 = vld [vmem:[#allocation146_spill] sm:$0xff] }
 0x7c1   : > { %v11863_v49 = vpop.eup %9006  ;;  %v4486_v17 = vpop.xlane.xlu1 %4485  ;;  %3099 = vadd.xlane.f32.xlu1 %v3098_v11  ;;  %v4709_v63 = vpack.c.bf16 %v11858_v19, %v11852_v59  ;;  %v3050_v11 = vsel %vm480_vm0, %v13878_v42, 0.0 }
 0x7c2   : > { %v4534_v34 = vsub.f32 %v11605_v14, %v4486_v17  ;;  %v4710_v43 = vpack.c.bf16 %v11856_v6, %v11863_v49  ;;  %9016 = vpow2.f32 %v4583_v15  ;;  %v4603_v17 = vmul.f32 1.442695, %v4541_v31 }
 0x7c3   : > { %3096 = vadd.xlane.f32.xlu0 %v3095_v28  ;;  %8456 = vmatprep.mubr.msk.bf16.mxu0 %vm480_vm0, %v4709_v63  ;;  %v4504_v48 = vpop.xlane.xlu0 %4503  ;;  %v5410_v63 = vsel %vm761_vm2, %v11546_v37, 0  ;;  %v3047_v28 = vsel %vm480_vm0, %v13879_v38, 0.0 }
 0x7c4   : > { %8457 = vmatmul.mubr.msk.bf16.vlgmr.msra.gmra.mrb[112].mxu0 %vm480_vm0, %v4710_v43  ;;  %v11877_v9 = vpop.eup %9008  ;;  %v4589_v14 = vmul.f32 1.442695, %v4534_v34  ;;  %v4540_v2 = vsub.f32 %v11613_v20, %v4504_v48  ;;  %v13880_v48 = vld [vmem:[#allocation101_spill] sm:$0xff] }
 0x7c5   : > { %8469 = vmatpush3.bf16.msra.mxu0 %v11528_v57  ;;  %v4480_v21 = vpop.xlane.xlu1 %4479  ;;  %3045 = vadd.xlane.f32.xlu1 %v3044_v58  ;;  %v3104_v57 = vsel %vm480_vm0, %v13875_v35, 0.0  ;;  %v3110_v22 = vsel %vm480_vm0, %v13880_v48, 0.0  ;;  %v13882_v58 = vld [vmem:[#allocation88_spill] sm:$0xff]  ;;  %v13885_v35 = vld [vmem:[#allocation106_spill] sm:$0xff] }
 0x7c6   : > { %v11881_v23 = vpop.eup %9010  ;;  %v4532_v32 = vsub.f32 %v11618_v7, %v4480_v21  ;;  %8470 = vmatprep.subr.bf16.mxu0 %v13873_v3  ;;  %9018 = vpow2.f32 %v4589_v14  ;;  %v4601_v7 = vmul.f32 1.442695, %v4540_v2  ;;  %v3056_v14 = vsel %vm480_vm0, %v13882_v58, 0.0 }
 0x7c7   : > { %3042 = vadd.xlane.f32.xlu0 %v3041_v25  ;;  %v4715_v52 = vpack.c.bf16 %v11877_v9, %v11881_v23  ;;  %v11891_v1 = vpop.eup %9012  ;;  %v5413_v2 = vsel %vm761_vm2, %v11558_v18, 0  ;;  %v3053_v25 = vsel %vm480_vm0, %v13883_v10, 0.0 }
 0x7c8   : > { %v4585_v20 = vmul.f32 1.442695, %v4532_v32 }
 0x7c9   : > { %8471 = vmatpush3.bf16.msra.mxu0 %v13873_v3  ;;  %3105 = vadd.xlane.f32.xlu1 %v3104_v57  ;;  %v4501_v26 = vpop.xlane.xlu1 %4500  ;;  %v11934_v3 = vpop.permute.xlu0 %5679  ;;  %v3116_v57 = vsel %vm480_vm0, %v13885_v35, 0.0 }
 0x7ca   : > { %v11895_v16 = vpop.eup %9014  ;;  %9020 = vpow2.f32 %v4585_v20  ;;  %v4539_v36 = vsub.f32 %v11630_v61, %v4501_v26  ;;  %8480 = vmatprep.mubr.msk.bf16.mxu1 %vm480_vm0, %v4715_v52  ;;  %8484 = vmatprep.subr.bf16.mxu0 %v13876_v60 }
 0x7cb   : > { %3102 = vadd.xlane.f32.xlu0 %v3101_v56  ;;  %v4716_v12 = vpack.c.bf16 %v11895_v16, %v11891_v1  ;;  %9022 = vpow2.f32 %v4587_v53  ;;  %v13884_v53 = vld [vmem:[#allocation149_spill] sm:$0xff] }
 0x7cc   : > { %v4599_v27 = vmul.f32 1.442695, %v4539_v36  ;;  %9024 = vpow2.f32 %v4601_v7  ;;  %v11918_v37 = vpop.eup %9016  ;;  %v13886_v7 = vld [vmem:[#allocation107_spill] sm:$0xff] }
 0x7cd   : > { %3051 = vadd.xlane.f32.xlu1 %v3050_v11  ;;  %v4510_v61 = vpop.xlane.xlu1 %4509  ;;  %8481 = vmatmul.mubr.msk.bf16.vlgmr.msra.gmra.mrb[96].mxu1 %vm480_vm0, %v4716_v12  ;;  %v3113_v26 = vsel %vm480_vm0, %v13886_v7, 0.0  ;;  %v11960_v12 = vpop.permute.xlu0 %5756  ;;  %v13889_v11 = vld [vmem:[#allocation150_spill] sm:$0xff]  ;;  %v13901_v7 = vld [vmem:[#allocation45_spill] sm:$0xff] }
 0x7ce   : > { %9026 = vpow2.f32 %v4599_v27  ;;  %v4542_v34 = vsub.f32 %v11639_v24, %v4510_v61  ;;  %8493 = vmatpush3.bf16.xpose.msra.mxu1 %v5410_v63  ;;  %8496 = vmatprep.mubr.msk.bf16.mxu1 %vm761_vm2, %v11580_v54  ;;  %v13881_v24 = vld [vmem:[#allocation100_spill] sm:$0xff]  ;;  %v13888_v27 = vld [vmem:[#allocation86_spill] sm:$0xff]  ;;  %v13890_v61 = vld [vmem:[#allocation147_spill] sm:$0xff] }
 0x7cf   : > { %8709 = vmatprep.subr.msk.bf16.mxu1 %vm761_vm2, %v11558_v18  ;;  %3048 = vadd.xlane.f32.xlu0 %v3047_v28  ;;  %9028 = vpow2.f32 %v4603_v17  ;;  %v3107_v15 = vsel %vm480_vm0, %v13881_v24, 0.0  ;;  %v3062_v42 = vsel %vm480_vm0, %v13888_v27, 0.0  ;;  %v13891_v63 = vld [vmem:[#allocation155_spill] sm:$0xff]  ;;  %v13893_v28 = vld [vmem:[#allocation152_spill] sm:$0xff] }
 0x7d0   : > { %v4605_v43 = vmul.f32 1.442695, %v4542_v34  ;;  %v11922_v54 = vpop.eup %9018  ;;  %v13892_v34 = vld [vmem:[#allocation89_spill] sm:$0xff]  ;;  %v13895_v24 = vld [vmem:[#allocation151_spill] sm:$0xff] }
 0x7d1   : > { %3111 = vadd.xlane.f32.xlu1 %v3110_v22  ;;  %v3059_v38 = vsel %vm480_vm0, %v13892_v34, 0.0  ;;  %v11983_v22 = vpop.permute.xlu0 %5750  ;;  %v5682_v10 = vpop.permute.xlu1 %5681 }
 0x7d2   : > { %9030 = vpow2.f32 %v4605_v43  ;;  %v13894_v43 = vld [vmem:[#allocation109_spill] sm:$0xff] }
 0x7d3   : > { %3108 = vadd.xlane.f32.xlu0 %v3107_v15  ;;  %v3122_v48 = vsel %vm480_vm0, %v13894_v43, 0.0  ;;  %v13896_v15 = vld [vmem:[#allocation108_spill] sm:$0xff]  ;;  %v13906_v43 = vld [vmem:[#allocation153_spill] sm:$0xff] }
 0x7d4   : > { %v11924_v41 = vpop.eup %9020  ;;  %v3119_v58 = vsel %vm480_vm0, %v13896_v15, 0.0 }
 0x7d5   : > { %3057 = vadd.xlane.f32.xlu1 %v3056_v14  ;;  %v4713_v21 = vpack.c.bf16 %v11924_v41, %v11918_v37  ;;  %v11932_v32 = vpop.eup %9022  ;;  %v13897_v14 = vld [vmem:[#allocation18_spill] sm:$0xff] }
 0x7d6   : > { %8495 = vmatpush3.bf16.xpose.msra.mxu1 %v5413_v2  ;;  %v11938_v52 = vpop.eup %9024  ;;  %v4714_v18 = vpack.c.bf16 %v11922_v54, %v11932_v32  ;;  %v1555_v2 = vsel %vm480_vm0, %v13897_v14, 0.0 }
 0x7d7   : > { %8712 = vmatprep.subr.msk.bf16.mxu1 %vm761_vm2, %v13884_v53  ;;  %3054 = vadd.xlane.f32.xlu0 %v3053_v25  ;;  %v5481_v25 = vsel %vm761_vm2, %v13890_v61, 0 }
 0x7d8   : > { %v11944_v20 = vpop.eup %9026  ;;  %8472 = vmatprep.mubr.msk.bf16.mxu0 %vm480_vm0, %v4713_v21  ;;  %v5555_v21 = vsel %vm761_vm2, %v13893_v28, 0 }
 0x7d9   : > { %8473 = vmatmul.mubr.msk.bf16.vlgmr.msra.gmra.mrb[116].mxu0 %vm480_vm0, %v4714_v18  ;;  %3117 = vadd.xlane.f32.xlu1 %v3116_v57  ;;  %v4717_v31 = vpack.c.bf16 %v11938_v52, %v11944_v20  ;;  %v11955_v36 = vpop.eup %9028  ;;  %v13899_v18 = vld [vmem:[#allocation44_spill] sm:$0xff]  ;;  %v11999_v57 = vpop.permute.xlu0 %5827 }
 0x7da   : > { %8485 = vmatpush3.bf16.msra.mxu0 %v13876_v60  ;;  %v5552_v60 = vsel %vm761_vm2, %v13884_v53, 0  ;;  %v13898_v53 = vld [vmem:[#allocation157_spill] sm:$0xff]  ;;  %v1552_v35 = vsel %vm480_vm0, %v13899_v18, 0.0  ;;  %v5623_v18 = vsel %vm761_vm2, %v13906_v43, 0 }
 0x7db   : > { %8486 = vmatprep.subr.bf16.mxu0 %v13887_v50  ;;  %3114 = vadd.xlane.f32.xlu0 %v3113_v26  ;;  %v1561_v26 = vsel %vm480_vm0, %v13901_v7, 0.0  ;;  %v13912_v7 = vld [vmem:[#allocation156_spill] sm:$0xff] }
 0x7dc   : > { %v11958_v56 = vpop.eup %9030  ;;  %8488 = vmatprep.mubr.msk.bf16.mxu0 %vm480_vm0, %v4717_v31  ;;  %v13900_v31 = vld [vmem:[#allocation148_spill] sm:$0xff] }
 0x7dd   : > { %8497 = vmatmul.mubr.msk.bf16.vlgmr.msra.gmra.mrb[100].mxu1 %vm761_vm2, %v13889_v11  ;;  %3063 = vadd.xlane.f32.xlu1 %v3062_v42  ;;  %v4718_v17 = vpack.c.bf16 %v11958_v56, %v11955_v36  ;;  %v5826_v42 = vpop.permute.xlu1 %5825  ;;  %v13903_v11 = vld [vmem:[#allocation37_spill] sm:$0xff]  ;;  %v5484_v34 = vsel %vm761_vm2, %v13900_v31, 0 }
 0x7de   : > { %8487 = vmatpush3.bf16.msra.mxu0 %v13887_v50  ;;  %8509 = vmatpush3.bf16.xpose.msra.mxu1 %v5552_v60  ;;  %v13902_v50 = vld [vmem:[#allocation46_spill] sm:$0xff]  ;;  %v1567_v60 = vsel %vm480_vm0, %v13903_v11, 0.0 }
 0x7df   : > { %8710 = vmatprep.subr.msk.bf16.mxu0 %vm761_vm2, %v13890_v61  ;;  %8512 = vmatprep.mubr.msk.bf16.mxu1 %vm761_vm2, %v13891_v63  ;;  %v1558_v27 = vsel %vm480_vm0, %v13902_v50, 0.0  ;;  %v5694_v61 = vsel %vm761_vm2, %v13898_v53, 0  ;;  %v5822_v63 = vpop.permute.xlu0 %5821  ;;  %v13914_v50 = vld [vmem:[#allocation48_spill] sm:$0xff] }
 0x7e0   : > { %8713 = vmatprep.subr.msk.bf16.mxu1 %vm761_vm2, %v13893_v28  ;;  %3060 = vadd.xlane.f32.xlu0 %v3059_v38  ;;  %v13905_v38 = vld [vmem:[#allocation36_spill] sm:$0xff] }
 0x7e1   : > { %8489 = vmatmul.mubr.msk.bf16.vlgmr.msra.gmra.mrb[120].mxu0 %vm480_vm0, %v4718_v17  ;;  %3123 = vadd.xlane.f32.xlu1 %v3122_v48  ;;  %v13904_v17 = vld [vmem:[#allocation158_spill] sm:$0xff]  ;;  %v1564_v28 = vsel %vm480_vm0, %v13905_v38, 0.0  ;;  %v12025_v15 = vpop.permute.xlu1 %5752  ;;  %v5836_v38 = vsel %vm761_vm2, %v5826_v42, 0 }
 0x7e2   : > { %8504 = vmatprep.mubr.msk.bf16.mxu0 %vm761_vm2, %v13895_v24  ;;  %v13907_v48 = vld [vmem:[#allocation38_spill] sm:$0xff] }
 0x7e3   : > { %v1573_v24 = vsel %vm480_vm0, %v13907_v48, 0.0  ;;  %v12029_v14 = vpop.permute.xlu0 %5898 }
 0x7e4   : > { %3120 = vadd.xlane.f32.xlu0 %v3119_v58  ;;  %v13908_v58 = vld [vmem:[#allocation39_spill] sm:$0xff] }
 0x7e5   : > { %1556 = vadd.xlane.f32.xlu1 %v1555_v2  ;;  %v13909_v2 = vld [vmem:[#allocation24_spill] sm:$0xff] }
 0x7e6   : > { %8511 = vmatpush3.bf16.xpose.msra.mxu1 %v5555_v21  ;;  %v1519_v21 = vsel %vm480_vm0, %v13909_v2, 0.0  ;;  %v13919_v2 = vld [vmem:[#allocation49_spill] sm:$0xff] }
 0x7e7   : > { %8501 = vmatpush3.bf16.xpose.msra.mxu0 %v5481_v25  ;;  %8716 = vmatprep.subr.msk.bf16.mxu1 %vm761_vm2, %v13898_v53  ;;  %v5697_v25 = vsel %vm761_vm2, %v11831_v5, 0  ;;  %v13910_v53 = vld [vmem:[#allocation154_spill] sm:$0xff]  ;;  %v12050_v11 = vpop.permute.xlu0 %5894 }
 0x7e8   : > { %8711 = vmatprep.subr.msk.bf16.mxu0 %vm761_vm2, %v13900_v31  ;;  %1553 = vadd.xlane.f32.xlu0 %v1552_v35  ;;  %v13911_v35 = vld [vmem:[#allocation159_spill] sm:$0xff]  ;;  %v12041_v31 = vpop.permute.xlu1 %5896 }
 0x7e9   : > { %1562 = vadd.xlane.f32.xlu1 %v1561_v26  ;;  %v13913_v26 = vld [vmem:[#allocation25_spill] sm:$0xff] }
 0x7eb   : > { %v6298_v48 = vpop.permute.xlu0 %6297 }
 0x7ec   : > { %1559 = vadd.xlane.f32.xlu0 %v1558_v27  ;;  %v1579_v27 = vsel %vm480_vm0, %v13914_v50, 0.0  ;;  %v13923_v50 = vld [vmem:[#allocation41_spill] sm:$0xff] }
 0x7ed   : > { %8513 = vmatmul.mubr.msk.bf16.vlgmr.msra.gmra.mrb[104].mxu1 %vm761_vm2, %v13904_v17  ;;  %1568 = vadd.xlane.f32.xlu1 %v1567_v60  ;;  %v13915_v60 = vld [vmem:[#allocation19_spill] sm:$0xff] }
 0x7ee   : > { %8525 = vmatpush3.bf16.xpose.msra.mxu1 %v5694_v61  ;;  %8528 = vmatprep.mubr.msk.bf16.mxu1 %vm761_vm2, %v11934_v3  ;;  %v1570_v3 = vsel %vm480_vm0, %v13908_v58, 0.0  ;;  %v1576_v17 = vsel %vm480_vm0, %v13915_v60, 0.0  ;;  %v13916_v61 = vld [vmem:[#allocation27_spill] sm:$0xff] }
 0x7ef   : > { %8503 = vmatpush3.bf16.xpose.msra.mxu0 %v5484_v34  ;;  %8717 = vmatprep.subr.msk.bf16.mxu1 %vm761_vm2, %v11831_v5  ;;  %v1516_v5 = vsel %vm480_vm0, %v13913_v26, 0.0  ;;  %v1525_v34 = vsel %vm480_vm0, %v13916_v61, 0.0  ;;  %v13922_v26 = vld [vmem:[#allocation29_spill] sm:$0xff] }
 0x7f0   : > { %8714 = vmatprep.subr.msk.bf16.mxu0 %vm761_vm2, %v13906_v43  ;;  %1565 = vadd.xlane.f32.xlu0 %v1564_v28  ;;  %v5824_v28 = vpop.permute.xlu1 %5823  ;;  %v5626_v43 = vsel %vm761_vm2, %v13912_v7, 0 }
 0x7f1   : > { %1574 = vadd.xlane.f32.xlu1 %v1573_v24 }
 0x7f4   : > { %1571 = vadd.xlane.f32.xlu0 %v1570_v3  ;;  %v5893_v3 = vpop.permute.xlu1 %5892 }
 0x7f5   : > { %1520 = vadd.xlane.f32.xlu1 %v1519_v21  ;;  %v1582_v21 = vsel %vm480_vm0, %v13919_v2, 0.0 }
 0x7f6   : > { %8505 = vmatmul.mubr.msk.bf16.vlgmr.msra.gmra.mrb[124].mxu0 %vm761_vm2, %v13910_v53  ;;  %8527 = vmatpush3.bf16.xpose.msra.mxu1 %v5697_v25  ;;  %v6300_v53 = vpop.permute.xlu0 %6299 }
 0x7f7   : > { %8517 = vmatpush3.bf16.xpose.msra.mxu0 %v5623_v18  ;;  %8520 = vmatprep.mubr.msk.bf16.mxu0 %vm761_vm2, %v13911_v35  ;;  %v13921_v18 = vld [vmem:[#allocation160_spill] sm:$0xff]  ;;  %v5765_v35 = vsel %vm761_vm2, %v11820_v0, 0 }
 0x7f8   : > { %8715 = vmatprep.subr.msk.bf16.mxu0 %vm761_vm2, %v13912_v7  ;;  %8720 = vmatprep.subr.msk.bf16.mxu1 %vm761_vm2, %v5826_v42  ;;  %v13918_v42 = vld [vmem:[#allocation47_spill] sm:$0xff]  ;;  %v5839_v7 = vsel %vm761_vm2, %v11999_v57, 0 }
 0x7f9   : > { %1517 = vadd.xlane.f32.xlu0 %v1516_v5  ;;  %1580 = vadd.xlane.f32.xlu1 %v1579_v27  ;;  %v1585_v58 = vsel %vm480_vm0, %v13918_v42, 0.0  ;;  %v1528_v5 = vsel %vm480_vm0, %v13922_v26, 0.0  ;;  %v1591_v27 = vsel %vm480_vm0, %v13923_v50, 0.0 }
 0x7fa   : > { %v12087_v60 = vpop.permute.xlu0 %6419 }
 0x7fd   : > { %1577 = vadd.xlane.f32.xlu0 %v1576_v17  ;;  %8529 = vmatmul.mubr.msk.bf16.vlgmr.msra.gmra.mrb[108].mxu1 %vm761_vm2, %v5682_v10  ;;  %v13917_v10 = vld [vmem:[#allocation26_spill] sm:$0xff] }
 0x7fe   : > { %1526 = vadd.xlane.f32.xlu1 %v1525_v34  ;;  %8541 = vmatpush3.bf16.xpose.msra.mxu1 %v5836_v38  ;;  %v1522_v24 = vsel %vm480_vm0, %v13917_v10, 0.0  ;;  %v5768_v34 = vsel %vm761_vm2, %v11960_v12, 0 }
 0x7ff   : > { %8519 = vmatpush3.bf16.xpose.msra.mxu0 %v5626_v43  ;;  %8544 = vmatprep.mubr.msk.bf16.mxu1 %vm761_vm2, %v5822_v63  ;;  %v13920_v63 = vld [vmem:[#allocation30_spill] sm:$0xff]  ;;  %v13926_v43 = vld [vmem:[#allocation31_spill] sm:$0xff] }
 0x800   : > { %8718 = vmatprep.subr.msk.bf16.mxu0 %vm761_vm2, %v11820_v0  ;;  %8721 = vmatprep.subr.msk.bf16.mxu1 %vm761_vm2, %v11999_v57  ;;  %v1531_v25 = vsel %vm480_vm0, %v13920_v63, 0.0  ;;  %v6359_v0 = vpop.permute.xlu1 %6358  ;;  %v13925_v57 = vld [vmem:[#allocation28_spill] sm:$0xff]  ;;  %v1534_v10 = vsel %vm480_vm0, %v13926_v43, 0.0 }
 0x801   : > { %1523 = vadd.xlane.f32.xlu0 %v1522_v24  ;;  %v1537_v61 = vsel %vm480_vm0, %v13925_v57, 0.0  ;;  %v13927_v24 = vld [vmem:[#allocation43_spill] sm:$0xff] }
 0x802   : > { %1586 = vadd.xlane.f32.xlu1 %v1585_v58  ;;  %v1597_v42 = vsel %vm480_vm0, %v13927_v24, 0.0  ;;  %v12102_v58 = vpop.permute.xlu0 %6421 }
 0x804   : > { %v6361_v38 = vpop.permute.xlu1 %6360 }
 0x805   : > { %1583 = vadd.xlane.f32.xlu0 %v1582_v21  ;;  %v5907_v21 = vsel %vm761_vm2, %v12041_v31, 0 }
 0x806   : > { %8521 = vmatmul.mubr.msk.bf16.vlgmr.msra.gmra.mrb[128].mxu0 %vm761_vm2, %v13921_v18  ;;  %1532 = vadd.xlane.f32.xlu1 %v1531_v25  ;;  %v12116_v63 = vpop.permute.xlu0 %6541  ;;  %v4610_v25 = vsel %vm480_vm0, %v11705_v44, 0.0  ;;  %v4637_v44 = vsel %vm480_vm0, %v11747_v33, 0.0 }
 0x807   : > { %8533 = vmatpush3.bf16.xpose.msra.mxu0 %v5765_v35  ;;  %8536 = vmatprep.mubr.msk.bf16.mxu0 %vm761_vm2, %v11983_v22  ;;  %v13924_v22 = vld [vmem:[#allocation40_spill] sm:$0xff]  ;;  %13930 = vst [vmem:[#allocation96_spill] sm:$0xff] %v12116_v63  ;;  %v4634_v35 = vsel %vm480_vm0, %v11744_v62, 0.0  ;;  %v4625_v62 = vsel %vm480_vm0, %v11773_v40, 0.0 }
 0x808   : > { %8543 = vmatpush3.bf16.xpose.msra.mxu1 %v5839_v7  ;;  %8719 = vmatprep.subr.msk.bf16.mxu0 %vm761_vm2, %v11960_v12  ;;  %v1588_v17 = vsel %vm480_vm0, %v13924_v22, 0.0  ;;  %v13928_v12 = vld [vmem:[#allocation42_spill] sm:$0xff]  ;;  %v12109_v2 = vpop.permute.xlu1 %6480 }
 0x809   : > { %8556 = vmatprep.subr.bf16.mxu1 %v6298_v48  ;;  %1529 = vadd.xlane.f32.xlu0 %v1528_v5  ;;  %13929 = vst [vmem:[#allocation143_spill] sm:$0xff] %v12109_v2  ;;  %v4622_v5 = vsel %vm480_vm0, %v11771_v30, 0.0  ;;  %v4661_v30 = vsel %vm480_vm0, %v11798_v55, 0.0  ;;  %v4649_v55 = vsel %vm480_vm0, %v11863_v49, 0.0  ;;  %v4688_v49 = vsel %vm480_vm0, %v11895_v16, 0.0 }
 0x80a   : > { %1592 = vadd.xlane.f32.xlu1 %v1591_v27  ;;  %v12130_v18 = vpop.permute.xlu0 %6602  ;;  %v4658_v27 = vsel %vm480_vm0, %v11795_v46, 0.0  ;;  %v4646_v46 = vsel %vm480_vm0, %v11858_v19, 0.0  ;;  %v4682_v16 = vsel %vm480_vm0, %v11877_v9, 0.0  ;;  %v4676_v9 = vsel %vm480_vm0, %v11922_v54, 0.0 }
 0x80b   : > { %13933 = vst [vmem:[#allocation142_spill] sm:$0xff] %v12130_v18  ;;  %v4670_v54 = vsel %vm480_vm0, %v11924_v41, 0.0  ;;  %v4700_v41 = vsel %vm480_vm0, %v11958_v56, 0.0  ;;  %v13950_v56 = vld [vmem:[#allocation111_spill] sm:$0xff] }
 0x80d   : > { %1589 = vadd.xlane.f32.xlu0 %v1588_v17 }
 0x80e   : > { %1538 = vadd.xlane.f32.xlu1 %v1537_v61  ;;  %v12140_v26 = vpop.permute.xlu0 %6604 }
 0x80f   : > { %8545 = vmatmul.mubr.msk.bf16.vlgmr.msra.gmra.mrb[112].mxu1 %vm761_vm2, %v5824_v28  ;;  %8535 = vmatpush3.bf16.xpose.msra.mxu0 %v5768_v34  ;;  %v1594_v28 = vsel %vm480_vm0, %v13928_v12, 0.0  ;;  %13935 = vst [vmem:[#allocation97_spill] sm:$0xff] %v12140_v26 }
 0x810   : > { %8557 = vmatpush3.bf16.msra.mxu1 %v6298_v48  ;;  %8722 = vmatprep.subr.msk.bf16.mxu0 %vm761_vm2, %v12041_v31  ;;  %v4616_v48 = vsel %vm480_vm0, %v11710_v8, 0.0  ;;  %v4613_v8 = vsel %vm480_vm0, %v11701_v45, 0.0  ;;  %v5910_v45 = vsel %vm761_vm2, %v12029_v14, 0 }
 0x811   : > { %8558 = vmatprep.subr.bf16.mxu1 %v6300_v53  ;;  %1535 = vadd.xlane.f32.xlu0 %v1534_v10 }
 0x812   : > { %1598 = vadd.xlane.f32.xlu1 %v1597_v42 }
 0x814   : > { %8559 = vmatpush3.bf16.msra.mxu1 %v6300_v53  ;;  %v13932_v53 = vld [vmem:[#allocation161_spill] sm:$0xff] }
 0x815   : > { %8572 = vmatprep.subr.bf16.mxu1 %v12087_v60  ;;  %1595 = vadd.xlane.f32.xlu0 %v1594_v28  ;;  %v4607_v31 = vsel %vm480_vm0, %v13932_v53, 0.0  ;;  %v13940_v28 = vld [vmem:[#allocation127_spill] sm:$0xff] }
 0x816   : > { %8537 = vmatmul.mubr.msk.bf16.vlgmr.msra.gmra.mrb[132].mxu0 %vm761_vm2, %v12025_v15  ;;  %4617 = vadd.xlane.f32.xlu1 %v4616_v48  ;;  %v12124_v15 = vpop.permute.xlu1 %6482 }
 0x817   : > { %8549 = vmatpush3.bf16.xpose.msra.mxu0 %v5907_v21  ;;  %8552 = vmatprep.mubr.msk.bf16.mxu0 %vm761_vm2, %v5893_v3  ;;  %13931 = vst [vmem:[#allocation95_spill] sm:$0xff] %v12124_v15  ;;  %v4640_v3 = vsel %vm480_vm0, %v11737_v47, 0.0  ;;  %v4631_v47 = vsel %vm480_vm0, %v11740_v13, 0.0  ;;  %v12154_v13 = vpop.permute.xlu0 %6665  ;;  %v13941_v21 = vld [vmem:[#allocation129_spill] sm:$0xff] }
 0x818   : > { %8723 = vmatprep.subr.msk.bf16.mxu0 %vm761_vm2, %v12029_v14  ;;  %v4628_v14 = vsel %vm480_vm0, %v11762_v4, 0.0  ;;  %13937 = vst [vmem:[#allocation83_spill] sm:$0xff] %v12154_v13  ;;  %v4619_v4 = vsel %vm480_vm0, %v11767_v29, 0.0  ;;  %v4655_v29 = vsel %vm480_vm0, %v11793_v51, 0.0 }
 0x819   : > { %4614 = vadd.xlane.f32.xlu0 %v4613_v8 }
 0x81a   : > { %4611 = vadd.xlane.f32.xlu1 %v4610_v25  ;;  %v12138_v7 = vpop.permute.xlu1 %6543 }
 0x81b   : > { %13934 = vst [vmem:[#allocation94_spill] sm:$0xff] %v12138_v7  ;;  %v12163_v40 = vpop.permute.xlu0 %6726 }
 0x81c   : > { %13939 = vst [vmem:[#allocation102_spill] sm:$0xff] %v12163_v40 }
 0x81d   : > { %4608 = vadd.xlane.f32.xlu0 %v4607_v31 }
 0x81e   : > { %4641 = vadd.xlane.f32.xlu1 %v4640_v3  ;;  %v12148_v33 = vpop.permute.xlu1 %6663 }
 0x81f   : > { %8551 = vmatpush3.bf16.xpose.msra.mxu0 %v5910_v45  ;;  %13936 = vst [vmem:[#allocation84_spill] sm:$0xff] %v12148_v33 }
 0x820   : > { %8564 = vmatprep.subr.bf16.mxu0 %v6359_v0 }
 0x821   : > { %4638 = vadd.xlane.f32.xlu0 %v4637_v44  ;;  %v13942_v44 = vld [vmem:[#allocation126_spill] sm:$0xff] }
 0x822   : > { %4635 = vadd.xlane.f32.xlu1 %v4634_v35  ;;  %v12161_v50 = vpop.permute.xlu1 %6724 }
 0x823   : > { %13938 = vst [vmem:[#allocation104_spill] sm:$0xff] %v12161_v50  ;;  %v14019_v50 = vld [vmem:[#allocation54_spill] sm:$0xff] }
 0x825   : > { %4632 = vadd.xlane.f32.xlu0 %v4631_v47  ;;  %v13943_v47 = vld [vmem:[#allocation128_spill] sm:$0xff] }
 0x826   : > { %8553 = vmatmul.mubr.msk.bf16.vlgmr.msra.gmra.mrb[136].mxu0 %vm761_vm2, %v12050_v11  ;;  %4629 = vadd.xlane.f32.xlu1 %v4628_v14  ;;  %v4664_v11 = vsel %vm480_vm0, %v11791_v39, 0.0  ;;  %v4652_v39 = vsel %vm480_vm0, %v11856_v6, 0.0  ;;  %v4643_v6 = vsel %vm480_vm0, %v11852_v59, 0.0  ;;  %v4685_v59 = vsel %vm480_vm0, %v11891_v1, 0.0 }
 0x827   : > { %8565 = vmatpush3.bf16.msra.mxu0 %v6359_v0  ;;  %v4679_v1 = vsel %vm480_vm0, %v11881_v23, 0.0  ;;  %v4673_v23 = vsel %vm480_vm0, %v11932_v32, 0.0  ;;  %v4667_v32 = vsel %vm480_vm0, %v11918_v37, 0.0  ;;  %v13972_v37 = vld [vmem:[#allocation133_spill] sm:$0xff] }
 0x828   : > { %8566 = vmatprep.subr.bf16.mxu0 %v6361_v38 }
 0x829   : > { %4626 = vadd.xlane.f32.xlu0 %v4625_v62 }
 0x82a   : > { %4623 = vadd.xlane.f32.xlu1 %v4622_v5 }
 0x82b   : > { %8567 = vmatpush3.bf16.msra.mxu0 %v6361_v38 }
 0x82c   : > { %8580 = vmatprep.subr.bf16.mxu0 %v12109_v2  ;;  %v12462_v2 = vld [vmem:[#allocation10 + $0x18] sm:$0xff] }
 0x82d   : > { %4620 = vadd.xlane.f32.xlu0 %v4619_v4 }
 0x82e   : > { %4665 = vadd.xlane.f32.xlu1 %v4664_v11 }
 0x831   : > { %4662 = vadd.xlane.f32.xlu0 %v4661_v30 }
 0x832   : > { %4659 = vadd.xlane.f32.xlu1 %v4658_v27  ;;  %v3067_v0 = vpop.xlane.xlu1 %3066  ;;  %v13944_v27 = vld [vmem:[#allocation123_spill] sm:$0xff] }
 0x833   : > { %9032 = vrcp.f32 %v3067_v0 }
 0x834   : > { %v3070_v22 = vpop.xlane.xlu0 %3069 }
 0x835   : > { %4656 = vadd.xlane.f32.xlu0 %v4655_v29  ;;  %9034 = vrcp.f32 %v3070_v22  ;;  %v13945_v29 = vld [vmem:[#allocation125_spill] sm:$0xff] }
 0x836   : > { %4653 = vadd.xlane.f32.xlu1 %v4652_v39  ;;  %v3076_v17 = vpop.xlane.xlu1 %3075 }
 0x837   : > { %9036 = vrcp.f32 %v3076_v17 }
 0x838   : > { %v3073_v57 = vpop.xlane.xlu0 %3072 }
 0x839   : > { %4650 = vadd.xlane.f32.xlu0 %v4649_v55  ;;  %9038 = vrcp.f32 %v3073_v57 }
 0x83a   : > { %4647 = vadd.xlane.f32.xlu1 %v4646_v46  ;;  %v3082_v51 = vpop.xlane.xlu1 %3081 }
 0x83b   : > { %9040 = vrcp.f32 %v3082_v51  ;;  %v12177_v61 = vpop.f32.mrb[84].mxu1  ;;  %v13946_v51 = vld [vmem:[#allocation122_spill] sm:$0xff] }
 0x83c   : > { %v3079_v34 = vpop.xlane.xlu0 %3078  ;;  %v12181_v38 = vpop.f32.mrb[85].mxu1 }
 0x83d   : > { %v9033_v43 = vpop.eup %9032  ;;  %4644 = vadd.xlane.f32.xlu0 %v4643_v6  ;;  %9042 = vrcp.f32 %v3079_v34  ;;  %v12185_v10 = vpop.f32.mrb[86].mxu1  ;;  %v13948_v34 = vld [vmem:[#allocation124_spill] sm:$0xff] }
 0x83e   : > { %4689 = vadd.xlane.f32.xlu1 %v4688_v49  ;;  %v3088_v19 = vpop.xlane.xlu1 %3087  ;;  %v12187_v24 = vpop.f32.mrb[87].mxu1  ;;  %v12192_v48 = vmul.f32 %v9033_v43, %v13940_v28 }
 0x83f   : > { %v9035_v42 = vpop.eup %9034  ;;  %9044 = vrcp.f32 %v3088_v19 }
 0x840   : > { %v3085_v12 = vpop.xlane.xlu0 %3084  ;;  %v12195_v8 = vmul.f32 %v9035_v42, %v13941_v21  ;;  %v4697_v21 = vsel %vm480_vm0, %v11955_v36, 0.0 }
 0x841   : > { %v9037_v25 = vpop.eup %9036  ;;  %4686 = vadd.xlane.f32.xlu0 %v4685_v59  ;;  %9046 = vrcp.f32 %v3085_v12 }
 0x842   : > { %4683 = vadd.xlane.f32.xlu1 %v4682_v16  ;;  %v3034_v53 = vpop.xlane.xlu1 %3033  ;;  %v12207_v14 = vmul.f32 %v9037_v25, %v13943_v47 }
 0x843   : > { %v9039_v3 = vpop.eup %9038  ;;  %9048 = vrcp.f32 %v3034_v53 }
 0x844   : > { %v3031_v45 = vpop.xlane.xlu0 %3030  ;;  %v12204_v35 = vmul.f32 %v9039_v3, %v13942_v44  ;;  %v13952_v3 = vld [vmem:[#allocation113_spill] sm:$0xff]  ;;  %v4694_v44 = vsel %vm480_vm0, %v11938_v52, 0.0 }
 0x845   : > { %v9041_v62 = vpop.eup %9040  ;;  %4680 = vadd.xlane.f32.xlu0 %v4679_v1  ;;  %9050 = vrcp.f32 %v3031_v45 }
 0x846   : > { %4677 = vadd.xlane.f32.xlu1 %v4676_v9  ;;  %v3094_v5 = vpop.xlane.xlu1 %3093  ;;  %v12219_v22 = vmul.f32 %v9041_v62, %v13945_v29  ;;  %v4691_v9 = vsel %vm480_vm0, %v11944_v20, 0.0 }
 0x847   : > { %v9043_v11 = vpop.eup %9042  ;;  %9052 = vrcp.f32 %v3094_v5 }
 0x848   : > { %v3091_v30 = vpop.xlane.xlu0 %3090  ;;  %v12216_v0 = vmul.f32 %v9043_v11, %v13944_v27  ;;  %v13954_v11 = vld [vmem:[#allocation135_spill] sm:$0xff] }
 0x849   : > { %v9045_v39 = vpop.eup %9044  ;;  %4674 = vadd.xlane.f32.xlu0 %v4673_v23  ;;  %9054 = vrcp.f32 %v3091_v30  ;;  %v13956_v30 = vld [vmem:[#allocation137_spill] sm:$0xff] }
 0x84a   : > { %4671 = vadd.xlane.f32.xlu1 %v4670_v54  ;;  %v3040_v17 = vpop.xlane.xlu1 %3039  ;;  %v12231_v43 = vmul.f32 %v9045_v39, %v13948_v34 }
 0x84b   : > { %v9047_v57 = vpop.eup %9046  ;;  %9056 = vrcp.f32 %v3040_v17  ;;  %v13974_v17 = vld [vmem:[#allocation118_spill] sm:$0xff] }
 0x84c   : > { %v3037_v46 = vpop.xlane.xlu0 %3036  ;;  %v12228_v6 = vmul.f32 %v9047_v57, %v13946_v51  ;;  %13949 = vst [vmem:[#allocation82_spill] sm:$0xff] %v12231_v43  ;;  %v13958_v51 = vld [vmem:[#allocation110_spill] sm:$0xff] }
 0x84d   : > { %v9049_v49 = vpop.eup %9048  ;;  %4668 = vadd.xlane.f32.xlu0 %v4667_v32  ;;  %9058 = vrcp.f32 %v3037_v46  ;;  %v12235_v19 = vpop.f32.mrb[88].mxu1 }
 0x84e   : > { %13947 = vst [vmem:[#allocation85_spill] sm:$0xff] %v12228_v6  ;;  %4701 = vadd.xlane.f32.xlu1 %v4700_v41  ;;  %v3100_v42 = vpop.xlane.xlu1 %3099  ;;  %v12237_v59 = vpop.f32.mrb[89].mxu1  ;;  %v12251_v1 = vmul.f32 %v9049_v49, %v13952_v3  ;;  %v13960_v49 = vld [vmem:[#allocation112_spill] sm:$0xff]  ;;  %v13962_v3 = vld [vmem:[#allocation134_spill] sm:$0xff] }
 0x84f   : > { %v9051_v12 = vpop.eup %9050  ;;  %9060 = vrcp.f32 %v3100_v42  ;;  %v12241_v28 = vpop.f32.mrb[90].mxu1 }
 0x850   : > { %v3097_v25 = vpop.xlane.xlu0 %3096  ;;  %v12245_v16 = vpop.f32.mrb[91].mxu1  ;;  %v12248_v53 = vmul.f32 %v9051_v12, %v13950_v56  ;;  %13953 = vst [vmem:[#allocation105_spill] sm:$0xff] %v12251_v1 }
 0x851   : > { %v9053_v45 = vpop.eup %9052  ;;  %4698 = vadd.xlane.f32.xlu0 %v4697_v21  ;;  %9062 = vrcp.f32 %v3097_v25  ;;  %v13970_v21 = vld [vmem:[#allocation131_spill] sm:$0xff] }
 0x852   : > { %13951 = vst [vmem:[#allocation103_spill] sm:$0xff] %v12248_v53  ;;  %4695 = vadd.xlane.f32.xlu1 %v4694_v44  ;;  %v3046_v47 = vpop.xlane.xlu1 %3045  ;;  %v12263_v27 = vmul.f32 %v9053_v45, %v13956_v30  ;;  %v13964_v44 = vld [vmem:[#allocation136_spill] sm:$0xff] }
 0x853   : > { %v9055_v62 = vpop.eup %9054  ;;  %9064 = vrcp.f32 %v3046_v47 }
 0x854   : > { %v3043_v5 = vpop.xlane.xlu0 %3042  ;;  %v12260_v23 = vmul.f32 %v9055_v62, %v13954_v11  ;;  %13957 = vst [vmem:[#allocation144_spill] sm:$0xff] %v12263_v27 }
 0x855   : > { %v9057_v29 = vpop.eup %9056  ;;  %4692 = vadd.xlane.f32.xlu0 %v4691_v9  ;;  %9066 = vrcp.f32 %v3043_v5  ;;  %v12265_v52 = vpop.f32.mrb[108].mxu0 }
 0x856   : > { %13955 = vst [vmem:[#allocation92_spill] sm:$0xff] %v12260_v23  ;;  %v3106_v39 = vpop.xlane.xlu1 %3105  ;;  %v12267_v54 = vpop.f32.mrb[109].mxu0  ;;  %v12279_v41 = vmul.f32 %v9057_v29, %v13960_v49  ;;  %v13968_v49 = vld [vmem:[#allocation121_spill] sm:$0xff] }
 0x857   : > { %v9059_v57 = vpop.eup %9058  ;;  %9068 = vrcp.f32 %v3106_v39  ;;  %v12271_v20 = vpop.f32.mrb[110].mxu0 }
 0x858   : > { %v3103_v32 = vpop.xlane.xlu0 %3102  ;;  %v12273_v46 = vpop.f32.mrb[111].mxu0  ;;  %v12276_v34 = vmul.f32 %v9059_v57, %v13958_v51  ;;  %13961 = vst [vmem:[#allocation98_spill] sm:$0xff] %v12279_v41  ;;  %v14017_v41 = vld [vmem:[#allocation67_spill] sm:$0xff] }
 0x859   : > { %v9061_v42 = vpop.eup %9060  ;;  %9070 = vrcp.f32 %v3103_v32  ;;  %v13966_v32 = vld [vmem:[#allocation119_spill] sm:$0xff] }
 0x85a   : > { %13959 = vst [vmem:[#allocation91_spill] sm:$0xff] %v12276_v34  ;;  %v3052_v12 = vpop.xlane.xlu1 %3051  ;;  %v12287_v47 = vmul.f32 %v9061_v42, %v13964_v44 }
 0x85b   : > { %v9063_v25 = vpop.eup %9062  ;;  %9072 = vrcp.f32 %v3052_v12 }
 0x85c   : > { %v3049_v56 = vpop.xlane.xlu0 %3048  ;;  %v12284_v45 = vmul.f32 %v9063_v25, %v13962_v3  ;;  %13965 = vst [vmem:[#allocation99_spill] sm:$0xff] %v12287_v47 }
 0x85d   : > { %v9065_v62 = vpop.eup %9064  ;;  %9074 = vrcp.f32 %v3049_v56 }
 0x85e   : > { %13963 = vst [vmem:[#allocation145_spill] sm:$0xff] %v12284_v45  ;;  %v3112_v9 = vpop.xlane.xlu1 %3111  ;;  %v12289_v5 = vpop.f32.mrb[92].mxu1  ;;  %v12301_v42 = vmul.f32 %v9065_v62, %v13968_v49 }
 0x85f   : > { %v9067_v30 = vpop.eup %9066  ;;  %9076 = vrcp.f32 %v3112_v9  ;;  %v12293_v29 = vpop.f32.mrb[93].mxu1 }
 0x860   : > { %v12295_v39 = vpop.f32.mrb[94].mxu1  ;;  %v3109_v57 = vpop.xlane.xlu0 %3108  ;;  %v12298_v51 = vmul.f32 %v9067_v30, %v13966_v32  ;;  %13969 = vst [vmem:[#allocation93_spill] sm:$0xff] %v12301_v42 }
 0x861   : > { %v9069_v12 = vpop.eup %9068  ;;  %9078 = vrcp.f32 %v3109_v57  ;;  %v12303_v25 = vpop.f32.mrb[95].mxu1  ;;  %v13980_v57 = vld [vmem:[#allocation132_spill] sm:$0xff] }
 0x862   : > { %13967 = vst [vmem:[#allocation90_spill] sm:$0xff] %v12298_v51  ;;  %v3058_v56 = vpop.xlane.xlu1 %3057  ;;  %v12311_v30 = vmul.f32 %v9069_v12, %v13972_v37  ;;  %v13984_v37 = vld [vmem:[#allocation117_spill] sm:$0xff]  ;;  %v14001_v51 = vld [vmem:[#allocation70_spill] sm:$0xff] }
 0x863   : > { %v9071_v44 = vpop.eup %9070  ;;  %9080 = vrcp.f32 %v3058_v56  ;;  %v13976_v56 = vld [vmem:[#allocation120_spill] sm:$0xff] }
 0x864   : > { %v3055_v9 = vpop.xlane.xlu0 %3054  ;;  %v12308_v36 = vmul.f32 %v9071_v44, %v13970_v21  ;;  %13973 = vst [vmem:[#allocation100_spill] sm:$0xff] %v12311_v30 }
 0x865   : > { %v9073_v32 = vpop.eup %9072  ;;  %9082 = vrcp.f32 %v3055_v9  ;;  %v13978_v9 = vld [vmem:[#allocation130_spill] sm:$0xff] }
 0x866   : > { %13971 = vst [vmem:[#allocation101_spill] sm:$0xff] %v12308_v36  ;;  %v3118_v62 = vpop.xlane.xlu1 %3117  ;;  %v12319_v55 = vmul.f32 %v9073_v32, %v13976_v56  ;;  %v13982_v56 = vld [vmem:[#allocation115_spill] sm:$0xff]  ;;  %v13988_v32 = vld [vmem:[#allocation141_spill] sm:$0xff] }
 0x867   : > { %v9075_v49 = vpop.eup %9074  ;;  %9084 = vrcp.f32 %v3118_v62 }
 0x868   : > { %v3115_v11 = vpop.xlane.xlu0 %3114  ;;  %v12316_v3 = vmul.f32 %v9075_v49, %v13974_v17  ;;  %13977 = vst [vmem:[#allocation87_spill] sm:$0xff] %v12319_v55 }
 0x869   : > { %v9077_v21 = vpop.eup %9076  ;;  %9086 = vrcp.f32 %v3115_v11 }
 0x86a   : > { %13975 = vst [vmem:[#allocation88_spill] sm:$0xff] %v12316_v3  ;;  %v3064_v44 = vpop.xlane.xlu1 %3063  ;;  %v12327_v62 = vmul.f32 %v9077_v21, %v13980_v57  ;;  %v13986_v3 = vld [vmem:[#allocation139_spill] sm:$0xff] }
 0x86b   : > { %v9079_v12 = vpop.eup %9078  ;;  %9088 = vrcp.f32 %v3064_v44 }
 0x86c   : > { %v12324_v31 = vmul.f32 %v9079_v12, %v13978_v9  ;;  %13981 = vst [vmem:[#allocation106_spill] sm:$0xff] %v12327_v62  ;;  %v13990_v62 = vld [vmem:[#allocation114_spill] sm:$0xff] }
 0x86d   : > { %v9081_v4 = vpop.eup %9080  ;;  %v3061_v17 = vpop.xlane.xlu0 %3060 }
 0x86e   : > { %13979 = vst [vmem:[#allocation149_spill] sm:$0xff] %v12324_v31  ;;  %9090 = vrcp.f32 %v3061_v17  ;;  %v3124_v49 = vpop.xlane.xlu1 %3123  ;;  %v12335_v44 = vmul.f32 %v9081_v4, %v13984_v37 }
 0x86f   : > { %v9083_v11 = vpop.eup %9082  ;;  %9092 = vrcp.f32 %v3124_v49 }
 0x870   : > { %v12332_v36 = vmul.f32 %v9083_v11, %v13982_v56  ;;  %13985 = vst [vmem:[#allocation146_spill] sm:$0xff] %v12335_v44  ;;  %v13994_v44 = vld [vmem:[#allocation138_spill] sm:$0xff] }
 0x871   : > { %v9085_v12 = vpop.eup %9084  ;;  %v3121_v9 = vpop.xlane.xlu0 %3120 }
 0x872   : > { %13983 = vst [vmem:[#allocation107_spill] sm:$0xff] %v12332_v36  ;;  %9094 = vrcp.f32 %v3121_v9  ;;  %v1557_v57 = vpop.xlane.xlu1 %1556  ;;  %v12343_v49 = vmul.f32 %v9085_v12, %v13988_v32  ;;  %v13999_v12 = vld [vmem:[#allocation71_spill] sm:$0xff] }
 0x873   : > { %v9087_v17 = vpop.eup %9086  ;;  %9096 = vrcp.f32 %v1557_v57  ;;  %v13992_v57 = vld [vmem:[#allocation116_spill] sm:$0xff] }
 0x874   : > { %v12340_v55 = vmul.f32 %v9087_v17, %v13986_v3  ;;  %13989 = vst [vmem:[#allocation150_spill] sm:$0xff] %v12343_v49 }
 0x875   : > { %v1554_v11 = vpop.xlane.xlu0 %1553  ;;  %v9089_v56 = vpop.eup %9088 }
 0x876   : > { %13987 = vst [vmem:[#allocation86_spill] sm:$0xff] %v12340_v55  ;;  %9098 = vrcp.f32 %v1554_v11  ;;  %v1563_v4 = vpop.xlane.xlu1 %1562  ;;  %v12351_v36 = vmul.f32 %v9089_v56, %v13992_v57  ;;  %v13998_v57 = vld [vmem:[#allocation73_spill] sm:$0xff] }
 0x877   : > { %9100 = vrcp.f32 %v1563_v4  ;;  %v13996_v4 = vld [vmem:[#allocation140_spill] sm:$0xff] }
 0x878   : > { %v9091_v9 = vpop.eup %9090  ;;  %13993 = vst [vmem:[#allocation155_spill] sm:$0xff] %v12351_v36 }
 0x879   : > { %v1560_v31 = vpop.xlane.xlu0 %1559  ;;  %v12348_v21 = vmul.f32 %v9091_v9, %v13990_v62  ;;  %v9093_v3 = vpop.eup %9092 }
 0x87a   : > { %9102 = vrcp.f32 %v1560_v31  ;;  %v1569_v32 = vpop.xlane.xlu1 %1568  ;;  %v12359_v55 = vmul.f32 %v9093_v3, %v13996_v4  ;;  %v14000_v3 = vld [vmem:[#allocation72_spill] sm:$0xff] }
 0x87b   : > { %13991 = vst [vmem:[#allocation147_spill] sm:$0xff] %v12348_v21  ;;  %9104 = vrcp.f32 %v1569_v32 }
 0x87c   : > { %v9095_v17 = vpop.eup %9094  ;;  %13997 = vst [vmem:[#allocation152_spill] sm:$0xff] %v12359_v55  ;;  %v14003_v55 = vld [vmem:[#allocation63_spill] sm:$0xff] }
 0x87d   : > { %v1566_v11 = vpop.xlane.xlu0 %1565  ;;  %v12356_v37 = vmul.f32 %v9095_v17, %v13994_v44  ;;  %v9097_v62 = vpop.eup %9096 }
 0x87e   : > { %9106 = vrcp.f32 %v1566_v11  ;;  %v1575_v9 = vpop.xlane.xlu1 %1574  ;;  %v2161_v49 = vmul.f32 %v9097_v62, %v13998_v57 }
 0x87f   : > { %13995 = vst [vmem:[#allocation89_spill] sm:$0xff] %v12356_v37  ;;  %9108 = vrcp.f32 %v1575_v9 }
 0x880   : > { %v9099_v31 = vpop.eup %9098 }
 0x881   : > { %v2160_v21 = vmul.f32 %v9099_v31, %v13999_v12  ;;  %v1572_v32 = vpop.xlane.xlu0 %1571  ;;  %v9101_v36 = vpop.eup %9100  ;;  %v14002_v12 = vld [vmem:[#allocation65_spill] sm:$0xff] }
 0x882   : > { %9110 = vrcp.f32 %v1572_v32  ;;  %v1521_v44 = vpop.xlane.xlu1 %1520  ;;  %v2163_v4 = vmul.f32 %v9101_v36, %v14000_v3  ;;  %v14005_v3 = vld [vmem:[#allocation62_spill] sm:$0xff] }
 0x883   : > { %v2186_v17 = vpack.c.bf16 %v2161_v49, %v2160_v21  ;;  %9112 = vrcp.f32 %v1521_v44  ;;  %v14004_v44 = vld [vmem:[#allocation64_spill] sm:$0xff] }
 0x884   : > { %v9103_v30 = vpop.eup %9102 }
 0x885   : > { %v2162_v11 = vmul.f32 %v9103_v30, %v14001_v51  ;;  %2202 = vst.msk [vmem:[#allocation3 + $0x30] sm:$0xff] %vm761_vm2, %v2186_v17  ;;  %v9105_v56 = vpop.eup %9104 }
 0x886   : > { %v1518_v37 = vpop.xlane.xlu0 %1517  ;;  %v1581_v9 = vpop.xlane.xlu1 %1580  ;;  %v2165_v31 = vmul.f32 %v9105_v56, %v14002_v12 }
 0x887   : > { %9114 = vrcp.f32 %v1518_v37  ;;  %v2187_v62 = vpack.c.bf16 %v2163_v4, %v2162_v11 }
 0x888   : > { %v9107_v57 = vpop.eup %9106  ;;  %9116 = vrcp.f32 %v1581_v9  ;;  %v14006_v9 = vld [vmem:[#allocation53_spill] sm:$0xff] }
 0x889   : > { %v2164_v32 = vmul.f32 %v9107_v57, %v14003_v55  ;;  %2203 = vst.msk [vmem:[#allocation3 + $0x38] sm:$0xff] %vm761_vm2, %v2187_v62  ;;  %v9109_v21 = vpop.eup %9108  ;;  %v14007_v57 = vld [vmem:[#allocation51_spill] sm:$0xff] }
 0x88a   : > { %v1578_v36 = vpop.xlane.xlu0 %1577  ;;  %v2167_v17 = vmul.f32 %v9109_v21, %v14004_v44  ;;  %v14009_v44 = vld [vmem:[#allocation75_spill] sm:$0xff] }
 0x88b   : > { %9118 = vrcp.f32 %v1578_v36  ;;  %v1527_v51 = vpop.xlane.xlu1 %1526  ;;  %v2188_v30 = vpack.c.bf16 %v2165_v31, %v2164_v32 }
 0x88c   : > { %v9111_v49 = vpop.eup %9110  ;;  %9120 = vrcp.f32 %v1527_v51 }
 0x88d   : > { %v2166_v42 = vmul.f32 %v9111_v49, %v14005_v3  ;;  %2204 = vst.msk [vmem:[#allocation3 + $0x40] sm:$0xff] %vm761_vm2, %v2188_v30  ;;  %v9113_v56 = vpop.eup %9112  ;;  %v14008_v30 = vld [vmem:[#allocation77_spill] sm:$0xff] }
 0x88e   : > { %v1524_v37 = vpop.xlane.xlu0 %1523  ;;  %v2149_v62 = vmul.f32 %v9113_v56, %v14006_v9 }
 0x88f   : > { %9122 = vrcp.f32 %v1524_v37  ;;  %v1587_v55 = vpop.xlane.xlu1 %1586  ;;  %v2189_v4 = vpack.c.bf16 %v2167_v17, %v2166_v42 }
 0x890   : > { %9124 = vrcp.f32 %v1587_v55 }
 0x891   : > { %v9115_v11 = vpop.eup %9114  ;;  %2205 = vst.msk [vmem:[#allocation3 + $0x48] sm:$0xff] %vm761_vm2, %v2189_v4 }
 0x892   : > { %v2148_v12 = vmul.f32 %v9115_v11, %v14007_v57  ;;  %v1584_v31 = vpop.xlane.xlu0 %1583  ;;  %v9117_v32 = vpop.eup %9116 }
 0x893   : > { %9126 = vrcp.f32 %v1584_v31  ;;  %v1533_v21 = vpop.xlane.xlu1 %1532  ;;  %v2169_v49 = vmul.f32 %v9117_v32, %v14008_v30 }
 0x894   : > { %v2180_v36 = vpack.c.bf16 %v2149_v62, %v2148_v12  ;;  %9128 = vrcp.f32 %v1533_v21  ;;  %v14010_v62 = vld [vmem:[#allocation52_spill] sm:$0xff]  ;;  %v14011_v12 = vld [vmem:[#allocation50_spill] sm:$0xff] }
 0x895   : > { %v9119_v51 = vpop.eup %9118 }
 0x896   : > { %v2168_v3 = vmul.f32 %v9119_v51, %v14009_v44  ;;  %v1530_v42 = vpop.xlane.xlu0 %1529  ;;  %2196 = vst.msk [vmem:[#allocation3] sm:$0xff] %vm761_vm2, %v2180_v36  ;;  %v9121_v17 = vpop.eup %9120 }
 0x897   : > { %9130 = vrcp.f32 %v1530_v42  ;;  %v1593_v37 = vpop.xlane.xlu1 %1592  ;;  %v12380_v56 = vpop.f32.mrb[112].mxu0  ;;  %v2151_v57 = vmul.f32 %v9121_v17, %v14010_v62  ;;  %v14013_v42 = vld [vmem:[#allocation74_spill] sm:$0xff] }
 0x898   : > { %v12382_v55 = vpop.f32.mrb[113].mxu0  ;;  %v2190_v4 = vpack.c.bf16 %v2169_v49, %v2168_v3  ;;  %9132 = vrcp.f32 %v1593_v37  ;;  %v14012_v49 = vld [vmem:[#allocation76_spill] sm:$0xff] }
 0x899   : > { %v9123_v11 = vpop.eup %9122  ;;  %v12384_v9 = vpop.f32.mrb[114].mxu0 }
 0x89a   : > { %v2150_v31 = vmul.f32 %v9123_v11, %v14011_v12  ;;  %v1590_v32 = vpop.xlane.xlu0 %1589  ;;  %v12388_v21 = vpop.f32.mrb[115].mxu0  ;;  %2206 = vst.msk [vmem:[#allocation3 + $0x50] sm:$0xff] %vm761_vm2, %v2190_v4 }
 0x89b   : > { %v9125_v36 = vpop.eup %9124  ;;  %9134 = vrcp.f32 %v1590_v32  ;;  %v1539_v51 = vpop.xlane.xlu1 %1538 }
 0x89c   : > { %v2181_v30 = vpack.c.bf16 %v2151_v57, %v2150_v31  ;;  %9136 = vrcp.f32 %v1539_v51  ;;  %v2171_v3 = vmul.f32 %v9125_v36, %v14012_v49  ;;  %v14014_v57 = vld [vmem:[#allocation57_spill] sm:$0xff]  ;;  %v14015_v51 = vld [vmem:[#allocation55_spill] sm:$0xff] }
 0x89d   : > { %v9127_v44 = vpop.eup %9126 }
 0x89e   : > { %v2170_v37 = vmul.f32 %v9127_v44, %v14013_v42  ;;  %v1536_v40 = vpop.xlane.xlu0 %1535  ;;  %2197 = vst.msk [vmem:[#allocation3 + $0x8] sm:$0xff] %vm761_vm2, %v2181_v30  ;;  %v9129_v17 = vpop.eup %9128 }
 0x89f   : > { %9138 = vrcp.f32 %v1536_v40  ;;  %v1599_v11 = vpop.xlane.xlu1 %1598  ;;  %v2153_v31 = vmul.f32 %v9129_v17, %v14014_v57 }
 0x8a0   : > { %v12394_v62 = vpop.f32.mrb[96].mxu1  ;;  %v2191_v12 = vpack.c.bf16 %v2171_v3, %v2170_v37  ;;  %9140 = vrcp.f32 %v1599_v11  ;;  %v14016_v37 = vld [vmem:[#allocation69_spill] sm:$0xff] }
 0x8a1   : > { %v9131_v4 = vpop.eup %9130  ;;  %v12396_v32 = vpop.f32.mrb[97].mxu1 }
 0x8a2   : > { %v2152_v34 = vmul.f32 %v9131_v4, %v14015_v51  ;;  %v1596_v36 = vpop.xlane.xlu0 %1595  ;;  %v12400_v49 = vpop.f32.mrb[98].mxu1  ;;  %2207 = vst.msk [vmem:[#allocation3 + $0x58] sm:$0xff] %vm761_vm2, %v2191_v12 }
 0x8a3   : > { %v9133_v30 = vpop.eup %9132  ;;  %9142 = vrcp.f32 %v1596_v36  ;;  %v4618_v40 = vpop.xlane.xlu1 %4617  ;;  %v14018_v36 = vld [vmem:[#allocation56_spill] sm:$0xff] }
 0x8a4   : > { %v12403_v44 = vpop.f32.mrb[99].mxu1  ;;  %v2182_v42 = vpack.c.bf16 %v2153_v31, %v2152_v34  ;;  %9144 = vrcp.f32 %v4618_v40  ;;  %v2173_v11 = vmul.f32 %v9133_v30, %v14016_v37  ;;  %v7779_v31 = vld [vmem:[#allocation9 + $0x38] sm:$0xff]   ;;  %v7769_v40 = vld [vmem:[#allocation9 + $0x30] sm:$0xff]  }
 0x8a5   : > { %v9135_v3 = vpop.eup %9134  ;;  %v12428_v26 = vunpack.c.h.bf16 %v7769_v40 }
 0x8a6   : > { %v2172_v53 = vmul.f32 %v9135_v3, %v14017_v41  ;;  %v4615_v17 = vpop.xlane.xlu0 %4614  ;;  %2198 = vst.msk [vmem:[#allocation3 + $0x10] sm:$0xff] %vm761_vm2, %v2182_v42  ;;  %v9137_v4 = vpop.eup %9136 }
 0x8a7   : > { %9146 = vrcp.f32 %v4615_v17  ;;  %v4612_v57 = vpop.xlane.xlu1 %4611  ;;  %v2155_v1 = vmul.f32 %v9137_v4, %v14018_v36 }
 0x8a8   : > { %9148 = vrcp.f32 %v4612_v57  ;;  %v2192_v12 = vpack.c.bf16 %v2173_v11, %v2172_v53  ;;  %v12415_v53 = vunpack.c.l.bf16 %v7779_v31  ;;  %v14020_v11 = vld [vmem:[#allocation68_spill] sm:$0xff] }
 0x8a9   : > { %v9139_v51 = vpop.eup %9138 }
 0x8aa   : > { %v2154_v6 = vmul.f32 %v9139_v51, %v14019_v50  ;;  %v4609_v34 = vpop.xlane.xlu0 %4608  ;;  %2208 = vst.msk [vmem:[#allocation3 + $0x60] sm:$0xff] %vm761_vm2, %v2192_v12  ;;  %v9141_v30 = vpop.eup %9140  ;;  %v14021_v50 = vld [vmem:[#allocation66_spill] sm:$0xff]  ;;  %v12421_v12 = vunpack.c.l.bf16 %v7769_v40  ;;  %v12439_v40 = vld [vmem:[#allocation10 + $0x10] sm:$0xff] }
 0x8ab   : > { %9150 = vrcp.f32 %v4609_v34  ;;  %v4642_v41 = vpop.xlane.xlu1 %4641  ;;  %v2175_v4 = vmul.f32 %v9141_v30, %v14020_v11 }
 0x8ac   : > { %v12411_v3 = vpop.f32.mrb[116].mxu0  ;;  %v2183_v42 = vpack.c.bf16 %v2155_v1, %v2154_v6  ;;  %9152 = vrcp.f32 %v4642_v41  ;;  %v12426_v41 = vunpack.c.h.bf16 %v7779_v31 }
 0x8ad   : > { %v9143_v37 = vpop.eup %9142  ;;  %v12413_v17 = vpop.f32.mrb[117].mxu0 }
 0x8ae   : > { %v2174_v57 = vmul.f32 %v9143_v37, %v14021_v50  ;;  %v4639_v51 = vpop.xlane.xlu0 %4638  ;;  %v12419_v36 = vpop.f32.mrb[118].mxu0  ;;  %2199 = vst.msk [vmem:[#allocation3 + $0x18] sm:$0xff] %vm761_vm2, %v2183_v42 }
 0x8af   : > { %v9145_v34 = vpop.eup %9144  ;;  %9154 = vrcp.f32 %v4639_v51  ;;  %v4636_v6 = vpop.xlane.xlu1 %4635 }
 0x8b0   : > { %v12424_v1 = vpop.f32.mrb[119].mxu0  ;;  %v8498_v43 = vpop.f32.mrb[100].mxu1  ;;  %v2193_v30 = vpack.c.bf16 %v2175_v4, %v2174_v57  ;;  %9156 = vrcp.f32 %v4636_v6  ;;  %v12436_v31 = vmul.f32 %v9145_v34, %v12185_v10 }
 0x8b1   : > { %v9147_v11 = vpop.eup %9146  ;;  %v5458_v37 = vadd.f32 %v8498_v43, %v12415_v53  ;;  %v5449_v50 = vpop.f32.mrb[101].mxu1 }
 0x8b2   : > { %v9149_v13 = vpop.eup %9148  ;;  %v5450_v18 = vadd.f32 %v12421_v12, %v5449_v50  ;;  %v4633_v42 = vpop.xlane.xlu0 %4632  ;;  %v12433_v51 = vmul.f32 %v9147_v11, %v12177_v61  ;;  %14023 = vst [vmem:[#allocation151_spill] sm:$0xff] %v12436_v31  ;;  %2209 = vst.msk [vmem:[#allocation3 + $0x68] sm:$0xff] %vm761_vm2, %v2193_v30  ;;  %v12445_v50 = vld [vmem:[#allocation10] sm:$0xff] }
 0x8b3   : > { %v8499_v15 = vpop.f32.mrb[102].mxu1  ;;  %v12442_v4 = vadd.f32 %v12439_v40, %v5458_v37  ;;  %9158 = vrcp.f32 %v4633_v42  ;;  %v4630_v57 = vpop.xlane.xlu1 %4629  ;;  %v12460_v42 = vmul.f32 %v9149_v13, %v12187_v24 }
 0x8b4   : > { %14022 = vst [vmem:[#allocation109_spill] sm:$0xff] %v12433_v51  ;;  %v5461_v43 = vadd.f32 %v8499_v15, %v12426_v41  ;;  %v5452_v6 = vpop.f32.mrb[103].mxu1  ;;  %v12448_v61 = vadd.f32 %v12445_v50, %v5450_v18  ;;  %v12451_v34 = vpop.f32.mrb[120].mxu0  ;;  %9160 = vrcp.f32 %v4630_v57 }
 0x8b5   : > { %v5453_v10 = vadd.f32 %v12428_v26, %v5452_v6  ;;  %v9151_v11 = vpop.eup %9150  ;;  %v12455_v37 = vpop.f32.mrb[121].mxu0  ;;  %v5999_v15 = vsel %vm480_vm0, %v12442_v4, -inf  ;;  %14024 = vst [vmem:[#allocation108_spill] sm:$0xff] %v12460_v42  ;;  %v12467_v6 = vld [vmem:[#allocation10 + $0x8] sm:$0xff] }
 0x8b6   : > { %v12465_v18 = vadd.f32 %v12462_v2, %v5461_v43  ;;  %v4627_v30 = vpop.xlane.xlu0 %4626  ;;  %v12472_v57 = vpop.f32.mrb[122].mxu0  ;;  %6000 = vmax.xlane.f32.xlu0 %v5999_v15  ;;  %v5993_v51 = vsel %vm480_vm0, %v12448_v61, -inf  ;;  %v12477_v13 = vmul.f32 %v9151_v11, %v12181_v38 }
 0x8b7   : > { %v12470_v33 = vadd.f32 %v12467_v6, %v5453_v10  ;;  %v9153_v24 = vpop.eup %9152  ;;  %9162 = vrcp.f32 %v4627_v30  ;;  %v4624_v31 = vpop.xlane.xlu1 %4623  ;;  %5994 = vmax.xlane.f32.xlu1 %v5993_v51 }
 0x8b8   : > { %14025 = vst [vmem:[#allocation18_spill] sm:$0xff] %v12477_v13  ;;  %v12479_v43 = vpop.f32.mrb[123].mxu0  ;;  %9164 = vrcp.f32 %v4624_v31  ;;  %v6002_v38 = vsel %vm480_vm0, %v12465_v18, -inf  ;;  %v12491_v30 = vmul.f32 %v9153_v24, %v12241_v28 }
 0x8b9   : > { %v5996_v10 = vsel %vm480_vm0, %v12470_v33, -inf  ;;  %v9155_v45 = vpop.eup %9154 }
 0x8ba   : > { %v4621_v15 = vpop.xlane.xlu0 %4620  ;;  %5997 = vmax.xlane.f32.xlu0 %v5996_v10  ;;  %v12488_v11 = vmul.f32 %v9155_v45, %v12235_v19  ;;  %14027 = vst [vmem:[#allocation44_spill] sm:$0xff] %v12491_v30  ;;  %v9157_v51 = vpop.eup %9156 }
 0x8bb   : > { %9166 = vrcp.f32 %v4621_v15  ;;  %v4666_v47 = vpop.xlane.xlu1 %4665  ;;  %6003 = vmax.xlane.f32.xlu1 %v6002_v38  ;;  %v12499_v42 = vmul.f32 %v9157_v51, %v12245_v16 }
 0x8bc   : > { %14026 = vst [vmem:[#allocation157_spill] sm:$0xff] %v12488_v11  ;;  %9168 = vrcp.f32 %v4666_v47 }
 0x8bd   : > { %v9159_v13 = vpop.eup %9158  ;;  %14029 = vst [vmem:[#allocation45_spill] sm:$0xff] %v12499_v42 }
 0x8be   : > { %v4663_v31 = vpop.xlane.xlu0 %4662  ;;  %v12496_v10 = vmul.f32 %v9159_v13, %v12237_v59  ;;  %v9161_v19 = vpop.eup %9160 }
 0x8bf   : > { %9170 = vrcp.f32 %v4663_v31  ;;  %v4660_v28 = vpop.xlane.xlu1 %4659  ;;  %v12509_v16 = vmul.f32 %v9161_v19, %v12271_v20 }
 0x8c0   : > { %14028 = vst [vmem:[#allocation148_spill] sm:$0xff] %v12496_v10  ;;  %9172 = vrcp.f32 %v4660_v28  ;;  %v8514_v45 = vpop.f32.mrb[104].mxu1 }
 0x8c1   : > { %v9163_v15 = vpop.eup %9162  ;;  %v5600_v38 = vadd.f32 %v8514_v45, %v12415_v53  ;;  %v5591_v7 = vpop.f32.mrb[105].mxu1  ;;  %14031 = vst [vmem:[#allocation37_spill] sm:$0xff] %v12509_v16  ;;  %v12551_v16 = vld [vmem:[#allocation10 + $0x30] sm:$0xff] }
 0x8c2   : > { %v5592_v47 = vadd.f32 %v12421_v12, %v5591_v7  ;;  %v4657_v11 = vpop.xlane.xlu0 %4656  ;;  %v8515_v59 = vpop.f32.mrb[106].mxu1  ;;  %v12506_v13 = vmul.f32 %v9163_v15, %v12265_v52 }
 0x8c3   : > { %v9165_v51 = vpop.eup %9164  ;;  %v12512_v31 = vadd.f32 %v12439_v40, %v5600_v38  ;;  %9174 = vrcp.f32 %v4657_v11  ;;  %v5603_v28 = vadd.f32 %v8515_v59, %v12426_v41  ;;  %v4654_v24 = vpop.xlane.xlu1 %4653 }
 0x8c4   : > { %14030 = vst [vmem:[#allocation46_spill] sm:$0xff] %v12506_v13  ;;  %v5594_v45 = vpop.f32.mrb[107].mxu1  ;;  %v12519_v52 = vadd.f32 %v12445_v50, %v5592_v47  ;;  %9176 = vrcp.f32 %v4654_v24  ;;  %v12530_v38 = vmul.f32 %v9165_v51, %v12273_v46 }
 0x8c5   : > { %v5595_v30 = vadd.f32 %v12428_v26, %v5594_v45  ;;  %v9167_v10 = vpop.eup %9166  ;;  %v12522_v20 = vadd.f32 %v12462_v2, %v5603_v28  ;;  %v6023_v11 = vsel %vm480_vm0, %v12512_v31, -inf }
 0x8c6   : > { %v4651_v19 = vpop.xlane.xlu0 %4650  ;;  %6024 = vmax.xlane.f32.xlu0 %v6023_v11  ;;  %v12527_v15 = vmul.f32 %v9167_v10, %v12267_v54  ;;  %14033 = vst [vmem:[#allocation36_spill] sm:$0xff] %v12530_v38  ;;  %v9169_v59 = vpop.eup %9168  ;;  %v6017_v46 = vsel %vm480_vm0, %v12519_v52, -inf }
 0x8c7   : > { %v12533_v45 = vadd.f32 %v12467_v6, %v5595_v30  ;;  %9178 = vrcp.f32 %v4651_v19  ;;  %v4648_v47 = vpop.xlane.xlu1 %4647  ;;  %v6026_v24 = vsel %vm480_vm0, %v12522_v20, -inf }
 0x8c8   : > { %14032 = vst [vmem:[#allocation158_spill] sm:$0xff] %v12527_v15  ;;  %6027 = vmax.xlane.f32.xlu1 %v6026_v24  ;;  %9180 = vrcp.f32 %v4648_v47  ;;  %v12546_v24 = vmul.f32 %v9169_v59, %v12295_v39 }
 0x8c9   : > { %v9171_v11 = vpop.eup %9170  ;;  %v8506_v54 = vpop.f32.mrb[124].mxu0  ;;  %v6020_v13 = vsel %vm480_vm0, %v12533_v45, -inf }
 0x8ca   : > { %v9173_v10 = vpop.eup %9172  ;;  %v5529_v51 = vadd.f32 %v8506_v54, %v12415_v53  ;;  %v5520_v30 = vpop.f32.mrb[125].mxu0  ;;  %6018 = vmax.xlane.f32.xlu0 %v6017_v46  ;;  %v12543_v19 = vmul.f32 %v9171_v11, %v12289_v5  ;;  %14035 = vst [vmem:[#allocation38_spill] sm:$0xff] %v12546_v24 }
 0x8cb   : > { %v4645_v7 = vpop.xlane.xlu0 %4644  ;;  %v5521_v28 = vadd.f32 %v12421_v12, %v5520_v30  ;;  %v8507_v47 = vpop.f32.mrb[126].mxu0  ;;  %v12561_v11 = vmul.f32 %v9173_v10, %v12303_v25  ;;  %v12563_v30 = vld [vmem:[#allocation10 + $0x20] sm:$0xff]  ;;  %v12578_v10 = vld [vmem:[#allocation10 + $0x28] sm:$0xff] }
 0x8cc   : > { %14034 = vst [vmem:[#allocation153_spill] sm:$0xff] %v12543_v19  ;;  %9182 = vrcp.f32 %v4645_v7  ;;  %v4690_v42 = vpop.xlane.xlu1 %4689  ;;  %v12554_v54 = vadd.f32 %v12551_v16, %v5529_v51  ;;  %v5532_v46 = vadd.f32 %v8507_v47, %v12426_v41  ;;  %v5523_v5 = vpop.f32.mrb[127].mxu0  ;;  %6021 = vmax.xlane.f32.xlu1 %v6020_v13  ;;  %v12568_v51 = vld [vmem:[#allocation10 + $0x38] sm:$0xff] }
 0x8cd   : > { %v9175_v59 = vpop.eup %9174  ;;  %9184 = vrcp.f32 %v4690_v42  ;;  %v5524_v7 = vadd.f32 %v12428_v26, %v5523_v5  ;;  %14036 = vst [vmem:[#allocation39_spill] sm:$0xff] %v12561_v11  ;;  %v12566_v15 = vadd.f32 %v12563_v30, %v5521_v28 }
 0x8ce   : > { %v12571_v47 = vadd.f32 %v12568_v51, %v5532_v46  ;;  %v6011_v39 = vsel %vm480_vm0, %v12554_v54, -inf  ;;  %v12576_v42 = vmul.f32 %v9175_v59, %v12293_v29  ;;  %v9177_v5 = vpop.eup %9176 }
 0x8cf   : > { %v4687_v13 = vpop.xlane.xlu0 %4686  ;;  %6012 = vmax.xlane.f32.xlu0 %v6011_v39  ;;  %v12581_v28 = vadd.f32 %v12578_v10, %v5524_v7  ;;  %v6005_v7 = vsel %vm480_vm0, %v12566_v15, -inf  ;;  %v12595_v24 = vmul.f32 %v9177_v5, %v12384_v9 }
 0x8d0   : > { %14037 = vst [vmem:[#allocation24_spill] sm:$0xff] %v12576_v42  ;;  %9186 = vrcp.f32 %v4687_v13  ;;  %v4684_v25 = vpop.xlane.xlu1 %4683  ;;  %v6014_v46 = vsel %vm480_vm0, %v12571_v47, -inf  ;;  %v8530_v38 = vpop.f32.mrb[108].mxu1 }
 0x8d1   : > { %14038 = vst [vmem:[#allocation154_spill] sm:$0xff] %v12581_v28  ;;  %9188 = vrcp.f32 %v4684_v25  ;;  %v9179_v27 = vpop.eup %9178  ;;  %6015 = vmax.xlane.f32.xlu1 %v6014_v46  ;;  %v5742_v29 = vadd.f32 %v8530_v38, %v12415_v53  ;;  %v5733_v59 = vpop.f32.mrb[109].mxu1  ;;  %v6008_v11 = vsel %vm480_vm0, %v12581_v28, -inf }
 0x8d2   : > { %v5734_v39 = vadd.f32 %v12421_v12, %v5733_v59  ;;  %v8531_v19 = vpop.f32.mrb[110].mxu1  ;;  %v12592_v25 = vmul.f32 %v9179_v27, %v12380_v56  ;;  %v9181_v63 = vpop.eup %9180 }
 0x8d3   : > { %v4681_v13 = vpop.xlane.xlu0 %4680  ;;  %v12598_v23 = vadd.f32 %v12439_v40, %v5742_v29  ;;  %v5745_v38 = vadd.f32 %v8531_v19, %v12426_v41  ;;  %6006 = vmax.xlane.f32.xlu0 %v6005_v7  ;;  %v5736_v59 = vpop.f32.mrb[111].mxu1  ;;  %v12618_v7 = vmul.f32 %v9181_v63, %v12388_v21 }
 0x8d4   : > { %9190 = vrcp.f32 %v4681_v13  ;;  %v4678_v46 = vpop.xlane.xlu1 %4677  ;;  %v5737_v42 = vadd.f32 %v12428_v26, %v5736_v59  ;;  %v12612_v5 = vadd.f32 %v12445_v50, %v5734_v39 }
 0x8d5   : > { %14039 = vst [vmem:[#allocation159_spill] sm:$0xff] %v12598_v23  ;;  %v12607_v9 = vadd.f32 %v12462_v2, %v5745_v38  ;;  %9192 = vrcp.f32 %v4678_v46  ;;  %6009 = vmax.xlane.f32.xlu1 %v6008_v11  ;;  %v6047_v19 = vsel %vm480_vm0, %v12598_v23, -inf }
 0x8d6   : > { %v9183_v56 = vpop.eup %9182  ;;  %14041 = vst [vmem:[#allocation25_spill] sm:$0xff] %v12612_v5  ;;  %v12623_v46 = vadd.f32 %v12467_v6, %v5737_v42 }
 0x8d7   : > { %14040 = vst [vmem:[#allocation156_spill] sm:$0xff] %v12607_v9  ;;  %v4675_v29 = vpop.xlane.xlu0 %4674  ;;  %v12615_v13 = vmul.f32 %v9183_v56, %v12382_v55  ;;  %v9185_v59 = vpop.eup %9184  ;;  %6048 = vmax.xlane.f32.xlu0 %v6047_v19  ;;  %v6050_v11 = vsel %vm480_vm0, %v12607_v9, -inf  ;;  %v6041_v19 = vsel %vm480_vm0, %v12612_v5, -inf }
 0x8d8   : > { %9194 = vrcp.f32 %v4675_v29  ;;  %v4672_v38 = vpop.xlane.xlu1 %4671  ;;  %v12634_v42 = vmul.f32 %v9185_v59, %v12400_v49  ;;  %v6044_v5 = vsel %vm480_vm0, %v12623_v46, -inf }
 0x8d9   : > { %9196 = vrcp.f32 %v4672_v38  ;;  %v8522_v55 = vpop.f32.mrb[128].mxu0  ;;  %6051 = vmax.xlane.f32.xlu1 %v6050_v11 }
 0x8da   : > { %v9187_v27 = vpop.eup %9186  ;;  %v5671_v63 = vadd.f32 %v8522_v55, %v12415_v53  ;;  %v5662_v21 = vpop.f32.mrb[129].mxu0  ;;  %14043 = vst [vmem:[#allocation19_spill] sm:$0xff] %v12634_v42 }
 0x8db   : > { %v9189_v56 = vpop.eup %9188  ;;  %v4669_v29 = vpop.xlane.xlu0 %4668  ;;  %v12631_v23 = vmul.f32 %v9187_v27, %v12394_v62  ;;  %v5663_v39 = vadd.f32 %v12421_v12, %v5662_v21  ;;  %6042 = vmax.xlane.f32.xlu0 %v6041_v19 }
 0x8dc   : > { %9198 = vrcp.f32 %v4669_v29  ;;  %v8523_v38 = vpop.f32.mrb[130].mxu0  ;;  %v4702_v11 = vpop.xlane.xlu1 %4701  ;;  %v12638_v9 = vadd.f32 %v12551_v16, %v5671_v63  ;;  %v12647_v59 = vmul.f32 %v9189_v56, %v12403_v44 }
 0x8dd   : > { %14042 = vst [vmem:[#allocation48_spill] sm:$0xff] %v12631_v23  ;;  %v5674_v55 = vadd.f32 %v8523_v38, %v12426_v41  ;;  %v5665_v28 = vpop.f32.mrb[131].mxu0  ;;  %9200 = vrcp.f32 %v4702_v11  ;;  %6045 = vmax.xlane.f32.xlu1 %v6044_v5  ;;  %v12650_v63 = vadd.f32 %v12563_v30, %v5663_v39 }
 0x8de   : > { %v9191_v49 = vpop.eup %9190  ;;  %v5666_v27 = vadd.f32 %v12428_v26, %v5665_v28  ;;  %v6035_v19 = vsel %vm480_vm0, %v12638_v9, -inf }
 0x8df   : > { %v12653_v21 = vadd.f32 %v12568_v51, %v5674_v55  ;;  %v4699_v29 = vpop.xlane.xlu0 %4698  ;;  %v12658_v38 = vmul.f32 %v9191_v49, %v12396_v32  ;;  %v9193_v11 = vpop.eup %9192  ;;  %6036 = vmax.xlane.f32.xlu0 %v6035_v19  ;;  %v6029_v32 = vsel %vm480_vm0, %v12650_v63, -inf }
 0x8e0   : > { %9202 = vrcp.f32 %v4699_v29  ;;  %v4696_v28 = vpop.xlane.xlu1 %4695  ;;  %v12661_v44 = vadd.f32 %v12578_v10, %v5666_v27  ;;  %v12673_v27 = vmul.f32 %v9193_v11, %v12419_v36 }
 0x8e1   : > { %14044 = vst [vmem:[#allocation27_spill] sm:$0xff] %v12658_v38  ;;  %v6038_v5 = vsel %vm480_vm0, %v12653_v21, -inf  ;;  %9204 = vrcp.f32 %v4696_v28 }
 0x8e2   : > { %v9195_v56 = vpop.eup %9194  ;;  %6039 = vmax.xlane.f32.xlu1 %v6038_v5  ;;  %v8546_v55 = vpop.f32.mrb[112].mxu1  ;;  %v6032_v39 = vsel %vm480_vm0, %v12661_v44, -inf }
 0x8e3   : > { %v4693_v62 = vpop.xlane.xlu0 %4692  ;;  %v12670_v49 = vmul.f32 %v9195_v56, %v12411_v3  ;;  %v9197_v29 = vpop.eup %9196  ;;  %v5884_v19 = vadd.f32 %v8546_v55, %v12415_v53  ;;  %6030 = vmax.xlane.f32.xlu0 %v6029_v32 }
 0x8e4   : > { %v5875_v23 = vpop.f32.mrb[113].mxu1  ;;  %9206 = vrcp.f32 %v4693_v62 }
 0x8e5   : > { %v5876_v28 = vadd.f32 %v12421_v12, %v5875_v23  ;;  %v8547_v5 = vpop.f32.mrb[114].mxu1  ;;  %v12682_v56 = vadd.f32 %v12439_v40, %v5884_v19  ;;  %v12690_v23 = vmul.f32 %v9197_v29, %v12424_v1 }
 0x8e6   : > { %v9199_v3 = vpop.eup %9198  ;;  %v5887_v36 = vadd.f32 %v8547_v5, %v12426_v41  ;;  %v5878_v11 = vpop.f32.mrb[115].mxu1  ;;  %6033 = vmax.xlane.f32.xlu1 %v6032_v39 }
 0x8e7   : > { %v5879_v62 = vadd.f32 %v12428_v26, %v5878_v11  ;;  %v12687_v55 = vmul.f32 %v9199_v3, %v12413_v17  ;;  %v9201_v32 = vpop.eup %9200  ;;  %v12696_v42 = vadd.f32 %v12445_v50, %v5876_v28  ;;  %v6071_v40 = vsel %vm480_vm0, %v12682_v56, -inf }
 0x8e8   : > { %v12693_v38 = vadd.f32 %v12462_v2, %v5887_v36  ;;  %v12712_v28 = vmul.f32 %v9201_v32, %v12472_v57 }
 0x8e9   : > { %v12703_v17 = vadd.f32 %v12467_v6, %v5879_v62  ;;  %v8538_v5 = vpop.f32.mrb[132].mxu0 }
 0x8ea   : > { %v9203_v19 = vpop.eup %9202  ;;  %6072 = vmax.xlane.f32.xlu1 %v6071_v40  ;;  %v6074_v1 = vsel %vm480_vm0, %v12693_v38, -inf  ;;  %v5813_v2 = vadd.f32 %v8538_v5, %v12415_v53  ;;  %v5804_v50 = vpop.f32.mrb[133].mxu0  ;;  %v6065_v40 = vsel %vm480_vm0, %v12696_v42, -inf }
 0x8eb   : > { %6075 = vmax.xlane.f32.xlu0 %v6074_v1  ;;  %v12709_v29 = vmul.f32 %v9203_v19, %v12451_v34  ;;  %v9205_v3 = vpop.eup %9204  ;;  %v5805_v36 = vadd.f32 %v12421_v12, %v5804_v50  ;;  %v8539_v6 = vpop.f32.mrb[134].mxu0  ;;  %v6068_v19 = vsel %vm480_vm0, %v12703_v17, -inf }
 0x8ec   : > { %v12716_v11 = vadd.f32 %v12551_v16, %v5813_v2  ;;  %v5807_v62 = vpop.f32.mrb[135].mxu0  ;;  %v5816_v57 = vadd.f32 %v8539_v6, %v12426_v41  ;;  %v12733_v50 = vmul.f32 %v9205_v3, %v12479_v43 }
 0x8ed   : > { %v12723_v34 = vadd.f32 %v12563_v30, %v5805_v36  ;;  %v5808_v32 = vadd.f32 %v12428_v26, %v5807_v62 }
 0x8ee   : > { %v9207_v1 = vpop.eup %9206  ;;  %6066 = vmax.xlane.f32.xlu1 %v6065_v40  ;;  %v6059_v6 = vsel %vm480_vm0, %v12716_v11, -inf  ;;  %v12745_v40 = vadd.f32 %v12568_v51, %v5816_v57 }
 0x8ef   : > { %6069 = vmax.xlane.f32.xlu0 %v6068_v19  ;;  %v12730_v2 = vmul.f32 %v9207_v1, %v12455_v37  ;;  %v6053_v5 = vsel %vm480_vm0, %v12723_v34, -inf  ;;  %v12738_v36 = vadd.f32 %v12578_v10, %v5808_v32 }
 0x8f0   : > { %v6062_v43 = vsel %vm480_vm0, %v12745_v40, -inf }
 0x8f1   : > { %v6056_v37 = vsel %vm480_vm0, %v12738_v36, -inf }
 0x8f2   : > { %6060 = vmax.xlane.f32.xlu1 %v6059_v6 }
 0x8f3   : > { %6054 = vmax.xlane.f32.xlu0 %v6053_v5 }
 0x8f6   : > { %6057 = vmax.xlane.f32.xlu1 %v6056_v37 }
 0x8f7   : > { %6063 = vmax.xlane.f32.xlu0 %v6062_v43 }
 0x8f9   : > { %v8554_v3 = vpop.f32.mrb[136].mxu0 }
 0x8fa   : > { %v5955_v1 = vadd.f32 %v8554_v3, %v12415_v53  ;;  %v5946_v32 = vpop.f32.mrb[137].mxu0 }
 0x8fb   : > { %v5947_v19 = vadd.f32 %v12421_v12, %v5946_v32  ;;  %v8555_v62 = vpop.f32.mrb[138].mxu0 }
 0x8fc   : > { %v12754_v57 = vadd.f32 %v12551_v16, %v5955_v1  ;;  %v5949_v6 = vpop.f32.mrb[139].mxu0  ;;  %v5958_v37 = vadd.f32 %v8555_v62, %v12426_v41  ;;  %v14048_v62 = vld [vmem:[#allocation33_spill] sm:$0xff] }
 0x8fd   : > { %v5950_v5 = vadd.f32 %v12428_v26, %v5949_v6  ;;  %v12758_v39 = vadd.f32 %v12563_v30, %v5947_v19  ;;  %v14045_v30 = vpack.c.bf16 %v12207_v14, %v12204_v35  ;;  %v1540_v3 = vsel %vm480_vm0, %v14048_v62, 0.0  ;;  %v14049_v1 = vld [vmem:[#allocation21_spill] sm:$0xff]  ;;  %v14050_v35 = vld [vmem:[#allocation20_spill] sm:$0xff] }
 0x8fe   : > { %v6083_v43 = vsel %vm480_vm0, %v12754_v57, -inf  ;;  %v12769_v16 = vadd.f32 %v12568_v51, %v5958_v37  ;;  %v14046_v51 = vpack.c.bf16 %v12195_v8, %v12192_v48  ;;  %v1600_v32 = vsel %vm480_vm0, %v14049_v1, 0.0  ;;  %v14051_v48 = vld [vmem:[#allocation34_spill] sm:$0xff]  ;;  %v14052_v19 = vld [vmem:[#allocation32_spill] sm:$0xff] }
 0x8ff   : > { %v12764_v53 = vadd.f32 %v12578_v10, %v5950_v5  ;;  %6084 = vmax.xlane.f32.xlu1 %v6083_v43  ;;  %v6077_v26 = vsel %vm480_vm0, %v12758_v39, -inf  ;;  %v14047_v10 = vpack.c.bf16 %v12618_v7, %v12615_v13  ;;  %v1603_v14 = vsel %vm480_vm0, %v14050_v35, 0.0 }
 0x900   : > { %v6086_v41 = vsel %vm480_vm0, %v12769_v16, -inf  ;;  %v1543_v8 = vsel %vm480_vm0, %v14051_v48, 0.0  ;;  %v1549_v13 = vsel %vm480_vm0, %v14052_v19, 0.0 }
 0x901   : > { %v6080_v12 = vsel %vm480_vm0, %v12764_v53, -inf }
 0x902   : > { %6081 = vmax.xlane.f32.xlu0 %v6080_v12  ;;  %v14053_v12 = vld [vmem:[#allocation23_spill] sm:$0xff] }
 0x903   : > { %6078 = vmax.xlane.f32.xlu1 %v6077_v26  ;;  %v1609_v26 = vsel %vm480_vm0, %v14053_v12, 0.0 }
 0x907   : > { %6087 = vmax.xlane.f32.xlu1 %v6086_v41 }
 0x918   : > { %3739 = vrot.lane.b32.xlu1 %v14045_v30, %s9606_s30  ;;  %3737 = vrot.lane.b32.xlu0 %v14046_v51, %s9606_s30 }
 0x91c   : > { %5315 = vrot.lane.b32.xlu1 %v14047_v10, %s9607_s9 }
 0x937   : > { %1541 = vadd.xlane.f32.xlu0 %v1540_v3 }
 0x93b   : > { %1601 = vadd.xlane.f32.xlu0 %v1600_v32 }
 0x93f   : > { %1604 = vadd.xlane.f32.xlu0 %v1603_v14 }
 0x940   : > { %1544 = vadd.xlane.f32.xlu1 %v1543_v8 }
 0x943   : > { %1550 = vadd.xlane.f32.xlu0 %v1549_v13  ;;  %v6001_v7 = vpop.xlane.xlu0 %6000 }
 0x944   : > { %v6091_v6 = vsub.f32 %v12442_v4, %v6001_v7  ;;  %v5995_v5 = vpop.xlane.xlu1 %5994  ;;  %v14054_v4 = vpack.c.bf16 %v12595_v24, %v12592_v25 }
 0x945   : > { %v6089_v37 = vsub.f32 %v12448_v61, %v5995_v5 }
 0x946   : > { %v6125_v43 = vmul.f32 1.442695, %v6091_v6 }
 0x947   : > { %v6121_v41 = vmul.f32 1.442695, %v6089_v37  ;;  %1610 = vadd.xlane.f32.xlu0 %v1609_v26  ;;  %v5998_v30 = vpop.xlane.xlu0 %5997  ;;  %v14056_v26 = vld [vmem:[#allocation96_spill] sm:$0xff] }
 0x948   : > { %v6090_v51 = vsub.f32 %v12470_v33, %v5998_v30  ;;  %v6004_v10 = vpop.xlane.xlu1 %6003  ;;  %9208 = vpow2.f32 %v6125_v43 }
 0x949   : > { %v6092_v62 = vsub.f32 %v12465_v18, %v6004_v10  ;;  %9210 = vpow2.f32 %v6121_v41  ;;  %v14057_v10 = vld [vmem:[#allocation38_spill] sm:$0xff] }
 0x94a   : > { %v6123_v3 = vmul.f32 1.442695, %v6090_v51 }
 0x94b   : > { %v6127_v1 = vmul.f32 1.442695, %v6092_v62  ;;  %v14058_v62 = vld [vmem:[#allocation153_spill] sm:$0xff] }
 0x94c   : > { %9212 = vpow2.f32 %v6123_v3 }
 0x94d   : > { %9214 = vpow2.f32 %v6127_v1  ;;  %v14060_v1 = vld [vmem:[#allocation154_spill] sm:$0xff] }
 0x951   : > { %5317 = vrot.lane.b32.xlu1 %v14054_v4, %s9607_s9 }
 0x952   : > { %v12807_v32 = vpop.eup %9208 }
 0x953   : > { %v6025_v61 = vpop.xlane.xlu0 %6024  ;;  %v12809_v35 = vpop.eup %9210 }
 0x954   : > { %v6099_v8 = vsub.f32 %v12512_v31, %v6025_v61 }
 0x955   : > { %v6028_v33 = vpop.xlane.xlu1 %6027 }
 0x956   : > { %v12811_v14 = vpop.eup %9212  ;;  %v6100_v18 = vsub.f32 %v12522_v20, %v6028_v33  ;;  %v6141_v37 = vmul.f32 1.442695, %v6099_v8  ;;  %v14062_v33 = vld [vmem:[#allocation92_spill] sm:$0xff] }
 0x957   : > { %v12814_v48 = vpop.eup %9214  ;;  %v6019_v19 = vpop.xlane.xlu0 %6018  ;;  %v6281_v13 = vpack.c.bf16 %v12811_v14, %v12809_v35 }
 0x958   : > { %v6143_v24 = vmul.f32 1.442695, %v6100_v18  ;;  %v6097_v25 = vsub.f32 %v12519_v52, %v6019_v19  ;;  %v6282_v7 = vpack.c.bf16 %v12814_v48, %v12807_v32  ;;  %v14055_v52 = vpack.c.bf16 %v12219_v22, %v12216_v0 }
 0x959   : > { %v6022_v6 = vpop.xlane.xlu1 %6021  ;;  %8560 = vmatprep.mubr.msk.bf16.mxu1 %vm480_vm0, %v6281_v13  ;;  %v14059_v0 = vpack.c.bf16 %v14057_v10, %v14058_v62  ;;  %v14064_v13 = vld [vmem:[#allocation156_spill] sm:$0xff] }
 0x95a   : > { %v6137_v5 = vmul.f32 1.442695, %v6097_v25  ;;  %v6098_v20 = vsub.f32 %v12533_v45, %v6022_v6  ;;  %8561 = vmatmul.mubr.msk.bf16.vlgmr.msra.gmra.mrb[116].mxu1 %vm480_vm0, %v6282_v7  ;;  %9216 = vpow2.f32 %v6143_v24  ;;  %v14065_v7 = vld [vmem:[#allocation159_spill] sm:$0xff] }
 0x95b   : > { %8573 = vmatpush3.bf16.msra.mxu1 %v12087_v60 }
 0x95c   : > { %v6139_v31 = vmul.f32 1.442695, %v6098_v20  ;;  %8574 = vmatprep.subr.bf16.mxu1 %v12102_v58  ;;  %v6013_v43 = vpop.xlane.xlu0 %6012  ;;  %9218 = vpow2.f32 %v6137_v5 }
 0x95d   : > { %3741 = vrot.lane.b32.xlu0 %v14055_v52, %s9606_s30  ;;  %v6095_v60 = vsub.f32 %v12554_v54, %v6013_v43  ;;  %v14061_v54 = vld [vmem:[#allocation144_spill] sm:$0xff]  ;;  %v14067_v52 = vld [vmem:[#allocation99_spill] sm:$0xff] }
 0x95e   : > { %9220 = vpow2.f32 %v6139_v31  ;;  %v6016_v12 = vpop.xlane.xlu1 %6015  ;;  %v14063_v18 = vpack.c.bf16 %v14061_v54, %v14062_v33  ;;  %v14066_v31 = vld [vmem:[#allocation25_spill] sm:$0xff] }
 0x95f   : > { %9222 = vpow2.f32 %v6141_v37  ;;  %v6096_v45 = vsub.f32 %v12571_v47, %v6016_v12  ;;  %8575 = vmatpush3.bf16.msra.mxu1 %v12102_v58  ;;  %v6133_v47 = vmul.f32 1.442695, %v6095_v60  ;;  %v14068_v12 = vld [vmem:[#allocation145_spill] sm:$0xff] }
 0x960   : > { %8588 = vmatprep.subr.bf16.mxu1 %v14056_v26  ;;  %v6007_v41 = vpop.xlane.xlu0 %6006 }
 0x961   : > { %v6135_v30 = vmul.f32 1.442695, %v6096_v45  ;;  %v6093_v51 = vsub.f32 %v12566_v15, %v6007_v41  ;;  %5321 = vrot.lane.b32.xlu0 %v14059_v0, %s9607_s9  ;;  %v14069_v45 = vpack.c.bf16 %v14067_v52, %v14068_v12  ;;  %v14075_v52 = vld [vmem:[#allocation95_spill] sm:$0xff] }
 0x962   : > { %v6010_v22 = vpop.xlane.xlu1 %6009 }
 0x963   : > { %v6129_v3 = vmul.f32 1.442695, %v6093_v51  ;;  %v6094_v4 = vsub.f32 %v14060_v1, %v6010_v22  ;;  %9224 = vpow2.f32 %v6135_v30 }
 0x964   : > { %v6049_v61 = vpop.xlane.xlu0 %6048  ;;  %v12845_v8 = vpop.eup %9216 }
 0x965   : > { %v6131_v58 = vmul.f32 1.442695, %v6094_v4  ;;  %3745 = vrot.lane.b32.xlu0 %v14063_v18, %s9606_s30  ;;  %9226 = vpow2.f32 %v6129_v3  ;;  %v6107_v6 = vsub.f32 %v14065_v7, %v6049_v61  ;;  %v14070_v3 = vpack.c.bf16 %v12690_v23, %v12687_v55  ;;  %v14071_v4 = vld [vmem:[#allocation94_spill] sm:$0xff] }
 0x966   : > { %v6052_v15 = vpop.xlane.xlu1 %6051  ;;  %v12847_v19 = vpop.eup %9218 }
 0x967   : > { %9228 = vpow2.f32 %v6131_v58  ;;  %v6108_v24 = vsub.f32 %v14064_v13, %v6052_v15  ;;  %v6157_v62 = vmul.f32 1.442695, %v6107_v6  ;;  %v14072_v15 = vld [vmem:[#allocation84_spill] sm:$0xff] }
 0x968   : > { %v12850_v25 = vpop.eup %9220  ;;  %9230 = vpow2.f32 %v6133_v47  ;;  %v6043_v5 = vpop.xlane.xlu0 %6042 }
 0x969   : > { %v12853_v20 = vpop.eup %9222  ;;  %v6159_v37 = vmul.f32 1.442695, %v6108_v24  ;;  %v6105_v43 = vsub.f32 %v14066_v31, %v6043_v5  ;;  %3747 = vrot.lane.b32.xlu0 %v14069_v45, %s9606_s30  ;;  %v6285_v60 = vpack.c.bf16 %v12850_v25, %v12847_v19 }
 0x96a   : > { %v6046_v41 = vpop.xlane.xlu1 %6045  ;;  %v6286_v30 = vpack.c.bf16 %v12845_v8, %v12853_v20 }
 0x96b   : > { %v6153_v51 = vmul.f32 1.442695, %v6105_v43  ;;  %v6106_v10 = vsub.f32 %v12623_v46, %v6046_v41  ;;  %8576 = vmatprep.mubr.msk.bf16.mxu1 %vm480_vm0, %v6285_v60  ;;  %9232 = vpow2.f32 %v6159_v37  ;;  %v14074_v37 = vld [vmem:[#allocation143_spill] sm:$0xff]  ;;  %v14076_v41 = vld [vmem:[#allocation22_spill] sm:$0xff] }
 0x96c   : > { %v6037_v0 = vpop.xlane.xlu0 %6036  ;;  %8577 = vmatmul.mubr.msk.bf16.vlgmr.msra.gmra.mrb[120].mxu1 %vm480_vm0, %v6286_v30  ;;  %v1606_v30 = vsel %vm480_vm0, %v14076_v41, 0.0  ;;  %v14080_v41 = vld [vmem:[#allocation82_spill] sm:$0xff] }
 0x96d   : > { %v6155_v22 = vmul.f32 1.442695, %v6106_v10  ;;  %5323 = vrot.lane.b32.xlu0 %v14070_v3, %s9607_s9  ;;  %8589 = vmatpush3.bf16.msra.mxu1 %v14056_v26  ;;  %9234 = vpow2.f32 %v6153_v51  ;;  %v12873_v46 = vpop.eup %9224  ;;  %v6103_v58 = vsub.f32 %v12638_v9, %v6037_v0 }
 0x96e   : > { %8590 = vmatprep.subr.bf16.mxu1 %v14071_v4 }
 0x96f   : > { %v6040_v1 = vpop.xlane.xlu1 %6039  ;;  %9236 = vpow2.f32 %v6155_v22  ;;  %v12876_v61 = vpop.eup %9226  ;;  %v6149_v7 = vmul.f32 1.442695, %v6103_v58 }
 0x970   : > { %v6104_v47 = vsub.f32 %v12653_v21, %v6040_v1  ;;  %9238 = vpow2.f32 %v6157_v62  ;;  %v6031_v54 = vpop.xlane.xlu0 %6030  ;;  %v14077_v1 = vld [vmem:[#allocation142_spill] sm:$0xff] }
 0x971   : > { %v12879_v33 = vpop.eup %9228  ;;  %v6101_v23 = vsub.f32 %v12650_v63, %v6031_v54  ;;  %8591 = vmatpush3.bf16.msra.mxu1 %v14071_v4  ;;  %v14073_v63 = vld [vmem:[#allocation35_spill] sm:$0xff] }
 0x972   : > { %v6151_v55 = vmul.f32 1.442695, %v6104_v47  ;;  %v12883_v26 = vpop.eup %9230  ;;  %8604 = vmatprep.subr.bf16.mxu1 %v14072_v15  ;;  %v6283_v21 = vpack.c.bf16 %v12879_v33, %v12876_v61  ;;  %v1546_v6 = vsel %vm480_vm0, %v14073_v63, 0.0 }
 0x973   : > { %v6034_v18 = vpop.xlane.xlu1 %6033  ;;  %v6145_v13 = vmul.f32 1.442695, %v6101_v23  ;;  %v6284_v9 = vpack.c.bf16 %v12873_v46, %v12883_v26 }
 0x974   : > { %v6102_v24 = vsub.f32 %v12661_v44, %v6034_v18  ;;  %8568 = vmatprep.mubr.msk.bf16.mxu0 %vm480_vm0, %v6283_v21  ;;  %9240 = vpow2.f32 %v6151_v55  ;;  %v14078_v18 = vld [vmem:[#allocation83_spill] sm:$0xff] }
 0x975   : > { %1547 = vadd.xlane.f32.xlu1 %v1546_v6  ;;  %8569 = vmatmul.mubr.msk.bf16.vlgmr.msra.gmra.mrb[140].mxu0 %vm480_vm0, %v6284_v9  ;;  %9242 = vpow2.f32 %v6145_v13  ;;  %v12896_v43 = vpop.eup %9232 }
 0x976   : > { %v6147_v5 = vmul.f32 1.442695, %v6102_v24  ;;  %8581 = vmatpush3.bf16.msra.mxu0 %v14074_v37 }
 0x977   : > { %v6073_v31 = vpop.xlane.xlu1 %6072  ;;  %8582 = vmatprep.subr.bf16.mxu0 %v14075_v52  ;;  %v12900_v45 = vpop.eup %9234 }
 0x978   : > { %9244 = vpow2.f32 %v6147_v5  ;;  %v6115_v44 = vsub.f32 %v12682_v56, %v6073_v31  ;;  %v6076_v12 = vpop.xlane.xlu0 %6075 }
 0x979   : > { %9246 = vpow2.f32 %v6149_v7  ;;  %v6116_v60 = vsub.f32 %v12693_v38, %v6076_v12  ;;  %v12905_v51 = vpop.eup %9236  ;;  %1607 = vadd.xlane.f32.xlu1 %v1606_v30  ;;  %v14081_v30 = vld [vmem:[#allocation85_spill] sm:$0xff] }
 0x97a   : > { %v6173_v10 = vmul.f32 1.442695, %v6115_v44  ;;  %v12907_v62 = vpop.eup %9238  ;;  %8583 = vmatpush3.bf16.msra.mxu0 %v14075_v52  ;;  %v6289_v22 = vpack.c.bf16 %v12905_v51, %v12900_v45 }
 0x97b   : > { %v6175_v0 = vmul.f32 1.442695, %v6116_v60  ;;  %v6067_v56 = vpop.xlane.xlu1 %6066  ;;  %8596 = vmatprep.subr.bf16.mxu0 %v14077_v1  ;;  %v6290_v4 = vpack.c.bf16 %v12896_v43, %v12907_v62 }
 0x97c   : > { %v6113_v3 = vsub.f32 %v12696_v42, %v6067_v56  ;;  %v6070_v38 = vpop.xlane.xlu0 %6069  ;;  %8592 = vmatprep.mubr.msk.bf16.mxu1 %vm480_vm0, %v6289_v22  ;;  %9248 = vpow2.f32 %v6173_v10  ;;  %v14082_v10 = vpack.c.bf16 %v14080_v41, %v14081_v30  ;;  %v6191_v56 = vsel %vm480_vm0, %v12807_v32, 0.0 }
 0x97d   : > { %v6114_v47 = vsub.f32 %v12703_v17, %v6070_v38  ;;  %8593 = vmatmul.mubr.msk.bf16.vlgmr.msra.gmra.mrb[124].mxu1 %vm480_vm0, %v6290_v4  ;;  %9250 = vpow2.f32 %v6175_v0  ;;  %v14083_v0 = vld [vmem:[#allocation104_spill] sm:$0xff]  ;;  %v14084_v38 = vld [vmem:[#allocation39_spill] sm:$0xff] }
 0x97e   : > { %v6169_v58 = vmul.f32 1.442695, %v6113_v3  ;;  %8605 = vmatpush3.bf16.msra.mxu1 %v14072_v15  ;;  %v12920_v42 = vpop.eup %9240  ;;  %v14085_v4 = vld [vmem:[#allocation24_spill] sm:$0xff] }
 0x97f   : > { %v6171_v54 = vmul.f32 1.442695, %v6114_v47  ;;  %v6061_v55 = vpop.xlane.xlu1 %6060  ;;  %8606 = vmatprep.subr.bf16.mxu1 %v14078_v18  ;;  %v12924_v17 = vpop.eup %9242  ;;  %v14086_v47 = vpack.c.bf16 %v14084_v38, %v14085_v4  ;;  %v14097_v4 = vld [vmem:[#allocation151_spill] sm:$0xff] }
 0x980   : > { %9252 = vpow2.f32 %v6169_v58  ;;  %v6111_v23 = vsub.f32 %v12716_v11, %v6061_v55  ;;  %v6055_v21 = vpop.xlane.xlu0 %6054 }
 0x981   : > { %9254 = vpow2.f32 %v6171_v54  ;;  %v6109_v13 = vsub.f32 %v12723_v34, %v6055_v21  ;;  %v6185_v54 = vsel %vm480_vm0, %v12809_v35, 0.0 }
 0x982   : > { %v12927_v24 = vpop.eup %9244  ;;  %v6165_v9 = vmul.f32 1.442695, %v6111_v23  ;;  %8607 = vmatpush3.bf16.msra.mxu1 %v14078_v18 }
 0x983   : > { %v12929_v7 = vpop.eup %9246  ;;  %v6161_v15 = vmul.f32 1.442695, %v6109_v13  ;;  %v6058_v63 = vpop.xlane.xlu1 %6057  ;;  %v6287_v11 = vpack.c.bf16 %v12927_v24, %v12924_v17 }
 0x984   : > { %v6110_v6 = vsub.f32 %v12738_v36, %v6058_v63  ;;  %v6064_v5 = vpop.xlane.xlu0 %6063  ;;  %v6288_v37 = vpack.c.bf16 %v12920_v42, %v12929_v7  ;;  %9256 = vpow2.f32 %v6165_v9  ;;  %v14079_v36 = vld [vmem:[#allocation97_spill] sm:$0xff] }
 0x985   : > { %v6112_v34 = vsub.f32 %v12745_v40, %v6064_v5  ;;  %8584 = vmatprep.mubr.msk.bf16.mxu0 %vm480_vm0, %v6287_v11  ;;  %9258 = vpow2.f32 %v6161_v15  ;;  %v14087_v11 = vld [vmem:[#allocation105_spill] sm:$0xff] }
 0x986   : > { %v6163_v31 = vmul.f32 1.442695, %v6110_v6  ;;  %8585 = vmatmul.mubr.msk.bf16.vlgmr.msra.gmra.mrb[144].mxu0 %vm480_vm0, %v6288_v37  ;;  %v12941_v52 = vpop.eup %9248  ;;  %v14088_v6 = vld [vmem:[#allocation103_spill] sm:$0xff]  ;;  %v6215_v37 = vsel %vm480_vm0, %v12853_v20, 0.0  ;;  %v14090_v20 = vld [vmem:[#allocation98_spill] sm:$0xff] }
 0x987   : > { %v6167_v44 = vmul.f32 1.442695, %v6112_v34  ;;  %8597 = vmatpush3.bf16.msra.mxu0 %v14077_v1  ;;  %v12944_v12 = vpop.eup %9250  ;;  %v14089_v35 = vpack.c.bf16 %v14087_v11, %v14088_v6  ;;  %v6227_v11 = vsel %vm480_vm0, %v12929_v7, 0.0  ;;  %v6221_v6 = vsel %vm480_vm0, %v12924_v17, 0.0 }
 0x988   : > { %9260 = vpow2.f32 %v6163_v31  ;;  %8598 = vmatprep.subr.bf16.mxu0 %v14079_v36  ;;  %v6294_v1 = vpack.c.bf16 %v12944_v12, %v12941_v52  ;;  %v6194_v17 = vsel %vm480_vm0, %v12814_v48, 0.0 }
 0x989   : > { %9262 = vpow2.f32 %v6167_v44 }
 0x98a   : > { %v12946_v60 = vpop.eup %9252  ;;  %3743 = vrot.lane.b32.xlu1 %v14082_v10, %s9606_s30  ;;  %v14093_v10 = vld [vmem:[#allocation102_spill] sm:$0xff] }
 0x98b   : > { %v12948_v40 = vpop.eup %9254  ;;  %8599 = vmatpush3.bf16.msra.mxu0 %v14079_v36  ;;  %v14091_v36 = vld [vmem:[#allocation91_spill] sm:$0xff] }
 0x98c   : > { %8612 = vmatprep.subr.bf16.mxu0 %v14083_v0  ;;  %v6293_v22 = vpack.c.bf16 %v12948_v40, %v12946_v60  ;;  %v6085_v3 = vpop.xlane.xlu1 %6084  ;;  %6192 = vadd.xlane.f32.xlu0 %v6191_v56  ;;  %v14092_v41 = vpack.c.bf16 %v14090_v20, %v14091_v36  ;;  %v6209_v56 = vsel %vm480_vm0, %v12847_v19, 0.0  ;;  %v14101_v36 = vld [vmem:[#allocation79_spill] sm:$0xff] }
 0x98d   : > { %v6119_v23 = vsub.f32 %v12754_v57, %v6085_v3 }
 0x98e   : > { %8608 = vmatprep.mubr.msk.bf16.mxu1 %vm480_vm0, %v6293_v22  ;;  %5319 = vrot.lane.b32.xlu1 %v14086_v47, %s9607_s9  ;;  %v12968_v58 = vpop.eup %9256  ;;  %v14098_v47 = vld [vmem:[#allocation109_spill] sm:$0xff] }
 0x98f   : > { %8609 = vmatmul.mubr.msk.bf16.vlgmr.msra.gmra.mrb[128].mxu1 %vm480_vm0, %v6294_v1  ;;  %v6082_v32 = vpop.xlane.xlu0 %6081  ;;  %v12972_v55 = vpop.eup %9258  ;;  %v6181_v34 = vmul.f32 1.442695, %v6119_v23  ;;  %v6203_v1 = vsel %vm480_vm0, %v12883_v26, 0.0  ;;  %v6197_v23 = vsel %vm480_vm0, %v12876_v61, 0.0  ;;  %v6233_v61 = vsel %vm480_vm0, %v12900_v45, 0.0 }
 0x990   : > { %v6118_v18 = vsub.f32 %v12764_v53, %v6082_v32  ;;  %v6079_v21 = vpop.xlane.xlu1 %6078  ;;  %6186 = vadd.xlane.f32.xlu0 %v6185_v54  ;;  %v14099_v32 = vpack.c.bf16 %v14097_v4, %v14098_v47  ;;  %v6251_v45 = vsel %vm480_vm0, %v12968_v58, 0.0  ;;  %v6245_v7 = vsel %vm480_vm0, %v12972_v55, 0.0 }
 0x991   : > { %v6117_v9 = vsub.f32 %v12758_v39, %v6079_v21  ;;  %v6230_v4 = vsel %vm480_vm0, %v12920_v42, 0.0  ;;  %v6224_v47 = vsel %vm480_vm0, %v12927_v24, 0.0  ;;  %v14105_v24 = vld [vmem:[#allocation93_spill] sm:$0xff] }
 0x992   : > { %v12976_v13 = vpop.eup %9260  ;;  %v6179_v63 = vmul.f32 1.442695, %v6118_v18  ;;  %3725 = vrot.lane.b32.xlu1 %v14089_v35, %s9606_s30  ;;  %v6257_v35 = vsel %vm480_vm0, %v12946_v60, 0.0  ;;  %v6218_v60 = vsel %vm480_vm0, %v12845_v8, 0.0 }
 0x993   : > { %v12979_v15 = vpop.eup %9262  ;;  %v6291_v57 = vpack.c.bf16 %v12976_v13, %v12972_v55  ;;  %v6177_v5 = vmul.f32 1.442695, %v6117_v9  ;;  %v3738_v53 = vpop.permute.xlu0 %3737  ;;  %v6239_v9 = vsel %vm480_vm0, %v12907_v62, 0.0  ;;  %v6263_v62 = vsel %vm480_vm0, %v12941_v52, 0.0 }
 0x994   : > { %v6292_v39 = vpack.c.bf16 %v12979_v15, %v12968_v58  ;;  %9264 = vpow2.f32 %v6179_v63  ;;  %3780 = vst.msk [vmem:[#allocation3 + $0x30] sm:$0xff] %vm3773_vm3, %v3738_v53  ;;  %v6088_v31 = vpop.xlane.xlu1 %6087  ;;  %6216 = vadd.xlane.f32.xlu0 %v6215_v37  ;;  %v6188_v52 = vsel %vm480_vm0, %v12811_v14, 0.0  ;;  %v6212_v53 = vsel %vm480_vm0, %v12850_v25, 0.0 }
 0x995   : > { %8600 = vmatprep.mubr.msk.bf16.mxu0 %vm480_vm0, %v6291_v57  ;;  %9266 = vpow2.f32 %v6177_v5  ;;  %v6120_v44 = vsub.f32 %v12769_v16, %v6088_v31  ;;  %v14094_v16 = vld [vmem:[#allocation108_spill] sm:$0xff]  ;;  %v6206_v14 = vsel %vm480_vm0, %v12873_v46, 0.0  ;;  %v14100_v25 = vpack.c.bf16 %v12673_v27, %v12670_v49  ;;  %v14102_v46 = vld [vmem:[#allocation81_spill] sm:$0xff] }
 0x996   : > { %8601 = vmatmul.mubr.msk.bf16.vlgmr.msra.gmra.mrb[148].mxu0 %vm480_vm0, %v6292_v39  ;;  %3727 = vrot.lane.b32.xlu1 %v14092_v41, %s9606_s30  ;;  %9268 = vpow2.f32 %v6181_v34  ;;  %v6200_v34 = vsel %vm480_vm0, %v12879_v33, 0.0  ;;  %v6242_v33 = vsel %vm480_vm0, %v12896_v43, 0.0 }
 0x997   : > { %8613 = vmatpush3.bf16.msra.mxu0 %v14083_v0  ;;  %v6183_v30 = vmul.f32 1.442695, %v6120_v44  ;;  %v14095_v0 = vld [vmem:[#allocation18_spill] sm:$0xff] }
 0x998   : > { %8614 = vmatprep.subr.bf16.mxu0 %v14093_v10  ;;  %v3740_v22 = vpop.permute.xlu1 %3739  ;;  %6210 = vadd.xlane.f32.xlu0 %v6209_v56  ;;  %v14096_v3 = vpack.c.bf16 %v14094_v16, %v14095_v0  ;;  %v14103_v56 = vld [vmem:[#allocation59_spill] sm:$0xff]  ;;  %v14104_v16 = vld [vmem:[#allocation61_spill] sm:$0xff] }
 0x999   : > { %9270 = vpow2.f32 %v6183_v30  ;;  %3781 = vst.msk [vmem:[#allocation3 + $0x38] sm:$0xff] %vm3773_vm3, %v3740_v22 }
 0x99a   : > { %5303 = vrot.lane.b32.xlu1 %v14096_v3, %s9607_s9 }
 0x99b   : > { %8615 = vmatpush3.bf16.msra.mxu0 %v14093_v10 }
 0x99c   : > { %v5316_v38 = vpop.permute.xlu1 %5315  ;;  %6204 = vadd.xlane.f32.xlu0 %v6203_v1  ;;  %v6236_v1 = vsel %vm480_vm0, %v12905_v51, 0.0  ;;  %v6266_v51 = vsel %vm480_vm0, %v12944_v12, 0.0 }
 0x99d   : > { %5358 = vst.msk [vmem:[#allocation3 + $0x30] sm:$0xff] %vm5351_vm4, %v5316_v38 }
 0x99e   : > { %v13012_v19 = vpop.eup %9264  ;;  %5305 = vrot.lane.b32.xlu1 %v14099_v32, %s9607_s9 }
 0x99f   : > { %v13018_v54 = vpop.eup %9266 }
 0x9a0   : > { %6198 = vadd.xlane.f32.xlu0 %v6197_v23  ;;  %v6295_v26 = vpack.c.bf16 %v13012_v19, %v13018_v54  ;;  %v13024_v18 = vpop.eup %9268  ;;  %v6260_v23 = vsel %vm480_vm0, %v12948_v40, 0.0 }
 0x9a1   : > { %v6275_v42 = vsel %vm480_vm0, %v13024_v18, 0.0 }
 0x9a2   : > { %8616 = vmatprep.mubr.msk.bf16.mxu0 %vm480_vm0, %v6295_v26  ;;  %v6269_v26 = vsel %vm480_vm0, %v13018_v54, 0.0  ;;  %v14108_v54 = vld [vmem:[#allocation60_spill] sm:$0xff] }
 0x9a3   : > { %v13027_v21 = vpop.eup %9270 }
 0x9a4   : > { %6240 = vadd.xlane.f32.xlu0 %v6239_v9  ;;  %v6296_v63 = vpack.c.bf16 %v13027_v21, %v13024_v18  ;;  %v14106_v9 = vld [vmem:[#allocation90_spill] sm:$0xff] }
 0x9a6   : > { %8617 = vmatmul.mubr.msk.bf16.vlgmr.msra.gmra.mrb[152].mxu0 %vm480_vm0, %v6296_v63  ;;  %v14107_v63 = vpack.c.bf16 %v14105_v24, %v14106_v9 }
 0x9a8   : > { %6234 = vadd.xlane.f32.xlu0 %v6233_v61 }
 0x9ac   : > { %6228 = vadd.xlane.f32.xlu0 %v6227_v11 }
 0x9b0   : > { %6222 = vadd.xlane.f32.xlu0 %v6221_v6 }
 0x9b4   : > { %6264 = vadd.xlane.f32.xlu0 %v6263_v62  ;;  %v14109_v62 = vld [vmem:[#allocation58_spill] sm:$0xff] }
 0x9b8   : > { %6258 = vadd.xlane.f32.xlu0 %v6257_v35 }
 0x9bc   : > { %6252 = vadd.xlane.f32.xlu0 %v6251_v45 }
 0x9c0   : > { %6246 = vadd.xlane.f32.xlu0 %v6245_v7 }
 0x9c2   : > { %6195 = vadd.xlane.f32.xlu1 %v6194_v17  ;;  %v14110_v17 = vld [vmem:[#allocation100_spill] sm:$0xff] }
 0x9c4   : > { %v1542_v57 = vpop.xlane.xlu0 %1541 }
 0x9c6   : > { %6189 = vadd.xlane.f32.xlu1 %v6188_v52 }
 0x9c8   : > { %v1602_v5 = vpop.xlane.xlu0 %1601 }
 0x9c9   : > { %9272 = vrcp.f32 %v1602_v5 }
 0x9ca   : > { %6219 = vadd.xlane.f32.xlu1 %v6218_v60  ;;  %9274 = vrcp.f32 %v1542_v57  ;;  %v14111_v57 = vld [vmem:[#allocation101_spill] sm:$0xff] }
 0x9cb   : > { %v14112_v52 = vpack.c.bf16 %v14110_v17, %v14111_v57 }
 0x9cc   : > { %v1605_v58 = vpop.xlane.xlu0 %1604 }
 0x9cd   : > { %9276 = vrcp.f32 %v1605_v58  ;;  %v1545_v55 = vpop.xlane.xlu1 %1544  ;;  %v14113_v58 = vld [vmem:[#allocation80_spill] sm:$0xff] }
 0x9ce   : > { %9278 = vrcp.f32 %v1545_v55  ;;  %6213 = vadd.xlane.f32.xlu1 %v6212_v53  ;;  %v14114_v53 = vld [vmem:[#allocation78_spill] sm:$0xff] }
 0x9d0   : > { %v1551_v48 = vpop.xlane.xlu0 %1550 }
 0x9d1   : > { %v5318_v37 = vpop.permute.xlu1 %5317  ;;  %9280 = vrcp.f32 %v1551_v48 }
 0x9d2   : > { %5359 = vst.msk [vmem:[#allocation3 + $0x38] sm:$0xff] %vm5351_vm4, %v5318_v37  ;;  %6207 = vadd.xlane.f32.xlu1 %v6206_v14  ;;  %v14115_v14 = vld [vmem:[#allocation106_spill] sm:$0xff] }
 0x9d3   : > { %v9273_v39 = vpop.eup %9272 }
 0x9d4   : > { %v1611_v8 = vpop.xlane.xlu0 %1610  ;;  %v9275_v31 = vpop.eup %9274  ;;  %v2176_v41 = vmul.f32 %v9273_v39, %v14101_v36 }
 0x9d5   : > { %v2156_v22 = vmul.f32 %v9275_v31, %v14103_v56 }
 0x9d6   : > { %6201 = vadd.xlane.f32.xlu1 %v6200_v34  ;;  %5325 = vrot.lane.b32.xlu0 %v14100_v25, %s9607_s9  ;;  %v14118_v25 = vld [vmem:[#allocation27_spill] sm:$0xff] }
 0x9d7   : > { %v9277_v44 = vpop.eup %9276 }
 0x9d8   : > { %v9279_v20 = vpop.eup %9278  ;;  %v2177_v30 = vmul.f32 %v9277_v44, %v14102_v46  ;;  %v3742_v10 = vpop.permute.xlu0 %3741  ;;  %v14119_v44 = vpack.c.bf16 %v12647_v59, %v14118_v25  ;;  %v14121_v46 = vld [vmem:[#allocation48_spill] sm:$0xff] }
 0x9d9   : > { %v2157_v0 = vmul.f32 %v9279_v20, %v14104_v16  ;;  %3782 = vst.msk [vmem:[#allocation3 + $0x40] sm:$0xff] %vm3773_vm3, %v3742_v10  ;;  %v6254_v16 = vsel %vm480_vm0, %v12979_v15, 0.0 }
 0x9da   : > { %6243 = vadd.xlane.f32.xlu1 %v6242_v33  ;;  %v2194_v3 = vpack.c.bf16 %v2177_v30, %v2176_v41  ;;  %v14120_v41 = vld [vmem:[#allocation19_spill] sm:$0xff] }
 0x9db   : > { %v2184_v49 = vpack.c.bf16 %v2157_v0, %v2156_v22  ;;  %v9281_v11 = vpop.eup %9280  ;;  %v14122_v30 = vpack.c.bf16 %v14120_v41, %v14121_v46  ;;  %v6248_v0 = vsel %vm480_vm0, %v12976_v13, 0.0  ;;  %v14123_v13 = vld [vmem:[#allocation87_spill] sm:$0xff] }
 0x9dc   : > { %v5322_v27 = vpop.permute.xlu0 %5321  ;;  %2210 = vst.msk [vmem:[#allocation3 + $0x70] sm:$0xff] %vm761_vm2, %v2194_v3  ;;  %v2159_v6 = vmul.f32 %v9281_v11, %v14108_v54 }
 0x9dd   : > { %2200 = vst.msk [vmem:[#allocation3 + $0x20] sm:$0xff] %vm761_vm2, %v2184_v49 }
 0x9de   : > { %6237 = vadd.xlane.f32.xlu1 %v6236_v1 }
 0x9e0   : > { %v3746_v38 = vpop.permute.xlu0 %3745 }
 0x9e1   : > { %3784 = vst.msk [vmem:[#allocation3 + $0x50] sm:$0xff] %vm3773_vm3, %v3746_v38 }
 0x9e2   : > { %6231 = vadd.xlane.f32.xlu1 %v6230_v4 }
 0x9e4   : > { %v3748_v43 = vpop.permute.xlu0 %3747 }
 0x9e5   : > { %3785 = vst.msk [vmem:[#allocation3 + $0x58] sm:$0xff] %vm3773_vm3, %v3748_v43 }
 0x9e6   : > { %6225 = vadd.xlane.f32.xlu1 %v6224_v47 }
 0x9e8   : > { %v5324_v32 = vpop.permute.xlu0 %5323 }
 0x9e9   : > { %5362 = vst.msk [vmem:[#allocation3 + $0x50] sm:$0xff] %vm5351_vm4, %v5324_v32 }
 0x9ea   : > { %6267 = vadd.xlane.f32.xlu1 %v6266_v51 }
 0x9ee   : > { %6261 = vadd.xlane.f32.xlu1 %v6260_v23  ;;  %v14124_v23 = vld [vmem:[#allocation88_spill] sm:$0xff] }
 0x9f5   : > { %6276 = vadd.xlane.f32.xlu0 %v6275_v42  ;;  %v14125_v42 = vpack.c.bf16 %v14123_v13, %v14124_v23 }
 0x9f9   : > { %6270 = vadd.xlane.f32.xlu0 %v6269_v26 }
 0x9ff   : > { %3729 = vrot.lane.b32.xlu1 %v14107_v63, %s9606_s30 }
 0xa02   : > { %v1548_v12 = vpop.xlane.xlu1 %1547 }
 0xa03   : > { %9282 = vrcp.f32 %v1548_v12 }
 0xa04   : > { %9284 = vrcp.f32 %v1611_v8  ;;  %v14116_v8 = vld [vmem:[#allocation149_spill] sm:$0xff] }
 0xa05   : > { %v14117_v39 = vpack.c.bf16 %v14115_v14, %v14116_v8 }
 0xa06   : > { %v1608_v61 = vpop.xlane.xlu1 %1607 }
 0xa07   : > { %9286 = vrcp.f32 %v1608_v61 }
 0xa0a   : > { %v3744_v40 = vpop.permute.xlu1 %3743 }
 0xa0b   : > { %3783 = vst.msk [vmem:[#allocation3 + $0x48] sm:$0xff] %vm3773_vm3, %v3744_v40 }
 0xa0c   : > { %5361 = vst.msk [vmem:[#allocation3 + $0x48] sm:$0xff] %vm5351_vm4, %v5322_v27 }
 0xa0d   : > { %v9283_v18 = vpop.eup %9282 }
 0xa0e   : > { %v2158_v35 = vmul.f32 %v9283_v18, %v14109_v62  ;;  %v5320_v45 = vpop.permute.xlu1 %5319  ;;  %v9285_v7 = vpop.eup %9284 }
 0xa0f   : > { %5360 = vst.msk [vmem:[#allocation3 + $0x40] sm:$0xff] %vm5351_vm4, %v5320_v45  ;;  %3749 = vrot.lane.b32.xlu0 %v14112_v52, %s9606_s30  ;;  %v2179_v55 = vmul.f32 %v9285_v7, %v14113_v58 }
 0xa10   : > { %v2185_v5 = vpack.c.bf16 %v2159_v6, %v2158_v35 }
 0xa11   : > { %v9287_v60 = vpop.eup %9286 }
 0xa12   : > { %v2178_v48 = vmul.f32 %v9287_v60, %v14114_v53  ;;  %v3726_v37 = vpop.permute.xlu1 %3725  ;;  %2201 = vst.msk [vmem:[#allocation3 + $0x28] sm:$0xff] %vm761_vm2, %v2185_v5 }
 0xa13   : > { %3774 = vst.msk [vmem:[#allocation3] sm:$0xff] %vm3773_vm3, %v3726_v37  ;;  %3751 = vrot.lane.b32.xlu0 %v14117_v39, %s9606_s30 }
 0xa14   : > { %v2195_v34 = vpack.c.bf16 %v2179_v55, %v2178_v48 }
 0xa16   : > { %v3728_v31 = vpop.permute.xlu1 %3727  ;;  %2211 = vst.msk [vmem:[#allocation3 + $0x78] sm:$0xff] %vm761_vm2, %v2195_v34 }
 0xa17   : > { %3775 = vst.msk [vmem:[#allocation3 + $0x8] sm:$0xff] %vm3773_vm3, %v3728_v31  ;;  %5327 = vrot.lane.b32.xlu0 %v14119_v44, %s9607_s9 }
 0xa19   : > { %v6193_v20 = vpop.xlane.xlu0 %6192 }
 0xa1a   : > { %v5304_v36 = vpop.permute.xlu1 %5303  ;;  %9288 = vrcp.f32 %v6193_v20 }
 0xa1b   : > { %5352 = vst.msk [vmem:[#allocation3] sm:$0xff] %vm5351_vm4, %v5304_v36  ;;  %5329 = vrot.lane.b32.xlu0 %v14122_v30, %s9607_s9  ;;  %v6278_v30 = vsel %vm480_vm0, %v13027_v21, 0.0 }
 0xa1d   : > { %v6187_v10 = vpop.xlane.xlu0 %6186 }
 0xa1e   : > { %v5306_v56 = vpop.permute.xlu1 %5305  ;;  %9290 = vrcp.f32 %v6187_v10 }
 0xa1f   : > { %5353 = vst.msk [vmem:[#allocation3 + $0x8] sm:$0xff] %vm5351_vm4, %v5306_v56 }
 0xa21   : > { %v6217_v22 = vpop.xlane.xlu0 %6216 }
 0xa22   : > { %9292 = vrcp.f32 %v6217_v22 }
 0xa23   : > { %6255 = vadd.xlane.f32.xlu1 %v6254_v16 }
 0xa24   : > { %v9289_v3 = vpop.eup %9288 }
 0xa25   : > { %v6211_v59 = vpop.xlane.xlu0 %6210 }
 0xa26   : > { %9294 = vrcp.f32 %v6211_v59  ;;  %v6272_v59 = vsel %vm480_vm0, %v13012_v19, 0.0 }
 0xa27   : > { %6249 = vadd.xlane.f32.xlu1 %v6248_v0 }
 0xa28   : > { %v9291_v1 = vpop.eup %9290 }
 0xa29   : > { %v6205_v33 = vpop.xlane.xlu0 %6204 }
 0xa2a   : > { %9296 = vrcp.f32 %v6205_v33 }
 0xa2c   : > { %v9293_v9 = vpop.eup %9292 }
 0xa2d   : > { %v6199_v49 = vpop.xlane.xlu0 %6198  ;;  %v8562_v27 = vpop.f32.mrb[116].mxu1 }
 0xa2e   : > { %v13128_v38 = vmul.f32 %v9289_v3, %v8562_v27  ;;  %v6343_v4 = vpop.f32.mrb[117].mxu1  ;;  %9298 = vrcp.f32 %v6199_v49 }
 0xa2f   : > { %v13130_v43 = vmul.f32 %v9291_v1, %v6343_v4  ;;  %v8563_v47 = vpop.f32.mrb[118].mxu1 }
 0xa30   : > { %v6346_v15 = vpop.f32.mrb[119].mxu1  ;;  %v9295_v12 = vpop.eup %9294 }
 0xa31   : > { %v13132_v32 = vpop.xlane.xlu0 %6240 }
 0xa34   : > { %v9297_v35 = vpop.eup %9296 }
 0xa35   : > { %v13134_v51 = vpop.xlane.xlu0 %6234 }
 0xa38   : > { %3731 = vrot.lane.b32.xlu1 %v14125_v42, %s9606_s30  ;;  %v9299_v7 = vpop.eup %9298 }
 0xa39   : > { %v13140_v26 = vpop.xlane.xlu0 %6228 }
 0xa3d   : > { %v13142_v24 = vpop.xlane.xlu0 %6222 }
 0xa3f   : > { %v8578_v63 = vpop.f32.mrb[120].mxu1 }
 0xa40   : > { %v13144_v61 = vmul.f32 %v9293_v9, %v8578_v63  ;;  %v6465_v40 = vpop.f32.mrb[121].mxu1 }
 0xa41   : > { %v13146_v11 = vmul.f32 %v9295_v12, %v6465_v40  ;;  %v13148_v18 = vpop.xlane.xlu0 %6264  ;;  %v8579_v54 = vpop.f32.mrb[122].mxu1 }
 0xa42   : > { %v6468_v6 = vpop.f32.mrb[123].mxu1 }
 0xa45   : > { %v13150_v62 = vpop.xlane.xlu0 %6258 }
 0xa48   : > { %v8570_v45 = vpop.f32.mrb[140].mxu0 }
 0xa49   : > { %v13152_v17 = vmul.f32 %v9297_v35, %v8570_v45  ;;  %v6404_v57 = vpop.f32.mrb[141].mxu0  ;;  %v6253_v52 = vpop.xlane.xlu0 %6252 }
 0xa4a   : > { %v13154_v5 = vmul.f32 %v9299_v7, %v6404_v57  ;;  %v8571_v60 = vpop.f32.mrb[142].mxu0 }
 0xa4b   : > { %v13156_v58 = vpop.f32.mrb[143].mxu0 }
 0xa4d   : > { %v6247_v55 = vpop.xlane.xlu0 %6246 }
 0xa4f   : > { %v6196_v53 = vpop.xlane.xlu1 %6195 }
 0xa50   : > { %9300 = vrcp.f32 %v6196_v53  ;;  %v13158_v48 = vpop.f32.mrb[124].mxu1 }
 0xa51   : > { %v13160_v37 = vpop.f32.mrb[125].mxu1  ;;  %v5326_v14 = vpop.permute.xlu0 %5325 }
 0xa52   : > { %5363 = vst.msk [vmem:[#allocation3 + $0x58] sm:$0xff] %vm5351_vm4, %v5326_v14  ;;  %v13163_v8 = vpop.f32.mrb[126].mxu1 }
 0xa53   : > { %v6190_v39 = vpop.xlane.xlu1 %6189  ;;  %v13165_v34 = vpop.f32.mrb[127].mxu1 }
 0xa54   : > { %9302 = vrcp.f32 %v6190_v39 }
 0xa57   : > { %v6220_v31 = vpop.xlane.xlu1 %6219 }
 0xa58   : > { %9304 = vrcp.f32 %v6220_v31  ;;  %v14127_v31 = vld [vmem:[#allocation158_spill] sm:$0xff] }
 0xa59   : > { %v13167_v25 = vpop.f32.mrb[144].mxu0 }
 0xa5a   : > { %v13169_v44 = vpop.f32.mrb[145].mxu0  ;;  %v9301_v20 = vpop.eup %9300 }
 0xa5b   : > { %v13171_v36 = vpop.f32.mrb[146].mxu0  ;;  %v6214_v41 = vpop.xlane.xlu1 %6213  ;;  %v13177_v10 = vmul.f32 %v9301_v20, %v8563_v47 }
 0xa5c   : > { %v13173_v46 = vpop.f32.mrb[147].mxu0  ;;  %9306 = vrcp.f32 %v6214_v41  ;;  %6279 = vadd.xlane.f32.xlu1 %v6278_v30 }
 0xa5d   : > { %v6850_v56 = vpack.c.bf16 %v13177_v10, %v13128_v38  ;;  %9308 = vrcp.f32 %v6253_v52 }
 0xa5e   : > { %v9303_v22 = vpop.eup %9302  ;;  %9310 = vrcp.f32 %v6247_v55 }
 0xa5f   : > { %v6208_v16 = vpop.xlane.xlu1 %6207  ;;  %v13183_v0 = vmul.f32 %v9303_v22, %v6346_v15 }
 0xa60   : > { %9312 = vrcp.f32 %v6208_v16  ;;  %6273 = vadd.xlane.f32.xlu1 %v6272_v59  ;;  %v14129_v16 = vld [vmem:[#allocation37_spill] sm:$0xff]  ;;  %v14130_v59 = vld [vmem:[#allocation46_spill] sm:$0xff] }
 0xa61   : > { %v6849_v21 = vpack.c.bf16 %v13183_v0, %v13130_v43 }
 0xa62   : > { %v13185_v33 = vpop.f32.mrb[128].mxu1  ;;  %v9305_v3 = vpop.eup %9304 }
 0xa63   : > { %v13189_v49 = vpop.f32.mrb[129].mxu1  ;;  %v6202_v1 = vpop.xlane.xlu1 %6201  ;;  %v13193_v4 = vmul.f32 %v9305_v3, %v8579_v54  ;;  %v14131_v3 = vpack.c.bf16 %v14129_v16, %v14130_v59 }
 0xa64   : > { %v13191_v27 = vpop.f32.mrb[130].mxu1  ;;  %9314 = vrcp.f32 %v6202_v1 }
 0xa65   : > { %v13195_v47 = vpop.f32.mrb[131].mxu1  ;;  %v6854_v19 = vpack.c.bf16 %v13193_v4, %v13144_v61  ;;  %9316 = vrcp.f32 %v13132_v32  ;;  %v14147_v4 = vld [vmem:[#allocation152_spill] sm:$0xff] }
 0xa66   : > { %v9307_v15 = vpop.eup %9306 }
 0xa67   : > { %v6244_v13 = vpop.xlane.xlu1 %6243  ;;  %v13200_v23 = vmul.f32 %v9307_v15, %v6468_v6  ;;  %v9309_v42 = vpop.eup %9308 }
 0xa68   : > { %9318 = vrcp.f32 %v6244_v13  ;;  %v9311_v63 = vpop.eup %9310 }
 0xa69   : > { %v8602_v9 = vpop.f32.mrb[148].mxu0  ;;  %v6853_v54 = vpack.c.bf16 %v13200_v23, %v13146_v11  ;;  %9320 = vrcp.f32 %v13134_v51  ;;  %v14126_v51 = vld [vmem:[#allocation36_spill] sm:$0xff] }
 0xa6a   : > { %v13202_v12 = vmul.f32 %v9309_v42, %v8602_v9  ;;  %v6648_v40 = vpop.f32.mrb[149].mxu0  ;;  %v9313_v35 = vpop.eup %9312  ;;  %v14128_v20 = vpack.c.bf16 %v14126_v51, %v14127_v31 }
 0xa6b   : > { %v13206_v45 = vmul.f32 %v9311_v63, %v6648_v40  ;;  %v13208_v7 = vpop.f32.mrb[150].mxu0  ;;  %v6238_v32 = vpop.xlane.xlu1 %6237  ;;  %v13213_v57 = vmul.f32 %v9313_v35, %v8571_v60 }
 0xa6c   : > { %v13211_v6 = vpop.f32.mrb[151].mxu0  ;;  %9322 = vrcp.f32 %v6238_v32  ;;  %v14133_v32 = vld [vmem:[#allocation86_spill] sm:$0xff] }
 0xa6d   : > { %v6852_v52 = vpack.c.bf16 %v13213_v57, %v13152_v17  ;;  %9324 = vrcp.f32 %v13140_v26 }
 0xa6e   : > { %v9315_v55 = vpop.eup %9314 }
 0xa6f   : > { %v6232_v53 = vpop.xlane.xlu1 %6231  ;;  %v13219_v14 = vmul.f32 %v9315_v55, %v13156_v58  ;;  %v9317_v39 = vpop.eup %9316 }
 0xa70   : > { %9326 = vrcp.f32 %v6232_v53  ;;  %v6835_v30 = vmul.f32 %v9317_v39, %v13158_v48 }
 0xa71   : > { %5307 = vrot.lane.b32.xlu1 %v14128_v20, %s9607_s9  ;;  %v6851_v60 = vpack.c.bf16 %v13219_v14, %v13154_v5  ;;  %9328 = vrcp.f32 %v13142_v24  ;;  %v8839_v20 = vld [vmem:[%s13542_s5 + $0x8] sm:$0xff]   ;;  %v14135_v5 = vld [vmem:[#allocation146_spill] sm:$0xff]  ;;  %v14136_v14 = vld [vmem:[#allocation107_spill] sm:$0xff] }
 0xa72   : > { %v9319_v41 = vpop.eup %9318 }
 0xa73   : > { %v6226_v26 = vpop.xlane.xlu1 %6225  ;;  %v6836_v22 = vmul.f32 %v9319_v41, %v13163_v8  ;;  %v9321_v58 = vpop.eup %9320 }
 0xa74   : > { %9330 = vrcp.f32 %v6226_v26  ;;  %v6833_v13 = vmul.f32 %v9321_v58, %v13160_v37 }
 0xa75   : > { %5309 = vrot.lane.b32.xlu1 %v14131_v3, %s9607_s9  ;;  %v6858_v1 = vpack.c.bf16 %v6836_v22, %v6835_v30  ;;  %9332 = vrcp.f32 %v13148_v18 }
 0xa76   : > { %v9323_v15 = vpop.eup %9322 }
 0xa77   : > { %v6268_v42 = vpop.xlane.xlu1 %6267  ;;  %6899 = vrot.lane.b32.xlu0 %v6858_v1, %s9608_s13  ;;  %v6834_v24 = vmul.f32 %v9323_v15, %v13165_v34  ;;  %v9325_v48 = vpop.eup %9324  ;;  %v14132_v34 = vld [vmem:[#allocation150_spill] sm:$0xff] }
 0xa78   : > { %9334 = vrcp.f32 %v6268_v42  ;;  %v6831_v18 = vmul.f32 %v9325_v48, %v13167_v25  ;;  %v14134_v55 = vpack.c.bf16 %v14132_v34, %v14133_v32  ;;  %v14139_v42 = vld [vmem:[#allocation147_spill] sm:$0xff] }
 0xa79   : > { %v8618_v8 = vpop.f32.mrb[152].mxu0  ;;  %6883 = vrot.lane.b32.xlu1 %v6850_v56, %s9608_s13  ;;  %v6857_v9 = vpack.c.bf16 %v6834_v24, %v6833_v13  ;;  %9336 = vrcp.f32 %v13150_v62  ;;  %v8838_v56 = vld [vmem:[%s13542_s5] sm:$0xff]   ;;  %v14138_v13 = vld [vmem:[#allocation155_spill] sm:$0xff] }
 0xa7a   : > { %v9327_v63 = vpop.eup %9326  ;;  %v6770_v40 = vpop.f32.mrb[153].mxu0  ;;  %8620 = vmatprep.subr.bf16.mxu0 %v8838_v56  ;;  %8656 = vmatprep.subr.bf16.mxu1 %v8838_v56  ;;  %v14140_v17 = vpack.c.bf16 %v14138_v13, %v14139_v42  ;;  %v14142_v24 = vld [vmem:[#allocation148_spill] sm:$0xff] }
 0xa7b   : > { %v6262_v37 = vpop.xlane.xlu1 %6261  ;;  %v13244_v35 = vpop.f32.mrb[154].mxu0  ;;  %3753 = vrot.lane.b32.xlu0 %v14134_v55, %s9606_s30  ;;  %v6832_v53 = vmul.f32 %v9327_v63, %v13171_v36  ;;  %8621 = vmatpush3.bf16.msra.mxu0 %v8838_v56 }
 0xa7c   : > { %9338 = vrcp.f32 %v6262_v37  ;;  %v13251_v38 = vpop.f32.mrb[155].mxu0  ;;  %v9329_v10 = vpop.eup %9328  ;;  %8658 = vmatpush3.bf16.msra.mxu1 %v8838_v56  ;;  %8622 = vmatprep.subr.bf16.mxu0 %v8839_v20 }
 0xa7d   : > { %6881 = vrot.lane.b32.xlu1 %v6849_v21, %s9608_s13  ;;  %v6856_v62 = vpack.c.bf16 %v6832_v53, %v6831_v18  ;;  %v6829_v39 = vmul.f32 %v9329_v10, %v13169_v44  ;;  %8657 = vmatprep.subr.bf16.mxu1 %v8839_v20 }
 0xa7e   : > { %v9331_v25 = vpop.eup %9330 }
 0xa7f   : > { %v3730_v51 = vpop.permute.xlu1 %3729  ;;  %v6830_v36 = vmul.f32 %v9331_v25, %v13173_v46  ;;  %v9333_v31 = vpop.eup %9332  ;;  %8623 = vmatpush3.bf16.msra.mxu0 %v8839_v20 }
 0xa80   : > { %3776 = vst.msk [vmem:[#allocation3 + $0x10] sm:$0xff] %vm3773_vm3, %v3730_v51  ;;  %v6843_v44 = vmul.f32 %v9333_v31, %v13185_v33  ;;  %8659 = vmatpush3.bf16.msra.mxu1 %v8839_v20 }
 0xa81   : > { %6897 = vrot.lane.b32.xlu1 %v6857_v9, %s9608_s13  ;;  %v6855_v43 = vpack.c.bf16 %v6830_v36, %v6829_v39  ;;  %v14145_v9 = vld [vmem:[#allocation157_spill] sm:$0xff] }
 0xa82   : > { %v9335_v0 = vpop.eup %9334  ;;  %v6277_v21 = vpop.xlane.xlu0 %6276 }
 0xa83   : > { %9340 = vrcp.f32 %v6277_v21  ;;  %6893 = vrot.lane.b32.xlu0 %v6855_v43, %s9608_s13  ;;  %v6844_v46 = vmul.f32 %v9335_v0, %v13191_v27  ;;  %v9337_v41 = vpop.eup %9336 }
 0xa84   : > { %v6841_v58 = vmul.f32 %v9337_v41, %v13189_v49 }
 0xa85   : > { %6895 = vrot.lane.b32.xlu1 %v6856_v62, %s9608_s13  ;;  %v6862_v30 = vpack.c.bf16 %v6844_v46, %v6843_v44 }
 0xa86   : > { %v9339_v26 = vpop.eup %9338  ;;  %v6271_v22 = vpop.xlane.xlu0 %6270 }
 0xa87   : > { %9342 = vrcp.f32 %v6271_v22  ;;  %6907 = vrot.lane.b32.xlu0 %v6862_v30, %s9608_s13  ;;  %v6842_v33 = vmul.f32 %v9339_v26, %v13195_v47 }
 0xa89   : > { %6885 = vrot.lane.b32.xlu1 %v6851_v60, %s9608_s13  ;;  %v6861_v27 = vpack.c.bf16 %v6842_v33, %v6841_v58  ;;  %v14137_v60 = vpack.c.bf16 %v14135_v5, %v14136_v14 }
 0xa8a   : > { %v3750_v16 = vpop.permute.xlu0 %3749 }
 0xa8b   : > { %3786 = vst.msk [vmem:[#allocation3 + $0x60] sm:$0xff] %vm3773_vm3, %v3750_v16  ;;  %6905 = vrot.lane.b32.xlu0 %v6861_v27, %s9608_s13 }
 0xa8d   : > { %v9341_v59 = vpop.eup %9340  ;;  %6887 = vrot.lane.b32.xlu1 %v6852_v52, %s9608_s13  ;;  %v14141_v52 = vld [vmem:[#allocation45_spill] sm:$0xff] }
 0xa8e   : > { %v3752_v49 = vpop.permute.xlu0 %3751  ;;  %v13284_v3 = vmul.f32 %v9341_v59, %v8618_v8  ;;  %v14143_v48 = vpack.c.bf16 %v14141_v52, %v14142_v24  ;;  %v14144_v8 = vld [vmem:[#allocation44_spill] sm:$0xff] }
 0xa8f   : > { %3787 = vst.msk [vmem:[#allocation3 + $0x68] sm:$0xff] %vm3773_vm3, %v3752_v49  ;;  %v14146_v63 = vpack.c.bf16 %v14144_v8, %v14145_v9 }
 0xa91   : > { %v9343_v47 = vpop.eup %9342  ;;  %3733 = vrot.lane.b32.xlu1 %v14137_v60, %s9606_s30 }
 0xa92   : > { %v5328_v1 = vpop.permute.xlu0 %5327  ;;  %v6845_v15 = vmul.f32 %v9343_v47, %v6770_v40 }
 0xa93   : > { %5364 = vst.msk [vmem:[#allocation3 + $0x60] sm:$0xff] %vm5351_vm4, %v5328_v1 }
 0xa95   : > { %3735 = vrot.lane.b32.xlu1 %v14140_v17, %s9606_s30 }
 0xa96   : > { %v5330_v57 = vpop.permute.xlu0 %5329 }
 0xa97   : > { %5365 = vst.msk [vmem:[#allocation3 + $0x68] sm:$0xff] %vm5351_vm4, %v5330_v57 }
 0xa99   : > { %5311 = vrot.lane.b32.xlu1 %v14143_v48, %s9607_s9 }
 0xa9d   : > { %5313 = vrot.lane.b32.xlu1 %v14146_v63, %s9607_s9 }
 0xaa1   : > { %6889 = vrot.lane.b32.xlu1 %v6853_v54, %s9608_s13  ;;  %v14150_v54 = vpack.c.bf16 %v12733_v50, %v12730_v2 }
 0xaa5   : > { %6891 = vrot.lane.b32.xlu1 %v6854_v19, %s9608_s13  ;;  %v14148_v19 = vld [vmem:[#allocation89_spill] sm:$0xff] }
 0xaa6   : > { %v14149_v23 = vpack.c.bf16 %v14147_v4, %v14148_v19 }
 0xab0   : > { %v6256_v40 = vpop.xlane.xlu1 %6255 }
 0xab1   : > { %9344 = vrcp.f32 %v6256_v40  ;;  %v13382_v40 = vld [vmem:[%s13543_s6] ss:$0 sm:$0xff] }
 0xab4   : > { %v6250_v18 = vpop.xlane.xlu1 %6249 }
 0xab5   : > { %9346 = vrcp.f32 %v6250_v18 }
 0xab8   : > { %v3732_v37 = vpop.permute.xlu1 %3731 }
 0xab9   : > { %3777 = vst.msk [vmem:[#allocation3 + $0x18] sm:$0xff] %vm3773_vm3, %v3732_v37 }
 0xabb   : > { %v9345_v34 = vpop.eup %9344 }
 0xabc   : > { %v6840_v32 = vmul.f32 %v9345_v34, %v13208_v7 }
 0xabe   : > { %v6860_v55 = vpack.c.bf16 %v6840_v32, %v13202_v12  ;;  %v14151_v12 = vpack.c.bf16 %v12712_v28, %v12709_v29 }
 0xabf   : > { %v9347_v53 = vpop.eup %9346 }
 0xac0   : > { %6903 = vrot.lane.b32.xlu0 %v6860_v55, %s9608_s13  ;;  %v6838_v11 = vmul.f32 %v9347_v53, %v13211_v6 }
 0xac2   : > { %v6859_v61 = vpack.c.bf16 %v6838_v11, %v13206_v45 }
 0xac4   : > { %6901 = vrot.lane.b32.xlu0 %v6859_v61, %s9608_s13 }
 0xac8   : > { %3755 = vrot.lane.b32.xlu0 %v14149_v23, %s9606_s30 }
 0xacc   : > { %5331 = vrot.lane.b32.xlu0 %v14150_v54, %s9607_s9 }
 0xad0   : > { %5333 = vrot.lane.b32.xlu0 %v14151_v12, %s9607_s9  ;;  %s13483_s9 = scalar_lea.hbm %s13544_s7, %s7743_s10 }
 0xae9   : > { %v6280_v7 = vpop.xlane.xlu1 %6279  ;;  %v6900_v45 = vpop.permute.xlu0 %6899 }
 0xaea   : > { %9348 = vrcp.f32 %v6280_v7  ;;  %6939 = vst.msk [vmem:[#allocation3 + $0x48] sm:$0xff] %vm6929_vm5, %v6900_v45 }
 0xaed   : > { %v6274_v6 = vpop.xlane.xlu1 %6273  ;;  %v3754_v10 = vpop.permute.xlu0 %3753 }
 0xaee   : > { %9350 = vrcp.f32 %v6274_v6  ;;  %3788 = vst.msk [vmem:[#allocation3 + $0x70] sm:$0xff] %vm3773_vm3, %v3754_v10 }
 0xaf1   : > { %v5308_v62 = vpop.permute.xlu1 %5307  ;;  %v6955_v16 = vld [vmem:[#allocation3 + $0x48] sm:$0xff] }
 0xaf2   : > { %5354 = vst.msk [vmem:[#allocation3 + $0x10] sm:$0xff] %vm5351_vm4, %v5308_v62 }
 0xaf4   : > { %v9349_v2 = vpop.eup %9348 }
 0xaf5   : > { %v5310_v50 = vpop.permute.xlu1 %5309  ;;  %v6894_v25 = vpop.permute.xlu0 %6893  ;;  %v6848_v29 = vmul.f32 %v9349_v2, %v13244_v35 }
 0xaf6   : > { %5355 = vst.msk [vmem:[#allocation3 + $0x18] sm:$0xff] %vm5351_vm4, %v5310_v50 }
 0xaf7   : > { %6936 = vst.msk [vmem:[#allocation3 + $0x30] sm:$0xff] %vm6929_vm5, %v6894_v25  ;;  %v6864_v28 = vpack.c.bf16 %v6848_v29, %v13284_v3 }
 0xaf8   : > { %v9351_v56 = vpop.eup %9350 }
 0xaf9   : > { %v6884_v39 = vpop.permute.xlu1 %6883  ;;  %v6908_v51 = vpop.permute.xlu0 %6907  ;;  %v6846_v36 = vmul.f32 %v9351_v56, %v13251_v38 }
 0xafa   : > { %6931 = vst.msk [vmem:[#allocation3 + $0x8] sm:$0xff] %vm6929_vm5, %v6884_v39  ;;  %6943 = vst.msk [vmem:[#allocation3 + $0x68] sm:$0xff] %vm6929_vm5, %v6908_v51 }
 0xafb   : > { %v6863_v31 = vpack.c.bf16 %v6846_v36, %v6845_v15 }
 0xafd   : > { %v6882_v43 = vpop.permute.xlu1 %6881  ;;  %6909 = vrot.lane.b32.xlu0 %v6863_v31, %s9608_s13  ;;  %v6906_v35 = vpop.permute.xlu0 %6905 }
 0xafe   : > { %v6952_v0 = vld [vmem:[#allocation3 + $0x30] sm:$0xff]  ;;  %6930 = vst.msk [vmem:[#allocation3] sm:$0xff] %vm6929_vm5, %v6882_v43  ;;  %6942 = vst.msk [vmem:[#allocation3 + $0x60] sm:$0xff] %vm6929_vm5, %v6906_v35 }
 0xaff   : > { %8636 = vmatprep.mubr.msk.bf16.mxu1 %vm480_vm0, %v6952_v0 }
 0xb01   : > { %v6898_v21 = vpop.permute.xlu1 %6897  ;;  %6911 = vrot.lane.b32.xlu0 %v6864_v28, %s9608_s13  ;;  %v6947_v44 = vld [vmem:[#allocation3 + $0x8] sm:$0xff]  ;;  %s9511_s13 = scalar_lea.vmem %s13487_s22, 2048 }
 0xb02   : > { %6938 = vst.msk [vmem:[#allocation3 + $0x40] sm:$0xff] %vm6929_vm5, %v6898_v21  ;;  %v6959_v24 = vld [vmem:[#allocation3 + $0x68] sm:$0xff]  ;;  %p9512_p10 = scmp.ne.s32.totalorder %s13487_s22, %s9511_s13  ;;  %p9519_p1 = scmp.lt.s32.totalorder %s9517_s19, %s9511_s13 }
 0xb04   : > { %p9513_p3 = pnand %p9512_p10, %p9802_p5  ;;  %p9520_p2 = por %p9519_p1, %p9518_p12 }
 0xb05   : > { %v6896_v38 = vpop.permute.xlu1 %6895  ;;  %v6946_v20 = vld [vmem:[#allocation3] sm:$0xff] }
 0xb06   : > { %6937 = vst.msk [vmem:[#allocation3 + $0x38] sm:$0xff] %vm6929_vm5, %v6896_v38  ;;  %8624 = vmatprep.mubr.msk.bf16.mxu0 %vm480_vm0, %v6946_v20  ;;  %v6958_v57 = vld [vmem:[#allocation3 + $0x60] sm:$0xff]  ;;  %p9514_p7 = pneg %p9513_p3 }
 0xb07   : > { %8625 = vmatmul.mubr.msk.bf16.vlgmr.msra.gmra.mrb[156].mxu0 %vm480_vm0, %v6947_v44 }
 0xb08   : > { %p9521_p4 = pnand %p9520_p2, %p9514_p7 }
 0xb09   : > { %v6886_v46 = vpop.permute.xlu1 %6885  ;;  %v6954_v26 = vld [vmem:[#allocation3 + $0x40] sm:$0xff] }
 0xb0a   : > { %6932 = vst.msk [vmem:[#allocation3 + $0x10] sm:$0xff] %vm6929_vm5, %v6886_v46 }
 0xb0d   : > { %v6888_v41 = vpop.permute.xlu1 %6887  ;;  %v6953_v30 = vld [vmem:[#allocation3 + $0x38] sm:$0xff] }
 0xb0e   : > { %6933 = vst.msk [vmem:[#allocation3 + $0x18] sm:$0xff] %vm6929_vm5, %v6888_v41  ;;  %8637 = vmatmul.mubr.msk.bf16.vlgmr.msra.gmra.mrb[132].mxu1 %vm480_vm0, %v6953_v30 }
 0xb0f   : > { %8640 = vmatprep.mubr.msk.bf16.mxu1 %vm480_vm0, %v6954_v26 }
 0xb11   : > { %v3734_v22 = vpop.permute.xlu1 %3733  ;;  %v6948_v58 = vld [vmem:[#allocation3 + $0x10] sm:$0xff] }
 0xb12   : > { %3778 = vst.msk [vmem:[#allocation3 + $0x20] sm:$0xff] %vm3773_vm3, %v3734_v22  ;;  %8628 = vmatprep.mubr.msk.bf16.mxu0 %vm480_vm0, %v6948_v58 }
 0xb15   : > { %v3736_v33 = vpop.permute.xlu1 %3735  ;;  %v6949_v27 = vld [vmem:[#allocation3 + $0x18] sm:$0xff] }
 0xb16   : > { %3779 = vst.msk [vmem:[#allocation3 + $0x28] sm:$0xff] %vm3773_vm3, %v3736_v33  ;;  %8629 = vmatmul.mubr.msk.bf16.gmra.mrb[160].mxu0 %vm480_vm0, %v6949_v27  ;;  %8641 = vmatmul.mubr.msk.bf16.gmra.mrb[136].mxu1 %vm480_vm0, %v6955_v16 }
 0xb19   : > { %v5312_v59 = vpop.permute.xlu1 %5311 }
 0xb1a   : > { %5356 = vst.msk [vmem:[#allocation3 + $0x20] sm:$0xff] %vm5351_vm4, %v5312_v59 }
 0xb1d   : > { %v5314_v49 = vpop.permute.xlu1 %5313 }
 0xb1e   : > { %5357 = vst.msk [vmem:[#allocation3 + $0x28] sm:$0xff] %vm5351_vm4, %v5314_v49 }
 0xb21   : > { %v6890_v3 = vpop.permute.xlu1 %6889 }
 0xb22   : > { %6934 = vst.msk [vmem:[#allocation3 + $0x20] sm:$0xff] %vm6929_vm5, %v6890_v3 }
 0xb25   : > { %v6892_v47 = vpop.permute.xlu1 %6891 }
 0xb26   : > { %6935 = vst.msk [vmem:[#allocation3 + $0x28] sm:$0xff] %vm6929_vm5, %v6892_v47 }
 0xb29   : > { %v6950_v5 = vld [vmem:[#allocation3 + $0x20] sm:$0xff] }
 0xb2a   : > { %8632 = vmatprep.mubr.msk.bf16.mxu0 %vm480_vm0, %v6950_v5 }
 0xb2d   : > { %v6951_v14 = vld [vmem:[#allocation3 + $0x28] sm:$0xff] }
 0xb2e   : > { %8633 = vmatmul.mubr.msk.bf16.gmra.mrb[164].mxu0 %vm480_vm0, %v6951_v14 }
 0xb32   : > { %v6904_v60 = vpop.permute.xlu0 %6903 }
 0xb33   : > { %6941 = vst.msk [vmem:[#allocation3 + $0x58] sm:$0xff] %vm6929_vm5, %v6904_v60 }
 0xb36   : > { %v6902_v1 = vpop.permute.xlu0 %6901 }
 0xb37   : > { %6940 = vst.msk [vmem:[#allocation3 + $0x50] sm:$0xff] %vm6929_vm5, %v6902_v1 }
 0xb3a   : > { %v3756_v15 = vpop.permute.xlu0 %3755  ;;  %v6957_v17 = vld [vmem:[#allocation3 + $0x58] sm:$0xff] }
 0xb3b   : > { %3789 = vst.msk [vmem:[#allocation3 + $0x78] sm:$0xff] %vm3773_vm3, %v3756_v15 }
 0xb3e   : > { %v5332_v13 = vpop.permute.xlu0 %5331  ;;  %v6956_v42 = vld [vmem:[#allocation3 + $0x50] sm:$0xff] }
 0xb3f   : > { %5366 = vst.msk [vmem:[#allocation3 + $0x70] sm:$0xff] %vm5351_vm4, %v5332_v13  ;;  %8644 = vmatprep.mubr.msk.bf16.mxu1 %vm480_vm0, %v6956_v42 }
 0xb40   : > { %8645 = vmatmul.mubr.msk.bf16.gmra.mrb[140].mxu1 %vm480_vm0, %v6957_v17 }
 0xb41   : > { %8648 = vmatprep.mubr.msk.bf16.mxu1 %vm480_vm0, %v6958_v57 }
 0xb42   : > { %v5334_v52 = vpop.permute.xlu0 %5333 }
 0xb43   : > { %5367 = vst.msk [vmem:[#allocation3 + $0x78] sm:$0xff] %vm5351_vm4, %v5334_v52 }
 0xb48   : > { %8649 = vmatmul.mubr.msk.bf16.gmra.mrb[144].mxu1 %vm480_vm0, %v6959_v24 }
 0xb6f   : > { %v6910_v48 = vpop.permute.xlu0 %6909 }
 0xb70   : > { %6944 = vst.msk [vmem:[#allocation3 + $0x70] sm:$0xff] %vm6929_vm5, %v6910_v48 }
 0xb73   : > { %v6912_v8 = vpop.permute.xlu0 %6911 }
 0xb74   : > { %6945 = vst.msk [vmem:[#allocation3 + $0x78] sm:$0xff] %vm6929_vm5, %v6912_v8 }
 0xb77   : > { %v6960_v9 = vld [vmem:[#allocation3 + $0x70] sm:$0xff] }
 0xb78   : > { %8652 = vmatprep.mubr.msk.bf16.mxu1 %vm480_vm0, %v6960_v9 }
 0xb7b   : > { %v6961_v63 = vld [vmem:[#allocation3 + $0x78] sm:$0xff] }
 0xb7c   : > { %8653 = vmatmul.mubr.msk.bf16.gmra.mrb[148].mxu1 %vm480_vm0, %v6961_v63 }
 0xbda   : > { %v8626_v18 = vpop.f32.mrb[156].mxu0 }
 0xbdb   : > { %v7076_v37 = vadd.f32 %v8626_v18, %v13382_v40  ;;  %v7067_v34 = vpop.f32.mrb[157].mxu0 }
 0xbdc   : > { %v7068_v32 = vadd.f32 %v13382_v40, %v7067_v34  ;;  %v8627_v55 = vpop.f32.mrb[158].mxu0 }
 0xbdd   : > { %v7712_v53 = vpack.c.bf16 %v7076_v37, %v7076_v37  ;;  %v7079_v11 = vadd.f32 %v8627_v55, %v13382_v40  ;;  %v7070_v61 = vpop.f32.mrb[159].mxu0 }
 0xbde   : > { %v7710_v4 = vpack.c.bf16 %v7068_v32, %v7068_v32  ;;  %v7071_v19 = vadd.f32 %v13382_v40, %v7070_v61 }
 0xbdf   : > { %7325 = vst.msk [vmem:[%s13390_s11 + $0x8] sm:$0xf] %vm7322_vm6, %v7712_v53  ;;  %v7713_v23 = vpack.c.bf16 %v7079_v11, %v7079_v11 }
 0xbe0   : > { %7323 = vst.msk [vmem:[%s13390_s11] sm:$0xf] %vm7322_vm6, %v7710_v4  ;;  %v7711_v54 = vpack.c.bf16 %v7071_v19, %v7071_v19 }
 0xbe1   : > { %7326 = vst.msk [vmem:[%s13390_s11 + $0xc] sm:$0xf] %vm7322_vm6, %v7713_v23  ;;  %v8638_v12 = vpop.f32.mrb[132].mxu1 }
 0xbe2   : > { %7324 = vst.msk [vmem:[%s13390_s11 + $0x4] sm:$0xf] %vm7322_vm6, %v7711_v54  ;;  %v7124_v7 = vadd.f32 %v8638_v12, %v13382_v40  ;;  %v7115_v45 = vpop.f32.mrb[133].mxu1 }
 0xbe3   : > { %v7116_v6 = vadd.f32 %v13382_v40, %v7115_v45  ;;  %v8639_v10 = vpop.f32.mrb[134].mxu1 }
 0xbe4   : > { %v7724_v62 = vpack.c.bf16 %v7124_v7, %v7124_v7  ;;  %v7127_v2 = vadd.f32 %v8639_v10, %v13382_v40  ;;  %v7118_v50 = vpop.f32.mrb[135].mxu1 }
 0xbe5   : > { %v7722_v25 = vpack.c.bf16 %v7116_v6, %v7116_v6  ;;  %v7119_v29 = vadd.f32 %v13382_v40, %v7118_v50 }
 0xbe6   : > { %7337 = vst.msk [vmem:[%s13390_s11 + $0x38] sm:$0xf] %vm7322_vm6, %v7724_v62  ;;  %v7725_v28 = vpack.c.bf16 %v7127_v2, %v7127_v2 }
 0xbe7   : > { %7335 = vst.msk [vmem:[%s13390_s11 + $0x30] sm:$0xf] %vm7322_vm6, %v7722_v25  ;;  %v7723_v56 = vpack.c.bf16 %v7119_v29, %v7119_v29 }
 0xbe8   : > { %7338 = vst.msk [vmem:[%s13390_s11 + $0x3c] sm:$0xf] %vm7322_vm6, %v7725_v28 }
 0xbe9   : > { %7336 = vst.msk [vmem:[%s13390_s11 + $0x34] sm:$0xf] %vm7322_vm6, %v7723_v56  ;;  %v8630_v39 = vpop.f32.mrb[160].mxu0  ;;  %v8642_v51 = vpop.f32.mrb[136].mxu1 }
 0xbea   : > { %v7092_v36 = vadd.f32 %v8630_v39, %v13382_v40  ;;  %v7140_v31 = vadd.f32 %v8642_v51, %v13382_v40  ;;  %v7083_v43 = vpop.f32.mrb[161].mxu0  ;;  %v7131_v35 = vpop.f32.mrb[137].mxu1 }
 0xbeb   : > { %v7084_v0 = vadd.f32 %v13382_v40, %v7083_v43  ;;  %v7132_v21 = vadd.f32 %v13382_v40, %v7131_v35  ;;  %v8631_v38 = vpop.f32.mrb[162].mxu0  ;;  %v8643_v20 = vpop.f32.mrb[138].mxu1 }
 0xbec   : > { %v7716_v44 = vpack.c.bf16 %v7092_v36, %v7092_v36  ;;  %v7728_v46 = vpack.c.bf16 %v7140_v31, %v7140_v31  ;;  %v7095_v41 = vadd.f32 %v8631_v38, %v13382_v40  ;;  %v7143_v30 = vadd.f32 %v8643_v20, %v13382_v40  ;;  %v7086_v26 = vpop.f32.mrb[163].mxu0  ;;  %v7134_v22 = vpop.f32.mrb[139].mxu1 }
 0xbed   : > { %v7714_v58 = vpack.c.bf16 %v7084_v0, %v7084_v0  ;;  %v7726_v33 = vpack.c.bf16 %v7132_v21, %v7132_v21  ;;  %v7087_v27 = vadd.f32 %v13382_v40, %v7086_v26  ;;  %v7135_v16 = vadd.f32 %v13382_v40, %v7134_v22 }
 0xbee   : > { %7329 = vst.msk [vmem:[%s13390_s11 + $0x18] sm:$0xf] %vm7322_vm6, %v7716_v44  ;;  %7341 = vst.msk [vmem:[%s13390_s11 + $0x48] sm:$0xf] %vm7322_vm6, %v7728_v46  ;;  %v7717_v59 = vpack.c.bf16 %v7095_v41, %v7095_v41  ;;  %v7729_v49 = vpack.c.bf16 %v7143_v30, %v7143_v30 }
 0xbef   : > { %7327 = vst.msk [vmem:[%s13390_s11 + $0x10] sm:$0xf] %vm7322_vm6, %v7714_v58  ;;  %7339 = vst.msk [vmem:[%s13390_s11 + $0x40] sm:$0xf] %vm7322_vm6, %v7726_v33  ;;  %v7715_v3 = vpack.c.bf16 %v7087_v27, %v7087_v27  ;;  %v7727_v47 = vpack.c.bf16 %v7135_v16, %v7135_v16 }
 0xbf0   : > { %7330 = vst.msk [vmem:[%s13390_s11 + $0x1c] sm:$0xf] %vm7322_vm6, %v7717_v59  ;;  %7342 = vst.msk [vmem:[%s13390_s11 + $0x4c] sm:$0xf] %vm7322_vm6, %v7729_v49 }
 0xbf1   : > { %7328 = vst.msk [vmem:[%s13390_s11 + $0x14] sm:$0xf] %vm7322_vm6, %v7715_v3  ;;  %7340 = vst.msk [vmem:[%s13390_s11 + $0x44] sm:$0xf] %vm7322_vm6, %v7727_v47 }
 0xc01   : > { %v8634_v5 = vpop.f32.mrb[164].mxu0 }
 0xc02   : > { %v7108_v14 = vadd.f32 %v8634_v5, %v13382_v40  ;;  %v7099_v60 = vpop.f32.mrb[165].mxu0 }
 0xc03   : > { %v7100_v1 = vadd.f32 %v13382_v40, %v7099_v60  ;;  %v8635_v15 = vpop.f32.mrb[166].mxu0 }
 0xc04   : > { %v7720_v13 = vpack.c.bf16 %v7108_v14, %v7108_v14  ;;  %v7111_v42 = vadd.f32 %v8635_v15, %v13382_v40  ;;  %v7102_v17 = vpop.f32.mrb[167].mxu0 }
 0xc05   : > { %v7718_v57 = vpack.c.bf16 %v7100_v1, %v7100_v1  ;;  %v7103_v52 = vadd.f32 %v13382_v40, %v7102_v17 }
 0xc06   : > { %7333 = vst.msk [vmem:[%s13390_s11 + $0x28] sm:$0xf] %vm7322_vm6, %v7720_v13  ;;  %v7721_v24 = vpack.c.bf16 %v7111_v42, %v7111_v42 }
 0xc07   : > { %7331 = vst.msk [vmem:[%s13390_s11 + $0x20] sm:$0xf] %vm7322_vm6, %v7718_v57  ;;  %v7719_v48 = vpack.c.bf16 %v7103_v52, %v7103_v52 }
 0xc08   : > { %7334 = vst.msk [vmem:[%s13390_s11 + $0x2c] sm:$0xf] %vm7322_vm6, %v7721_v24 }
 0xc09   : > { %7332 = vst.msk [vmem:[%s13390_s11 + $0x24] sm:$0xf] %vm7322_vm6, %v7719_v48 }
 0xc13   : > { %v8646_v8 = vpop.f32.mrb[140].mxu1 }
 0xc14   : > { %v7156_v9 = vadd.f32 %v8646_v8, %v13382_v40  ;;  %v7147_v63 = vpop.f32.mrb[141].mxu1 }
 0xc15   : > { %v7148_v18 = vadd.f32 %v13382_v40, %v7147_v63  ;;  %v8647_v37 = vpop.f32.mrb[142].mxu1 }
 0xc16   : > { %v7732_v34 = vpack.c.bf16 %v7156_v9, %v7156_v9  ;;  %v7159_v32 = vadd.f32 %v8647_v37, %v13382_v40  ;;  %v7150_v55 = vpop.f32.mrb[143].mxu1 }
 0xc17   : > { %v7730_v53 = vpack.c.bf16 %v7148_v18, %v7148_v18  ;;  %v7151_v11 = vadd.f32 %v13382_v40, %v7150_v55 }
 0xc18   : > { %7345 = vst.msk [vmem:[%s13390_s11 + $0x58] sm:$0xf] %vm7322_vm6, %v7732_v34  ;;  %v7733_v61 = vpack.c.bf16 %v7159_v32, %v7159_v32 }
 0xc19   : > { %7343 = vst.msk [vmem:[%s13390_s11 + $0x50] sm:$0xf] %vm7322_vm6, %v7730_v53  ;;  %v7731_v4 = vpack.c.bf16 %v7151_v11, %v7151_v11 }
 0xc1a   : > { %7346 = vst.msk [vmem:[%s13390_s11 + $0x5c] sm:$0xf] %vm7322_vm6, %v7733_v61 }
 0xc1b   : > { %7344 = vst.msk [vmem:[%s13390_s11 + $0x54] sm:$0xf] %vm7322_vm6, %v7731_v4  ;;  %v8650_v19 = vpop.f32.mrb[144].mxu1 }
 0xc1c   : > { %v7172_v23 = vadd.f32 %v8650_v19, %v13382_v40  ;;  %v7163_v54 = vpop.f32.mrb[145].mxu1 }
 0xc1d   : > { %v7164_v12 = vadd.f32 %v13382_v40, %v7163_v54  ;;  %v8651_v7 = vpop.f32.mrb[146].mxu1 }
 0xc1e   : > { %v7736_v45 = vpack.c.bf16 %v7172_v23, %v7172_v23  ;;  %v7175_v6 = vadd.f32 %v8651_v7, %v13382_v40  ;;  %v7166_v10 = vpop.f32.mrb[147].mxu1 }
 0xc1f   : > { %v7734_v62 = vpack.c.bf16 %v7164_v12, %v7164_v12  ;;  %v7167_v2 = vadd.f32 %v13382_v40, %v7166_v10 }
 0xc20   : > { %7349 = vst.msk [vmem:[%s13390_s11 + $0x68] sm:$0xf] %vm7322_vm6, %v7736_v45  ;;  %v7737_v50 = vpack.c.bf16 %v7175_v6, %v7175_v6 }
 0xc21   : > { %7347 = vst.msk [vmem:[%s13390_s11 + $0x60] sm:$0xf] %vm7322_vm6, %v7734_v62  ;;  %v7735_v25 = vpack.c.bf16 %v7167_v2, %v7167_v2 }
 0xc22   : > { %7350 = vst.msk [vmem:[%s13390_s11 + $0x6c] sm:$0xf] %vm7322_vm6, %v7737_v50 }
 0xc23   : > { %7348 = vst.msk [vmem:[%s13390_s11 + $0x64] sm:$0xf] %vm7322_vm6, %v7735_v25 }
 0xc4f   : > { %v8654_v29 = vpop.f32.mrb[148].mxu1 }
 0xc50   : > { %v7188_v28 = vadd.f32 %v8654_v29, %v13382_v40  ;;  %v7179_v56 = vpop.f32.mrb[149].mxu1 }
 0xc51   : > { %v7180_v39 = vadd.f32 %v13382_v40, %v7179_v56  ;;  %v8655_v51 = vpop.f32.mrb[150].mxu1 }
 0xc52   : > { %v7740_v36 = vpack.c.bf16 %v7188_v28, %v7188_v28  ;;  %v7191_v31 = vadd.f32 %v8655_v51, %v13382_v40  ;;  %v7182_v43 = vpop.f32.mrb[151].mxu1 }
 0xc53   : > { %v7738_v35 = vpack.c.bf16 %v7180_v39, %v7180_v39  ;;  %v7183_v0 = vadd.f32 %v13382_v40, %v7182_v43 }
 0xc54   : > { %7353 = vst.msk [vmem:[%s13390_s11 + $0x78] sm:$0xf] %vm7322_vm6, %v7740_v36  ;;  %v7741_v21 = vpack.c.bf16 %v7191_v31, %v7191_v31 }
 0xc55   : > { %7351 = vst.msk [vmem:[%s13390_s11 + $0x70] sm:$0xf] %vm7322_vm6, %v7738_v35  ;;  %v7739_v38 = vpack.c.bf16 %v7183_v0, %v7183_v0 }
 0xc56   : > { %7354 = vst.msk [vmem:[%s13390_s11 + $0x7c] sm:$0xf] %vm7322_vm6, %v7741_v21 }
 0xc57   : > { %7352 = vst.msk [vmem:[%s13390_s11 + $0x74] sm:$0xf] %vm7322_vm6, %v7739_v38 }
 0xc58   : > { %9524 = shalt.err (!%p9521_p4)
}
 0xc59   : > { %s9525_s12 = scalar_lea.hbm %s13483_s9, 2048  ;;  %s9529_s11 = scalar_lea.hbm %s13544_s7, 4096 }
 0xc5a   : > { %p9526_p9 = scmp.ne.s32.totalorder %s13483_s9, %s9525_s12  ;;  %p9530_p8 = scmp.lt.u32.totalorder %s13483_s9, %s13544_s7 }
 0xc5b   : > { %p9531_p13 = scmp.lt.u32.totalorder %s9529_s11, %s9525_s12  ;;  %p9533_p10 = scmp.lt.u32.totalorder %s9525_s12, %s13483_s9 }
 0xc5c   : > { %p9527_p0 = pnand %p9526_p9, %p9802_p5 }
 0xc5d   : > { %p9532_p6 = por %p9531_p13, %p9530_p8 }
 0xc5e   : > { %p9528_p11 = pneg %p9527_p0 }
 0xc5f   : > { %p9534_p3 = por %p9533_p10, %p9532_p6 }
 0xc61   : > { %p9535_p7 = pnand %p9534_p3, %p9528_p11 }
 0xc63   : > { %9538 = shalt.err (!%p9535_p7)
}
 0xc64   : > { %s9610_s30 = smov 4  }
 0xc65   : > { %8738 = dma.vmem_to_hbm [thread:$0]  (%p9802_p5), %s13487_s22, 2048, %s13483_s9, %s7356_s28, %s9596_s15, %s9596_s15, %s9610_s30  }
 0xc66 PF: > { %s14152_s13 = sld [smem:[#allocation17_spill]]  ;;  %s7385_s14 = sand.u32 1, %s9573_s24  }
 0xc67   : > { %p14154_p1 = scmp.ge.s32.totalorder %s9585_s27, 2  ;;  %s7386_s8 = scalar_lea.sflag [#allocation6], %s7385_s14 }
 0xc6c   : > { %p14153_p12 = scmp.ne.s32.totalorder %s14152_s13, 0 }
 0xc6e   : > { %p8755_p2 = pnand %p14154_p1, %p14153_p12 }
 0xc70   : > { %9568 = dma.done.wait (!%p8755_p2), %s7386_s8, 2048  }
 0xc71   : > { %9570 = vsyncadd (!%p8755_p2), %s7386_s8, 4294965248  ;;  %p22_p4 = scmp.ge.s32.totalorder %s9788_s18, 4   ;;  %s14155_s24 = smov %s9577_s25 }
 0xc72   : > { %s14156_s25 = smov %s9581_s26  ;;  %s14157_s26 = smov %s9798_s21 }
 0xc73   : > { %s14158_s27 = smov %s9788_s18  ;;  %24 = sbr.rel (!%p22_p4) target bundleno = 7 (0x7), region = 108 }
 0xc7a   :  { %7391 = vsyncpa [#allocation5], 1 }
 0xc7b   :  { %7393 = vsyncpa [#allocation5 + $0x1], 1 }
 0xc7c   :  { %7394 = vsyncpa [#allocation8], 1 }
 0xc7d   :  { %7395 = vsyncpa [#allocation11], 1 }
 0xc7e   :  { %7396 = vsyncpa [#allocation6], 1 }
 0xc7f   :  { %7398 = vsyncpa [#allocation6 + $0x1], 1 }

</bundles_post_ra>
